<compile_context>
chip_gen: v7x
topology: tpu7x:2x2x1
jax: 0.10.0
libtpu: 0.0.40
codegen_flags: <defaults>
</compile_context>

<pallas_src>
import jax
import jax.numpy as jnp
from jax.experimental import pallas as pl
from jax.experimental.pallas import tpu as pltpu

SHAPENUM = 79
BN_EPS = 1e-5
TILE_N = 512                                   # points per grid step

# Unpadded (PyTorch) head-input layout: [onehot 79 | m1 64 | m2 64 | m3 64 | m4 128 | m5 1024]
FC_IN = SHAPENUM + 64 + 64 + 64 + 128 + 1024   # 1423
# Padded, 128-lane-aligned layout used inside the kernel:
#   [onehot 0:128 | m1 128:192 | pad | m2 256:320 | pad | m3 384:448 | pad | m4 512:640 | m5 640:1664]
ONEHOT_PAD = 128
FC_IN_PAD = 1664                               # 13 * 128
OUT_PAD = 16                                   # fc_out: 9 -> 16 lanes (zero-padded cols)

_SRC_OFF = (0, 79, 143, 207, 271, 399)         # offsets in the unpadded 1423 layout
_DST_OFF = (0, 128, 256, 384, 512, 640)        # offsets in the padded 1664 layout
_WIDTHS = (79, 64, 64, 64, 128, 1024)


# ----------------------------------------------------------------------------
# Fused kernel: per-point embedding MLP + deferred max-pool + FC head.
# Grid = (batch, point_tiles); point axis is the reduction ("arbitrary") axis.
# ----------------------------------------------------------------------------
def _posenet_kernel(x_ref, c_ref, oh_ref,
                    ew1, eb1, ew2, eb2, ew3, eb3, ew4, eb4, ew5, eb5,
                    fw1, fb1, fw2, fb2, fw3, fb3, fw4, fb4,
                    out_ref,
                    acc1, acc2, acc3, acc4, acc5):
    n = pl.program_id(1)
    n_last = pl.num_programs(1) - 1

    # In-kernel centering: c_ref holds (0,0,0, cx,cy,cz), so subtracting the
    # whole 6-wide row centers only the xyz channels.  f32 subtract, bf16 MXU.
    x = x_ref[0] - c_ref[0]                                    # (TILE_N, 6) f32

    def lin_relu(h, w_ref, b_ref):
        y = jnp.dot(h.astype(jnp.bfloat16), w_ref[...],
                    preferred_element_type=jnp.float32) + b_ref[...]
        return jnp.maximum(y, 0.0)

    h1 = lin_relu(x,  ew1, eb1)                                # (TILE_N, 64)
    h2 = lin_relu(h1, ew2, eb2)                                # (TILE_N, 64)
    h3 = lin_relu(h2, ew3, eb3)                                # (TILE_N, 64)
    h4 = lin_relu(h3, ew4, eb4)                                # (TILE_N, 128)
    h5 = lin_relu(h4, ew5, eb5)                                # (TILE_N, 1024)

    def partial_max(h):
        # Tree-reduce the point (sublane) axis down to 8 rows with elementwise
        # VPU max on 8-aligned slabs; the final cross-sublane XLU reduce is
        # deferred to the last point tile.
        r = h
        rows = TILE_N
        while rows > 8:
            half = rows // 2
            r = jnp.maximum(r[:half, :], r[half:rows, :])
            rows = half
        return r                                               # (8, C) f32

    p1 = partial_max(h1)
    p2 = partial_max(h2)
    p3 = partial_max(h3)
    p4 = partial_max(h4)
    p5 = partial_max(h5)

    @pl.when(n == 0)
    def _():
        acc1[...] = p1
        acc2[...] = p2
        acc3[...] = p3
        acc4[...] = p4
        acc5[...] = p5

    @pl.when(n > 0)
    def _():
        acc1[...] = jnp.maximum(acc1[...], p1)
        acc2[...] = jnp.maximum(acc2[...], p2)
        acc3[...] = jnp.maximum(acc3[...], p3)
        acc4[...] = jnp.maximum(acc4[...], p4)
        acc5[...] = jnp.maximum(acc5[...], p5)

    @pl.when(n == n_last)
    def _():
        # Final cross-sublane max (once per batch element) + fused FC head.
        m1 = jnp.max(acc1[...], axis=0, keepdims=True)         # (1, 64)
        m2 = jnp.max(acc2[...], axis=0, keepdims=True)         # (1, 64)
        m3 = jnp.max(acc3[...], axis=0, keepdims=True)         # (1, 64)
        m4 = jnp.max(acc4[...], axis=0, keepdims=True)         # (1, 128)
        m5 = jnp.max(acc5[...], axis=0, keepdims=True)         # (1, 1024)
        z64 = jnp.zeros((1, 64), jnp.float32)
        feat = jnp.concatenate(
            [oh_ref[0], m1, z64, m2, z64, m3, z64, m4, m5], axis=-1)  # (1, 1664)

        def head(h, w_ref, b_ref):
            return jnp.dot(h.astype(jnp.bfloat16), w_ref[...],
                           preferred_element_type=jnp.float32) + b_ref[...]

        h = jnp.maximum(head(feat, fw1, fb1), 0.0)             # (1, 512)
        h = jnp.maximum(head(h, fw2, fb2), 0.0)                # (1, 256)
        h = jnp.maximum(head(h, fw3, fb3), 0.0)                # (1, 128)
        out_ref[0] = head(h, fw4, fb4)                         # (1, 16); cols 9:16 zero


# ----------------------------------------------------------------------------
# Parameter init (deterministic, BatchNorm folded, padded + bf16 weights).
# ----------------------------------------------------------------------------
def _folded_linear(key, cin, cout, with_bn=True):
    ks = jax.random.split(key, 6)
    w = jax.random.normal(ks[0], (cin, cout), jnp.float32) / jnp.sqrt(float(cin))
    b = 0.05 * jax.random.normal(ks[1], (cout,), jnp.float32)
    if with_bn:
        gamma = 1.0 + 0.1 * jax.random.normal(ks[2], (cout,), jnp.float32)
        beta = 0.1 * jax.random.normal(ks[3], (cout,), jnp.float32)
        mean = 0.1 * jax.random.normal(ks[4], (cout,), jnp.float32)
        var = jax.random.uniform(ks[5], (cout,), jnp.float32, minval=0.5, maxval=1.5)
        s = gamma / jnp.sqrt(var + BN_EPS)
        w = w * s[None, :]
        b = b * s + beta - mean * s
    return w, b.reshape(1, cout)


def init_params(key):
    keys = jax.random.split(key, 9)
    emb_dims = [(6, 64), (64, 64), (64, 64), (64, 128), (128, 1024)]
    emb = [_folded_linear(k, ci, co, with_bn=True)
           for k, (ci, co) in zip(keys[:5], emb_dims)]

    # fc_stack1 in the original 1423-row layout, scattered into the padded
    # 1664-row layout (pad rows are zero, pad feature lanes are zero -> exact).
    w1, b1 = _folded_linear(keys[5], FC_IN, 512, with_bn=True)
    w1p = jnp.zeros((FC_IN_PAD, 512), jnp.float32)
    for so, do, wd in zip(_SRC_OFF, _DST_OFF, _WIDTHS):
        w1p = w1p.at[do:do + wd, :].set(w1[so:so + wd, :])

    w2, b2 = _folded_linear(keys[6], 512, 256, with_bn=True)
    w3, b3 = _folded_linear(keys[7], 256, 128, with_bn=True)
    w4, b4 = _folded_linear(keys[8], 128, 9, with_bn=False)
    w4p = jnp.zeros((128, OUT_PAD), jnp.float32).at[:, :9].set(w4)
    b4p = jnp.zeros((1, OUT_PAD), jnp.float32).at[:, :9].set(b4)

    fc = [(w1p, b1), (w2, b2), (w3, b3), (w4p, b4p)]

    # MXU runs bf16: cast weights; biases (added after f32 accumulation) stay f32.
    emb = [(w.astype(jnp.bfloat16), b) for w, b in emb]
    fc = [(w.astype(jnp.bfloat16), b) for w, b in fc]
    return {"emb": emb, "fc": fc}


# ----------------------------------------------------------------------------
# Forward
# ----------------------------------------------------------------------------
def _to_rot(a, b):
    a = a / jnp.maximum(jnp.linalg.norm(a, axis=-1, keepdims=True), 1e-12)
    b = b - a * jnp.sum(a * b, axis=-1, keepdims=True)
    b = b / jnp.maximum(jnp.linalg.norm(b, axis=-1, keepdims=True), 1e-12)
    c = jnp.cross(a, b)
    return jnp.stack([a, b, c], axis=-1)                       # columns = a, b, c


def posenet_forward(params, x, ids):
    """x: (B, N, 6) float32, ids: (B,) int32  ->  M: (B, 4, 4) float32."""
    B, N, _ = x.shape
    assert N % TILE_N == 0, "point count must be a multiple of TILE_N"

    # xyz bounding-box center: tiny O(B*N) reduction kept as plain-JAX glue;
    # the subtraction itself happens inside the kernel (no centered-x roundtrip).
    xyz = x[..., 3:]
    center = (jnp.max(xyz, axis=-2, keepdims=True)
              + jnp.min(xyz, axis=-2, keepdims=True)) * 0.5    # (B, 1, 3)
    center6 = jnp.concatenate(
        [jnp.zeros((B, 1, 3), jnp.float32), center], axis=-1)  # (B, 1, 6)

    onehot = jax.nn.one_hot(ids, SHAPENUM, dtype=jnp.float32)  # (B, 79)
    onehot_pad = jnp.zeros((B, 1, ONEHOT_PAD), jnp.float32)
    onehot_pad = onehot_pad.at[:, 0, :SHAPENUM].set(onehot)    # (B, 1, 128)

    wb_flat = [t for wb in params["emb"] + params["fc"] for t in wb]

    out16 = pl.pallas_call(
        _posenet_kernel,
        out_shape=jax.ShapeDtypeStruct((B, 1, OUT_PAD), jnp.float32),
        grid_spec=pltpu.PrefetchScalarGridSpec(
            num_scalar_prefetch=0,
            grid=(B, N // TILE_N),
            in_specs=[
                pl.BlockSpec((1, TILE_N, 6), lambda b, n: (b, n, 0)),
                pl.BlockSpec((1, 1, 6), lambda b, n: (b, 0, 0)),
                pl.BlockSpec((1, 1, ONEHOT_PAD), lambda b, n: (b, 0, 0)),
            ] + [pl.BlockSpec(p.shape, lambda b, n: (0, 0)) for p in wb_flat],
            out_specs=pl.BlockSpec((1, 1, OUT_PAD), lambda b, n: (b, 0, 0)),
            scratch_shapes=[pltpu.VMEM((8, 64), jnp.float32),
                            pltpu.VMEM((8, 64), jnp.float32),
                            pltpu.VMEM((8, 64), jnp.float32),
                            pltpu.VMEM((8, 128), jnp.float32),
                            pltpu.VMEM((8, 1024), jnp.float32)]),
        compiler_params=pltpu.CompilerParams(
            dimension_semantics=("parallel", "arbitrary"),
            vmem_limit_bytes=32 * 1024 * 1024),
    )(x, center6, onehot_pad, *wb_flat)

    out9 = out16[:, 0, :9]                                     # (B, 9)

    # Gram-Schmidt rotation + 4x4 assembly: O(B) work, plain JAX glue.
    R = _to_rot(out9[..., :3], out9[..., 3:6])                 # (B, 3, 3)
    M = jnp.zeros((B, 4, 4), jnp.float32)
    M = M.at[:, :3, :3].set(R)
    M = M.at[:, 3, 3].set(1.0)
    M = M.at[:, :3, 3].set(out9[..., 6:] + jnp.squeeze(center, axis=1))
    return M


if __name__ == "__main__":
    key = jax.random.PRNGKey(0)
    kp, kx, ki = jax.random.split(key, 3)

    params = init_params(kp)

    B, N = 2, 1024
    x = jax.random.normal(kx, (B, N, 6), jnp.float32)
    ids = jax.random.randint(ki, (B,), 0, SHAPENUM, jnp.int32)

    M = jax.jit(posenet_forward)(params, x, ids)
    M = jax.block_until_ready(M)
    assert M.shape == (B, 4, 4) and M.dtype == jnp.float32
    assert bool(jnp.all(jnp.isfinite(M)))
    print("KERNEL_OK")
</pallas_src>

<mosaic_0001>
module attributes {stable_mosaic.version = 11 : i64} {
  func.func @_posenet_kernel(%arg0: i32, %arg1: i32, %arg2: memref<1x512x6xf32, #tpu.memory_space<vmem>>, %arg3: memref<1x1x6xf32, #tpu.memory_space<vmem>>, %arg4: memref<1x1x128xf32, #tpu.memory_space<vmem>>, %arg5: memref<6x64xbf16, #tpu.memory_space<vmem>>, %arg6: memref<1x64xf32, #tpu.memory_space<vmem>>, %arg7: memref<64x64xbf16, #tpu.memory_space<vmem>>, %arg8: memref<1x64xf32, #tpu.memory_space<vmem>>, %arg9: memref<64x64xbf16, #tpu.memory_space<vmem>>, %arg10: memref<1x64xf32, #tpu.memory_space<vmem>>, %arg11: memref<64x128xbf16, #tpu.memory_space<vmem>>, %arg12: memref<1x128xf32, #tpu.memory_space<vmem>>, %arg13: memref<128x1024xbf16, #tpu.memory_space<vmem>>, %arg14: memref<1x1024xf32, #tpu.memory_space<vmem>>, %arg15: memref<1664x512xbf16, #tpu.memory_space<vmem>>, %arg16: memref<1x512xf32, #tpu.memory_space<vmem>>, %arg17: memref<512x256xbf16, #tpu.memory_space<vmem>>, %arg18: memref<1x256xf32, #tpu.memory_space<vmem>>, %arg19: memref<256x128xbf16, #tpu.memory_space<vmem>>, %arg20: memref<1x128xf32, #tpu.memory_space<vmem>>, %arg21: memref<128x16xbf16, #tpu.memory_space<vmem>>, %arg22: memref<1x16xf32, #tpu.memory_space<vmem>>, %arg23: memref<1x1x16xf32, #tpu.memory_space<vmem>>, %arg24: memref<8x64xf32, #tpu.memory_space<vmem>>, %arg25: memref<8x64xf32, #tpu.memory_space<vmem>>, %arg26: memref<8x64xf32, #tpu.memory_space<vmem>>, %arg27: memref<8x128xf32, #tpu.memory_space<vmem>>, %arg28: memref<8x1024xf32, #tpu.memory_space<vmem>>) attributes {dimension_semantics = [#tpu.dimension_semantics<parallel>, #tpu.dimension_semantics<arbitrary>], iteration_bounds = array<i64: 2, 2>, scalar_prefetch = 0 : i64, scratch_operands = 5 : i64, tpu.core_type = #tpu.core_type<tc>, window_params = [{transform_indices = @transform_0, window_bounds = array<i64: 1, 512, 6>}, {transform_indices = @transform_1, window_bounds = array<i64: 1, 1, 6>}, {transform_indices = @transform_2, window_bounds = array<i64: 1, 1, 128>}, {pipeline_mode = #tpu.pipeline_mode<synchronous>, transform_indices = @transform_3, window_bounds = array<i64: 6, 64>}, {pipeline_mode = #tpu.pipeline_mode<synchronous>, transform_indices = @transform_4, window_bounds = array<i64: 1, 64>}, {pipeline_mode = #tpu.pipeline_mode<synchronous>, transform_indices = @transform_5, window_bounds = array<i64: 64, 64>}, {pipeline_mode = #tpu.pipeline_mode<synchronous>, transform_indices = @transform_6, window_bounds = array<i64: 1, 64>}, {pipeline_mode = #tpu.pipeline_mode<synchronous>, transform_indices = @transform_7, window_bounds = array<i64: 64, 64>}, {pipeline_mode = #tpu.pipeline_mode<synchronous>, transform_indices = @transform_8, window_bounds = array<i64: 1, 64>}, {pipeline_mode = #tpu.pipeline_mode<synchronous>, transform_indices = @transform_9, window_bounds = array<i64: 64, 128>}, {pipeline_mode = #tpu.pipeline_mode<synchronous>, transform_indices = @transform_10, window_bounds = array<i64: 1, 128>}, {pipeline_mode = #tpu.pipeline_mode<synchronous>, transform_indices = @transform_11, window_bounds = array<i64: 128, 1024>}, {pipeline_mode = #tpu.pipeline_mode<synchronous>, transform_indices = @transform_12, window_bounds = array<i64: 1, 1024>}, {pipeline_mode = #tpu.pipeline_mode<synchronous>, transform_indices = @transform_13, window_bounds = array<i64: 1664, 512>}, {pipeline_mode = #tpu.pipeline_mode<synchronous>, transform_indices = @transform_14, window_bounds = array<i64: 1, 512>}, {pipeline_mode = #tpu.pipeline_mode<synchronous>, transform_indices = @transform_15, window_bounds = array<i64: 512, 256>}, {pipeline_mode = #tpu.pipeline_mode<synchronous>, transform_indices = @transform_16, window_bounds = array<i64: 1, 256>}, {pipeline_mode = #tpu.pipeline_mode<synchronous>, transform_indices = @transform_17, window_bounds = array<i64: 256, 128>}, {pipeline_mode = #tpu.pipeline_mode<synchronous>, transform_indices = @transform_18, window_bounds = array<i64: 1, 128>}, {pipeline_mode = #tpu.pipeline_mode<synchronous>, transform_indices = @transform_19, window_bounds = array<i64: 128, 16>}, {pipeline_mode = #tpu.pipeline_mode<synchronous>, transform_indices = @transform_20, window_bounds = array<i64: 1, 16>}, {transform_indices = @transform_21, window_bounds = array<i64: 1, 1, 16>}]} {
    %c0 = arith.constant 0 : index
    %c0_0 = arith.constant 0 : index
    %c0_1 = arith.constant 0 : index
    %0 = vector.load %arg2[%c0, %c0_0, %c0_1] : memref<1x512x6xf32, #tpu.memory_space<vmem>>, vector<1x512x6xf32>
    %1 = vector.shape_cast %0 : vector<1x512x6xf32> to vector<512x6xf32>
    %c0_2 = arith.constant 0 : index
    %c0_3 = arith.constant 0 : index
    %c0_4 = arith.constant 0 : index
    %2 = vector.load %arg3[%c0_2, %c0_3, %c0_4] : memref<1x1x6xf32, #tpu.memory_space<vmem>>, vector<1x1x6xf32>
    %3 = vector.shape_cast %2 : vector<1x1x6xf32> to vector<1x6xf32>
    %4 = vector.broadcast %3 : vector<1x6xf32> to vector<512x6xf32>
    %5 = arith.subf %1, %4 : vector<512x6xf32>
    %6 = arith.truncf %5 : vector<512x6xf32> to vector<512x6xbf16>
    %c0_5 = arith.constant 0 : index
    %c0_6 = arith.constant 0 : index
    %7 = vector.load %arg5[%c0_5, %c0_6] : memref<6x64xbf16, #tpu.memory_space<vmem>>, vector<6x64xbf16>
    %cst = arith.constant dense<0.000000e+00> : vector<512x64xf32>
    %8 = tpu.matmul %6, %7, %cst {dimension_numbers = #tpu.dot_dimension_numbers<[1], [0], [0], [1], [0, 0, 1, 1], [], []>} : vector<512x6xbf16>, vector<6x64xbf16>, vector<512x64xf32> -> vector<512x64xf32>
    %c0_7 = arith.constant 0 : index
    %c0_8 = arith.constant 0 : index
    %9 = vector.load %arg6[%c0_7, %c0_8] : memref<1x64xf32, #tpu.memory_space<vmem>>, vector<1x64xf32>
    %10 = vector.broadcast %9 : vector<1x64xf32> to vector<512x64xf32>
    %11 = arith.addf %8, %10 : vector<512x64xf32>
    %cst_9 = arith.constant 0.000000e+00 : f32
    %12 = vector.broadcast %cst_9 : f32 to vector<512x64xf32>
    %13 = arith.maximumf %11, %12 : vector<512x64xf32>
    %14 = arith.truncf %13 : vector<512x64xf32> to vector<512x64xbf16>
    %c0_10 = arith.constant 0 : index
    %c0_11 = arith.constant 0 : index
    %15 = vector.load %arg7[%c0_10, %c0_11] : memref<64x64xbf16, #tpu.memory_space<vmem>>, vector<64x64xbf16>
    %cst_12 = arith.constant dense<0.000000e+00> : vector<512x64xf32>
    %16 = tpu.matmul %14, %15, %cst_12 {dimension_numbers = #tpu.dot_dimension_numbers<[1], [0], [0], [1], [0, 0, 1, 1], [], []>} : vector<512x64xbf16>, vector<64x64xbf16>, vector<512x64xf32> -> vector<512x64xf32>
    %c0_13 = arith.constant 0 : index
    %c0_14 = arith.constant 0 : index
    %17 = vector.load %arg8[%c0_13, %c0_14] : memref<1x64xf32, #tpu.memory_space<vmem>>, vector<1x64xf32>
    %18 = vector.broadcast %17 : vector<1x64xf32> to vector<512x64xf32>
    %19 = arith.addf %16, %18 : vector<512x64xf32>
    %cst_15 = arith.constant 0.000000e+00 : f32
    %20 = vector.broadcast %cst_15 : f32 to vector<512x64xf32>
    %21 = arith.maximumf %19, %20 : vector<512x64xf32>
    %22 = arith.truncf %21 : vector<512x64xf32> to vector<512x64xbf16>
    %c0_16 = arith.constant 0 : index
    %c0_17 = arith.constant 0 : index
    %23 = vector.load %arg9[%c0_16, %c0_17] : memref<64x64xbf16, #tpu.memory_space<vmem>>, vector<64x64xbf16>
    %cst_18 = arith.constant dense<0.000000e+00> : vector<512x64xf32>
    %24 = tpu.matmul %22, %23, %cst_18 {dimension_numbers = #tpu.dot_dimension_numbers<[1], [0], [0], [1], [0, 0, 1, 1], [], []>} : vector<512x64xbf16>, vector<64x64xbf16>, vector<512x64xf32> -> vector<512x64xf32>
    %c0_19 = arith.constant 0 : index
    %c0_20 = arith.constant 0 : index
    %25 = vector.load %arg10[%c0_19, %c0_20] : memref<1x64xf32, #tpu.memory_space<vmem>>, vector<1x64xf32>
    %26 = vector.broadcast %25 : vector<1x64xf32> to vector<512x64xf32>
    %27 = arith.addf %24, %26 : vector<512x64xf32>
    %cst_21 = arith.constant 0.000000e+00 : f32
    %28 = vector.broadcast %cst_21 : f32 to vector<512x64xf32>
    %29 = arith.maximumf %27, %28 : vector<512x64xf32>
    %30 = arith.truncf %29 : vector<512x64xf32> to vector<512x64xbf16>
    %c0_22 = arith.constant 0 : index
    %c0_23 = arith.constant 0 : index
    %31 = vector.load %arg11[%c0_22, %c0_23] : memref<64x128xbf16, #tpu.memory_space<vmem>>, vector<64x128xbf16>
    %cst_24 = arith.constant dense<0.000000e+00> : vector<512x128xf32>
    %32 = tpu.matmul %30, %31, %cst_24 {dimension_numbers = #tpu.dot_dimension_numbers<[1], [0], [0], [1], [0, 0, 1, 1], [], []>} : vector<512x64xbf16>, vector<64x128xbf16>, vector<512x128xf32> -> vector<512x128xf32>
    %c0_25 = arith.constant 0 : index
    %c0_26 = arith.constant 0 : index
    %33 = vector.load %arg12[%c0_25, %c0_26] : memref<1x128xf32, #tpu.memory_space<vmem>>, vector<1x128xf32>
    %34 = vector.broadcast %33 : vector<1x128xf32> to vector<512x128xf32>
    %35 = arith.addf %32, %34 : vector<512x128xf32>
    %cst_27 = arith.constant 0.000000e+00 : f32
    %36 = vector.broadcast %cst_27 : f32 to vector<512x128xf32>
    %37 = arith.maximumf %35, %36 : vector<512x128xf32>
    %38 = arith.truncf %37 : vector<512x128xf32> to vector<512x128xbf16>
    %c0_28 = arith.constant 0 : index
    %c0_29 = arith.constant 0 : index
    %39 = vector.load %arg13[%c0_28, %c0_29] : memref<128x1024xbf16, #tpu.memory_space<vmem>>, vector<128x1024xbf16>
    %cst_30 = arith.constant dense<0.000000e+00> : vector<512x1024xf32>
    %40 = tpu.matmul %38, %39, %cst_30 {dimension_numbers = #tpu.dot_dimension_numbers<[1], [0], [0], [1], [0, 0, 1, 1], [], []>} : vector<512x128xbf16>, vector<128x1024xbf16>, vector<512x1024xf32> -> vector<512x1024xf32>
    %c0_31 = arith.constant 0 : index
    %c0_32 = arith.constant 0 : index
    %41 = vector.load %arg14[%c0_31, %c0_32] : memref<1x1024xf32, #tpu.memory_space<vmem>>, vector<1x1024xf32>
    %42 = vector.broadcast %41 : vector<1x1024xf32> to vector<512x1024xf32>
    %43 = arith.addf %40, %42 : vector<512x1024xf32>
    %cst_33 = arith.constant 0.000000e+00 : f32
    %44 = vector.broadcast %cst_33 : f32 to vector<512x1024xf32>
    %45 = arith.maximumf %43, %44 : vector<512x1024xf32>
    %46 = vector.extract_strided_slice %13 {offsets = [0, 0], sizes = [256, 64], strides = [1, 1]} : vector<512x64xf32> to vector<256x64xf32>
    %47 = vector.extract_strided_slice %13 {offsets = [256, 0], sizes = [256, 64], strides = [1, 1]} : vector<512x64xf32> to vector<256x64xf32>
    %48 = arith.maximumf %46, %47 : vector<256x64xf32>
    %49 = vector.extract_strided_slice %48 {offsets = [0, 0], sizes = [128, 64], strides = [1, 1]} : vector<256x64xf32> to vector<128x64xf32>
    %50 = vector.extract_strided_slice %48 {offsets = [128, 0], sizes = [128, 64], strides = [1, 1]} : vector<256x64xf32> to vector<128x64xf32>
    %51 = arith.maximumf %49, %50 : vector<128x64xf32>
    %52 = vector.extract_strided_slice %51 {offsets = [0, 0], sizes = [64, 64], strides = [1, 1]} : vector<128x64xf32> to vector<64x64xf32>
    %53 = vector.extract_strided_slice %51 {offsets = [64, 0], sizes = [64, 64], strides = [1, 1]} : vector<128x64xf32> to vector<64x64xf32>
    %54 = arith.maximumf %52, %53 : vector<64x64xf32>
    %55 = vector.extract_strided_slice %54 {offsets = [0, 0], sizes = [32, 64], strides = [1, 1]} : vector<64x64xf32> to vector<32x64xf32>
    %56 = vector.extract_strided_slice %54 {offsets = [32, 0], sizes = [32, 64], strides = [1, 1]} : vector<64x64xf32> to vector<32x64xf32>
    %57 = arith.maximumf %55, %56 : vector<32x64xf32>
    %58 = vector.extract_strided_slice %57 {offsets = [0, 0], sizes = [16, 64], strides = [1, 1]} : vector<32x64xf32> to vector<16x64xf32>
    %59 = vector.extract_strided_slice %57 {offsets = [16, 0], sizes = [16, 64], strides = [1, 1]} : vector<32x64xf32> to vector<16x64xf32>
    %60 = arith.maximumf %58, %59 : vector<16x64xf32>
    %61 = vector.extract_strided_slice %60 {offsets = [0, 0], sizes = [8, 64], strides = [1, 1]} : vector<16x64xf32> to vector<8x64xf32>
    %62 = vector.extract_strided_slice %60 {offsets = [8, 0], sizes = [8, 64], strides = [1, 1]} : vector<16x64xf32> to vector<8x64xf32>
    %63 = arith.maximumf %61, %62 : vector<8x64xf32>
    %64 = vector.extract_strided_slice %21 {offsets = [0, 0], sizes = [256, 64], strides = [1, 1]} : vector<512x64xf32> to vector<256x64xf32>
    %65 = vector.extract_strided_slice %21 {offsets = [256, 0], sizes = [256, 64], strides = [1, 1]} : vector<512x64xf32> to vector<256x64xf32>
    %66 = arith.maximumf %64, %65 : vector<256x64xf32>
    %67 = vector.extract_strided_slice %66 {offsets = [0, 0], sizes = [128, 64], strides = [1, 1]} : vector<256x64xf32> to vector<128x64xf32>
    %68 = vector.extract_strided_slice %66 {offsets = [128, 0], sizes = [128, 64], strides = [1, 1]} : vector<256x64xf32> to vector<128x64xf32>
    %69 = arith.maximumf %67, %68 : vector<128x64xf32>
    %70 = vector.extract_strided_slice %69 {offsets = [0, 0], sizes = [64, 64], strides = [1, 1]} : vector<128x64xf32> to vector<64x64xf32>
    %71 = vector.extract_strided_slice %69 {offsets = [64, 0], sizes = [64, 64], strides = [1, 1]} : vector<128x64xf32> to vector<64x64xf32>
    %72 = arith.maximumf %70, %71 : vector<64x64xf32>
    %73 = vector.extract_strided_slice %72 {offsets = [0, 0], sizes = [32, 64], strides = [1, 1]} : vector<64x64xf32> to vector<32x64xf32>
    %74 = vector.extract_strided_slice %72 {offsets = [32, 0], sizes = [32, 64], strides = [1, 1]} : vector<64x64xf32> to vector<32x64xf32>
    %75 = arith.maximumf %73, %74 : vector<32x64xf32>
    %76 = vector.extract_strided_slice %75 {offsets = [0, 0], sizes = [16, 64], strides = [1, 1]} : vector<32x64xf32> to vector<16x64xf32>
    %77 = vector.extract_strided_slice %75 {offsets = [16, 0], sizes = [16, 64], strides = [1, 1]} : vector<32x64xf32> to vector<16x64xf32>
    %78 = arith.maximumf %76, %77 : vector<16x64xf32>
    %79 = vector.extract_strided_slice %78 {offsets = [0, 0], sizes = [8, 64], strides = [1, 1]} : vector<16x64xf32> to vector<8x64xf32>
    %80 = vector.extract_strided_slice %78 {offsets = [8, 0], sizes = [8, 64], strides = [1, 1]} : vector<16x64xf32> to vector<8x64xf32>
    %81 = arith.maximumf %79, %80 : vector<8x64xf32>
    %82 = vector.extract_strided_slice %29 {offsets = [0, 0], sizes = [256, 64], strides = [1, 1]} : vector<512x64xf32> to vector<256x64xf32>
    %83 = vector.extract_strided_slice %29 {offsets = [256, 0], sizes = [256, 64], strides = [1, 1]} : vector<512x64xf32> to vector<256x64xf32>
    %84 = arith.maximumf %82, %83 : vector<256x64xf32>
    %85 = vector.extract_strided_slice %84 {offsets = [0, 0], sizes = [128, 64], strides = [1, 1]} : vector<256x64xf32> to vector<128x64xf32>
    %86 = vector.extract_strided_slice %84 {offsets = [128, 0], sizes = [128, 64], strides = [1, 1]} : vector<256x64xf32> to vector<128x64xf32>
    %87 = arith.maximumf %85, %86 : vector<128x64xf32>
    %88 = vector.extract_strided_slice %87 {offsets = [0, 0], sizes = [64, 64], strides = [1, 1]} : vector<128x64xf32> to vector<64x64xf32>
    %89 = vector.extract_strided_slice %87 {offsets = [64, 0], sizes = [64, 64], strides = [1, 1]} : vector<128x64xf32> to vector<64x64xf32>
    %90 = arith.maximumf %88, %89 : vector<64x64xf32>
    %91 = vector.extract_strided_slice %90 {offsets = [0, 0], sizes = [32, 64], strides = [1, 1]} : vector<64x64xf32> to vector<32x64xf32>
    %92 = vector.extract_strided_slice %90 {offsets = [32, 0], sizes = [32, 64], strides = [1, 1]} : vector<64x64xf32> to vector<32x64xf32>
    %93 = arith.maximumf %91, %92 : vector<32x64xf32>
    %94 = vector.extract_strided_slice %93 {offsets = [0, 0], sizes = [16, 64], strides = [1, 1]} : vector<32x64xf32> to vector<16x64xf32>
    %95 = vector.extract_strided_slice %93 {offsets = [16, 0], sizes = [16, 64], strides = [1, 1]} : vector<32x64xf32> to vector<16x64xf32>
    %96 = arith.maximumf %94, %95 : vector<16x64xf32>
    %97 = vector.extract_strided_slice %96 {offsets = [0, 0], sizes = [8, 64], strides = [1, 1]} : vector<16x64xf32> to vector<8x64xf32>
    %98 = vector.extract_strided_slice %96 {offsets = [8, 0], sizes = [8, 64], strides = [1, 1]} : vector<16x64xf32> to vector<8x64xf32>
    %99 = arith.maximumf %97, %98 : vector<8x64xf32>
    %100 = vector.extract_strided_slice %37 {offsets = [0, 0], sizes = [256, 128], strides = [1, 1]} : vector<512x128xf32> to vector<256x128xf32>
    %101 = vector.extract_strided_slice %37 {offsets = [256, 0], sizes = [256, 128], strides = [1, 1]} : vector<512x128xf32> to vector<256x128xf32>
    %102 = arith.maximumf %100, %101 : vector<256x128xf32>
    %103 = vector.extract_strided_slice %102 {offsets = [0, 0], sizes = [128, 128], strides = [1, 1]} : vector<256x128xf32> to vector<128x128xf32>
    %104 = vector.extract_strided_slice %102 {offsets = [128, 0], sizes = [128, 128], strides = [1, 1]} : vector<256x128xf32> to vector<128x128xf32>
    %105 = arith.maximumf %103, %104 : vector<128x128xf32>
    %106 = vector.extract_strided_slice %105 {offsets = [0, 0], sizes = [64, 128], strides = [1, 1]} : vector<128x128xf32> to vector<64x128xf32>
    %107 = vector.extract_strided_slice %105 {offsets = [64, 0], sizes = [64, 128], strides = [1, 1]} : vector<128x128xf32> to vector<64x128xf32>
    %108 = arith.maximumf %106, %107 : vector<64x128xf32>
    %109 = vector.extract_strided_slice %108 {offsets = [0, 0], sizes = [32, 128], strides = [1, 1]} : vector<64x128xf32> to vector<32x128xf32>
    %110 = vector.extract_strided_slice %108 {offsets = [32, 0], sizes = [32, 128], strides = [1, 1]} : vector<64x128xf32> to vector<32x128xf32>
    %111 = arith.maximumf %109, %110 : vector<32x128xf32>
    %112 = vector.extract_strided_slice %111 {offsets = [0, 0], sizes = [16, 128], strides = [1, 1]} : vector<32x128xf32> to vector<16x128xf32>
    %113 = vector.extract_strided_slice %111 {offsets = [16, 0], sizes = [16, 128], strides = [1, 1]} : vector<32x128xf32> to vector<16x128xf32>
    %114 = arith.maximumf %112, %113 : vector<16x128xf32>
    %115 = vector.extract_strided_slice %114 {offsets = [0, 0], sizes = [8, 128], strides = [1, 1]} : vector<16x128xf32> to vector<8x128xf32>
    %116 = vector.extract_strided_slice %114 {offsets = [8, 0], sizes = [8, 128], strides = [1, 1]} : vector<16x128xf32> to vector<8x128xf32>
    %117 = arith.maximumf %115, %116 : vector<8x128xf32>
    %118 = vector.extract_strided_slice %45 {offsets = [0, 0], sizes = [256, 1024], strides = [1, 1]} : vector<512x1024xf32> to vector<256x1024xf32>
    %119 = vector.extract_strided_slice %45 {offsets = [256, 0], sizes = [256, 1024], strides = [1, 1]} : vector<512x1024xf32> to vector<256x1024xf32>
    %120 = arith.maximumf %118, %119 : vector<256x1024xf32>
    %121 = vector.extract_strided_slice %120 {offsets = [0, 0], sizes = [128, 1024], strides = [1, 1]} : vector<256x1024xf32> to vector<128x1024xf32>
    %122 = vector.extract_strided_slice %120 {offsets = [128, 0], sizes = [128, 1024], strides = [1, 1]} : vector<256x1024xf32> to vector<128x1024xf32>
    %123 = arith.maximumf %121, %122 : vector<128x1024xf32>
    %124 = vector.extract_strided_slice %123 {offsets = [0, 0], sizes = [64, 1024], strides = [1, 1]} : vector<128x1024xf32> to vector<64x1024xf32>
    %125 = vector.extract_strided_slice %123 {offsets = [64, 0], sizes = [64, 1024], strides = [1, 1]} : vector<128x1024xf32> to vector<64x1024xf32>
    %126 = arith.maximumf %124, %125 : vector<64x1024xf32>
    %127 = vector.extract_strided_slice %126 {offsets = [0, 0], sizes = [32, 1024], strides = [1, 1]} : vector<64x1024xf32> to vector<32x1024xf32>
    %128 = vector.extract_strided_slice %126 {offsets = [32, 0], sizes = [32, 1024], strides = [1, 1]} : vector<64x1024xf32> to vector<32x1024xf32>
    %129 = arith.maximumf %127, %128 : vector<32x1024xf32>
    %130 = vector.extract_strided_slice %129 {offsets = [0, 0], sizes = [16, 1024], strides = [1, 1]} : vector<32x1024xf32> to vector<16x1024xf32>
    %131 = vector.extract_strided_slice %129 {offsets = [16, 0], sizes = [16, 1024], strides = [1, 1]} : vector<32x1024xf32> to vector<16x1024xf32>
    %132 = arith.maximumf %130, %131 : vector<16x1024xf32>
    %133 = vector.extract_strided_slice %132 {offsets = [0, 0], sizes = [8, 1024], strides = [1, 1]} : vector<16x1024xf32> to vector<8x1024xf32>
    %134 = vector.extract_strided_slice %132 {offsets = [8, 0], sizes = [8, 1024], strides = [1, 1]} : vector<16x1024xf32> to vector<8x1024xf32>
    %135 = arith.maximumf %133, %134 : vector<8x1024xf32>
    %c0_i32 = arith.constant 0 : i32
    %136 = arith.cmpi eq, %arg1, %c0_i32 : i32
    %137 = arith.extui %136 : i1 to i32
    %c0_i32_34 = arith.constant 0 : i32
    %138 = arith.cmpi ne, %137, %c0_i32_34 : i32
    scf.if %138 {
      %c0_38 = arith.constant 0 : index
      %c0_39 = arith.constant 0 : index
      %145 = vector.load %arg24[%c0_38, %c0_39] : memref<8x64xf32, #tpu.memory_space<vmem>>, vector<8x64xf32>
      tpu.vector_store %arg24[%c0_38, %c0_39], %63 {strides = array<i32>} : memref<8x64xf32, #tpu.memory_space<vmem>>, vector<8x64xf32>,
      %c0_40 = arith.constant 0 : index
      %c0_41 = arith.constant 0 : index
      %146 = vector.load %arg25[%c0_40, %c0_41] : memref<8x64xf32, #tpu.memory_space<vmem>>, vector<8x64xf32>
      tpu.vector_store %arg25[%c0_40, %c0_41], %81 {strides = array<i32>} : memref<8x64xf32, #tpu.memory_space<vmem>>, vector<8x64xf32>,
      %c0_42 = arith.constant 0 : index
      %c0_43 = arith.constant 0 : index
      %147 = vector.load %arg26[%c0_42, %c0_43] : memref<8x64xf32, #tpu.memory_space<vmem>>, vector<8x64xf32>
      tpu.vector_store %arg26[%c0_42, %c0_43], %99 {strides = array<i32>} : memref<8x64xf32, #tpu.memory_space<vmem>>, vector<8x64xf32>,
      %c0_44 = arith.constant 0 : index
      %c0_45 = arith.constant 0 : index
      %148 = vector.load %arg27[%c0_44, %c0_45] : memref<8x128xf32, #tpu.memory_space<vmem>>, vector<8x128xf32>
      tpu.vector_store %arg27[%c0_44, %c0_45], %117 {strides = array<i32>} : memref<8x128xf32, #tpu.memory_space<vmem>>, vector<8x128xf32>,
      %c0_46 = arith.constant 0 : index
      %c0_47 = arith.constant 0 : index
      %149 = vector.load %arg28[%c0_46, %c0_47] : memref<8x1024xf32, #tpu.memory_space<vmem>>, vector<8x1024xf32>
      tpu.vector_store %arg28[%c0_46, %c0_47], %135 {strides = array<i32>} : memref<8x1024xf32, #tpu.memory_space<vmem>>, vector<8x1024xf32>,
    } else {
    }
    %c0_i32_35 = arith.constant 0 : i32
    %139 = arith.cmpi sgt, %arg1, %c0_i32_35 : i32
    %140 = arith.extui %139 : i1 to i32
    %c0_i32_36 = arith.constant 0 : i32
    %141 = arith.cmpi ne, %140, %c0_i32_36 : i32
    scf.if %141 {
      %c0_38 = arith.constant 0 : index
      %c0_39 = arith.constant 0 : index
      %145 = vector.load %arg24[%c0_38, %c0_39] : memref<8x64xf32, #tpu.memory_space<vmem>>, vector<8x64xf32>
      %146 = arith.maximumf %145, %63 : vector<8x64xf32>
      %c0_40 = arith.constant 0 : index
      %c0_41 = arith.constant 0 : index
      %147 = vector.load %arg24[%c0_40, %c0_41] : memref<8x64xf32, #tpu.memory_space<vmem>>, vector<8x64xf32>
      tpu.vector_store %arg24[%c0_40, %c0_41], %146 {strides = array<i32>} : memref<8x64xf32, #tpu.memory_space<vmem>>, vector<8x64xf32>,
      %c0_42 = arith.constant 0 : index
      %c0_43 = arith.constant 0 : index
      %148 = vector.load %arg25[%c0_42, %c0_43] : memref<8x64xf32, #tpu.memory_space<vmem>>, vector<8x64xf32>
      %149 = arith.maximumf %148, %81 : vector<8x64xf32>
      %c0_44 = arith.constant 0 : index
      %c0_45 = arith.constant 0 : index
      %150 = vector.load %arg25[%c0_44, %c0_45] : memref<8x64xf32, #tpu.memory_space<vmem>>, vector<8x64xf32>
      tpu.vector_store %arg25[%c0_44, %c0_45], %149 {strides = array<i32>} : memref<8x64xf32, #tpu.memory_space<vmem>>, vector<8x64xf32>,
      %c0_46 = arith.constant 0 : index
      %c0_47 = arith.constant 0 : index
      %151 = vector.load %arg26[%c0_46, %c0_47] : memref<8x64xf32, #tpu.memory_space<vmem>>, vector<8x64xf32>
      %152 = arith.maximumf %151, %99 : vector<8x64xf32>
      %c0_48 = arith.constant 0 : index
      %c0_49 = arith.constant 0 : index
      %153 = vector.load %arg26[%c0_48, %c0_49] : memref<8x64xf32, #tpu.memory_space<vmem>>, vector<8x64xf32>
      tpu.vector_store %arg26[%c0_48, %c0_49], %152 {strides = array<i32>} : memref<8x64xf32, #tpu.memory_space<vmem>>, vector<8x64xf32>,
      %c0_50 = arith.constant 0 : index
      %c0_51 = arith.constant 0 : index
      %154 = vector.load %arg27[%c0_50, %c0_51] : memref<8x128xf32, #tpu.memory_space<vmem>>, vector<8x128xf32>
      %155 = arith.maximumf %154, %117 : vector<8x128xf32>
      %c0_52 = arith.constant 0 : index
      %c0_53 = arith.constant 0 : index
      %156 = vector.load %arg27[%c0_52, %c0_53] : memref<8x128xf32, #tpu.memory_space<vmem>>, vector<8x128xf32>
      tpu.vector_store %arg27[%c0_52, %c0_53], %155 {strides = array<i32>} : memref<8x128xf32, #tpu.memory_space<vmem>>, vector<8x128xf32>,
      %c0_54 = arith.constant 0 : index
      %c0_55 = arith.constant 0 : index
      %157 = vector.load %arg28[%c0_54, %c0_55] : memref<8x1024xf32, #tpu.memory_space<vmem>>, vector<8x1024xf32>
      %158 = arith.maximumf %157, %135 : vector<8x1024xf32>
      %c0_56 = arith.constant 0 : index
      %c0_57 = arith.constant 0 : index
      %159 = vector.load %arg28[%c0_56, %c0_57] : memref<8x1024xf32, #tpu.memory_space<vmem>>, vector<8x1024xf32>
      tpu.vector_store %arg28[%c0_56, %c0_57], %158 {strides = array<i32>} : memref<8x1024xf32, #tpu.memory_space<vmem>>, vector<8x1024xf32>,
    } else {
    }
    %c1_i32 = arith.constant 1 : i32
    %142 = arith.cmpi eq, %arg1, %c1_i32 : i32
    %143 = arith.extui %142 : i1 to i32
    %c0_i32_37 = arith.constant 0 : i32
    %144 = arith.cmpi ne, %143, %c0_i32_37 : i32
    scf.if %144 {
      %c0_38 = arith.constant 0 : index
      %c0_39 = arith.constant 0 : index
      %145 = vector.load %arg24[%c0_38, %c0_39] : memref<8x64xf32, #tpu.memory_space<vmem>>, vector<8x64xf32>
      %cst_40 = arith.constant dense<0xFF800000> : vector<64xf32>
      %146 = vector.multi_reduction <maximumf>, %145, %cst_40 [0] : vector<8x64xf32> to vector<64xf32>
      %147 = vector.shape_cast %146 : vector<64xf32> to vector<1x64xf32>
      %c0_41 = arith.constant 0 : index
      %c0_42 = arith.constant 0 : index
      %148 = vector.load %arg25[%c0_41, %c0_42] : memref<8x64xf32, #tpu.memory_space<vmem>>, vector<8x64xf32>
      %cst_43 = arith.constant dense<0xFF800000> : vector<64xf32>
      %149 = vector.multi_reduction <maximumf>, %148, %cst_43 [0] : vector<8x64xf32> to vector<64xf32>
      %150 = vector.shape_cast %149 : vector<64xf32> to vector<1x64xf32>
      %c0_44 = arith.constant 0 : index
      %c0_45 = arith.constant 0 : index
      %151 = vector.load %arg26[%c0_44, %c0_45] : memref<8x64xf32, #tpu.memory_space<vmem>>, vector<8x64xf32>
      %cst_46 = arith.constant dense<0xFF800000> : vector<64xf32>
      %152 = vector.multi_reduction <maximumf>, %151, %cst_46 [0] : vector<8x64xf32> to vector<64xf32>
      %153 = vector.shape_cast %152 : vector<64xf32> to vector<1x64xf32>
      %c0_47 = arith.constant 0 : index
      %c0_48 = arith.constant 0 : index
      %154 = vector.load %arg27[%c0_47, %c0_48] : memref<8x128xf32, #tpu.memory_space<vmem>>, vector<8x128xf32>
      %cst_49 = arith.constant dense<0xFF800000> : vector<128xf32>
      %155 = vector.multi_reduction <maximumf>, %154, %cst_49 [0] : vector<8x128xf32> to vector<128xf32>
      %156 = vector.shape_cast %155 : vector<128xf32> to vector<1x128xf32>
      %c0_50 = arith.constant 0 : index
      %c0_51 = arith.constant 0 : index
      %157 = vector.load %arg28[%c0_50, %c0_51] : memref<8x1024xf32, #tpu.memory_space<vmem>>, vector<8x1024xf32>
      %cst_52 = arith.constant dense<0xFF800000> : vector<1024xf32>
      %158 = vector.multi_reduction <maximumf>, %157, %cst_52 [0] : vector<8x1024xf32> to vector<1024xf32>
      %159 = vector.shape_cast %158 : vector<1024xf32> to vector<1x1024xf32>
      %cst_53 = arith.constant 0.000000e+00 : f32
      %160 = vector.broadcast %cst_53 : f32 to vector<1x64xf32>
      %c0_54 = arith.constant 0 : index
      %c0_55 = arith.constant 0 : index
      %c0_56 = arith.constant 0 : index
      %161 = vector.load %arg4[%c0_54, %c0_55, %c0_56] : memref<1x1x128xf32, #tpu.memory_space<vmem>>, vector<1x1x128xf32>
      %162 = vector.shape_cast %161 : vector<1x1x128xf32> to vector<1x128xf32>
      %163 = tpu.concatenate %162, %147, %160, %150, %160, %153, %160, %156, %159 in 1 : vector<1x128xf32>, vector<1x64xf32>, vector<1x64xf32>, vector<1x64xf32>, vector<1x64xf32>, vector<1x64xf32>, vector<1x64xf32>, vector<1x128xf32>, vector<1x1024xf32> -> vector<1x1664xf32>
      %164 = arith.truncf %163 : vector<1x1664xf32> to vector<1x1664xbf16>
      %c0_57 = arith.constant 0 : index
      %c0_58 = arith.constant 0 : index
      %165 = vector.load %arg15[%c0_57, %c0_58] : memref<1664x512xbf16, #tpu.memory_space<vmem>>, vector<1664x512xbf16>
      %cst_59 = arith.constant dense<0.000000e+00> : vector<1x512xf32>
      %166 = tpu.matmul %164, %165, %cst_59 {dimension_numbers = #tpu.dot_dimension_numbers<[1], [0], [0], [1], [0, 0, 1, 1], [], []>} : vector<1x1664xbf16>, vector<1664x512xbf16>, vector<1x512xf32> -> vector<1x512xf32>
      %c0_60 = arith.constant 0 : index
      %c0_61 = arith.constant 0 : index
      %167 = vector.load %arg16[%c0_60, %c0_61] : memref<1x512xf32, #tpu.memory_space<vmem>>, vector<1x512xf32>
      %168 = arith.addf %166, %167 : vector<1x512xf32>
      %cst_62 = arith.constant 0.000000e+00 : f32
      %169 = vector.broadcast %cst_62 : f32 to vector<1x512xf32>
      %170 = arith.maximumf %168, %169 : vector<1x512xf32>
      %171 = arith.truncf %170 : vector<1x512xf32> to vector<1x512xbf16>
      %c0_63 = arith.constant 0 : index
      %c0_64 = arith.constant 0 : index
      %172 = vector.load %arg17[%c0_63, %c0_64] : memref<512x256xbf16, #tpu.memory_space<vmem>>, vector<512x256xbf16>
      %cst_65 = arith.constant dense<0.000000e+00> : vector<1x256xf32>
      %173 = tpu.matmul %171, %172, %cst_65 {dimension_numbers = #tpu.dot_dimension_numbers<[1], [0], [0], [1], [0, 0, 1, 1], [], []>} : vector<1x512xbf16>, vector<512x256xbf16>, vector<1x256xf32> -> vector<1x256xf32>
      %c0_66 = arith.constant 0 : index
      %c0_67 = arith.constant 0 : index
      %174 = vector.load %arg18[%c0_66, %c0_67] : memref<1x256xf32, #tpu.memory_space<vmem>>, vector<1x256xf32>
      %175 = arith.addf %173, %174 : vector<1x256xf32>
      %cst_68 = arith.constant 0.000000e+00 : f32
      %176 = vector.broadcast %cst_68 : f32 to vector<1x256xf32>
      %177 = arith.maximumf %175, %176 : vector<1x256xf32>
      %178 = arith.truncf %177 : vector<1x256xf32> to vector<1x256xbf16>
      %c0_69 = arith.constant 0 : index
      %c0_70 = arith.constant 0 : index
      %179 = vector.load %arg19[%c0_69, %c0_70] : memref<256x128xbf16, #tpu.memory_space<vmem>>, vector<256x128xbf16>
      %cst_71 = arith.constant dense<0.000000e+00> : vector<1x128xf32>
      %180 = tpu.matmul %178, %179, %cst_71 {dimension_numbers = #tpu.dot_dimension_numbers<[1], [0], [0], [1], [0, 0, 1, 1], [], []>} : vector<1x256xbf16>, vector<256x128xbf16>, vector<1x128xf32> -> vector<1x128xf32>
      %c0_72 = arith.constant 0 : index
      %c0_73 = arith.constant 0 : index
      %181 = vector.load %arg20[%c0_72, %c0_73] : memref<1x128xf32, #tpu.memory_space<vmem>>, vector<1x128xf32>
      %182 = arith.addf %180, %181 : vector<1x128xf32>
      %cst_74 = arith.constant 0.000000e+00 : f32
      %183 = vector.broadcast %cst_74 : f32 to vector<1x128xf32>
      %184 = arith.maximumf %182, %183 : vector<1x128xf32>
      %185 = arith.truncf %184 : vector<1x128xf32> to vector<1x128xbf16>
      %c0_75 = arith.constant 0 : index
      %c0_76 = arith.constant 0 : index
      %186 = vector.load %arg21[%c0_75, %c0_76] : memref<128x16xbf16, #tpu.memory_space<vmem>>, vector<128x16xbf16>
      %cst_77 = arith.constant dense<0.000000e+00> : vector<1x16xf32>
      %187 = tpu.matmul %185, %186, %cst_77 {dimension_numbers = #tpu.dot_dimension_numbers<[1], [0], [0], [1], [0, 0, 1, 1], [], []>} : vector<1x128xbf16>, vector<128x16xbf16>, vector<1x16xf32> -> vector<1x16xf32>
      %c0_78 = arith.constant 0 : index
      %c0_79 = arith.constant 0 : index
      %188 = vector.load %arg22[%c0_78, %c0_79] : memref<1x16xf32, #tpu.memory_space<vmem>>, vector<1x16xf32>
      %189 = arith.addf %187, %188 : vector<1x16xf32>
      %c0_80 = arith.constant 0 : index
      %c0_81 = arith.constant 0 : index
      %c0_82 = arith.constant 0 : index
      %190 = vector.load %arg23[%c0_80, %c0_81, %c0_82] : memref<1x1x16xf32, #tpu.memory_space<vmem>>, vector<1x1x16xf32>
      %191 = vector.shape_cast %190 : vector<1x1x16xf32> to vector<1x16xf32>
      %192 = vector.shape_cast %189 : vector<1x16xf32> to vector<1x1x16xf32>
      tpu.vector_store %arg23[%c0_80, %c0_81, %c0_82], %192 {strides = array<i32>} : memref<1x1x16xf32, #tpu.memory_space<vmem>>, vector<1x1x16xf32>,
    } else {
    }
    return
  }
  func.func @transform_0(%arg0: i32, %arg1: i32) -> (i32, i32, i32) {
    %c0_i32 = arith.constant 0 : i32
    %c0_i32_0 = arith.constant 0 : i32
    return %arg0, %arg1, %c0_i32 : i32, i32, i32
  }
  func.func @transform_1(%arg0: i32, %arg1: i32) -> (i32, i32, i32) {
    %c0_i32 = arith.constant 0 : i32
    %c0_i32_0 = arith.constant 0 : i32
    %c0_i32_1 = arith.constant 0 : i32
    return %arg0, %c0_i32, %c0_i32_0 : i32, i32, i32
  }
  func.func @transform_2(%arg0: i32, %arg1: i32) -> (i32, i32, i32) {
    %c0_i32 = arith.constant 0 : i32
    %c0_i32_0 = arith.constant 0 : i32
    %c0_i32_1 = arith.constant 0 : i32
    return %arg0, %c0_i32, %c0_i32_0 : i32, i32, i32
  }
  func.func @transform_3(%arg0: i32, %arg1: i32) -> (i32, i32) {
    %c0_i32 = arith.constant 0 : i32
    %c0_i32_0 = arith.constant 0 : i32
    %c0_i32_1 = arith.constant 0 : i32
    return %c0_i32, %c0_i32_0 : i32, i32
  }
  func.func @transform_4(%arg0: i32, %arg1: i32) -> (i32, i32) {
    %c0_i32 = arith.constant 0 : i32
    %c0_i32_0 = arith.constant 0 : i32
    %c0_i32_1 = arith.constant 0 : i32
    return %c0_i32, %c0_i32_0 : i32, i32
  }
  func.func @transform_5(%arg0: i32, %arg1: i32) -> (i32, i32) {
    %c0_i32 = arith.constant 0 : i32
    %c0_i32_0 = arith.constant 0 : i32
    %c0_i32_1 = arith.constant 0 : i32
    return %c0_i32, %c0_i32_0 : i32, i32
  }
  func.func @transform_6(%arg0: i32, %arg1: i32) -> (i32, i32) {
    %c0_i32 = arith.constant 0 : i32
    %c0_i32_0 = arith.constant 0 : i32
    %c0_i32_1 = arith.constant 0 : i32
    return %c0_i32, %c0_i32_0 : i32, i32
  }
  func.func @transform_7(%arg0: i32, %arg1: i32) -> (i32, i32) {
    %c0_i32 = arith.constant 0 : i32
    %c0_i32_0 = arith.constant 0 : i32
    %c0_i32_1 = arith.constant 0 : i32
    return %c0_i32, %c0_i32_0 : i32, i32
  }
  func.func @transform_8(%arg0: i32, %arg1: i32) -> (i32, i32) {
    %c0_i32 = arith.constant 0 : i32
    %c0_i32_0 = arith.constant 0 : i32
    %c0_i32_1 = arith.constant 0 : i32
    return %c0_i32, %c0_i32_0 : i32, i32
  }
  func.func @transform_9(%arg0: i32, %arg1: i32) -> (i32, i32) {
    %c0_i32 = arith.constant 0 : i32
    %c0_i32_0 = arith.constant 0 : i32
    %c0_i32_1 = arith.constant 0 : i32
    return %c0_i32, %c0_i32_0 : i32, i32
  }
  func.func @transform_10(%arg0: i32, %arg1: i32) -> (i32, i32) {
    %c0_i32 = arith.constant 0 : i32
    %c0_i32_0 = arith.constant 0 : i32
    %c0_i32_1 = arith.constant 0 : i32
    return %c0_i32, %c0_i32_0 : i32, i32
  }
  func.func @transform_11(%arg0: i32, %arg1: i32) -> (i32, i32) {
    %c0_i32 = arith.constant 0 : i32
    %c0_i32_0 = arith.constant 0 : i32
    %c0_i32_1 = arith.constant 0 : i32
    return %c0_i32, %c0_i32_0 : i32, i32
  }
  func.func @transform_12(%arg0: i32, %arg1: i32) -> (i32, i32) {
    %c0_i32 = arith.constant 0 : i32
    %c0_i32_0 = arith.constant 0 : i32
    %c0_i32_1 = arith.constant 0 : i32
    return %c0_i32, %c0_i32_0 : i32, i32
  }
  func.func @transform_13(%arg0: i32, %arg1: i32) -> (i32, i32) {
    %c0_i32 = arith.constant 0 : i32
    %c0_i32_0 = arith.constant 0 : i32
    %c0_i32_1 = arith.constant 0 : i32
    return %c0_i32, %c0_i32_0 : i32, i32
  }
  func.func @transform_14(%arg0: i32, %arg1: i32) -> (i32, i32) {
    %c0_i32 = arith.constant 0 : i32
    %c0_i32_0 = arith.constant 0 : i32
    %c0_i32_1 = arith.constant 0 : i32
    return %c0_i32, %c0_i32_0 : i32, i32
  }
  func.func @transform_15(%arg0: i32, %arg1: i32) -> (i32, i32) {
    %c0_i32 = arith.constant 0 : i32
    %c0_i32_0 = arith.constant 0 : i32
    %c0_i32_1 = arith.constant 0 : i32
    return %c0_i32, %c0_i32_0 : i32, i32
  }
  func.func @transform_16(%arg0: i32, %arg1: i32) -> (i32, i32) {
    %c0_i32 = arith.constant 0 : i32
    %c0_i32_0 = arith.constant 0 : i32
    %c0_i32_1 = arith.constant 0 : i32
    return %c0_i32, %c0_i32_0 : i32, i32
  }
  func.func @transform_17(%arg0: i32, %arg1: i32) -> (i32, i32) {
    %c0_i32 = arith.constant 0 : i32
    %c0_i32_0 = arith.constant 0 : i32
    %c0_i32_1 = arith.constant 0 : i32
    return %c0_i32, %c0_i32_0 : i32, i32
  }
  func.func @transform_18(%arg0: i32, %arg1: i32) -> (i32, i32) {
    %c0_i32 = arith.constant 0 : i32
    %c0_i32_0 = arith.constant 0 : i32
    %c0_i32_1 = arith.constant 0 : i32
    return %c0_i32, %c0_i32_0 : i32, i32
  }
  func.func @transform_19(%arg0: i32, %arg1: i32) -> (i32, i32) {
    %c0_i32 = arith.constant 0 : i32
    %c0_i32_0 = arith.constant 0 : i32
    %c0_i32_1 = arith.constant 0 : i32
    return %c0_i32, %c0_i32_0 : i32, i32
  }
  func.func @transform_20(%arg0: i32, %arg1: i32) -> (i32, i32) {
    %c0_i32 = arith.constant 0 : i32
    %c0_i32_0 = arith.constant 0 : i32
    %c0_i32_1 = arith.constant 0 : i32
    return %c0_i32, %c0_i32_0 : i32, i32
  }
  func.func @transform_21(%arg0: i32, %arg1: i32) -> (i32, i32, i32) {
    %c0_i32 = arith.constant 0 : i32
    %c0_i32_0 = arith.constant 0 : i32
    %c0_i32_1 = arith.constant 0 : i32
    return %arg0, %c0_i32, %c0_i32_0 : i32, i32, i32
  }
}

</mosaic_0001>

<bundles_post_ra>
// kernel: posenet_forward.1
= control target key start
LH: loop header
LB: loop body
LE: loop exit
PB: predicated region body
PF: predicated region fallthrough
CT: control target
= control target key end

     0   :  { %s15662_s0 = inlined_call_operand.vmem [shape: f32[2,1024,6], index: 0, kind: input, shape index: {}]   ;;  %s15663_s1 = inlined_call_operand.vmem [shape: f32[2,1,6], index: 1, kind: input, shape index: {}]   ;;  %s15664_s2 = inlined_call_operand.vmem [shape: f32[2,1,128], index: 2, kind: input, shape index: {}]   ;;  %s15665_s3 = inlined_call_operand.hbm [shape: bf16[6,64], index: 3, kind: input, shape index: {}]   ;;  %s15666_s4 = inlined_call_operand.hbm [shape: f32[1,64], index: 4, kind: input, shape index: {}]   ;;  %s15667_s5 = inlined_call_operand.hbm [shape: bf16[64,64], index: 5, kind: input, shape index: {}]   ;;  %s15668_s6 = inlined_call_operand.hbm [shape: f32[1,64], index: 6, kind: input, shape index: {}]   ;;  %s15669_s7 = inlined_call_operand.hbm [shape: bf16[64,64], index: 7, kind: input, shape index: {}]   ;;  %s15670_s8 = inlined_call_operand.hbm [shape: f32[1,64], index: 8, kind: input, shape index: {}]   ;;  %s15671_s9 = inlined_call_operand.hbm [shape: bf16[64,128], index: 9, kind: input, shape index: {}]   ;;  %s15672_s10 = inlined_call_operand.hbm [shape: f32[1,128], index: 10, kind: input, shape index: {}]   ;;  %s15673_s11 = inlined_call_operand.hbm [shape: bf16[128,1024], index: 11, kind: input, shape index: {}]   ;;  %s15674_s12 = inlined_call_operand.hbm [shape: f32[1,1024], index: 12, kind: input, shape index: {}]   ;;  %s15675_s13 = inlined_call_operand.hbm [shape: bf16[1664,512], index: 13, kind: input, shape index: {}]   ;;  %s15676_s14 = inlined_call_operand.hbm [shape: f32[1,512], index: 14, kind: input, shape index: {}]   ;;  %s15677_s15 = inlined_call_operand.hbm [shape: bf16[512,256], index: 15, kind: input, shape index: {}]   ;;  %s15678_s16 = inlined_call_operand.hbm [shape: f32[1,256], index: 16, kind: input, shape index: {}]   ;;  %s15679_s17 = inlined_call_operand.hbm [shape: bf16[256,128], index: 17, kind: input, shape index: {}]   ;;  %s15680_s18 = inlined_call_operand.hbm [shape: f32[1,128], index: 18, kind: input, shape index: {}]   ;;  %s15681_s19 = inlined_call_operand.vmem [shape: bf16[128,16], index: 19, kind: input, shape index: {}]   ;;  %s15682_s20 = inlined_call_operand.hbm [shape: f32[1,16], index: 20, kind: input, shape index: {}]   ;;  %s15683_s21 = inlined_call_operand.vmem [shape: f32[2,1,16], index: 21, kind: output, shape index: {}]  }
   0x1   :  { %15706 = sst [smem:[#allocation51_spill]] %s15662_s0 }
   0x2   :  { %15707 = sst [smem:[#allocation52_spill]] %s15663_s1 }
   0x3   :  { %15708 = sst [smem:[#allocation53_spill]] %s15664_s2 }
   0x4   :  { %15709 = sst [smem:[#allocation54_spill]] %s15665_s3 }
   0x5   :  { %15710 = sst [smem:[#allocation55_spill]] %s15666_s4 }
   0x6   :  { %15711 = sst [smem:[#allocation56_spill]] %s15667_s5 }
   0x7   :  { %15712 = sst [smem:[#allocation57_spill]] %s15668_s6 }
   0x8   :  { %15713 = sst [smem:[#allocation58_spill]] %s15669_s7 }
   0x9   :  { %15714 = sst [smem:[#allocation59_spill]] %s15670_s8 }
   0xa   :  { %15715 = sst [smem:[#allocation60_spill]] %s15671_s9 }
   0xb   :  { %15716 = sst [smem:[#allocation61_spill]] %s15672_s10 }
   0xc   :  { %15717 = sst [smem:[#allocation62_spill]] %s15673_s11 }
   0xd   :  { %15718 = sst [smem:[#allocation63_spill]] %s15674_s12 }
   0xe   :  { %15719 = sst [smem:[#allocation64_spill]] %s15675_s13 }
   0xf   :  { %15720 = sst [smem:[#allocation65_spill]] %s15676_s14 }
  0x10   :  { %15721 = sst [smem:[#allocation66_spill]] %s15677_s15 }
  0x11   :  { %15722 = sst [smem:[#allocation67_spill]] %s15678_s16 }
  0x12   :  { %15723 = sst [smem:[#allocation68_spill]] %s15680_s18 }
  0x13   :  { %15724 = sst [smem:[#allocation69_spill]] %s15681_s19 }
  0x14   :  { %15725 = sst [smem:[#allocation70_spill]] %s15682_s20 }
  0x15   :  { %15726 = sst [smem:[#allocation71_spill]] %s15683_s21 }
  0x16   :  { %26 = vsyncpa [#allocation8], 0 }
  0x17   :  { %27 = vsyncpa [#allocation10], 0 }
  0x18   :  { %28 = vsyncpa [#allocation13], 0 }
  0x19   :  { %29 = vsyncpa [#allocation16], 0 }
  0x1a   :  { %30 = vsyncpa [#allocation19], 0 }
  0x1b   :  { %31 = vsyncpa [#allocation22], 0 }
  0x1c   :  { %32 = vsyncpa [#allocation25], 0 }
  0x1d   :  { %33 = vsyncpa [#allocation28], 0 }
  0x1e   :  { %34 = vsyncpa [#allocation31], 0  ;;  %s13516_s2 = smov 0   ;;  %s13518_s25 = smov 0  }
  0x1f   :  { %s13520_s26 = smov 0   ;;  %s13522_s27 = smov 0  }
  0x20   :  { %s13524_s3 = smov 0  }
  0x21 LB: > { %15727 = sst [smem:[#allocation42_spill]] %s13359_s2  ;;  %s13377_s28 = smov [#allocation9]   ;;  %s13375_s3 = sphi %s13524_s3, %s40_s3   ;;  %s13371_s27 = sphi %s13522_s27, %s15788_s27   ;;  %s13367_s26 = sphi %s13520_s26, %s15787_s26   ;;  %s13363_s25 = sphi %s13518_s25, %s15786_s25   ;;  %s13359_s2 = sphi %s13516_s2, %s15785_s2  }
  0x22   : > { %15728 = sst [smem:[#allocation43_spill]] %s13363_s25  ;;  %s565_s29 = sshll.u32 %s13377_s28, 4  ;;  %s13548_s29 = int_to_ptr.vmem [resolvable:$true] %s565_s29 }
  0x23   : > { %15729 = sst [smem:[#allocation44_spill]] %s13375_s3  ;;  %s10536_s0 = sadd.s32 4294967295, %s13375_s3  }
  0x24   : > { %p10538_p0 = scmp.ge.s32.totalorder %s13375_s3, 1  ;;  %p541_p1 = scmp.lt.s32.totalorder %s13375_s3, 5 }
  0x25   : > { %p13544_p2 = scmp.eq.s32.totalorder %s10536_s0, 0  ;;  %s13378_s5 = smov [#allocation12]  }
  0x26   : > { %p13550_p3 = pnand %p10538_p0, %p541_p1  ;;  %s589_s22 = sshll.u32 %s13378_s5, 4  ;;  %s13556_s22 = int_to_ptr.vmem [resolvable:$true] %s589_s22 }
  0x27   : > { %s15730_s4 = scalar_select %p13544_p2, 1, 0 }
  0x28   : > { %s15732_s30 = scalar_select %p13550_p3, 1, 0 }
  0x29   : > { %15731 = sst [smem:[#allocation45_spill]] %s15730_s4  ;;  %p11913_p4 = pneg %p13550_p3 }
  0x2a   : > { %15733 = sst [smem:[#allocation46_spill]] %s15732_s30  ;;  %s13379_s23 = smov [#allocation15]  }
  0x2b   : > { %s613_s1 = sshll.u32 %s13379_s23, 4  ;;  %p13560_p5 = pnand %p13544_p2, %p11913_p4  ;;  %s13564_s1 = int_to_ptr.vmem [resolvable:$true] %s613_s1 }
  0x2c   : > { %s13380_s28 = smov [#allocation18]   ;;  %s15735_s19 = sld [smem:[#allocation55_spill]] }
  0x2d   : > { %s637_s0 = sshll.u32 %s13380_s28, 4  ;;  %p13576_p7 = pneg %p13560_p5  ;;  %s13566_s0 = int_to_ptr.vmem [resolvable:$true] %s637_s0 }
  0x32   : > { %s12825_s21 = scalar_lea.hbm %s15735_s19, 16 }
  0x33   : > { %p12826_p6 = scmp.ne.s32.totalorder %s15735_s19, %s12825_s21  ;;  %p12832_p10 = scmp.lt.u32.totalorder %s12825_s21, %s15735_s19 }
  0x35   : > { %p12828_p8 = pnand %p13576_p7, %p12826_p6 }
  0x37   : > { %p12829_p9 = pneg %p12828_p8 }
  0x39   : > { %p12834_p11 = pnand %p12832_p10, %p12829_p9 }
  0x3b   : > { %12837 = shalt.err (!%p12834_p11)
}
  0x3c   : > { %s12838_s2 = scalar_lea.vmem %s13548_s29, 16  ;;  %s12845_s25 = scalar_lea.vmem %s13548_s29, 32 }
  0x3d   : > { %p12839_p12 = scmp.ne.s32.totalorder %s13548_s29, %s12838_s2  ;;  %p12846_p1 = scmp.lt.s32.totalorder %s13548_s29, %s13548_s29 }
  0x3e   : > { %p12847_p4 = scmp.lt.s32.totalorder %s12845_s25, %s12838_s2 }
  0x3f   : > { %p12841_p13 = pnand %p12839_p12, %p13576_p7 }
  0x40   : > { %p12848_p6 = por %p12847_p4, %p12846_p1 }
  0x41   : > { %p12842_p0 = pneg %p12841_p13 }
  0x43   : > { %p12849_p8 = pnand %p12848_p6, %p12842_p0 }
  0x45   : > { %12852 = shalt.err (!%p12849_p8)
}
  0x46   : > { %11919 = dma.hbm_to_vmem [thread:$0]  (!%p13560_p5), %s15735_s19, 16, %s13548_s29, [#allocation10]  }
  0x47   : > { %s15737_s6 = sld [smem:[#allocation57_spill]] }
  0x4d   : > { %s12853_s28 = scalar_lea.hbm %s15737_s6, 16 }
  0x4e   : > { %p12854_p9 = scmp.ne.s32.totalorder %s15737_s6, %s12853_s28  ;;  %p12860_p12 = scmp.lt.u32.totalorder %s12853_s28, %s15737_s6 }
  0x50   : > { %p12856_p10 = pnand %p12854_p9, %p13576_p7 }
  0x52   : > { %p12857_p11 = pneg %p12856_p10 }
  0x54   : > { %p12862_p13 = pnand %p12860_p12, %p12857_p11 }
  0x56   : > { %12865 = shalt.err (!%p12862_p13)
}
  0x57   : > { %s12866_s29 = scalar_lea.vmem %s13556_s22, 16  ;;  %s12873_s20 = scalar_lea.vmem %s13556_s22, 32 }
  0x58   : > { %p12867_p0 = scmp.ne.s32.totalorder %s13556_s22, %s12866_s29  ;;  %p12874_p6 = scmp.lt.s32.totalorder %s13556_s22, %s13556_s22 }
  0x59   : > { %p12875_p8 = scmp.lt.s32.totalorder %s12873_s20, %s12866_s29 }
  0x5a   : > { %p12869_p1 = pnand %p12867_p0, %p13576_p7 }
  0x5b   : > { %p12876_p9 = por %p12875_p8, %p12874_p6 }
  0x5c   : > { %p12870_p4 = pneg %p12869_p1 }
  0x5e   : > { %p12877_p10 = pnand %p12876_p9, %p12870_p4 }
  0x60   : > { %12880 = shalt.err (!%p12877_p10)
}
  0x61   : > { %11925 = dma.hbm_to_vmem [thread:$0]  (!%p13560_p5), %s15737_s6, 16, %s13556_s22, [#allocation13]  }
  0x62   : > { %s15738_s8 = sld [smem:[#allocation59_spill]] }
  0x68   : > { %s12881_s5 = scalar_lea.hbm %s15738_s8, 16 }
  0x69   : > { %p12882_p11 = scmp.ne.s32.totalorder %s15738_s8, %s12881_s5  ;;  %p12888_p0 = scmp.lt.u32.totalorder %s12881_s5, %s15738_s8 }
  0x6b   : > { %p12884_p12 = pnand %p12882_p11, %p13576_p7 }
  0x6d   : > { %p12885_p13 = pneg %p12884_p12 }
  0x6f   : > { %p12890_p1 = pnand %p12888_p0, %p12885_p13 }
  0x71   : > { %12893 = shalt.err (!%p12890_p1)
}
  0x72   : > { %s12894_s22 = scalar_lea.vmem %s13564_s1, 16  ;;  %s12901_s20 = scalar_lea.vmem %s13564_s1, 32 }
  0x73   : > { %p12895_p4 = scmp.ne.s32.totalorder %s13564_s1, %s12894_s22  ;;  %p12902_p9 = scmp.lt.s32.totalorder %s13564_s1, %s13564_s1 }
  0x74   : > { %p12903_p10 = scmp.lt.s32.totalorder %s12901_s20, %s12894_s22 }
  0x75   : > { %p12897_p6 = pnand %p12895_p4, %p13576_p7 }
  0x76   : > { %p12904_p11 = por %p12903_p10, %p12902_p9 }
  0x77   : > { %p12898_p8 = pneg %p12897_p6 }
  0x79   : > { %p12905_p12 = pnand %p12904_p11, %p12898_p8 }
  0x7b   : > { %12908 = shalt.err (!%p12905_p12)
}
  0x7c   : > { %11931 = dma.hbm_to_vmem [thread:$0]  (!%p13560_p5), %s15738_s8, 16, %s13564_s1, [#allocation16]  }
  0x7d   : > { %s15739_s10 = sld [smem:[#allocation61_spill]] }
  0x83   : > { %s12909_s5 = scalar_lea.hbm %s15739_s10, 16 }
  0x84   : > { %p12910_p13 = scmp.ne.s32.totalorder %s15739_s10, %s12909_s5  ;;  %p12916_p4 = scmp.lt.u32.totalorder %s12909_s5, %s15739_s10 }
  0x86   : > { %p12912_p0 = pnand %p12910_p13, %p13576_p7 }
  0x88   : > { %p12913_p1 = pneg %p12912_p0 }
  0x8a   : > { %p12918_p6 = pnand %p12916_p4, %p12913_p1 }
  0x8c   : > { %12921 = shalt.err (!%p12918_p6)
}
  0x8d   : > { %s12922_s1 = scalar_lea.vmem %s13566_s0, 16  ;;  %s12929_s22 = scalar_lea.vmem %s13566_s0, 32 }
  0x8e   : > { %p12923_p8 = scmp.ne.s32.totalorder %s13566_s0, %s12922_s1  ;;  %p12930_p11 = scmp.lt.s32.totalorder %s13566_s0, %s13566_s0 }
  0x8f   : > { %p12931_p12 = scmp.lt.s32.totalorder %s12929_s22, %s12922_s1 }
  0x90   : > { %p12925_p9 = pnand %p12923_p8, %p13576_p7 }
  0x91   : > { %p12932_p13 = por %p12931_p12, %p12930_p11 }
  0x92   : > { %p12926_p10 = pneg %p12925_p9 }
  0x94   : > { %p12933_p0 = pnand %p12932_p13, %p12926_p10 }
  0x96   : > { %12936 = shalt.err (!%p12933_p0)
}
  0x97   : > { %11937 = dma.hbm_to_vmem [thread:$0]  (!%p13560_p5), %s15739_s10, 16, %s13566_s0, [#allocation19]  }
  0x98   : > { %s13381_s21 = smov [#allocation21]   ;;  %s13382_s4 = smov [#allocation24]  }
  0x99   : > { %s661_s3 = sshll.u32 %s13381_s21, 4  ;;  %s685_s5 = sshll.u32 %s13382_s4, 4  ;;  %s662_s3 = int_to_ptr.vmem [resolvable:$true] %s661_s3  ;;  %s686_s5 = int_to_ptr.vmem [resolvable:$true] %s685_s5 }
  0x9a   : > { %s15740_s12 = sld [smem:[#allocation63_spill]] }
  0xa0   : > { %s12937_s25 = scalar_lea.hbm %s15740_s12, 128 }
  0xa1   : > { %p12938_p1 = scmp.ne.s32.totalorder %s15740_s12, %s12937_s25  ;;  %p12944_p8 = scmp.lt.u32.totalorder %s12937_s25, %s15740_s12 }
  0xa3   : > { %p12940_p4 = pnand %p12938_p1, %p13576_p7 }
  0xa5   : > { %p12941_p6 = pneg %p12940_p4 }
  0xa7   : > { %p12946_p9 = pnand %p12944_p8, %p12941_p6 }
  0xa9   : > { %12949 = shalt.err (!%p12946_p9)
}
  0xaa   : > { %s12950_s0 = scalar_lea.vmem %s662_s3, 128  ;;  %p12958_p13 = scmp.lt.s32.totalorder %s662_s3, %s662_s3 }
  0xab   : > { %p12951_p10 = scmp.ne.s32.totalorder %s662_s3, %s12950_s0  ;;  %p12959_p0 = scmp.lt.s32.totalorder %s12950_s0, %s12950_s0 }
  0xad   : > { %p12953_p11 = pnand %p12951_p10, %p13576_p7  ;;  %p12960_p2 = por %p12959_p0, %p12958_p13 }
  0xaf   : > { %p12954_p12 = pneg %p12953_p11 }
  0xb1   : > { %p12961_p3 = pnand %p12960_p2, %p12954_p12 }
  0xb3   : > { %12964 = shalt.err (!%p12961_p3)
}
  0xb4   : > { %11943 = dma.hbm_to_vmem [thread:$0]  (!%p13560_p5), %s15740_s12, 128, %s662_s3, [#allocation22]  }
  0xb5   : > { %s15741_s14 = sld [smem:[#allocation65_spill]] }
  0xbb   : > { %s12965_s2 = scalar_lea.hbm %s15741_s14, 64 }
  0xbc   : > { %p12966_p1 = scmp.ne.s32.totalorder %s15741_s14, %s12965_s2  ;;  %p12972_p3 = scmp.lt.u32.totalorder %s12965_s2, %s15741_s14 }
  0xbe   : > { %p12968_p4 = pnand %p12966_p1, %p13576_p7 }
  0xc0   : > { %p12969_p2 = pneg %p12968_p4 }
  0xc2   : > { %p12974_p6 = pnand %p12972_p3, %p12969_p2 }
  0xc4   : > { %12977 = shalt.err (!%p12974_p6)
}
  0xc5   : > { %s12978_s20 = scalar_lea.vmem %s686_s5, 64  ;;  %p12986_p11 = scmp.lt.s32.totalorder %s686_s5, %s686_s5 }
  0xc6   : > { %p12979_p8 = scmp.ne.s32.totalorder %s686_s5, %s12978_s20  ;;  %p12987_p12 = scmp.lt.s32.totalorder %s12978_s20, %s12978_s20 }
  0xc8   : > { %p12981_p9 = pnand %p12979_p8, %p13576_p7  ;;  %p12988_p13 = por %p12987_p12, %p12986_p11 }
  0xca   : > { %p12982_p10 = pneg %p12981_p9 }
  0xcc   : > { %p12989_p0 = pnand %p12988_p13, %p12982_p10 }
  0xce   : > { %12992 = shalt.err (!%p12989_p0)
}
  0xcf   : > { %11949 = dma.hbm_to_vmem [thread:$0]  (!%p13560_p5), %s15741_s14, 64, %s686_s5, [#allocation25]  }
  0xd0   : > { %s13383_s30 = smov [#allocation27]   ;;  %s13384_s4 = smov [#allocation30]  }
  0xd1   : > { %s709_s21 = sshll.u32 %s13383_s30, 4  ;;  %s733_s28 = sshll.u32 %s13384_s4, 4  ;;  %s710_s21 = int_to_ptr.vmem [resolvable:$true] %s709_s21  ;;  %s734_s28 = int_to_ptr.vmem [resolvable:$true] %s733_s28 }
  0xd2   : > { %s15742_s16 = sld [smem:[#allocation67_spill]] }
  0xd8   : > { %s12993_s29 = scalar_lea.hbm %s15742_s16, 32 }
  0xd9   : > { %p12994_p1 = scmp.ne.s32.totalorder %s15742_s16, %s12993_s29  ;;  %p13000_p3 = scmp.lt.u32.totalorder %s12993_s29, %s15742_s16 }
  0xdb   : > { %p12996_p4 = pnand %p12994_p1, %p13576_p7 }
  0xdd   : > { %p12997_p2 = pneg %p12996_p4 }
  0xdf   : > { %p13002_p6 = pnand %p13000_p3, %p12997_p2 }
  0xe1   : > { %13005 = shalt.err (!%p13002_p6)
}
  0xe2   : > { %s13006_s5 = scalar_lea.vmem %s710_s21, 32  ;;  %p13014_p11 = scmp.lt.s32.totalorder %s710_s21, %s710_s21 }
  0xe3   : > { %p13007_p8 = scmp.ne.s32.totalorder %s710_s21, %s13006_s5  ;;  %p13015_p12 = scmp.lt.s32.totalorder %s13006_s5, %s13006_s5 }
  0xe5   : > { %p13009_p9 = pnand %p13007_p8, %p13576_p7  ;;  %p13016_p13 = por %p13015_p12, %p13014_p11 }
  0xe7   : > { %p13010_p10 = pneg %p13009_p9 }
  0xe9   : > { %p13017_p0 = pnand %p13016_p13, %p13010_p10 }
  0xeb   : > { %13020 = shalt.err (!%p13017_p0)
}
  0xec   : > { %11955 = dma.hbm_to_vmem [thread:$0]  (!%p13560_p5), %s15742_s16, 32, %s710_s21, [#allocation28]  }
  0xed   : > { %s15743_s18 = sld [smem:[#allocation68_spill]] }
  0xf3   : > { %s13021_s25 = scalar_lea.hbm %s15743_s18, 16 }
  0xf4   : > { %p13022_p1 = scmp.ne.s32.totalorder %s15743_s18, %s13021_s25  ;;  %p13028_p3 = scmp.lt.u32.totalorder %s13021_s25, %s15743_s18 }
  0xf6   : > { %p13024_p4 = pnand %p13022_p1, %p13576_p7 }
  0xf8   : > { %p13025_p2 = pneg %p13024_p4 }
  0xfa   : > { %p13030_p6 = pnand %p13028_p3, %p13025_p2 }
  0xfc   : > { %13033 = shalt.err (!%p13030_p6)
}
  0xfd   : > { %s13034_s3 = scalar_lea.vmem %s734_s28, 16  ;;  %s13041_s21 = scalar_lea.vmem %s734_s28, 32 }
  0xfe   : > { %p13035_p8 = scmp.ne.s32.totalorder %s734_s28, %s13034_s3  ;;  %p13042_p11 = scmp.lt.s32.totalorder %s734_s28, %s734_s28 }
  0xff   : > { %p13043_p12 = scmp.lt.s32.totalorder %s13041_s21, %s13034_s3 }
 0x100   : > { %p13037_p9 = pnand %p13035_p8, %p13576_p7 }
 0x101   : > { %p13044_p13 = por %p13043_p12, %p13042_p11 }
 0x102   : > { %p13038_p10 = pneg %p13037_p9 }
 0x104   : > { %p13045_p0 = pnand %p13044_p13, %p13038_p10 }
 0x106   : > { %13048 = shalt.err (!%p13045_p0)
}
 0x107   : > { %11961 = dma.hbm_to_vmem [thread:$0]  (!%p13560_p5), %s15743_s18, 16, %s734_s28, [#allocation31]  }
 0x108   : > { %s49_s30 = sadd.s32 1, %s13367_s26  ;;  %s52_s4 = sadd.s32 1, %s13371_s27 }
 0x109   : > { %p50_p1 = scmp.ge.s32.totalorder %s49_s30, 2  ;;  %s13385_s2 = smov [#allocation7]  }
 0x10a   : > { %s554_s25 = sshll.u32 %s13385_s2, 4  ;;  %s13386_s29 = smov [#allocation11]   ;;  %s555_s25 = int_to_ptr.vmem [resolvable:$true] %s554_s25 }
 0x10b   : > { %s15790_s30 = smov (%p50_p1, %s49_s30), 0  ;;  %s15792_s4 = smov (!%p50_p1, %s52_s4), %s13371_s27 }
 0x10c   : > { %s575_s1 = sshll.u32 %s13386_s29, 4  ;;  %s15744_s3 = sld [smem:[#allocation54_spill]]  ;;  %s576_s1 = int_to_ptr.vmem [resolvable:$true] %s575_s1 }
 0x112   : > { %s15745_s21 = smov %s15744_s3  ;;  %s13049_s5 = scalar_lea.hbm %s15744_s3, 64 }
 0x113   : > { %p13050_p2 = scmp.ne.s32.totalorder %s15745_s21, %s13049_s5  ;;  %p13056_p8 = scmp.lt.u32.totalorder %s13049_s5, %s15745_s21 }
 0x115   : > { %p13052_p3 = pnand %p13050_p2, %p13576_p7 }
 0x117   : > { %p13053_p6 = pneg %p13052_p3 }
 0x119   : > { %p13058_p9 = pnand %p13056_p8, %p13053_p6 }
 0x11b   : > { %13061 = shalt.err (!%p13058_p9)
}
 0x11c   : > { %s13062_s2 = scalar_lea.vmem %s555_s25, 64  ;;  %p13070_p13 = scmp.lt.s32.totalorder %s555_s25, %s555_s25 }
 0x11d   : > { %p13063_p10 = scmp.ne.s32.totalorder %s555_s25, %s13062_s2  ;;  %p13071_p0 = scmp.lt.s32.totalorder %s13062_s2, %s13062_s2 }
 0x11f   : > { %p13065_p11 = pnand %p13063_p10, %p13576_p7  ;;  %p13072_p1 = por %p13071_p0, %p13070_p13 }
 0x121   : > { %p13066_p12 = pneg %p13065_p11 }
 0x123   : > { %p13073_p4 = pnand %p13072_p1, %p13066_p12 }
 0x125   : > { %13076 = shalt.err (!%p13073_p4)
}
 0x126   : > { %11916 = dma.hbm_to_vmem [thread:$0]  (!%p13560_p5), %s15745_s21, 64, %s555_s25, [#allocation8]  }
 0x127   : > { %p15746_p2 = scmp.ge.s32.totalorder %s15792_s4, 2  ;;  %s15747_s20 = sld [smem:[#allocation56_spill]] }
 0x129   : > { %s15794_s4 = smov (%p15746_p2, %s15792_s4), 0 }
 0x12d   : > { %s13077_s3 = scalar_lea.hbm %s15747_s20, 512 }
 0x12e   : > { %p13078_p3 = scmp.ne.s32.totalorder %s15747_s20, %s13077_s3  ;;  %p13084_p8 = scmp.lt.u32.totalorder %s13077_s3, %s15747_s20 }
 0x130   : > { %p13080_p4 = pnand %p13078_p3, %p13576_p7 }
 0x132   : > { %p13081_p6 = pneg %p13080_p4 }
 0x134   : > { %p13086_p9 = pnand %p13084_p8, %p13081_p6 }
 0x136   : > { %13089 = shalt.err (!%p13086_p9)
}
 0x137   : > { %s13090_s25 = scalar_lea.vmem %s576_s1, 512  ;;  %p13098_p13 = scmp.lt.s32.totalorder %s576_s1, %s576_s1 }
 0x138   : > { %p13091_p10 = scmp.ne.s32.totalorder %s576_s1, %s13090_s25  ;;  %p13099_p0 = scmp.lt.s32.totalorder %s13090_s25, %s13090_s25 }
 0x13a   : > { %p13093_p11 = pnand %p13091_p10, %p13576_p7  ;;  %p13100_p1 = por %p13099_p0, %p13098_p13 }
 0x13c   : > { %p13094_p12 = pneg %p13093_p11 }
 0x13e   : > { %p13101_p2 = pnand %p13100_p1, %p13094_p12 }
 0x140   : > { %13104 = shalt.err (!%p13101_p2)
}
 0x141   : > { %s13387_s6 = smov 64   ;;  %s13388_s29 = smov 4  }
 0x142   : > { %11922 = dma.hbm_to_vmem [thread:$0]  (!%p13560_p5), %s15747_s20, 512, %s576_s1, [#allocation10], %s13387_s6, %s13387_s6, %s13388_s29  }
 0x143   : > { %s13389_s3 = smov [#allocation14]   ;;  %s13390_s0 = smov [#allocation17]  }
 0x144   : > { %s599_s5 = sshll.u32 %s13389_s3, 4  ;;  %s623_s28 = sshll.u32 %s13390_s0, 4  ;;  %s600_s5 = int_to_ptr.vmem [resolvable:$true] %s599_s5  ;;  %s624_s28 = int_to_ptr.vmem [resolvable:$true] %s623_s28 }
 0x145   : > { %s15748_s7 = sld [smem:[#allocation58_spill]] }
 0x14b   : > { %s13105_s10 = scalar_lea.hbm %s15748_s7, 512 }
 0x14c   : > { %p13106_p3 = scmp.ne.s32.totalorder %s15748_s7, %s13105_s10  ;;  %p13112_p8 = scmp.lt.u32.totalorder %s13105_s10, %s15748_s7 }
 0x14e   : > { %p13108_p4 = pnand %p13106_p3, %p13576_p7 }
 0x150   : > { %p13109_p6 = pneg %p13108_p4 }
 0x152   : > { %p13114_p9 = pnand %p13112_p8, %p13109_p6 }
 0x154   : > { %13117 = shalt.err (!%p13114_p9)
}
 0x155   : > { %s13118_s1 = scalar_lea.vmem %s600_s5, 512  ;;  %p13126_p13 = scmp.lt.s32.totalorder %s600_s5, %s600_s5 }
 0x156   : > { %p13119_p10 = scmp.ne.s32.totalorder %s600_s5, %s13118_s1  ;;  %p13127_p0 = scmp.lt.s32.totalorder %s13118_s1, %s13118_s1 }
 0x158   : > { %p13121_p11 = pnand %p13119_p10, %p13576_p7  ;;  %p13128_p1 = por %p13127_p0, %p13126_p13 }
 0x15a   : > { %p13122_p12 = pneg %p13121_p11 }
 0x15c   : > { %p13129_p2 = pnand %p13128_p1, %p13122_p12 }
 0x15e   : > { %13132 = shalt.err (!%p13129_p2)
}
 0x15f   : > { %11928 = dma.hbm_to_vmem [thread:$0]  (!%p13560_p5), %s15748_s7, 512, %s600_s5, [#allocation13], %s13387_s6, %s13387_s6, %s13388_s29  }
 0x160   : > { %s15749_s9 = sld [smem:[#allocation60_spill]] }
 0x166   : > { %s13133_s18 = scalar_lea.hbm %s15749_s9, 512 }
 0x167   : > { %p13134_p3 = scmp.ne.s32.totalorder %s15749_s9, %s13133_s18  ;;  %p13140_p8 = scmp.lt.u32.totalorder %s13133_s18, %s15749_s9 }
 0x169   : > { %p13136_p4 = pnand %p13134_p3, %p13576_p7 }
 0x16b   : > { %p13137_p6 = pneg %p13136_p4 }
 0x16d   : > { %p13142_p9 = pnand %p13140_p8, %p13137_p6 }
 0x16f   : > { %13145 = shalt.err (!%p13142_p9)
}
 0x170   : > { %s13146_s2 = scalar_lea.vmem %s624_s28, 512  ;;  %p13154_p13 = scmp.lt.s32.totalorder %s624_s28, %s624_s28 }
 0x171   : > { %p13147_p10 = scmp.ne.s32.totalorder %s624_s28, %s13146_s2  ;;  %p13155_p0 = scmp.lt.s32.totalorder %s13146_s2, %s13146_s2 }
 0x173   : > { %p13149_p11 = pnand %p13147_p10, %p13576_p7  ;;  %p13156_p1 = por %p13155_p0, %p13154_p13 }
 0x175   : > { %p13150_p12 = pneg %p13149_p11 }
 0x177   : > { %p13157_p2 = pnand %p13156_p1, %p13150_p12 }
 0x179   : > { %13160 = shalt.err (!%p13157_p2)
}
 0x17a   : > { %11934 = dma.hbm_to_vmem [thread:$0]  (!%p13560_p5), %s15749_s9, 512, %s624_s28, [#allocation16], %s13387_s6, %s13387_s6, %s13388_s29  }
 0x17b   : > { %s13391_s1 = smov [#allocation20]   ;;  %s15750_s11 = sld [smem:[#allocation62_spill]] }
 0x17c   : > { %s647_s12 = sshll.u32 %s13391_s1, 4  ;;  %s648_s12 = int_to_ptr.vmem [resolvable:$true] %s647_s12 }
 0x181   : > { %s13161_s16 = scalar_lea.hbm %s15750_s11, 8192 }
 0x182   : > { %p13162_p3 = scmp.ne.s32.totalorder %s15750_s11, %s13161_s16  ;;  %p13168_p8 = scmp.lt.u32.totalorder %s13161_s16, %s15750_s11 }
 0x184   : > { %p13164_p4 = pnand %p13162_p3, %p13576_p7 }
 0x186   : > { %p13165_p6 = pneg %p13164_p4 }
 0x188   : > { %p13170_p9 = pnand %p13168_p8, %p13165_p6 }
 0x18a   : > { %13173 = shalt.err (!%p13170_p9)
}
 0x18b   : > { %s13174_s28 = scalar_lea.vmem %s648_s12, 8192  ;;  %p13182_p13 = scmp.lt.s32.totalorder %s648_s12, %s648_s12 }
 0x18c   : > { %p13175_p10 = scmp.ne.s32.totalorder %s648_s12, %s13174_s28  ;;  %p13183_p0 = scmp.lt.s32.totalorder %s13174_s28, %s13174_s28 }
 0x18e   : > { %p13177_p11 = pnand %p13175_p10, %p13576_p7  ;;  %p13184_p1 = por %p13183_p0, %p13182_p13 }
 0x190   : > { %p13178_p12 = pneg %p13177_p11 }
 0x192   : > { %p13185_p2 = pnand %p13184_p1, %p13178_p12 }
 0x194   : > { %13188 = shalt.err (!%p13185_p2)
}
 0x195   : > { %s13392_s0 = smov 512   ;;  %s13393_s2 = smov 32  }
 0x196   : > { %11940 = dma.hbm_to_vmem [thread:$0]  (!%p13560_p5), %s15750_s11, 8192, %s648_s12, [#allocation19], %s13392_s0, %s13392_s0, %s13393_s2  }
 0x197   : > { %s13394_s1 = smov [#allocation23]   ;;  %s15751_s13 = sld [smem:[#allocation64_spill]] }
 0x198   : > { %s671_s10 = sshll.u32 %s13394_s1, 4  ;;  %s672_s10 = int_to_ptr.vmem [resolvable:$true] %s671_s10 }
 0x19d   : > { %s13189_s18 = scalar_lea.hbm %s15751_s13, 53248 }
 0x19e   : > { %p13190_p3 = scmp.ne.s32.totalorder %s15751_s13, %s13189_s18  ;;  %p13196_p8 = scmp.lt.u32.totalorder %s13189_s18, %s15751_s13 }
 0x1a0   : > { %p13192_p4 = pnand %p13190_p3, %p13576_p7 }
 0x1a2   : > { %p13193_p6 = pneg %p13192_p4 }
 0x1a4   : > { %p13198_p9 = pnand %p13196_p8, %p13193_p6 }
 0x1a6   : > { %13201 = shalt.err (!%p13198_p9)
}
 0x1a7   : > { %s13202_s12 = scalar_lea.vmem %s672_s10, 53248  ;;  %p13210_p13 = scmp.lt.s32.totalorder %s672_s10, %s672_s10 }
 0x1a8   : > { %p13203_p10 = scmp.ne.s32.totalorder %s672_s10, %s13202_s12  ;;  %p13211_p0 = scmp.lt.s32.totalorder %s13202_s12, %s13202_s12 }
 0x1aa   : > { %p13205_p11 = pnand %p13203_p10, %p13576_p7  ;;  %p13212_p1 = por %p13211_p0, %p13210_p13 }
 0x1ac   : > { %p13206_p12 = pneg %p13205_p11 }
 0x1ae   : > { %p13213_p2 = pnand %p13212_p1, %p13206_p12 }
 0x1b0   : > { %13216 = shalt.err (!%p13213_p2)
}
 0x1b1   : > { %s13395_s0 = smov 256   ;;  %s13396_s2 = smov 16  }
 0x1b2   : > { %11946 = dma.hbm_to_vmem [thread:$0]  (!%p13560_p5), %s15751_s13, 53248, %s672_s10, [#allocation22], %s13395_s0, %s13395_s0, %s13396_s2  }
 0x1b3   : > { %s13397_s1 = smov [#allocation26]   ;;  %s15752_s15 = sld [smem:[#allocation66_spill]] }
 0x1b4   : > { %s695_s14 = sshll.u32 %s13397_s1, 4  ;;  %s696_s14 = int_to_ptr.vmem [resolvable:$true] %s695_s14 }
 0x1b9   : > { %s13217_s8 = scalar_lea.hbm %s15752_s15, 8192 }
 0x1ba   : > { %p13218_p3 = scmp.ne.s32.totalorder %s15752_s15, %s13217_s8  ;;  %p13224_p8 = scmp.lt.u32.totalorder %s13217_s8, %s15752_s15 }
 0x1bc   : > { %p13220_p4 = pnand %p13218_p3, %p13576_p7 }
 0x1be   : > { %p13221_p6 = pneg %p13220_p4 }
 0x1c0   : > { %p13226_p9 = pnand %p13224_p8, %p13221_p6 }
 0x1c2   : > { %13229 = shalt.err (!%p13226_p9)
}
 0x1c3   : > { %s13230_s10 = scalar_lea.vmem %s696_s14, 8192  ;;  %p13238_p13 = scmp.lt.s32.totalorder %s696_s14, %s696_s14 }
 0x1c4   : > { %p13231_p10 = scmp.ne.s32.totalorder %s696_s14, %s13230_s10  ;;  %p13239_p0 = scmp.lt.s32.totalorder %s13230_s10, %s13230_s10 }
 0x1c6   : > { %p13233_p11 = pnand %p13231_p10, %p13576_p7  ;;  %p13240_p1 = por %p13239_p0, %p13238_p13 }
 0x1c8   : > { %p13234_p12 = pneg %p13233_p11 }
 0x1ca   : > { %p13241_p2 = pnand %p13240_p1, %p13234_p12 }
 0x1cc   : > { %13244 = shalt.err (!%p13241_p2)
}
 0x1cd   : > { %s13398_s0 = smov 128   ;;  %s13399_s2 = smov 8  }
 0x1ce   : > { %11952 = dma.hbm_to_vmem [thread:$0]  (!%p13560_p5), %s15752_s15, 8192, %s696_s14, [#allocation25], %s13398_s0, %s13398_s0, %s13399_s2  }
 0x1cf   : > { %s13400_s1 = smov [#allocation29]   ;;  %s13401_s18 = smov [#allocation32]  }
 0x1d0   : > { %s719_s16 = sshll.u32 %s13400_s1, 4  ;;  %s747_s8 = sshll.u32 %s13401_s18, 4  ;;  %s720_s16 = int_to_ptr.vmem [resolvable:$true] %s719_s16  ;;  %s13885_s8 = int_to_ptr.vmem [resolvable:$true] %s747_s8 }
 0x1d1   : > { %s13245_s28 = scalar_lea.hbm %s15679_s17, 2048 }
 0x1d2   : > { %p13246_p3 = scmp.ne.s32.totalorder %s15679_s17, %s13245_s28  ;;  %p13252_p8 = scmp.lt.u32.totalorder %s13245_s28, %s15679_s17 }
 0x1d4   : > { %p13248_p4 = pnand %p13246_p3, %p13576_p7 }
 0x1d6   : > { %p13249_p6 = pneg %p13248_p4 }
 0x1d8   : > { %p13254_p9 = pnand %p13252_p8, %p13249_p6 }
 0x1da   : > { %13257 = shalt.err (!%p13254_p9)
}
 0x1db   : > { %s13258_s0 = scalar_lea.vmem %s720_s16, 2048  ;;  %p13266_p13 = scmp.lt.s32.totalorder %s720_s16, %s720_s16 }
 0x1dc   : > { %p13259_p10 = scmp.ne.s32.totalorder %s720_s16, %s13258_s0  ;;  %p13267_p0 = scmp.lt.s32.totalorder %s13258_s0, %s13258_s0 }
 0x1de   : > { %p13261_p11 = pnand %p13259_p10, %p13576_p7  ;;  %p13268_p1 = por %p13267_p0, %p13266_p13 }
 0x1e0   : > { %p13262_p12 = pneg %p13261_p11 }
 0x1e2   : > { %p13269_p2 = pnand %p13268_p1, %p13262_p12 }
 0x1e4   : > { %13272 = shalt.err (!%p13269_p2)
}
 0x1e5   : > { %11958 = dma.hbm_to_vmem [thread:$0]  (!%p13560_p5), %s15679_s17, 2048, %s720_s16, [#allocation28], %s13387_s6, %s13387_s6, %s13388_s29  }
 0x1e6   : > { %s15753_s22 = sld [smem:[#allocation70_spill]] }
 0x1ec   : > { %s13273_s3 = scalar_lea.hbm %s15753_s22, 16 }
 0x1ed   : > { %p13274_p3 = scmp.ne.s32.totalorder %s15753_s22, %s13273_s3  ;;  %p13280_p8 = scmp.lt.u32.totalorder %s13273_s3, %s15753_s22 }
 0x1ef   : > { %p13276_p4 = pnand %p13274_p3, %p13576_p7 }
 0x1f1   : > { %p13277_p6 = pneg %p13276_p4 }
 0x1f3   : > { %p13282_p9 = pnand %p13280_p8, %p13277_p6 }
 0x1f5   : > { %13285 = shalt.err (!%p13282_p9)
}
 0x1f6   : > { %s13286_s6 = scalar_lea.vmem %s13885_s8, 16  ;;  %s13293_s29 = scalar_lea.vmem %s13885_s8, 32 }
 0x1f7   : > { %p13287_p10 = scmp.ne.s32.totalorder %s13885_s8, %s13286_s6  ;;  %p13294_p13 = scmp.lt.s32.totalorder %s13885_s8, %s13885_s8 }
 0x1f8   : > { %p13295_p0 = scmp.lt.s32.totalorder %s13293_s29, %s13286_s6 }
 0x1f9   : > { %p13289_p11 = pnand %p13287_p10, %p13576_p7 }
 0x1fa   : > { %p13296_p1 = por %p13295_p0, %p13294_p13 }
 0x1fb   : > { %p13290_p12 = pneg %p13289_p11 }
 0x1fd   : > { %p13297_p2 = pnand %p13296_p1, %p13290_p12 }
 0x1ff   : > { %13300 = shalt.err (!%p13297_p2)
}
 0x200   : > { %11964 = dma.hbm_to_vmem [thread:$0]  (!%p13560_p5), %s15753_s22, 16, %s13885_s8, [#allocation31]  }
 0x201   : > { %s15754_s0 = sld [smem:[#allocation46_spill]] }
 0x207   : > { %p15755_p3 = scmp.ne.s32.totalorder %s15754_s0, 0 }
 0x209   : > { %785 = sbr.rel (%p15755_p3) target bundleno = 3536 (0xdd0), region = 104 }
 0x210   : > { %s15756_s23 = sld [smem:[#allocation45_spill]] }
 0x216   : > { %p15757_p7 = scmp.ne.s32.totalorder %s15756_s23, 0 }
 0x218   : > { %13322 = dma.done.wait (%p15757_p7), [#allocation8], 64  }
 0x219   : > { %13324 = vsyncadd (%p15757_p7), [#allocation8], 4294967232 }
 0x21a   : > { %13326 = dma.done.wait (%p15757_p7), [#allocation10], 528  }
 0x21b   : > { %13328 = vsyncadd (%p15757_p7), [#allocation10], 4294966768 }
 0x21c   : > { %13330 = dma.done.wait (%p15757_p7), [#allocation13], 528  }
 0x21d   : > { %13332 = vsyncadd (%p15757_p7), [#allocation13], 4294966768 }
 0x21e   : > { %13334 = dma.done.wait (%p15757_p7), [#allocation16], 528  }
 0x21f   : > { %13336 = vsyncadd (%p15757_p7), [#allocation16], 4294966768 }
 0x220   : > { %13338 = dma.done.wait (%p15757_p7), [#allocation19], 8208  }
 0x221   : > { %13340 = vsyncadd (%p15757_p7), [#allocation19], 4294959088 }
 0x222   : > { %13342 = dma.done.wait (%p15757_p7), [#allocation22], 53376  }
 0x223   : > { %13344 = vsyncadd (%p15757_p7), [#allocation22], 4294913920 }
 0x224   : > { %13346 = dma.done.wait (%p15757_p7), [#allocation25], 8256  }
 0x225   : > { %13348 = vsyncadd (%p15757_p7), [#allocation25], 4294959040 }
 0x226   : > { %13350 = dma.done.wait (%p15757_p7), [#allocation28], 2080  }
 0x227   : > { %13352 = vsyncadd (%p15757_p7), [#allocation28], 4294965216 }
 0x228   : > { %13354 = dma.done.wait (%p15757_p7), [#allocation31], 32  }
 0x229   : > { %13356 = vsyncadd (%p15757_p7), [#allocation31], 4294967264  ;;  %s15758_s24 = sld [smem:[#allocation42_spill]]  ;;  %s15759_s8 = sld [smem:[#allocation43_spill]]  ;;  %vm1209_vm0 = vcmask 1042432   ;;  %vm1112_vm1 = vcmask 48128  }
 0x22a   : > { %s15760_s3 = sld [smem:[#allocation52_spill]]  ;;  %s15761_s6 = sld [smem:[#allocation53_spill]]  ;;  %v1104_v0 = vld [vmem:[#allocation7] sm:$0x7]  ;;  %vm1637_vm2 = vcmask 523264  }
 0x22b   : > { %s15762_s23 = sld [smem:[#allocation71_spill]]  ;;  %s15763_s13 = sld [smem:[#allocation51_spill]]  ;;  %11844 = vmatprep.subr.msk.bf16.mxu0 %vm1209_vm0, %v1104_v0  ;;  %v1211_v2 = vsel %vm1209_vm0, %v1104_v0, 0 }
 0x22c   : > { %11487 = vmatpush3.bf16.msra.mxu0 %v1211_v2 }
 0x22f   : > { %s10575_s2 = sshll.u32 %s15758_s24, 6  ;;  %p918_p5 = scmp.lt.s32.totalorder %s15759_s8, 1 }
 0x230   : > { %p920_p4 = scmp.lt.s32.totalorder %s10575_s2, 127  ;;  %p10787_p6 = scmp.ne.s32.totalorder %s15758_s24, 0 }
 0x231   : > { %s15796_s8 = smov (!%p918_p5, %s15759_s8), 1 }
 0x232   : > { %s15798_s2 = smov (!%p920_p4, %s10575_s2), 127  ;;  %s10576_s25 = sshll.u32 %s15796_s8, 7 }
 0x233   : > { %s929_s28 = scalar_lea.vmem %s15760_s3, %s15796_s8  ;;  %s923_s12 = sadd.s32 %s10576_s25, %s15798_s2 }
 0x234   : > { %s932_s29 = scalar_lea.vmem %s15761_s6, %s15796_s8  ;;  %s10577_s16 = sshll.u32 %s923_s12, 3  ;;  %v13993_v1 = vld [vmem:[%s929_s28] ss:$0 sm:$0xff] }
 0x235   : > { %s935_s7 = scalar_lea.vmem %s15762_s23, %s15796_s8  ;;  %s13991_s15 = scalar_lea.vmem %s15763_s13, %s10577_s16 }
 0x236   : > { %v937_v3 = vld [vmem:[%s13991_s15] sm:$0xff]  ;;  %v938_v4 = vld [vmem:[%s13991_s15 + $0x8] sm:$0xff]  ;;  %v939_v5 = vld [vmem:[%s13991_s15 + $0x10] sm:$0xff] }
 0x237   : > { %v1008_v6 = vsub.f32 %v937_v3, %v13993_v1  ;;  %v1009_v7 = vsub.f32 %v938_v4, %v13993_v1  ;;  %v940_v8 = vld [vmem:[%s13991_s15 + $0x18] sm:$0xff]  ;;  %v1010_v9 = vsub.f32 %v939_v5, %v13993_v1  ;;  %v941_v10 = vld [vmem:[%s13991_s15 + $0x20] sm:$0xff]  ;;  %v942_v11 = vld [vmem:[%s13991_s15 + $0x28] sm:$0xff] }
 0x238   : > { %v1011_v12 = vsub.f32 %v940_v8, %v13993_v1  ;;  %v1012_v13 = vsub.f32 %v941_v10, %v13993_v1  ;;  %v1013_v14 = vsub.f32 %v942_v11, %v13993_v1  ;;  %v943_v16 = vld [vmem:[%s13991_s15 + $0x30] sm:$0xff]  ;;  %v944_v17 = vld [vmem:[%s13991_s15 + $0x38] sm:$0xff]  ;;  %v945_v20 = vld [vmem:[%s13991_s15 + $0x40] sm:$0xff] }
 0x239   : > { %v1072_v15 = vpack.c.bf16 %v1009_v7, %v1008_v6  ;;  %v946_v21 = vld [vmem:[%s13991_s15 + $0x48] sm:$0xff]  ;;  %v1014_v22 = vsub.f32 %v943_v16, %v13993_v1  ;;  %v1015_v23 = vsub.f32 %v944_v17, %v13993_v1  ;;  %v947_v24 = vld [vmem:[%s13991_s15 + $0x50] sm:$0xff]  ;;  %v948_v25 = vld [vmem:[%s13991_s15 + $0x58] sm:$0xff]  ;;  %v1016_v26 = vsub.f32 %v945_v20, %v13993_v1 }
 0x23a   : > { %v1073_v18 = vpack.c.bf16 %v1011_v12, %v1010_v9  ;;  %v1074_v19 = vpack.c.bf16 %v1013_v14, %v1012_v13  ;;  %v1017_v27 = vsub.f32 %v946_v21, %v13993_v1  ;;  %v949_v28 = vld [vmem:[%s13991_s15 + $0x60] sm:$0xff]  ;;  %v950_v29 = vld [vmem:[%s13991_s15 + $0x68] sm:$0xff]  ;;  %v1018_v30 = vsub.f32 %v947_v24, %v13993_v1  ;;  %v14025_v32 = vld [vmem:[%s13991_s15 + $0x70] sm:$0xff] }
 0x23b   : > { %11488 = vmatprep.mubr.msk.bf16.mxu0 %vm1112_vm1, %v1072_v15  ;;  %v1019_v31 = vsub.f32 %v948_v25, %v13993_v1  ;;  %v1075_v33 = vpack.c.bf16 %v1015_v23, %v1014_v22  ;;  %v1020_v34 = vsub.f32 %v949_v28, %v13993_v1  ;;  %v1021_v35 = vsub.f32 %v950_v29, %v13993_v1  ;;  %v14030_v36 = vld [vmem:[%s13991_s15 + $0x78] sm:$0xff]  ;;  %v14033_v37 = vld [vmem:[%s13991_s15 + $0x80] sm:$0xff]  ;;  %v14036_v39 = vld [vmem:[%s13991_s15 + $0x88] sm:$0xff] }
 0x23c   : > { %11489 = vmatmul.mubr.msk.bf16.vlgmr.msra.gmra.mrb[0].mxu0 %vm1112_vm1, %v1073_v18  ;;  %v1076_v38 = vpack.c.bf16 %v1017_v27, %v1016_v26  ;;  %v971_v40 = vld [vmem:[%s13991_s15 + $0x110] sm:$0xff]  ;;  %v972_v41 = vld [vmem:[%s13991_s15 + $0x118] sm:$0xff]  ;;  %v1022_v42 = vsub.f32 %v14025_v32, %v13993_v1  ;;  %v973_v43 = vld [vmem:[%s13991_s15 + $0x120] sm:$0xff]  ;;  %v1023_v47 = vsub.f32 %v14030_v36, %v13993_v1  ;;  %v1024_v48 = vsub.f32 %v14033_v37, %v13993_v1 }
 0x23d   : > { %11492 = vmatprep.mubr.msk.bf16.mxu0 %vm1112_vm1, %v1074_v19  ;;  %v974_v44 = vld [vmem:[%s13991_s15 + $0x128] sm:$0xff]  ;;  %v975_v45 = vld [vmem:[%s13991_s15 + $0x130] sm:$0xff]  ;;  %v14045_v46 = vpack.c.bf16 %v1019_v31, %v1018_v30  ;;  %v1042_v49 = vsub.f32 %v971_v40, %v13993_v1  ;;  %v976_v50 = vld [vmem:[%s13991_s15 + $0x138] sm:$0xff]  ;;  %v1078_v53 = vpack.c.bf16 %v1021_v35, %v1020_v34  ;;  %v1043_v54 = vsub.f32 %v972_v41, %v13993_v1 }
 0x23e   : > { %v977_v51 = vld [vmem:[%s13991_s15 + $0x140] sm:$0xff]  ;;  %v978_v52 = vld [vmem:[%s13991_s15 + $0x148] sm:$0xff]  ;;  %v1044_v55 = vsub.f32 %v973_v43, %v13993_v1  ;;  %v1045_v56 = vsub.f32 %v974_v44, %v13993_v1  ;;  %v979_v57 = vld [vmem:[%s13991_s15 + $0x150] sm:$0xff]  ;;  %v1025_v60 = vsub.f32 %v14036_v39, %v13993_v1  ;;  %v1046_v61 = vsub.f32 %v975_v45, %v13993_v1 }
 0x23f   : > { %v980_v58 = vld [vmem:[%s13991_s15 + $0x158] sm:$0xff]  ;;  %v981_v59 = vld [vmem:[%s13991_s15 + $0x160] sm:$0xff]  ;;  %v1047_v62 = vsub.f32 %v976_v50, %v13993_v1  ;;  %v1048_v63 = vsub.f32 %v977_v51, %v13993_v1  ;;  %v982_v0 = vld [vmem:[%s13991_s15 + $0x168] sm:$0xff]  ;;  %v14071_v4 = vpack.c.bf16 %v1043_v54, %v1042_v49  ;;  %v1049_v6 = vsub.f32 %v978_v52, %v13993_v1 }
 0x240   : > { %v983_v2 = vld [vmem:[%s13991_s15 + $0x170] sm:$0xff]  ;;  %v984_v3 = vld [vmem:[%s13991_s15 + $0x178] sm:$0xff]  ;;  %v14073_v5 = vpack.c.bf16 %v1045_v56, %v1044_v55  ;;  %v1050_v7 = vsub.f32 %v979_v57, %v13993_v1  ;;  %v985_v8 = vld [vmem:[%s13991_s15 + $0x180] sm:$0xff]  ;;  %v1051_v12 = vsub.f32 %v980_v58, %v13993_v1  ;;  %v1052_v13 = vsub.f32 %v981_v59, %v13993_v1 }
 0x241   : > { %v986_v9 = vld [vmem:[%s13991_s15 + $0x188] sm:$0xff]  ;;  %v987_v10 = vld [vmem:[%s13991_s15 + $0x190] sm:$0xff]  ;;  %v14080_v11 = vpack.c.bf16 %v1047_v62, %v1046_v61  ;;  %v1053_v14 = vsub.f32 %v982_v0, %v13993_v1  ;;  %v988_v15 = vld [vmem:[%s13991_s15 + $0x198] sm:$0xff]  ;;  %v14088_v18 = vpack.c.bf16 %v1049_v6, %v1048_v63  ;;  %v1054_v19 = vsub.f32 %v983_v2, %v13993_v1 }
 0x242   : > { %v989_v16 = vld [vmem:[%s13991_s15 + $0x1a0] sm:$0xff]  ;;  %v990_v17 = vld [vmem:[%s13991_s15 + $0x1a8] sm:$0xff]  ;;  %v1055_v20 = vsub.f32 %v984_v3, %v13993_v1  ;;  %v1056_v21 = vsub.f32 %v985_v8, %v13993_v1  ;;  %v991_v22 = vld [vmem:[%s13991_s15 + $0x1b0] sm:$0xff]  ;;  %v14096_v25 = vpack.c.bf16 %v1051_v12, %v1050_v7  ;;  %v1057_v27 = vsub.f32 %v986_v9, %v13993_v1 }
 0x243   : > { %v992_v23 = vld [vmem:[%s13991_s15 + $0x1b8] sm:$0xff]  ;;  %v993_v24 = vld [vmem:[%s13991_s15 + $0x1c0] sm:$0xff]  ;;  %v14098_v26 = vpack.c.bf16 %v1053_v14, %v1052_v13  ;;  %v1058_v28 = vsub.f32 %v987_v10, %v13993_v1  ;;  %v994_v29 = vld [vmem:[%s13991_s15 + $0x1c8] sm:$0xff]  ;;  %v1059_v34 = vsub.f32 %v988_v15, %v13993_v1  ;;  %v1060_v35 = vsub.f32 %v989_v16, %v13993_v1 }
 0x244   : > { %11493 = vmatmul.mubr.msk.bf16.gmra.mrb[4].mxu0 %vm1112_vm1, %v1075_v33  ;;  %v995_v30 = vld [vmem:[%s13991_s15 + $0x1d0] sm:$0xff]  ;;  %v996_v31 = vld [vmem:[%s13991_s15 + $0x1d8] sm:$0xff]  ;;  %v14105_v33 = vpack.c.bf16 %v1055_v20, %v1054_v19  ;;  %v997_v40 = vld [vmem:[%s13991_s15 + $0x1e0] sm:$0xff]  ;;  %v14113_v44 = vpack.c.bf16 %v1057_v27, %v1056_v21  ;;  %v1062_v45 = vsub.f32 %v991_v22, %v13993_v1  ;;  %v1063_v49 = vsub.f32 %v992_v23, %v13993_v1 }
 0x245   : > { %11496 = vmatprep.mubr.msk.bf16.mxu0 %vm1112_vm1, %v1076_v38  ;;  %v1061_v38 = vsub.f32 %v990_v17, %v13993_v1  ;;  %v998_v41 = vld [vmem:[%s13991_s15 + $0x1e8] sm:$0xff]  ;;  %v999_v43 = vld [vmem:[%s13991_s15 + $0x1f0] sm:$0xff]  ;;  %v1064_v50 = vsub.f32 %v993_v24, %v13993_v1  ;;  %v1000_v51 = vld [vmem:[%s13991_s15 + $0x1f8] sm:$0xff]  ;;  %v14121_v54 = vpack.c.bf16 %v1059_v34, %v1058_v28  ;;  %v1065_v56 = vsub.f32 %v994_v29, %v13993_v1 }
 0x246   : > { %v12068_v52 = vld [vmem:[#allocation11] sm:$0xff]   ;;  %v1066_v57 = vsub.f32 %v995_v30, %v13993_v1  ;;  %v12069_v58 = vld [vmem:[#allocation11 + $0x8] sm:$0xff]   ;;  %v14128_v59 = vpack.c.bf16 %v1063_v49, %v1062_v45  ;;  %v1067_v61 = vsub.f32 %v996_v31, %v13993_v1  ;;  %v1069_v62 = vsub.f32 %v998_v41, %v13993_v1  ;;  %v956_v6 = vld [vmem:[%s13991_s15 + $0x98] sm:$0xff] }
 0x247   : > { %v14123_v55 = vpack.c.bf16 %v1061_v38, %v1060_v35  ;;  %v14133_v63 = vpack.c.bf16 %v1065_v56, %v1064_v50  ;;  %v1070_v0 = vsub.f32 %v999_v43, %v13993_v1  ;;  %v1071_v2 = vsub.f32 %v1000_v51, %v13993_v1  ;;  %11552 = vmatprep.subr.bf16.mxu1 %v12068_v52  ;;  %v955_v3 = vld [vmem:[%s13991_s15 + $0x90] sm:$0xff]  ;;  %v957_v9 = vld [vmem:[%s13991_s15 + $0xa0] sm:$0xff]  ;;  %v958_v10 = vld [vmem:[%s13991_s15 + $0xa8] sm:$0xff] }
 0x248   : > { %v14139_v7 = vpack.c.bf16 %v1067_v61, %v1066_v57  ;;  %11553 = vmatpush3.bf16.msra.mxu1 %v12068_v52  ;;  %v1079_v8 = vpack.c.bf16 %v1023_v47, %v1022_v42  ;;  %v1080_v32 = vpack.c.bf16 %v1025_v60, %v1024_v48  ;;  %v1026_v36 = vsub.f32 %v955_v3, %v13993_v1  ;;  %v959_v39 = vld [vmem:[%s13991_s15 + $0xb0] sm:$0xff]  ;;  %v960_v48 = vld [vmem:[%s13991_s15 + $0xb8] sm:$0xff]  ;;  %v961_v60 = vld [vmem:[%s13991_s15 + $0xc0] sm:$0xff] }
 0x249   : > { %v14151_v12 = vpack.c.bf16 %v1071_v2, %v1070_v0  ;;  %11554 = vmatprep.subr.bf16.mxu1 %v12069_v58  ;;  %v1027_v42 = vsub.f32 %v956_v6, %v13993_v1  ;;  %v1028_v47 = vsub.f32 %v957_v9, %v13993_v1  ;;  %v1029_v13 = vsub.f32 %v958_v10, %v13993_v1  ;;  %v962_v15 = vld [vmem:[%s13991_s15 + $0xc8] sm:$0xff]  ;;  %v963_v23 = vld [vmem:[%s13991_s15 + $0xd0] sm:$0xff]  ;;  %v964_v24 = vld [vmem:[%s13991_s15 + $0xd8] sm:$0xff] }
 0x24a   : > { %v1030_v16 = vsub.f32 %v959_v39, %v13993_v1  ;;  %v1031_v17 = vsub.f32 %v960_v48, %v13993_v1  ;;  %v1032_v19 = vsub.f32 %v961_v60, %v13993_v1  ;;  %v1033_v20 = vsub.f32 %v962_v15, %v13993_v1  ;;  %v965_v27 = vld [vmem:[%s13991_s15 + $0xe0] sm:$0xff]  ;;  %v966_v28 = vld [vmem:[%s13991_s15 + $0xe8] sm:$0xff]  ;;  %v968_v41 = vld [vmem:[%s13991_s15 + $0xf8] sm:$0xff] }
 0x24b   : > { %v1081_v37 = vpack.c.bf16 %v1027_v42, %v1026_v36  ;;  %v1082_v14 = vpack.c.bf16 %v1029_v13, %v1028_v47  ;;  %v1034_v29 = vsub.f32 %v963_v23, %v13993_v1  ;;  %v1035_v30 = vsub.f32 %v964_v24, %v13993_v1  ;;  %v969_v43 = vld [vmem:[%s13991_s15 + $0x100] sm:$0xff]  ;;  %v970_v45 = vld [vmem:[%s13991_s15 + $0x108] sm:$0xff]  ;;  %v12073_v2 = vld [vmem:[#allocation14 + $0x8] sm:$0xff]  }
 0x24c   : > { %11497 = vmatmul.mubr.msk.bf16.gmra.mrb[8].mxu0 %vm1112_vm1, %v14045_v46  ;;  %v1068_v46 = vsub.f32 %v997_v40, %v13993_v1  ;;  %11555 = vmatpush3.bf16.msra.mxu1 %v12069_v58  ;;  %v1083_v21 = vpack.c.bf16 %v1031_v17, %v1030_v16  ;;  %v1084_v22 = vpack.c.bf16 %v1033_v20, %v1032_v19  ;;  %v967_v40 = vld [vmem:[%s13991_s15 + $0xf0] sm:$0xff]  ;;  %v12074_v3 = vld [vmem:[#allocation14 + $0x10] sm:$0xff]   ;;  %v12075_v42 = vld [vmem:[#allocation14 + $0x18] sm:$0xff]  }
 0x24d   : > { %11500 = vmatprep.mubr.msk.bf16.mxu0 %vm1112_vm1, %v1078_v53  ;;  %v1036_v31 = vsub.f32 %v965_v27, %v13993_v1  ;;  %v1037_v34 = vsub.f32 %v966_v28, %v13993_v1  ;;  %v1085_v35 = vpack.c.bf16 %v1035_v30, %v1034_v29  ;;  %v1038_v49 = vsub.f32 %v967_v40, %v13993_v1 }
 0x24e   : > { %v14141_v53 = vpack.c.bf16 %v1069_v62, %v1068_v46  ;;  %v1039_v50 = vsub.f32 %v968_v41, %v13993_v1  ;;  %v1040_v51 = vsub.f32 %v969_v43, %v13993_v1  ;;  %v1041_v52 = vsub.f32 %v970_v45, %v13993_v1  ;;  %v12070_v1 = vld [vmem:[#allocation11 + $0x10] sm:$0xff]  }
 0x24f   : > { %v1086_v38 = vpack.c.bf16 %v1037_v34, %v1036_v31  ;;  %11556 = vmatprep.subr.bf16.mxu1 %v12070_v1 }
 0x250   : > { %v1087_v56 = vpack.c.bf16 %v1039_v50, %v1038_v49  ;;  %v1088_v57 = vpack.c.bf16 %v1041_v52, %v1040_v51  ;;  %11557 = vmatpush3.bf16.msra.mxu1 %v12070_v1 }
 0x254   : > { %11501 = vmatmul.mubr.msk.bf16.gmra.mrb[12].mxu0 %vm1112_vm1, %v1079_v8 }
 0x255   : > { %11504 = vmatprep.mubr.msk.bf16.mxu0 %vm1112_vm1, %v1080_v32 }
 0x25c   : > { %11505 = vmatmul.mubr.msk.bf16.gmra.mrb[16].mxu0 %vm1112_vm1, %v1081_v37 }
 0x25d   : > { %11508 = vmatprep.mubr.msk.bf16.mxu0 %vm1112_vm1, %v1082_v14 }
 0x264   : > { %11509 = vmatmul.mubr.msk.bf16.gmra.mrb[20].mxu0 %vm1112_vm1, %v1083_v21 }
 0x265   : > { %11512 = vmatprep.mubr.msk.bf16.mxu0 %vm1112_vm1, %v1084_v22 }
 0x26c   : > { %11513 = vmatmul.mubr.msk.bf16.gmra.mrb[24].mxu0 %vm1112_vm1, %v1085_v35 }
 0x26d   : > { %11516 = vmatprep.mubr.msk.bf16.mxu0 %vm1112_vm1, %v1086_v38 }
 0x274   : > { %11517 = vmatmul.mubr.msk.bf16.gmra.mrb[28].mxu0 %vm1112_vm1, %v1087_v56 }
 0x275   : > { %11520 = vmatprep.mubr.msk.bf16.mxu0 %vm1112_vm1, %v1088_v57 }
 0x27c   : > { %11521 = vmatmul.mubr.msk.bf16.gmra.mrb[32].mxu0 %vm1112_vm1, %v14071_v4  ;;  %v12071_v4 = vld [vmem:[#allocation11 + $0x18] sm:$0xff]  }
 0x27d   : > { %11524 = vmatprep.mubr.msk.bf16.mxu0 %vm1112_vm1, %v14073_v5  ;;  %11558 = vmatprep.subr.bf16.mxu1 %v12071_v4  ;;  %v12072_v5 = vld [vmem:[#allocation14] sm:$0xff]  }
 0x27e   : > { %11559 = vmatpush3.bf16.msra.mxu1 %v12071_v4  ;;  %11624 = vmatprep.subr.bf16.mxu0 %v12072_v5 }
 0x27f   : > { %11625 = vmatpush3.bf16.msra.mxu0 %v12072_v5 }
 0x280   : > { %11626 = vmatprep.subr.bf16.mxu0 %v12073_v2 }
 0x283   : > { %11627 = vmatpush3.bf16.msra.mxu0 %v12073_v2 }
 0x284   : > { %11525 = vmatmul.mubr.msk.bf16.gmra.mrb[36].mxu0 %vm1112_vm1, %v14080_v11  ;;  %v14227_v11 = vld [vmem:[#allocation9] ss:$0 sm:$0xff]  ;;  %11628 = vmatprep.subr.bf16.mxu0 %v12074_v3 }
 0x285   : > { %11528 = vmatprep.mubr.msk.bf16.mxu0 %vm1112_vm1, %v14088_v18 }
 0x287   : > { %11629 = vmatpush3.bf16.msra.mxu0 %v12074_v3 }
 0x288   : > { %11630 = vmatprep.subr.bf16.mxu0 %v12075_v42 }
 0x28b   : > { %11631 = vmatpush3.bf16.msra.mxu0 %v12075_v42 }
 0x28c   : > { %11529 = vmatmul.mubr.msk.bf16.gmra.mrb[40].mxu0 %vm1112_vm1, %v14096_v25 }
 0x28d   : > { %11532 = vmatprep.mubr.msk.bf16.mxu0 %vm1112_vm1, %v14098_v26 }
 0x294   : > { %11533 = vmatmul.mubr.msk.bf16.gmra.mrb[44].mxu0 %vm1112_vm1, %v14105_v33 }
 0x295   : > { %11536 = vmatprep.mubr.msk.bf16.mxu0 %vm1112_vm1, %v14113_v44 }
 0x29c   : > { %11537 = vmatmul.mubr.msk.bf16.gmra.mrb[48].mxu0 %vm1112_vm1, %v14121_v54 }
 0x29d   : > { %11540 = vmatprep.mubr.msk.bf16.mxu0 %vm1112_vm1, %v14123_v55 }
 0x2a4   : > { %11541 = vmatmul.mubr.msk.bf16.gmra.mrb[52].mxu0 %vm1112_vm1, %v14128_v59 }
 0x2a5   : > { %11544 = vmatprep.mubr.msk.bf16.mxu0 %vm1112_vm1, %v14133_v63 }
 0x2ac   : > { %11545 = vmatmul.mubr.msk.bf16.gmra.mrb[56].mxu0 %vm1112_vm1, %v14139_v7 }
 0x2ad   : > { %11548 = vmatprep.mubr.msk.bf16.mxu0 %vm1112_vm1, %v14141_v53 }
 0x2b4   : > { %11549 = vmatmul.mubr.msk.bf16.gmra.mrb[60].mxu0 %vm1112_vm1, %v14151_v12 }
 0x30f   : > { %v11490_v18 = vpop.f32.mrb[0].mxu0 }
 0x310   : > { %v1256_v25 = vadd.f32 %v11490_v18, %v14227_v11  ;;  %v1247_v26 = vpop.f32.mrb[1].mxu0 }
 0x311   : > { %v1248_v33 = vadd.f32 %v14227_v11, %v1247_v26  ;;  %v11491_v44 = vpop.f32.mrb[2].mxu0 }
 0x312   : > { %v1259_v54 = vadd.f32 %v11491_v44, %v14227_v11  ;;  %v1250_v55 = vpop.f32.mrb[3].mxu0  ;;  %v1504_v59 = vmax.f32 %v1256_v25, 0.0 }
 0x313   : > { %v1251_v58 = vadd.f32 %v14227_v11, %v1250_v55  ;;  %v1502_v46 = vmax.f32 %v1248_v33, 0.0 }
 0x314   : > { %v1505_v61 = vmax.f32 %v1259_v54, 0.0 }
 0x315   : > { %v1503_v62 = vmax.f32 %v1251_v58, 0.0 }
 0x316   : > { %v5511_v63 = vmax.f32 %v1504_v59, %v1505_v61  ;;  %v1567_v0 = vpack.c.bf16 %v1505_v61, %v1504_v59 }
 0x317   : > { %v11494_v6 = vpop.f32.mrb[4].mxu0  ;;  %v1566_v7 = vpack.c.bf16 %v1503_v62, %v1502_v46 }
 0x318   : > { %v1272_v53 = vadd.f32 %v11494_v6, %v14227_v11  ;;  %v1263_v8 = vpop.f32.mrb[5].mxu0 }
 0x319   : > { %v1264_v9 = vadd.f32 %v14227_v11, %v1263_v8  ;;  %v11495_v10 = vpop.f32.mrb[6].mxu0  ;;  %11560 = vmatprep.mubr.msk.bf16.mxu1 %vm1637_vm2, %v1566_v7 }
 0x31a   : > { %v1508_v12 = vmax.f32 %v1272_v53, 0.0  ;;  %v1275_v32 = vadd.f32 %v11495_v10, %v14227_v11  ;;  %v1266_v36 = vpop.f32.mrb[7].mxu0  ;;  %11561 = vmatmul.mubr.msk.bf16.vlgmr.msra.gmra.mrb[0].mxu1 %vm1637_vm2, %v1567_v0 }
 0x31b   : > { %v1506_v47 = vmax.f32 %v1264_v9, 0.0  ;;  %v1267_v13 = vadd.f32 %v14227_v11, %v1266_v36 }
 0x31c   : > { %v5509_v37 = vmax.f32 %v1508_v12, %v5511_v63  ;;  %v1509_v14 = vmax.f32 %v1275_v32, 0.0 }
 0x31d   : > { %v1507_v39 = vmax.f32 %v1267_v13, 0.0 }
 0x31e   : > { %v5512_v48 = vmax.f32 %v1506_v47, %v5509_v37  ;;  %v1569_v60 = vpack.c.bf16 %v1509_v14, %v1508_v12 }
 0x31f   : > { %v1568_v15 = vpack.c.bf16 %v1507_v39, %v1506_v47  ;;  %v11498_v16 = vpop.f32.mrb[8].mxu0 }
 0x320   : > { %v5510_v17 = vmax.f32 %v1509_v14, %v5512_v48  ;;  %v1288_v19 = vadd.f32 %v11498_v16, %v14227_v11  ;;  %v1279_v20 = vpop.f32.mrb[9].mxu0 }
 0x321   : > { %v1280_v21 = vadd.f32 %v14227_v11, %v1279_v20  ;;  %v11499_v22 = vpop.f32.mrb[10].mxu0  ;;  %11564 = vmatprep.mubr.msk.bf16.mxu1 %vm1637_vm2, %v1568_v15 }
 0x322   : > { %v5515_v23 = vmax.f32 %v1502_v46, %v5510_v17  ;;  %v1512_v24 = vmax.f32 %v1288_v19, 0.0  ;;  %v1291_v27 = vadd.f32 %v11499_v22, %v14227_v11  ;;  %v1282_v28 = vpop.f32.mrb[11].mxu0  ;;  %11565 = vmatmul.mubr.msk.bf16.gmra.mrb[4].mxu1 %vm1637_vm2, %v1569_v60 }
 0x323   : > { %v1510_v29 = vmax.f32 %v1280_v21, 0.0  ;;  %v1283_v30 = vadd.f32 %v14227_v11, %v1282_v28 }
 0x324   : > { %v5513_v31 = vmax.f32 %v1503_v62, %v5515_v23  ;;  %v1513_v34 = vmax.f32 %v1291_v27, 0.0 }
 0x325   : > { %v1511_v35 = vmax.f32 %v1283_v30, 0.0 }
 0x326   : > { %v5516_v38 = vmax.f32 %v1507_v39, %v5513_v31  ;;  %v1571_v40 = vpack.c.bf16 %v1513_v34, %v1512_v24 }
 0x327   : > { %v1570_v41 = vpack.c.bf16 %v1511_v35, %v1510_v29  ;;  %v11502_v43 = vpop.f32.mrb[12].mxu0 }
 0x328   : > { %v5514_v45 = vmax.f32 %v1512_v24, %v5516_v38  ;;  %v1304_v49 = vadd.f32 %v11502_v43, %v14227_v11  ;;  %v1295_v50 = vpop.f32.mrb[13].mxu0 }
 0x329   : > { %v1296_v51 = vadd.f32 %v14227_v11, %v1295_v50  ;;  %v11503_v52 = vpop.f32.mrb[14].mxu0  ;;  %11568 = vmatprep.mubr.msk.bf16.mxu1 %vm1637_vm2, %v1570_v41 }
 0x32a   : > { %v5519_v56 = vmax.f32 %v1510_v29, %v5514_v45  ;;  %v1516_v57 = vmax.f32 %v1304_v49, 0.0  ;;  %v1307_v1 = vadd.f32 %v11503_v52, %v14227_v11  ;;  %v1298_v4 = vpop.f32.mrb[15].mxu0  ;;  %11569 = vmatmul.mubr.msk.bf16.gmra.mrb[8].mxu1 %vm1637_vm2, %v1571_v40 }
 0x32b   : > { %v1514_v5 = vmax.f32 %v1296_v51, 0.0  ;;  %v1299_v18 = vadd.f32 %v14227_v11, %v1298_v4 }
 0x32c   : > { %v5517_v25 = vmax.f32 %v1513_v34, %v5519_v56  ;;  %v1517_v26 = vmax.f32 %v1307_v1, 0.0 }
 0x32d   : > { %v1515_v33 = vmax.f32 %v1299_v18, 0.0 }
 0x32e   : > { %v5520_v44 = vmax.f32 %v1511_v35, %v5517_v25  ;;  %v1573_v54 = vpack.c.bf16 %v1517_v26, %v1516_v57 }
 0x32f   : > { %v1572_v55 = vpack.c.bf16 %v1515_v33, %v1514_v5  ;;  %v11506_v58 = vpop.f32.mrb[16].mxu0 }
 0x330   : > { %v5518_v59 = vmax.f32 %v1516_v57, %v5520_v44  ;;  %v1320_v61 = vadd.f32 %v11506_v58, %v14227_v11  ;;  %v1311_v46 = vpop.f32.mrb[17].mxu0 }
 0x331   : > { %v1312_v62 = vadd.f32 %v14227_v11, %v1311_v46  ;;  %v11507_v63 = vpop.f32.mrb[18].mxu0  ;;  %11572 = vmatprep.mubr.msk.bf16.mxu1 %vm1637_vm2, %v1572_v55 }
 0x332   : > { %v5523_v0 = vmax.f32 %v1514_v5, %v5518_v59  ;;  %v1520_v2 = vmax.f32 %v1320_v61, 0.0  ;;  %v1323_v3 = vadd.f32 %v11507_v63, %v14227_v11  ;;  %v1314_v6 = vpop.f32.mrb[19].mxu0  ;;  %11573 = vmatmul.mubr.msk.bf16.gmra.mrb[12].mxu1 %vm1637_vm2, %v1573_v54 }
 0x333   : > { %v1518_v7 = vmax.f32 %v1312_v62, 0.0  ;;  %v1315_v53 = vadd.f32 %v14227_v11, %v1314_v6 }
 0x334   : > { %v5521_v8 = vmax.f32 %v1517_v26, %v5523_v0  ;;  %v1521_v9 = vmax.f32 %v1323_v3, 0.0 }
 0x335   : > { %v1519_v10 = vmax.f32 %v1315_v53, 0.0 }
 0x336   : > { %v5524_v12 = vmax.f32 %v1515_v33, %v5521_v8  ;;  %v1575_v32 = vpack.c.bf16 %v1521_v9, %v1520_v2 }
 0x337   : > { %v1574_v36 = vpack.c.bf16 %v1519_v10, %v1518_v7  ;;  %v11510_v42 = vpop.f32.mrb[20].mxu0 }
 0x338   : > { %v5522_v47 = vmax.f32 %v1520_v2, %v5524_v12  ;;  %v1336_v13 = vadd.f32 %v11510_v42, %v14227_v11  ;;  %v1327_v37 = vpop.f32.mrb[21].mxu0 }
 0x339   : > { %v1328_v14 = vadd.f32 %v14227_v11, %v1327_v37  ;;  %v11511_v39 = vpop.f32.mrb[22].mxu0  ;;  %11576 = vmatprep.mubr.msk.bf16.mxu1 %vm1637_vm2, %v1574_v36 }
 0x33a   : > { %v5527_v48 = vmax.f32 %v1518_v7, %v5522_v47  ;;  %v1524_v60 = vmax.f32 %v1336_v13, 0.0  ;;  %v1339_v15 = vadd.f32 %v11511_v39, %v14227_v11  ;;  %v1330_v16 = vpop.f32.mrb[23].mxu0  ;;  %11577 = vmatmul.mubr.msk.bf16.gmra.mrb[16].mxu1 %vm1637_vm2, %v1575_v32 }
 0x33b   : > { %v1522_v17 = vmax.f32 %v1328_v14, 0.0  ;;  %v1331_v19 = vadd.f32 %v14227_v11, %v1330_v16 }
 0x33c   : > { %v5543_v20 = vmax.f32 %v1521_v9, %v5527_v48  ;;  %v1525_v21 = vmax.f32 %v1339_v15, 0.0 }
 0x33d   : > { %v1523_v22 = vmax.f32 %v1331_v19, 0.0 }
 0x33e   : > { %v5525_v23 = vmax.f32 %v1519_v10, %v5543_v20  ;;  %v1577_v24 = vpack.c.bf16 %v1525_v21, %v1524_v60 }
 0x33f   : > { %v1576_v27 = vpack.c.bf16 %v1523_v22, %v1522_v17  ;;  %v11514_v28 = vpop.f32.mrb[24].mxu0 }
 0x340   : > { %v5541_v29 = vmax.f32 %v1524_v60, %v5525_v23  ;;  %v1352_v30 = vadd.f32 %v11514_v28, %v14227_v11  ;;  %v1343_v31 = vpop.f32.mrb[25].mxu0 }
 0x341   : > { %v1344_v34 = vadd.f32 %v14227_v11, %v1343_v31  ;;  %v11515_v35 = vpop.f32.mrb[26].mxu0  ;;  %11580 = vmatprep.mubr.msk.bf16.mxu1 %vm1637_vm2, %v1576_v27 }
 0x342   : > { %v5528_v38 = vmax.f32 %v1522_v17, %v5541_v29  ;;  %v1528_v40 = vmax.f32 %v1352_v30, 0.0  ;;  %v1355_v41 = vadd.f32 %v11515_v35, %v14227_v11  ;;  %v1346_v43 = vpop.f32.mrb[27].mxu0  ;;  %11581 = vmatmul.mubr.msk.bf16.gmra.mrb[20].mxu1 %vm1637_vm2, %v1577_v24 }
 0x343   : > { %v1526_v45 = vmax.f32 %v1344_v34, 0.0  ;;  %v1347_v49 = vadd.f32 %v14227_v11, %v1346_v43 }
 0x344   : > { %v5544_v50 = vmax.f32 %v1525_v21, %v5528_v38  ;;  %v1529_v51 = vmax.f32 %v1355_v41, 0.0 }
 0x345   : > { %v1527_v52 = vmax.f32 %v1347_v49, 0.0 }
 0x346   : > { %v5526_v56 = vmax.f32 %v1523_v22, %v5544_v50  ;;  %v1579_v57 = vpack.c.bf16 %v1529_v51, %v1528_v40 }
 0x347   : > { %v1578_v1 = vpack.c.bf16 %v1527_v52, %v1526_v45  ;;  %v11518_v4 = vpop.f32.mrb[28].mxu0 }
 0x348   : > { %v5542_v5 = vmax.f32 %v1528_v40, %v5526_v56  ;;  %v1368_v18 = vadd.f32 %v11518_v4, %v14227_v11  ;;  %v1359_v25 = vpop.f32.mrb[29].mxu0 }
 0x349   : > { %v1360_v26 = vadd.f32 %v14227_v11, %v1359_v25  ;;  %v11519_v33 = vpop.f32.mrb[30].mxu0  ;;  %11584 = vmatprep.mubr.msk.bf16.mxu1 %vm1637_vm2, %v1578_v1 }
 0x34a   : > { %v5531_v44 = vmax.f32 %v1526_v45, %v5542_v5  ;;  %v1532_v54 = vmax.f32 %v1368_v18, 0.0  ;;  %v1371_v55 = vadd.f32 %v11519_v33, %v14227_v11  ;;  %v1362_v58 = vpop.f32.mrb[31].mxu0  ;;  %11585 = vmatmul.mubr.msk.bf16.gmra.mrb[24].mxu1 %vm1637_vm2, %v1579_v57 }
 0x34b   : > { %v1530_v59 = vmax.f32 %v1360_v26, 0.0  ;;  %v1363_v61 = vadd.f32 %v14227_v11, %v1362_v58 }
 0x34c   : > { %v5547_v46 = vmax.f32 %v1529_v51, %v5531_v44  ;;  %v1533_v62 = vmax.f32 %v1371_v55, 0.0 }
 0x34d   : > { %v1531_v63 = vmax.f32 %v1363_v61, 0.0 }
 0x34e   : > { %v5529_v0 = vmax.f32 %v1527_v52, %v5547_v46  ;;  %v1581_v2 = vpack.c.bf16 %v1533_v62, %v1532_v54 }
 0x34f   : > { %v1580_v3 = vpack.c.bf16 %v1531_v63, %v1530_v59  ;;  %v11522_v6 = vpop.f32.mrb[32].mxu0 }
 0x350   : > { %v5545_v7 = vmax.f32 %v1532_v54, %v5529_v0  ;;  %v1384_v53 = vadd.f32 %v11522_v6, %v14227_v11  ;;  %v1375_v8 = vpop.f32.mrb[33].mxu0 }
 0x351   : > { %v1376_v9 = vadd.f32 %v14227_v11, %v1375_v8  ;;  %v11523_v10 = vpop.f32.mrb[34].mxu0  ;;  %11588 = vmatprep.mubr.msk.bf16.mxu1 %vm1637_vm2, %v1580_v3 }
 0x352   : > { %v5532_v12 = vmax.f32 %v1530_v59, %v5545_v7  ;;  %v1536_v32 = vmax.f32 %v1384_v53, 0.0  ;;  %v1387_v36 = vadd.f32 %v11523_v10, %v14227_v11  ;;  %v1378_v42 = vpop.f32.mrb[35].mxu0  ;;  %11589 = vmatmul.mubr.msk.bf16.gmra.mrb[28].mxu1 %vm1637_vm2, %v1581_v2 }
 0x353   : > { %v1534_v47 = vmax.f32 %v1376_v9, 0.0  ;;  %v1379_v13 = vadd.f32 %v14227_v11, %v1378_v42 }
 0x354   : > { %v5548_v37 = vmax.f32 %v1533_v62, %v5532_v12  ;;  %v1537_v14 = vmax.f32 %v1387_v36, 0.0 }
 0x355   : > { %v1535_v39 = vmax.f32 %v1379_v13, 0.0 }
 0x356   : > { %v5530_v48 = vmax.f32 %v1531_v63, %v5548_v37  ;;  %v1583_v60 = vpack.c.bf16 %v1537_v14, %v1536_v32 }
 0x357   : > { %v1582_v15 = vpack.c.bf16 %v1535_v39, %v1534_v47  ;;  %v11526_v16 = vpop.f32.mrb[36].mxu0 }
 0x358   : > { %v5546_v17 = vmax.f32 %v1536_v32, %v5530_v48  ;;  %v1400_v19 = vadd.f32 %v11526_v16, %v14227_v11  ;;  %v1391_v20 = vpop.f32.mrb[37].mxu0 }
 0x359   : > { %v1392_v21 = vadd.f32 %v14227_v11, %v1391_v20  ;;  %v11527_v22 = vpop.f32.mrb[38].mxu0  ;;  %11592 = vmatprep.mubr.msk.bf16.mxu1 %vm1637_vm2, %v1582_v15 }
 0x35a   : > { %v5535_v23 = vmax.f32 %v1534_v47, %v5546_v17  ;;  %v1540_v24 = vmax.f32 %v1400_v19, 0.0  ;;  %v1403_v27 = vadd.f32 %v11527_v22, %v14227_v11  ;;  %v1394_v28 = vpop.f32.mrb[39].mxu0  ;;  %11593 = vmatmul.mubr.msk.bf16.gmra.mrb[32].mxu1 %vm1637_vm2, %v1583_v60 }
 0x35b   : > { %v1538_v29 = vmax.f32 %v1392_v21, 0.0  ;;  %v1395_v30 = vadd.f32 %v14227_v11, %v1394_v28 }
 0x35c   : > { %v5551_v31 = vmax.f32 %v1537_v14, %v5535_v23  ;;  %v1541_v34 = vmax.f32 %v1403_v27, 0.0 }
 0x35d   : > { %v1539_v35 = vmax.f32 %v1395_v30, 0.0 }
 0x35e   : > { %v5559_v38 = vmax.f32 %v1535_v39, %v5551_v31  ;;  %v1585_v40 = vpack.c.bf16 %v1541_v34, %v1540_v24 }
 0x35f   : > { %v1584_v41 = vpack.c.bf16 %v1539_v35, %v1538_v29  ;;  %v11530_v43 = vpop.f32.mrb[40].mxu0 }
 0x360   : > { %v5533_v45 = vmax.f32 %v1540_v24, %v5559_v38  ;;  %v1416_v49 = vadd.f32 %v11530_v43, %v14227_v11  ;;  %v1407_v50 = vpop.f32.mrb[41].mxu0 }
 0x361   : > { %v1408_v51 = vadd.f32 %v14227_v11, %v1407_v50  ;;  %v11531_v52 = vpop.f32.mrb[42].mxu0  ;;  %11596 = vmatprep.mubr.msk.bf16.mxu1 %vm1637_vm2, %v1584_v41 }
 0x362   : > { %v5549_v56 = vmax.f32 %v1538_v29, %v5533_v45  ;;  %v1544_v57 = vmax.f32 %v1416_v49, 0.0  ;;  %v1419_v1 = vadd.f32 %v11531_v52, %v14227_v11  ;;  %v1410_v4 = vpop.f32.mrb[43].mxu0  ;;  %11597 = vmatmul.mubr.msk.bf16.gmra.mrb[36].mxu1 %vm1637_vm2, %v1585_v40 }
 0x363   : > { %v1542_v5 = vmax.f32 %v1408_v51, 0.0  ;;  %v1411_v18 = vadd.f32 %v14227_v11, %v1410_v4 }
 0x364   : > { %v5557_v25 = vmax.f32 %v1541_v34, %v5549_v56  ;;  %v1545_v26 = vmax.f32 %v1419_v1, 0.0 }
 0x365   : > { %v1543_v33 = vmax.f32 %v1411_v18, 0.0 }
 0x366   : > { %v5536_v44 = vmax.f32 %v1539_v35, %v5557_v25  ;;  %v1587_v54 = vpack.c.bf16 %v1545_v26, %v1544_v57 }
 0x367   : > { %v1586_v55 = vpack.c.bf16 %v1543_v33, %v1542_v5  ;;  %v11534_v58 = vpop.f32.mrb[44].mxu0 }
 0x368   : > { %v5552_v59 = vmax.f32 %v1544_v57, %v5536_v44  ;;  %v1432_v61 = vadd.f32 %v11534_v58, %v14227_v11  ;;  %v1423_v46 = vpop.f32.mrb[45].mxu0 }
 0x369   : > { %v1424_v62 = vadd.f32 %v14227_v11, %v1423_v46  ;;  %v11535_v63 = vpop.f32.mrb[46].mxu0  ;;  %11600 = vmatprep.mubr.msk.bf16.mxu1 %vm1637_vm2, %v1586_v55 }
 0x36a   : > { %v5560_v0 = vmax.f32 %v1542_v5, %v5552_v59  ;;  %v1548_v2 = vmax.f32 %v1432_v61, 0.0  ;;  %v1435_v3 = vadd.f32 %v11535_v63, %v14227_v11  ;;  %v1426_v6 = vpop.f32.mrb[47].mxu0  ;;  %11601 = vmatmul.mubr.msk.bf16.gmra.mrb[40].mxu1 %vm1637_vm2, %v1587_v54 }
 0x36b   : > { %v1546_v7 = vmax.f32 %v1424_v62, 0.0  ;;  %v1427_v53 = vadd.f32 %v14227_v11, %v1426_v6 }
 0x36c   : > { %v5534_v8 = vmax.f32 %v1545_v26, %v5560_v0  ;;  %v1549_v9 = vmax.f32 %v1435_v3, 0.0 }
 0x36d   : > { %v1547_v10 = vmax.f32 %v1427_v53, 0.0 }
 0x36e   : > { %v5550_v12 = vmax.f32 %v1543_v33, %v5534_v8  ;;  %v1589_v32 = vpack.c.bf16 %v1549_v9, %v1548_v2 }
 0x36f   : > { %v1588_v36 = vpack.c.bf16 %v1547_v10, %v1546_v7  ;;  %v11538_v42 = vpop.f32.mrb[48].mxu0 }
 0x370   : > { %v5558_v47 = vmax.f32 %v1548_v2, %v5550_v12  ;;  %v1448_v13 = vadd.f32 %v11538_v42, %v14227_v11  ;;  %v1439_v37 = vpop.f32.mrb[49].mxu0 }
 0x371   : > { %v1440_v14 = vadd.f32 %v14227_v11, %v1439_v37  ;;  %v11539_v39 = vpop.f32.mrb[50].mxu0  ;;  %11604 = vmatprep.mubr.msk.bf16.mxu1 %vm1637_vm2, %v1588_v36 }
 0x372   : > { %v5539_v48 = vmax.f32 %v1546_v7, %v5558_v47  ;;  %v1552_v60 = vmax.f32 %v1448_v13, 0.0  ;;  %v1451_v15 = vadd.f32 %v11539_v39, %v14227_v11  ;;  %v1442_v16 = vpop.f32.mrb[51].mxu0  ;;  %11605 = vmatmul.mubr.msk.bf16.gmra.mrb[44].mxu1 %vm1637_vm2, %v1589_v32 }
 0x373   : > { %v1550_v17 = vmax.f32 %v1440_v14, 0.0  ;;  %v1443_v19 = vadd.f32 %v14227_v11, %v1442_v16 }
 0x374   : > { %v5555_v20 = vmax.f32 %v1549_v9, %v5539_v48  ;;  %v1553_v21 = vmax.f32 %v1451_v15, 0.0 }
 0x375   : > { %v1551_v22 = vmax.f32 %v1443_v19, 0.0 }
 0x376   : > { %v5563_v23 = vmax.f32 %v1547_v10, %v5555_v20  ;;  %v1591_v24 = vpack.c.bf16 %v1553_v21, %v1552_v60 }
 0x377   : > { %v1590_v27 = vpack.c.bf16 %v1551_v22, %v1550_v17  ;;  %v11542_v28 = vpop.f32.mrb[52].mxu0 }
 0x378   : > { %v5567_v29 = vmax.f32 %v1552_v60, %v5563_v23  ;;  %v1464_v30 = vadd.f32 %v11542_v28, %v14227_v11  ;;  %v1455_v31 = vpop.f32.mrb[53].mxu0 }
 0x379   : > { %v1456_v34 = vadd.f32 %v14227_v11, %v1455_v31  ;;  %v11543_v35 = vpop.f32.mrb[54].mxu0  ;;  %11608 = vmatprep.mubr.msk.bf16.mxu1 %vm1637_vm2, %v1590_v27 }
 0x37a   : > { %v5537_v38 = vmax.f32 %v1550_v17, %v5567_v29  ;;  %v1556_v40 = vmax.f32 %v1464_v30, 0.0  ;;  %v1467_v41 = vadd.f32 %v11543_v35, %v14227_v11  ;;  %v1458_v43 = vpop.f32.mrb[55].mxu0  ;;  %11609 = vmatmul.mubr.msk.bf16.gmra.mrb[48].mxu1 %vm1637_vm2, %v1591_v24  ;;  %v12078_v35 = vld [vmem:[#allocation17 + $0x10] sm:$0xff]  }
 0x37b   : > { %v1554_v45 = vmax.f32 %v1456_v34, 0.0  ;;  %v1459_v49 = vadd.f32 %v14227_v11, %v1458_v43  ;;  %v12077_v34 = vld [vmem:[#allocation17 + $0x8] sm:$0xff]  }
 0x37c   : > { %v5553_v50 = vmax.f32 %v1553_v21, %v5537_v38  ;;  %v1557_v51 = vmax.f32 %v1467_v41, 0.0  ;;  %v12076_v21 = vld [vmem:[#allocation17] sm:$0xff]  }
 0x37d   : > { %v1555_v52 = vmax.f32 %v1459_v49, 0.0  ;;  %11696 = vmatprep.subr.bf16.mxu1 %v12076_v21 }
 0x37e   : > { %v5561_v56 = vmax.f32 %v1551_v22, %v5553_v50  ;;  %v1593_v57 = vpack.c.bf16 %v1557_v51, %v1556_v40  ;;  %11697 = vmatpush3.bf16.msra.mxu1 %v12076_v21  ;;  %v14327_v22 = vld [vmem:[#allocation12] ss:$0 sm:$0xff] }
 0x37f   : > { %v1592_v1 = vpack.c.bf16 %v1555_v52, %v1554_v45  ;;  %v11546_v4 = vpop.f32.mrb[56].mxu0  ;;  %11698 = vmatprep.subr.bf16.mxu1 %v12077_v34  ;;  %v12079_v50 = vld [vmem:[#allocation17 + $0x18] sm:$0xff]  }
 0x380   : > { %v5565_v5 = vmax.f32 %v1556_v40, %v5561_v56  ;;  %v1480_v18 = vadd.f32 %v11546_v4, %v14227_v11  ;;  %v1471_v25 = vpop.f32.mrb[57].mxu0 }
 0x381   : > { %v1472_v26 = vadd.f32 %v14227_v11, %v1471_v25  ;;  %v11547_v33 = vpop.f32.mrb[58].mxu0  ;;  %11612 = vmatprep.mubr.msk.bf16.mxu1 %vm1637_vm2, %v1592_v1 }
 0x382   : > { %v5569_v44 = vmax.f32 %v5565_v5, %v1554_v45  ;;  %v1560_v54 = vmax.f32 %v1480_v18, 0.0  ;;  %v1483_v55 = vadd.f32 %v11547_v33, %v14227_v11  ;;  %v1474_v58 = vpop.f32.mrb[59].mxu0  ;;  %11613 = vmatmul.mubr.msk.bf16.gmra.mrb[52].mxu1 %vm1637_vm2, %v1593_v57 }
 0x383   : > { %v1558_v59 = vmax.f32 %v1472_v26, 0.0  ;;  %v1475_v61 = vadd.f32 %v14227_v11, %v1474_v58  ;;  %11699 = vmatpush3.bf16.msra.mxu1 %v12077_v34 }
 0x384   : > { %v5540_v46 = vmax.f32 %v1557_v51, %v5569_v44  ;;  %v1561_v62 = vmax.f32 %v1483_v55, 0.0  ;;  %11700 = vmatprep.subr.bf16.mxu1 %v12078_v35 }
 0x385   : > { %v1559_v63 = vmax.f32 %v1475_v61, 0.0 }
 0x386   : > { %v5556_v0 = vmax.f32 %v1555_v52, %v5540_v46  ;;  %v1595_v2 = vpack.c.bf16 %v1561_v62, %v1560_v54 }
 0x387   : > { %v1594_v3 = vpack.c.bf16 %v1559_v63, %v1558_v59  ;;  %v11550_v6 = vpop.f32.mrb[60].mxu0  ;;  %11701 = vmatpush3.bf16.msra.mxu1 %v12078_v35 }
 0x388   : > { %v5564_v7 = vmax.f32 %v1560_v54, %v5556_v0  ;;  %v1496_v53 = vadd.f32 %v11550_v6, %v14227_v11  ;;  %v1487_v8 = vpop.f32.mrb[61].mxu0  ;;  %11702 = vmatprep.subr.bf16.mxu1 %v12079_v50 }
 0x389   : > { %v1488_v9 = vadd.f32 %v14227_v11, %v1487_v8  ;;  %v11551_v10 = vpop.f32.mrb[62].mxu0  ;;  %11616 = vmatprep.mubr.msk.bf16.mxu1 %vm1637_vm2, %v1594_v3 }
 0x38a   : > { %v5568_v12 = vmax.f32 %v1558_v59, %v5564_v7  ;;  %v1564_v32 = vmax.f32 %v1496_v53, 0.0  ;;  %v1499_v36 = vadd.f32 %v11551_v10, %v14227_v11  ;;  %v1490_v42 = vpop.f32.mrb[63].mxu0  ;;  %11617 = vmatmul.mubr.msk.bf16.gmra.mrb[56].mxu1 %vm1637_vm2, %v1595_v2 }
 0x38b   : > { %v1562_v47 = vmax.f32 %v1488_v9, 0.0  ;;  %v1491_v13 = vadd.f32 %v14227_v11, %v1490_v42  ;;  %11703 = vmatpush3.bf16.msra.mxu1 %v12079_v50 }
 0x38c   : > { %v5538_v37 = vmax.f32 %v1561_v62, %v5568_v12  ;;  %v1565_v14 = vmax.f32 %v1499_v36, 0.0 }
 0x38d   : > { %v1563_v39 = vmax.f32 %v1491_v13, 0.0 }
 0x38e   : > { %v5554_v48 = vmax.f32 %v1559_v63, %v5538_v37  ;;  %v1597_v60 = vpack.c.bf16 %v1565_v14, %v1564_v32 }
 0x38f   : > { %v1596_v15 = vpack.c.bf16 %v1563_v39, %v1562_v47 }
 0x390   : > { %v5562_v16 = vmax.f32 %v1564_v32, %v5554_v48 }
 0x391   : > { %11620 = vmatprep.mubr.msk.bf16.mxu1 %vm1637_vm2, %v1596_v15 }
 0x392   : > { %v5566_v17 = vmax.f32 %v1562_v47, %v5562_v16  ;;  %11621 = vmatmul.mubr.msk.bf16.gmra.mrb[60].mxu1 %vm1637_vm2, %v1597_v60 }
 0x394   : > { %v5570_v19 = vmax.f32 %v5566_v17, %v1565_v14 }
 0x396   : > { %v14325_v20 = vmax.f32 %v1563_v39, %v5570_v19 }
 0x398   : > { %6269 = vst.msk [vmem:[#allocation2] sm:$0xff] (!%p10787_p6), %vm1637_vm2, %v14325_v20 }
 0x3ed   : > { %v11562_v11 = vpop.f32.mrb[0].mxu1 }
 0x3ee   : > { %v1777_v23 = vadd.f32 %v11562_v11, %v14327_v22  ;;  %v1768_v24 = vpop.f32.mrb[1].mxu1 }
 0x3ef   : > { %v1769_v27 = vadd.f32 %v14327_v22, %v1768_v24  ;;  %v11563_v28 = vpop.f32.mrb[2].mxu1 }
 0x3f0   : > { %v2025_v29 = vmax.f32 %v1777_v23, 0.0  ;;  %v1780_v30 = vadd.f32 %v11563_v28, %v14327_v22  ;;  %v1771_v31 = vpop.f32.mrb[3].mxu1 }
 0x3f1   : > { %v2023_v38 = vmax.f32 %v1769_v27, 0.0  ;;  %v1772_v40 = vadd.f32 %v14327_v22, %v1771_v31 }
 0x3f2   : > { %v2026_v41 = vmax.f32 %v1780_v30, 0.0 }
 0x3f3   : > { %v5574_v43 = vmax.f32 %v2025_v29, %v2023_v38  ;;  %v2024_v45 = vmax.f32 %v1772_v40, 0.0 }
 0x3f4   : > { %v2088_v49 = vpack.c.bf16 %v2026_v41, %v2025_v29 }
 0x3f5   : > { %v5572_v51 = vmax.f32 %v2026_v41, %v5574_v43  ;;  %v2087_v52 = vpack.c.bf16 %v2024_v45, %v2023_v38  ;;  %v11566_v56 = vpop.f32.mrb[4].mxu1 }
 0x3f6   : > { %v1793_v57 = vadd.f32 %v11566_v56, %v14327_v22  ;;  %v1784_v1 = vpop.f32.mrb[5].mxu1 }
 0x3f7   : > { %v5575_v4 = vmax.f32 %v2024_v45, %v5572_v51  ;;  %v1785_v5 = vadd.f32 %v14327_v22, %v1784_v1  ;;  %v11567_v18 = vpop.f32.mrb[6].mxu1  ;;  %11632 = vmatprep.mubr.msk.bf16.mxu0 %vm1637_vm2, %v2087_v52 }
 0x3f8   : > { %v2029_v25 = vmax.f32 %v1793_v57, 0.0  ;;  %v1796_v26 = vadd.f32 %v11567_v18, %v14327_v22  ;;  %v1787_v33 = vpop.f32.mrb[7].mxu1  ;;  %11633 = vmatmul.mubr.msk.bf16.vlgmr.msra.gmra.mrb[64].mxu0 %vm1637_vm2, %v2088_v49 }
 0x3f9   : > { %v2027_v44 = vmax.f32 %v1785_v5, 0.0  ;;  %v1788_v54 = vadd.f32 %v14327_v22, %v1787_v33 }
 0x3fa   : > { %v5573_v55 = vmax.f32 %v2029_v25, %v5575_v4  ;;  %v2030_v58 = vmax.f32 %v1796_v26, 0.0 }
 0x3fb   : > { %v2028_v59 = vmax.f32 %v1788_v54, 0.0 }
 0x3fc   : > { %v5578_v61 = vmax.f32 %v2027_v44, %v5573_v55  ;;  %v2090_v46 = vpack.c.bf16 %v2030_v58, %v2029_v25 }
 0x3fd   : > { %v2089_v62 = vpack.c.bf16 %v2028_v59, %v2027_v44  ;;  %v11570_v63 = vpop.f32.mrb[8].mxu1 }
 0x3fe   : > { %v5576_v0 = vmax.f32 %v2030_v58, %v5578_v61  ;;  %v1809_v2 = vadd.f32 %v11570_v63, %v14327_v22  ;;  %v1800_v3 = vpop.f32.mrb[9].mxu1 }
 0x3ff   : > { %v1801_v6 = vadd.f32 %v14327_v22, %v1800_v3  ;;  %v11571_v7 = vpop.f32.mrb[10].mxu1  ;;  %11636 = vmatprep.mubr.msk.bf16.mxu0 %vm1637_vm2, %v2089_v62 }
 0x400   : > { %v5579_v53 = vmax.f32 %v2028_v59, %v5576_v0  ;;  %v2033_v8 = vmax.f32 %v1809_v2, 0.0  ;;  %v1812_v9 = vadd.f32 %v11571_v7, %v14327_v22  ;;  %v1803_v10 = vpop.f32.mrb[11].mxu1  ;;  %11637 = vmatmul.mubr.msk.bf16.gmra.mrb[68].mxu0 %vm1637_vm2, %v2090_v46 }
 0x401   : > { %v2031_v12 = vmax.f32 %v1801_v6, 0.0  ;;  %v1804_v32 = vadd.f32 %v14327_v22, %v1803_v10 }
 0x402   : > { %v5577_v36 = vmax.f32 %v2033_v8, %v5579_v53  ;;  %v2034_v42 = vmax.f32 %v1812_v9, 0.0 }
 0x403   : > { %v2032_v47 = vmax.f32 %v1804_v32, 0.0 }
 0x404   : > { %v5582_v13 = vmax.f32 %v2031_v12, %v5577_v36  ;;  %v2092_v37 = vpack.c.bf16 %v2034_v42, %v2033_v8 }
 0x405   : > { %v2091_v14 = vpack.c.bf16 %v2032_v47, %v2031_v12  ;;  %v11574_v39 = vpop.f32.mrb[12].mxu1 }
 0x406   : > { %v5580_v48 = vmax.f32 %v2034_v42, %v5582_v13  ;;  %v1825_v60 = vadd.f32 %v11574_v39, %v14327_v22  ;;  %v1816_v15 = vpop.f32.mrb[13].mxu1 }
 0x407   : > { %v1817_v16 = vadd.f32 %v14327_v22, %v1816_v15  ;;  %v11575_v17 = vpop.f32.mrb[14].mxu1  ;;  %11640 = vmatprep.mubr.msk.bf16.mxu0 %vm1637_vm2, %v2091_v14 }
 0x408   : > { %v5583_v19 = vmax.f32 %v2032_v47, %v5580_v48  ;;  %v2037_v21 = vmax.f32 %v1825_v60, 0.0  ;;  %v1828_v11 = vadd.f32 %v11575_v17, %v14327_v22  ;;  %v1819_v23 = vpop.f32.mrb[15].mxu1  ;;  %11641 = vmatmul.mubr.msk.bf16.gmra.mrb[72].mxu0 %vm1637_vm2, %v2092_v37 }
 0x409   : > { %v2035_v24 = vmax.f32 %v1817_v16, 0.0  ;;  %v1820_v27 = vadd.f32 %v14327_v22, %v1819_v23 }
 0x40a   : > { %v5581_v28 = vmax.f32 %v2037_v21, %v5583_v19  ;;  %v2038_v29 = vmax.f32 %v1828_v11, 0.0 }
 0x40b   : > { %v2036_v30 = vmax.f32 %v1820_v27, 0.0 }
 0x40c   : > { %v5586_v31 = vmax.f32 %v2035_v24, %v5581_v28  ;;  %v2094_v34 = vpack.c.bf16 %v2038_v29, %v2037_v21 }
 0x40d   : > { %v2093_v35 = vpack.c.bf16 %v2036_v30, %v2035_v24  ;;  %v11578_v38 = vpop.f32.mrb[16].mxu1 }
 0x40e   : > { %v5584_v40 = vmax.f32 %v2038_v29, %v5586_v31  ;;  %v1841_v41 = vadd.f32 %v11578_v38, %v14327_v22  ;;  %v1832_v43 = vpop.f32.mrb[17].mxu1 }
 0x40f   : > { %v1833_v45 = vadd.f32 %v14327_v22, %v1832_v43  ;;  %v11579_v49 = vpop.f32.mrb[18].mxu1  ;;  %11644 = vmatprep.mubr.msk.bf16.mxu0 %vm1637_vm2, %v2093_v35 }
 0x410   : > { %v5587_v50 = vmax.f32 %v2036_v30, %v5584_v40  ;;  %v2041_v51 = vmax.f32 %v1841_v41, 0.0  ;;  %v1844_v52 = vadd.f32 %v11579_v49, %v14327_v22  ;;  %v1835_v56 = vpop.f32.mrb[19].mxu1  ;;  %11645 = vmatmul.mubr.msk.bf16.gmra.mrb[76].mxu0 %vm1637_vm2, %v2094_v34 }
 0x411   : > { %v2039_v57 = vmax.f32 %v1833_v45, 0.0  ;;  %v1836_v1 = vadd.f32 %v14327_v22, %v1835_v56 }
 0x412   : > { %v5585_v4 = vmax.f32 %v2041_v51, %v5587_v50  ;;  %v2042_v5 = vmax.f32 %v1844_v52, 0.0 }
 0x413   : > { %v2040_v18 = vmax.f32 %v1836_v1, 0.0 }
 0x414   : > { %v5590_v25 = vmax.f32 %v2039_v57, %v5585_v4  ;;  %v2096_v26 = vpack.c.bf16 %v2042_v5, %v2041_v51 }
 0x415   : > { %v2095_v33 = vpack.c.bf16 %v2040_v18, %v2039_v57  ;;  %v11582_v44 = vpop.f32.mrb[20].mxu1 }
 0x416   : > { %v5606_v54 = vmax.f32 %v2042_v5, %v5590_v25  ;;  %v1857_v55 = vadd.f32 %v11582_v44, %v14327_v22  ;;  %v1848_v58 = vpop.f32.mrb[21].mxu1 }
 0x417   : > { %v1849_v59 = vadd.f32 %v14327_v22, %v1848_v58  ;;  %v11583_v61 = vpop.f32.mrb[22].mxu1  ;;  %11648 = vmatprep.mubr.msk.bf16.mxu0 %vm1637_vm2, %v2095_v33 }
 0x418   : > { %v5588_v46 = vmax.f32 %v2040_v18, %v5606_v54  ;;  %v2045_v62 = vmax.f32 %v1857_v55, 0.0  ;;  %v1860_v63 = vadd.f32 %v11583_v61, %v14327_v22  ;;  %v1851_v0 = vpop.f32.mrb[23].mxu1  ;;  %11649 = vmatmul.mubr.msk.bf16.gmra.mrb[80].mxu0 %vm1637_vm2, %v2096_v26 }
 0x419   : > { %v2043_v2 = vmax.f32 %v1849_v59, 0.0  ;;  %v1852_v3 = vadd.f32 %v14327_v22, %v1851_v0 }
 0x41a   : > { %v5604_v6 = vmax.f32 %v2045_v62, %v5588_v46  ;;  %v2046_v7 = vmax.f32 %v1860_v63, 0.0 }
 0x41b   : > { %v2044_v53 = vmax.f32 %v1852_v3, 0.0 }
 0x41c   : > { %v5591_v8 = vmax.f32 %v2043_v2, %v5604_v6  ;;  %v2098_v9 = vpack.c.bf16 %v2046_v7, %v2045_v62 }
 0x41d   : > { %v2097_v10 = vpack.c.bf16 %v2044_v53, %v2043_v2  ;;  %v11586_v12 = vpop.f32.mrb[24].mxu1 }
 0x41e   : > { %v5607_v32 = vmax.f32 %v2046_v7, %v5591_v8  ;;  %v1873_v36 = vadd.f32 %v11586_v12, %v14327_v22  ;;  %v1864_v42 = vpop.f32.mrb[25].mxu1 }
 0x41f   : > { %v1865_v47 = vadd.f32 %v14327_v22, %v1864_v42  ;;  %v11587_v13 = vpop.f32.mrb[26].mxu1  ;;  %11652 = vmatprep.mubr.msk.bf16.mxu0 %vm1637_vm2, %v2097_v10 }
 0x420   : > { %v5589_v37 = vmax.f32 %v2044_v53, %v5607_v32  ;;  %v2049_v14 = vmax.f32 %v1873_v36, 0.0  ;;  %v1876_v39 = vadd.f32 %v11587_v13, %v14327_v22  ;;  %v1867_v48 = vpop.f32.mrb[27].mxu1  ;;  %11653 = vmatmul.mubr.msk.bf16.gmra.mrb[84].mxu0 %vm1637_vm2, %v2098_v9 }
 0x421   : > { %v2047_v60 = vmax.f32 %v1865_v47, 0.0  ;;  %v1868_v15 = vadd.f32 %v14327_v22, %v1867_v48 }
 0x422   : > { %v5605_v16 = vmax.f32 %v2049_v14, %v5589_v37  ;;  %v2050_v17 = vmax.f32 %v1876_v39, 0.0 }
 0x423   : > { %v2048_v19 = vmax.f32 %v1868_v15, 0.0 }
 0x424   : > { %v5594_v21 = vmax.f32 %v2047_v60, %v5605_v16  ;;  %v2100_v11 = vpack.c.bf16 %v2050_v17, %v2049_v14 }
 0x425   : > { %v2099_v23 = vpack.c.bf16 %v2048_v19, %v2047_v60  ;;  %v11590_v24 = vpop.f32.mrb[28].mxu1 }
 0x426   : > { %v5610_v27 = vmax.f32 %v2050_v17, %v5594_v21  ;;  %v1889_v28 = vadd.f32 %v11590_v24, %v14327_v22  ;;  %v1880_v29 = vpop.f32.mrb[29].mxu1 }
 0x427   : > { %v1881_v30 = vadd.f32 %v14327_v22, %v1880_v29  ;;  %v11591_v31 = vpop.f32.mrb[30].mxu1  ;;  %11656 = vmatprep.mubr.msk.bf16.mxu0 %vm1637_vm2, %v2099_v23 }
 0x428   : > { %v5592_v34 = vmax.f32 %v2048_v19, %v5610_v27  ;;  %v2053_v35 = vmax.f32 %v1889_v28, 0.0  ;;  %v1892_v38 = vadd.f32 %v11591_v31, %v14327_v22  ;;  %v1883_v40 = vpop.f32.mrb[31].mxu1  ;;  %11657 = vmatmul.mubr.msk.bf16.gmra.mrb[88].mxu0 %vm1637_vm2, %v2100_v11 }
 0x429   : > { %v2051_v41 = vmax.f32 %v1881_v30, 0.0  ;;  %v1884_v43 = vadd.f32 %v14327_v22, %v1883_v40 }
 0x42a   : > { %v5608_v45 = vmax.f32 %v2053_v35, %v5592_v34  ;;  %v2054_v49 = vmax.f32 %v1892_v38, 0.0 }
 0x42b   : > { %v2052_v50 = vmax.f32 %v1884_v43, 0.0 }
 0x42c   : > { %v5595_v51 = vmax.f32 %v2051_v41, %v5608_v45  ;;  %v2102_v52 = vpack.c.bf16 %v2054_v49, %v2053_v35 }
 0x42d   : > { %v2101_v56 = vpack.c.bf16 %v2052_v50, %v2051_v41  ;;  %v11594_v57 = vpop.f32.mrb[32].mxu1 }
 0x42e   : > { %v5611_v1 = vmax.f32 %v2054_v49, %v5595_v51  ;;  %v1905_v4 = vadd.f32 %v11594_v57, %v14327_v22  ;;  %v1896_v5 = vpop.f32.mrb[33].mxu1 }
 0x42f   : > { %v1897_v18 = vadd.f32 %v14327_v22, %v1896_v5  ;;  %v11595_v25 = vpop.f32.mrb[34].mxu1  ;;  %11660 = vmatprep.mubr.msk.bf16.mxu0 %vm1637_vm2, %v2101_v56 }
 0x430   : > { %v5593_v26 = vmax.f32 %v2052_v50, %v5611_v1  ;;  %v2057_v33 = vmax.f32 %v1905_v4, 0.0  ;;  %v1908_v44 = vadd.f32 %v11595_v25, %v14327_v22  ;;  %v1899_v54 = vpop.f32.mrb[35].mxu1  ;;  %11661 = vmatmul.mubr.msk.bf16.gmra.mrb[92].mxu0 %vm1637_vm2, %v2102_v52 }
 0x431   : > { %v2055_v55 = vmax.f32 %v1897_v18, 0.0  ;;  %v1900_v58 = vadd.f32 %v14327_v22, %v1899_v54 }
 0x432   : > { %v5609_v59 = vmax.f32 %v2057_v33, %v5593_v26  ;;  %v2058_v61 = vmax.f32 %v1908_v44, 0.0 }
 0x433   : > { %v2056_v46 = vmax.f32 %v1900_v58, 0.0 }
 0x434   : > { %v5598_v62 = vmax.f32 %v2055_v55, %v5609_v59  ;;  %v2104_v63 = vpack.c.bf16 %v2058_v61, %v2057_v33 }
 0x435   : > { %v2103_v0 = vpack.c.bf16 %v2056_v46, %v2055_v55  ;;  %v11598_v2 = vpop.f32.mrb[36].mxu1 }
 0x436   : > { %v5614_v3 = vmax.f32 %v2058_v61, %v5598_v62  ;;  %v1921_v6 = vadd.f32 %v11598_v2, %v14327_v22  ;;  %v1912_v7 = vpop.f32.mrb[37].mxu1 }
 0x437   : > { %v1913_v53 = vadd.f32 %v14327_v22, %v1912_v7  ;;  %v11599_v8 = vpop.f32.mrb[38].mxu1  ;;  %11664 = vmatprep.mubr.msk.bf16.mxu0 %vm1637_vm2, %v2103_v0 }
 0x438   : > { %v5622_v9 = vmax.f32 %v2056_v46, %v5614_v3  ;;  %v2061_v10 = vmax.f32 %v1921_v6, 0.0  ;;  %v1924_v12 = vadd.f32 %v11599_v8, %v14327_v22  ;;  %v1915_v32 = vpop.f32.mrb[39].mxu1  ;;  %11665 = vmatmul.mubr.msk.bf16.gmra.mrb[96].mxu0 %vm1637_vm2, %v2104_v63 }
 0x439   : > { %v2059_v36 = vmax.f32 %v1913_v53, 0.0  ;;  %v1916_v42 = vadd.f32 %v14327_v22, %v1915_v32 }
 0x43a   : > { %v5596_v47 = vmax.f32 %v2061_v10, %v5622_v9  ;;  %v2062_v13 = vmax.f32 %v1924_v12, 0.0 }
 0x43b   : > { %v2060_v37 = vmax.f32 %v1916_v42, 0.0 }
 0x43c   : > { %v5612_v14 = vmax.f32 %v2059_v36, %v5596_v47  ;;  %v2106_v39 = vpack.c.bf16 %v2062_v13, %v2061_v10 }
 0x43d   : > { %v2105_v48 = vpack.c.bf16 %v2060_v37, %v2059_v36  ;;  %v11602_v60 = vpop.f32.mrb[40].mxu1 }
 0x43e   : > { %v5620_v15 = vmax.f32 %v2062_v13, %v5612_v14  ;;  %v1937_v16 = vadd.f32 %v11602_v60, %v14327_v22  ;;  %v1928_v17 = vpop.f32.mrb[41].mxu1 }
 0x43f   : > { %v1929_v19 = vadd.f32 %v14327_v22, %v1928_v17  ;;  %v11603_v21 = vpop.f32.mrb[42].mxu1  ;;  %11668 = vmatprep.mubr.msk.bf16.mxu0 %vm1637_vm2, %v2105_v48 }
 0x440   : > { %v5599_v11 = vmax.f32 %v2060_v37, %v5620_v15  ;;  %v2065_v23 = vmax.f32 %v1937_v16, 0.0  ;;  %v1940_v24 = vadd.f32 %v11603_v21, %v14327_v22  ;;  %v1931_v27 = vpop.f32.mrb[43].mxu1  ;;  %11669 = vmatmul.mubr.msk.bf16.gmra.mrb[100].mxu0 %vm1637_vm2, %v2106_v39 }
 0x441   : > { %v2063_v28 = vmax.f32 %v1929_v19, 0.0  ;;  %v1932_v29 = vadd.f32 %v14327_v22, %v1931_v27 }
 0x442   : > { %v5615_v30 = vmax.f32 %v2065_v23, %v5599_v11  ;;  %v2066_v31 = vmax.f32 %v1940_v24, 0.0 }
 0x443   : > { %v2064_v34 = vmax.f32 %v1932_v29, 0.0 }
 0x444   : > { %v5623_v35 = vmax.f32 %v2063_v28, %v5615_v30  ;;  %v2108_v38 = vpack.c.bf16 %v2066_v31, %v2065_v23 }
 0x445   : > { %v2107_v40 = vpack.c.bf16 %v2064_v34, %v2063_v28  ;;  %v11606_v41 = vpop.f32.mrb[44].mxu1 }
 0x446   : > { %v5597_v43 = vmax.f32 %v2066_v31, %v5623_v35  ;;  %v1953_v45 = vadd.f32 %v11606_v41, %v14327_v22  ;;  %v1944_v49 = vpop.f32.mrb[45].mxu1 }
 0x447   : > { %v1945_v50 = vadd.f32 %v14327_v22, %v1944_v49  ;;  %v11607_v51 = vpop.f32.mrb[46].mxu1  ;;  %11672 = vmatprep.mubr.msk.bf16.mxu0 %vm1637_vm2, %v2107_v40 }
 0x448   : > { %v5613_v52 = vmax.f32 %v2064_v34, %v5597_v43  ;;  %v2069_v56 = vmax.f32 %v1953_v45, 0.0  ;;  %v1956_v57 = vadd.f32 %v11607_v51, %v14327_v22  ;;  %v1947_v1 = vpop.f32.mrb[47].mxu1  ;;  %11673 = vmatmul.mubr.msk.bf16.gmra.mrb[104].mxu0 %vm1637_vm2, %v2108_v38 }
 0x449   : > { %v2067_v4 = vmax.f32 %v1945_v50, 0.0  ;;  %v1948_v5 = vadd.f32 %v14327_v22, %v1947_v1 }
 0x44a   : > { %v5621_v18 = vmax.f32 %v2069_v56, %v5613_v52  ;;  %v2070_v25 = vmax.f32 %v1956_v57, 0.0 }
 0x44b   : > { %v2068_v26 = vmax.f32 %v1948_v5, 0.0 }
 0x44c   : > { %v5602_v33 = vmax.f32 %v2067_v4, %v5621_v18  ;;  %v2110_v44 = vpack.c.bf16 %v2070_v25, %v2069_v56 }
 0x44d   : > { %v2109_v54 = vpack.c.bf16 %v2068_v26, %v2067_v4  ;;  %v11610_v55 = vpop.f32.mrb[48].mxu1 }
 0x44e   : > { %v5618_v58 = vmax.f32 %v2070_v25, %v5602_v33  ;;  %v1969_v59 = vadd.f32 %v11610_v55, %v14327_v22  ;;  %v1960_v61 = vpop.f32.mrb[49].mxu1 }
 0x44f   : > { %v1961_v46 = vadd.f32 %v14327_v22, %v1960_v61  ;;  %v11611_v62 = vpop.f32.mrb[50].mxu1  ;;  %11676 = vmatprep.mubr.msk.bf16.mxu0 %vm1637_vm2, %v2109_v54 }
 0x450   : > { %v5626_v63 = vmax.f32 %v2068_v26, %v5618_v58  ;;  %v2073_v0 = vmax.f32 %v1969_v59, 0.0  ;;  %v1972_v2 = vadd.f32 %v11611_v62, %v14327_v22  ;;  %v1963_v3 = vpop.f32.mrb[51].mxu1  ;;  %11677 = vmatmul.mubr.msk.bf16.gmra.mrb[108].mxu0 %vm1637_vm2, %v2110_v44 }
 0x451   : > { %v2071_v6 = vmax.f32 %v1961_v46, 0.0  ;;  %v1964_v7 = vadd.f32 %v14327_v22, %v1963_v3 }
 0x452   : > { %v5630_v53 = vmax.f32 %v2073_v0, %v5626_v63  ;;  %v2074_v8 = vmax.f32 %v1972_v2, 0.0 }
 0x453   : > { %v2072_v9 = vmax.f32 %v1964_v7, 0.0 }
 0x454   : > { %v5600_v10 = vmax.f32 %v2071_v6, %v5630_v53  ;;  %v2112_v12 = vpack.c.bf16 %v2074_v8, %v2073_v0  ;;  %v3159_v53 = vld [vmem:[#allocation20] sm:$0xff] }
 0x455   : > { %v2111_v32 = vpack.c.bf16 %v2072_v9, %v2071_v6  ;;  %v11614_v36 = vpop.f32.mrb[52].mxu1 }
 0x456   : > { %v5616_v42 = vmax.f32 %v2074_v8, %v5600_v10  ;;  %v1985_v47 = vadd.f32 %v11614_v36, %v14327_v22  ;;  %v1976_v13 = vpop.f32.mrb[53].mxu1  ;;  %v3163_v8 = vld [vmem:[#allocation20 + $0x20] sm:$0xff] }
 0x457   : > { %v1977_v37 = vadd.f32 %v14327_v22, %v1976_v13  ;;  %v11615_v14 = vpop.f32.mrb[54].mxu1  ;;  %11680 = vmatprep.mubr.msk.bf16.mxu0 %vm1637_vm2, %v2111_v32  ;;  %v10723_v10 = vcombine.low %v3159_v53, %v3163_v8  ;;  %v3167_v36 = vld [vmem:[#allocation20 + $0x40] sm:$0xff] }
 0x458   : > { %v5624_v39 = vmax.f32 %v2072_v9, %v5616_v42  ;;  %v2077_v48 = vmax.f32 %v1985_v47, 0.0  ;;  %v1988_v60 = vadd.f32 %v11615_v14, %v14327_v22  ;;  %v1979_v15 = vpop.f32.mrb[55].mxu1  ;;  %11681 = vmatmul.mubr.msk.bf16.gmra.mrb[112].mxu0 %vm1637_vm2, %v2112_v12  ;;  %v14427_v9 = vld [vmem:[#allocation20 + $0x8] sm:$0xff]  ;;  %v10724_v12 = vcombine.high %v3159_v53, %v3163_v8  ;;  %v3171_v42 = vld [vmem:[#allocation20 + $0x60] sm:$0xff] }
 0x459   : > { %v2075_v16 = vmax.f32 %v1977_v37, 0.0  ;;  %v1980_v17 = vadd.f32 %v14327_v22, %v1979_v15  ;;  %v10731_v47 = vcombine.low %v3167_v36, %v3171_v42  ;;  %v10732_v13 = vcombine.high %v3167_v36, %v3171_v42  ;;  %v14433_v37 = vld [vmem:[#allocation15] ss:$0 sm:$0xff] }
 0x45a   : > { %v5628_v19 = vmax.f32 %v2077_v48, %v5624_v39  ;;  %v2078_v21 = vmax.f32 %v1988_v60, 0.0  ;;  %3585 = vmatprep.subr.bf16.mxu0 %v10724_v12 }
 0x45b   : > { %v2076_v11 = vmax.f32 %v1980_v17, 0.0  ;;  %3586 = vmatpush1.bf16.msra.mxu0 %v10723_v10  ;;  %v3211_v10 = vld [vmem:[#allocation20 + $0x1a0] sm:$0xff] }
 0x45c   : > { %v5632_v23 = vmax.f32 %v5628_v19, %v2075_v16  ;;  %v2114_v24 = vpack.c.bf16 %v2078_v21, %v2077_v48  ;;  %3587 = vmatprep.subr.bf16.mxu0 %v10732_v13 }
 0x45d   : > { %v2113_v27 = vpack.c.bf16 %v2076_v11, %v2075_v16  ;;  %v11618_v28 = vpop.f32.mrb[56].mxu1 }
 0x45e   : > { %v5603_v29 = vmax.f32 %v2078_v21, %v5632_v23  ;;  %v2001_v30 = vadd.f32 %v11618_v28, %v14327_v22  ;;  %v1992_v31 = vpop.f32.mrb[57].mxu1  ;;  %v3175_v21 = vld [vmem:[#allocation20 + $0x80] sm:$0xff] }
 0x45f   : > { %v1993_v34 = vadd.f32 %v14327_v22, %v1992_v31  ;;  %v11619_v35 = vpop.f32.mrb[58].mxu1  ;;  %11684 = vmatprep.mubr.msk.bf16.mxu0 %vm1637_vm2, %v2113_v27  ;;  %3588 = vmatpush1.bf16.msra.mxu0 %v10731_v47 }
 0x460   : > { %v5619_v38 = vmax.f32 %v2076_v11, %v5603_v29  ;;  %v2081_v40 = vmax.f32 %v2001_v30, 0.0  ;;  %v2004_v41 = vadd.f32 %v11619_v35, %v14327_v22  ;;  %v1995_v43 = vpop.f32.mrb[59].mxu1  ;;  %11685 = vmatmul.mubr.msk.bf16.gmra.mrb[116].mxu0 %vm1637_vm2, %v2114_v24  ;;  %v3179_v11 = vld [vmem:[#allocation20 + $0xa0] sm:$0xff] }
 0x461   : > { %v2079_v45 = vmax.f32 %v1993_v34, 0.0  ;;  %v1996_v49 = vadd.f32 %v14327_v22, %v1995_v43  ;;  %v10739_v27 = vcombine.low %v3175_v21, %v3179_v11  ;;  %v10740_v28 = vcombine.high %v3175_v21, %v3179_v11  ;;  %v3183_v29 = vld [vmem:[#allocation20 + $0xc0] sm:$0xff] }
 0x462   : > { %v5627_v50 = vmax.f32 %v2081_v40, %v5619_v38  ;;  %v2082_v51 = vmax.f32 %v2004_v41, 0.0  ;;  %v3187_v30 = vld [vmem:[#allocation20 + $0xe0] sm:$0xff]  ;;  %v3172_v41 = vld [vmem:[#allocation20 + $0x68] sm:$0xff] }
 0x463   : > { %v2080_v52 = vmax.f32 %v1996_v49, 0.0  ;;  %v3191_v34 = vld [vmem:[#allocation20 + $0x100] sm:$0xff]  ;;  %3589 = vmatprep.subr.bf16.mxu0 %v10740_v28  ;;  %v10748_v43 = vcombine.high %v3183_v29, %v3187_v30 }
 0x464   : > { %v5631_v56 = vmax.f32 %v2079_v45, %v5627_v50  ;;  %v2116_v57 = vpack.c.bf16 %v2082_v51, %v2081_v40  ;;  %v3168_v40 = vld [vmem:[#allocation20 + $0x48] sm:$0xff]  ;;  %3590 = vmatpush1.bf16.msra.mxu0 %v10739_v27  ;;  %v10747_v50 = vcombine.low %v3183_v29, %v3187_v30  ;;  %v3219_v21 = vld [vmem:[#allocation20 + $0x1e0] sm:$0xff] }
 0x465   : > { %v2115_v1 = vpack.c.bf16 %v2080_v52, %v2079_v45  ;;  %v11622_v4 = vpop.f32.mrb[60].mxu1  ;;  %v3195_v45 = vld [vmem:[#allocation20 + $0x120] sm:$0xff]  ;;  %3591 = vmatprep.subr.bf16.mxu0 %v10748_v43  ;;  %v3196_v27 = vld [vmem:[#allocation20 + $0x128] sm:$0xff] }
 0x466   : > { %v5601_v5 = vmax.f32 %v2082_v51, %v5631_v56  ;;  %v2017_v18 = vadd.f32 %v11622_v4, %v14327_v22  ;;  %v2008_v25 = vpop.f32.mrb[61].mxu1 }
 0x467   : > { %v2009_v26 = vadd.f32 %v14327_v22, %v2008_v25  ;;  %v11623_v33 = vpop.f32.mrb[62].mxu1  ;;  %11688 = vmatprep.mubr.msk.bf16.mxu0 %vm1637_vm2, %v2115_v1  ;;  %v10756_v1 = vcombine.high %v3191_v34, %v3195_v45  ;;  %v3199_v25 = vld [vmem:[#allocation20 + $0x140] sm:$0xff] }
 0x468   : > { %v5617_v44 = vmax.f32 %v2080_v52, %v5601_v5  ;;  %v2085_v54 = vmax.f32 %v2017_v18, 0.0  ;;  %v2020_v55 = vadd.f32 %v11623_v33, %v14327_v22  ;;  %v2011_v58 = vpop.f32.mrb[63].mxu1  ;;  %11689 = vmatmul.mubr.msk.bf16.gmra.mrb[120].mxu0 %vm1637_vm2, %v2116_v57  ;;  %v10734_v18 = vcombine.high %v3168_v40, %v3172_v41 }
 0x469   : > { %v2083_v59 = vmax.f32 %v2009_v26, 0.0  ;;  %v2012_v61 = vadd.f32 %v14327_v22, %v2011_v58  ;;  %v14429_v22 = vld [vmem:[#allocation20 + $0x28] sm:$0xff]  ;;  %v3203_v26 = vld [vmem:[#allocation20 + $0x160] sm:$0xff]  ;;  %3592 = vmatpush1.bf16.msra.mxu0 %v10747_v50 }
 0x46a   : > { %v5625_v46 = vmax.f32 %v2085_v54, %v5617_v44  ;;  %v2086_v62 = vmax.f32 %v2020_v55, 0.0  ;;  %v10726_v32 = vcombine.high %v14427_v9, %v14429_v22  ;;  %v10725_v57 = vcombine.low %v14427_v9, %v14429_v22  ;;  %v3176_v55 = vld [vmem:[#allocation20 + $0x88] sm:$0xff]  ;;  %3593 = vmatprep.subr.bf16.mxu0 %v10756_v1  ;;  %v3207_v9 = vld [vmem:[#allocation20 + $0x180] sm:$0xff] }
 0x46b   : > { %v2084_v63 = vmax.f32 %v2012_v61, 0.0  ;;  %v3180_v58 = vld [vmem:[#allocation20 + $0xa8] sm:$0xff]  ;;  %v10763_v47 = vcombine.low %v3199_v25, %v3203_v26 }
 0x46c   : > { %v5629_v0 = vmax.f32 %v2083_v59, %v5625_v46  ;;  %v2118_v2 = vpack.c.bf16 %v2086_v62, %v2085_v54  ;;  %3938 = vmatprep.subr.bf16.mxu1 %v10726_v32  ;;  %v10742_v8 = vcombine.high %v3176_v55, %v3180_v58  ;;  %v3184_v22 = vld [vmem:[#allocation20 + $0xc8] sm:$0xff] }
 0x46d   : > { %v2117_v3 = vpack.c.bf16 %v2084_v63, %v2083_v59  ;;  %v3188_v32 = vld [vmem:[#allocation20 + $0xe8] sm:$0xff] }
 0x46e   : > { %v5633_v6 = vmax.f32 %v5629_v0, %v2086_v62  ;;  %v10755_v62 = vcombine.low %v3191_v34, %v3195_v45  ;;  %v10771_v34 = vcombine.low %v3207_v9, %v3211_v10 }
 0x46f   : > { %11692 = vmatprep.mubr.msk.bf16.mxu0 %vm1637_vm2, %v2117_v3  ;;  %v10764_v3 = vcombine.high %v3199_v25, %v3203_v26 }
 0x470   : > { %v14424_v7 = vmax.f32 %v2084_v63, %v5633_v6  ;;  %11693 = vmatmul.mubr.msk.bf16.gmra.mrb[124].mxu0 %vm1637_vm2, %v2118_v2  ;;  %v10733_v2 = vcombine.low %v3168_v40, %v3172_v41  ;;  %v10749_v40 = vcombine.low %v3184_v22, %v3188_v32 }
 0x471   : > { %3594 = vmatpush1.bf16.msra.mxu0 %v10755_v62 }
 0x472   : > { %3595 = vmatprep.subr.bf16.mxu0 %v10764_v3  ;;  %6270 = vst.msk [vmem:[#allocation3] sm:$0xff] (!%p10787_p6), %vm1637_vm2, %v14424_v7 }
 0x475   : > { %3596 = vmatpush1.bf16.msra.mxu0 %v10763_v47 }
 0x4cb   : > { %v11634_v14 = vpop.f32.mrb[64].mxu0 }
 0x4cc   : > { %v2297_v39 = vadd.f32 %v11634_v14, %v14433_v37  ;;  %v2288_v48 = vpop.f32.mrb[65].mxu0 }
 0x4cd   : > { %v2289_v60 = vadd.f32 %v14433_v37, %v2288_v48  ;;  %v11635_v15 = vpop.f32.mrb[66].mxu0  ;;  %v10772_v48 = vcombine.high %v3207_v9, %v3211_v10  ;;  %v3216_v10 = vld [vmem:[#allocation20 + $0x1c8] sm:$0xff] }
 0x4ce   : > { %v2545_v16 = vmax.f32 %v2297_v39, 0.0  ;;  %v2300_v17 = vadd.f32 %v11635_v15, %v14433_v37  ;;  %v2291_v19 = vpop.f32.mrb[67].mxu0  ;;  %v10741_v39 = vcombine.low %v3176_v55, %v3180_v58  ;;  %v3208_v58 = vld [vmem:[#allocation20 + $0x188] sm:$0xff] }
 0x4cf   : > { %v2543_v23 = vmax.f32 %v2289_v60, 0.0  ;;  %v2292_v24 = vadd.f32 %v14433_v37, %v2291_v19  ;;  %v3215_v19 = vld [vmem:[#allocation20 + $0x1c0] sm:$0xff]  ;;  %3597 = vmatprep.subr.bf16.mxu0 %v10772_v48 }
 0x4d0   : > { %v2546_v31 = vmax.f32 %v2300_v17, 0.0  ;;  %v10750_v17 = vcombine.high %v3184_v22, %v3188_v32  ;;  %v10780_v41 = vcombine.high %v3215_v19, %v3219_v21  ;;  %3598 = vmatpush1.bf16.msra.mxu0 %v10771_v34  ;;  %v10779_v1 = vcombine.low %v3215_v19, %v3219_v21 }
 0x4d1   : > { %v5637_v35 = vmax.f32 %v2545_v16, %v2543_v23  ;;  %v2544_v38 = vmax.f32 %v2292_v24, 0.0  ;;  %v3192_v24 = vld [vmem:[#allocation20 + $0x108] sm:$0xff] }
 0x4d2   : > { %v2608_v49 = vpack.c.bf16 %v2546_v31, %v2545_v16  ;;  %3599 = vmatprep.subr.bf16.mxu0 %v10780_v41 }
 0x4d3   : > { %v5635_v51 = vmax.f32 %v2546_v31, %v5637_v35  ;;  %v2607_v52 = vpack.c.bf16 %v2544_v38, %v2543_v23  ;;  %v11638_v56 = vpop.f32.mrb[68].mxu0 }
 0x4d4   : > { %v2313_v4 = vadd.f32 %v11638_v56, %v14433_v37  ;;  %v2304_v5 = vpop.f32.mrb[69].mxu0  ;;  %3600 = vmatpush1.bf16.msra.mxu0 %v10779_v1 }
 0x4d5   : > { %v5638_v33 = vmax.f32 %v2544_v38, %v5635_v51  ;;  %v2305_v44 = vadd.f32 %v14433_v37, %v2304_v5  ;;  %v11639_v54 = vpop.f32.mrb[70].mxu0  ;;  %11704 = vmatprep.mubr.msk.bf16.mxu1 %vm1637_vm2, %v2607_v52  ;;  %v3200_v51 = vld [vmem:[#allocation20 + $0x148] sm:$0xff] }
 0x4d6   : > { %v2549_v59 = vmax.f32 %v2313_v4, 0.0  ;;  %v2316_v61 = vadd.f32 %v11639_v54, %v14433_v37  ;;  %v2307_v46 = vpop.f32.mrb[71].mxu0  ;;  %11705 = vmatmul.mubr.msk.bf16.vlgmr.msra.gmra.mrb[64].mxu1 %vm1637_vm2, %v2608_v49  ;;  %v10758_v49 = vcombine.high %v3192_v24, %v3196_v27  ;;  %v3204_v52 = vld [vmem:[#allocation20 + $0x168] sm:$0xff] }
 0x4d7   : > { %v2547_v63 = vmax.f32 %v2305_v44, 0.0  ;;  %v2308_v0 = vadd.f32 %v14433_v37, %v2307_v46  ;;  %3939 = vmatpush1.bf16.msra.mxu1 %v10725_v57  ;;  %v10766_v44 = vcombine.high %v3200_v51, %v3204_v52  ;;  %v10765_v3 = vcombine.low %v3200_v51, %v3204_v52 }
 0x4d8   : > { %v5636_v6 = vmax.f32 %v2549_v59, %v5638_v33  ;;  %v2550_v53 = vmax.f32 %v2316_v61, 0.0  ;;  %3940 = vmatprep.subr.bf16.mxu1 %v10734_v18  ;;  %v10757_v18 = vcombine.low %v3192_v24, %v3196_v27 }
 0x4d9   : > { %v2548_v12 = vmax.f32 %v2308_v0, 0.0 }
 0x4da   : > { %v5641_v36 = vmax.f32 %v2547_v63, %v5636_v6  ;;  %v2610_v42 = vpack.c.bf16 %v2550_v53, %v2549_v59  ;;  %v3212_v59 = vld [vmem:[#allocation20 + $0x1a8] sm:$0xff] }
 0x4db   : > { %v2609_v13 = vpack.c.bf16 %v2548_v12, %v2547_v63  ;;  %v11642_v14 = vpop.f32.mrb[72].mxu0  ;;  %3941 = vmatpush1.bf16.msra.mxu1 %v10733_v2  ;;  %v10773_v47 = vcombine.low %v3208_v58, %v3212_v59 }
 0x4dc   : > { %v5639_v60 = vmax.f32 %v2550_v53, %v5641_v36  ;;  %v2329_v15 = vadd.f32 %v11642_v14, %v14433_v37  ;;  %v2320_v16 = vpop.f32.mrb[73].mxu0  ;;  %3942 = vmatprep.subr.bf16.mxu1 %v10742_v8  ;;  %v10774_v8 = vcombine.high %v3208_v58, %v3212_v59 }
 0x4dd   : > { %v2321_v11 = vadd.f32 %v14433_v37, %v2320_v16  ;;  %v11643_v23 = vpop.f32.mrb[74].mxu0  ;;  %11708 = vmatprep.mubr.msk.bf16.mxu1 %vm1637_vm2, %v2609_v13 }
 0x4de   : > { %v5642_v28 = vmax.f32 %v2548_v12, %v5639_v60  ;;  %v2553_v29 = vmax.f32 %v2329_v15, 0.0  ;;  %v2332_v30 = vadd.f32 %v11643_v23, %v14433_v37  ;;  %v2323_v31 = vpop.f32.mrb[75].mxu0  ;;  %11709 = vmatmul.mubr.msk.bf16.gmra.mrb[68].mxu1 %vm1637_vm2, %v2610_v42  ;;  %v3220_v12 = vld [vmem:[#allocation20 + $0x1e8] sm:$0xff] }
 0x4df   : > { %v2551_v35 = vmax.f32 %v2321_v11, 0.0  ;;  %v2324_v38 = vadd.f32 %v14433_v37, %v2323_v31  ;;  %3943 = vmatpush1.bf16.msra.mxu1 %v10741_v39  ;;  %v10782_v48 = vcombine.high %v3216_v10, %v3220_v12  ;;  %v10781_v24 = vcombine.low %v3216_v10, %v3220_v12 }
 0x4e0   : > { %v5640_v43 = vmax.f32 %v2553_v29, %v5642_v28  ;;  %v2554_v45 = vmax.f32 %v2332_v30, 0.0  ;;  %3944 = vmatprep.subr.bf16.mxu1 %v10750_v17 }
 0x4e1   : > { %v2552_v50 = vmax.f32 %v2324_v38, 0.0 }
 0x4e2   : > { %v5645_v56 = vmax.f32 %v2551_v35, %v5640_v43  ;;  %v2612_v57 = vpack.c.bf16 %v2554_v45, %v2553_v29 }
 0x4e3   : > { %v2611_v4 = vpack.c.bf16 %v2552_v50, %v2551_v35  ;;  %v11646_v5 = vpop.f32.mrb[76].mxu0  ;;  %3945 = vmatpush1.bf16.msra.mxu1 %v10749_v40 }
 0x4e4   : > { %v5643_v25 = vmax.f32 %v2554_v45, %v5645_v56  ;;  %v2345_v26 = vadd.f32 %v11646_v5, %v14433_v37  ;;  %v2336_v33 = vpop.f32.mrb[77].mxu0  ;;  %3946 = vmatprep.subr.bf16.mxu1 %v10758_v49 }
 0x4e5   : > { %v2337_v54 = vadd.f32 %v14433_v37, %v2336_v33  ;;  %v11647_v55 = vpop.f32.mrb[78].mxu0  ;;  %11712 = vmatprep.mubr.msk.bf16.mxu1 %vm1637_vm2, %v2611_v4 }
 0x4e6   : > { %v5646_v61 = vmax.f32 %v2552_v50, %v5643_v25  ;;  %v2557_v46 = vmax.f32 %v2345_v26, 0.0  ;;  %v2348_v62 = vadd.f32 %v11647_v55, %v14433_v37  ;;  %v2339_v63 = vpop.f32.mrb[79].mxu0  ;;  %11713 = vmatmul.mubr.msk.bf16.gmra.mrb[72].mxu1 %vm1637_vm2, %v2612_v57 }
 0x4e7   : > { %v2555_v0 = vmax.f32 %v2337_v54, 0.0  ;;  %v2340_v2 = vadd.f32 %v14433_v37, %v2339_v63  ;;  %3947 = vmatpush1.bf16.msra.mxu1 %v10757_v18 }
 0x4e8   : > { %v5644_v6 = vmax.f32 %v2557_v46, %v5646_v61  ;;  %v2558_v53 = vmax.f32 %v2348_v62, 0.0  ;;  %3948 = vmatprep.subr.bf16.mxu1 %v10766_v44 }
 0x4e9   : > { %v2556_v9 = vmax.f32 %v2340_v2, 0.0 }
 0x4ea   : > { %v5649_v22 = vmax.f32 %v2555_v0, %v5644_v6  ;;  %v2614_v32 = vpack.c.bf16 %v2558_v53, %v2557_v46 }
 0x4eb   : > { %v2613_v36 = vpack.c.bf16 %v2556_v9, %v2555_v0  ;;  %v11650_v42 = vpop.f32.mrb[80].mxu0  ;;  %3949 = vmatpush1.bf16.msra.mxu1 %v10765_v3 }
 0x4ec   : > { %v5647_v13 = vmax.f32 %v2558_v53, %v5649_v22  ;;  %v2361_v14 = vadd.f32 %v11650_v42, %v14433_v37  ;;  %v2352_v39 = vpop.f32.mrb[81].mxu0  ;;  %3950 = vmatprep.subr.bf16.mxu1 %v10774_v8 }
 0x4ed   : > { %v2353_v60 = vadd.f32 %v14433_v37, %v2352_v39  ;;  %v11651_v15 = vpop.f32.mrb[82].mxu0  ;;  %11716 = vmatprep.mubr.msk.bf16.mxu1 %vm1637_vm2, %v2613_v36 }
 0x4ee   : > { %v5650_v16 = vmax.f32 %v2556_v9, %v5647_v13  ;;  %v2561_v17 = vmax.f32 %v2361_v14, 0.0  ;;  %v2364_v19 = vadd.f32 %v11651_v15, %v14433_v37  ;;  %v2355_v21 = vpop.f32.mrb[83].mxu0  ;;  %11717 = vmatmul.mubr.msk.bf16.gmra.mrb[76].mxu1 %vm1637_vm2, %v2614_v32 }
 0x4ef   : > { %v2559_v11 = vmax.f32 %v2353_v60, 0.0  ;;  %v2356_v23 = vadd.f32 %v14433_v37, %v2355_v21  ;;  %3951 = vmatpush1.bf16.msra.mxu1 %v10773_v47 }
 0x4f0   : > { %v5648_v27 = vmax.f32 %v2561_v17, %v5650_v16  ;;  %v2562_v28 = vmax.f32 %v2364_v19, 0.0  ;;  %3952 = vmatprep.subr.bf16.mxu1 %v10782_v48 }
 0x4f1   : > { %v2560_v29 = vmax.f32 %v2356_v23, 0.0 }
 0x4f2   : > { %v5653_v30 = vmax.f32 %v2559_v11, %v5648_v27  ;;  %v2616_v31 = vpack.c.bf16 %v2562_v28, %v2561_v17 }
 0x4f3   : > { %v2615_v34 = vpack.c.bf16 %v2560_v29, %v2559_v11  ;;  %v11654_v35 = vpop.f32.mrb[84].mxu0  ;;  %3953 = vmatpush1.bf16.msra.mxu1 %v10781_v24 }
 0x4f4   : > { %v5669_v38 = vmax.f32 %v2562_v28, %v5653_v30  ;;  %v2377_v40 = vadd.f32 %v11654_v35, %v14433_v37  ;;  %v2368_v41 = vpop.f32.mrb[85].mxu0 }
 0x4f5   : > { %v2369_v43 = vadd.f32 %v14433_v37, %v2368_v41  ;;  %v11655_v45 = vpop.f32.mrb[86].mxu0  ;;  %11720 = vmatprep.mubr.msk.bf16.mxu1 %vm1637_vm2, %v2615_v34 }
 0x4f6   : > { %v5651_v49 = vmax.f32 %v2560_v29, %v5669_v38  ;;  %v2565_v50 = vmax.f32 %v2377_v40, 0.0  ;;  %v2380_v51 = vadd.f32 %v11655_v45, %v14433_v37  ;;  %v2371_v52 = vpop.f32.mrb[87].mxu0  ;;  %11721 = vmatmul.mubr.msk.bf16.gmra.mrb[80].mxu1 %vm1637_vm2, %v2616_v31 }
 0x4f7   : > { %v2563_v56 = vmax.f32 %v2369_v43, 0.0  ;;  %v2372_v57 = vadd.f32 %v14433_v37, %v2371_v52 }
 0x4f8   : > { %v5667_v1 = vmax.f32 %v2565_v50, %v5651_v49  ;;  %v2566_v4 = vmax.f32 %v2380_v51, 0.0 }
 0x4f9   : > { %v2564_v5 = vmax.f32 %v2372_v57, 0.0 }
 0x4fa   : > { %v5654_v18 = vmax.f32 %v2563_v56, %v5667_v1  ;;  %v2618_v25 = vpack.c.bf16 %v2566_v4, %v2565_v50 }
 0x4fb   : > { %v2617_v26 = vpack.c.bf16 %v2564_v5, %v2563_v56  ;;  %v11658_v33 = vpop.f32.mrb[88].mxu0 }
 0x4fc   : > { %v5670_v44 = vmax.f32 %v2566_v4, %v5654_v18  ;;  %v2393_v54 = vadd.f32 %v11658_v33, %v14433_v37  ;;  %v2384_v55 = vpop.f32.mrb[89].mxu0 }
 0x4fd   : > { %v2385_v58 = vadd.f32 %v14433_v37, %v2384_v55  ;;  %v11659_v59 = vpop.f32.mrb[90].mxu0  ;;  %11724 = vmatprep.mubr.msk.bf16.mxu1 %vm1637_vm2, %v2617_v26 }
 0x4fe   : > { %v5652_v61 = vmax.f32 %v2564_v5, %v5670_v44  ;;  %v2569_v46 = vmax.f32 %v2393_v54, 0.0  ;;  %v2396_v62 = vadd.f32 %v11659_v59, %v14433_v37  ;;  %v2387_v63 = vpop.f32.mrb[91].mxu0  ;;  %11725 = vmatmul.mubr.msk.bf16.gmra.mrb[84].mxu1 %vm1637_vm2, %v2618_v25 }
 0x4ff   : > { %v2567_v0 = vmax.f32 %v2385_v58, 0.0  ;;  %v2388_v2 = vadd.f32 %v14433_v37, %v2387_v63 }
 0x500   : > { %v5668_v3 = vmax.f32 %v2569_v46, %v5652_v61  ;;  %v2570_v6 = vmax.f32 %v2396_v62, 0.0 }
 0x501   : > { %v2568_v53 = vmax.f32 %v2388_v2, 0.0 }
 0x502   : > { %v5657_v8 = vmax.f32 %v2567_v0, %v5668_v3  ;;  %v2620_v9 = vpack.c.bf16 %v2570_v6, %v2569_v46 }
 0x503   : > { %v2619_v10 = vpack.c.bf16 %v2568_v53, %v2567_v0  ;;  %v11662_v12 = vpop.f32.mrb[92].mxu0 }
 0x504   : > { %v5673_v22 = vmax.f32 %v2570_v6, %v5657_v8  ;;  %v2409_v32 = vadd.f32 %v11662_v12, %v14433_v37  ;;  %v2400_v36 = vpop.f32.mrb[93].mxu0 }
 0x505   : > { %v2401_v42 = vadd.f32 %v14433_v37, %v2400_v36  ;;  %v11663_v47 = vpop.f32.mrb[94].mxu0  ;;  %11728 = vmatprep.mubr.msk.bf16.mxu1 %vm1637_vm2, %v2619_v10 }
 0x506   : > { %v5655_v13 = vmax.f32 %v2568_v53, %v5673_v22  ;;  %v2573_v14 = vmax.f32 %v2409_v32, 0.0  ;;  %v2412_v39 = vadd.f32 %v11663_v47, %v14433_v37  ;;  %v2403_v48 = vpop.f32.mrb[95].mxu0  ;;  %11729 = vmatmul.mubr.msk.bf16.gmra.mrb[88].mxu1 %vm1637_vm2, %v2620_v9 }
 0x507   : > { %v2571_v60 = vmax.f32 %v2401_v42, 0.0  ;;  %v2404_v15 = vadd.f32 %v14433_v37, %v2403_v48 }
 0x508   : > { %v5671_v16 = vmax.f32 %v2573_v14, %v5655_v13  ;;  %v2574_v17 = vmax.f32 %v2412_v39, 0.0 }
 0x509   : > { %v2572_v19 = vmax.f32 %v2404_v15, 0.0 }
 0x50a   : > { %v5658_v21 = vmax.f32 %v2571_v60, %v5671_v16  ;;  %v2622_v11 = vpack.c.bf16 %v2574_v17, %v2573_v14 }
 0x50b   : > { %v2621_v23 = vpack.c.bf16 %v2572_v19, %v2571_v60  ;;  %v11666_v24 = vpop.f32.mrb[96].mxu0 }
 0x50c   : > { %v5674_v27 = vmax.f32 %v2574_v17, %v5658_v21  ;;  %v2425_v28 = vadd.f32 %v11666_v24, %v14433_v37  ;;  %v2416_v29 = vpop.f32.mrb[97].mxu0 }
 0x50d   : > { %v2417_v30 = vadd.f32 %v14433_v37, %v2416_v29  ;;  %v11667_v31 = vpop.f32.mrb[98].mxu0  ;;  %11732 = vmatprep.mubr.msk.bf16.mxu1 %vm1637_vm2, %v2621_v23 }
 0x50e   : > { %v5656_v34 = vmax.f32 %v2572_v19, %v5674_v27  ;;  %v2577_v35 = vmax.f32 %v2425_v28, 0.0  ;;  %v2428_v38 = vadd.f32 %v11667_v31, %v14433_v37  ;;  %v2419_v40 = vpop.f32.mrb[99].mxu0  ;;  %11733 = vmatmul.mubr.msk.bf16.gmra.mrb[92].mxu1 %vm1637_vm2, %v2622_v11 }
 0x50f   : > { %v2575_v41 = vmax.f32 %v2417_v30, 0.0  ;;  %v2420_v43 = vadd.f32 %v14433_v37, %v2419_v40 }
 0x510   : > { %v5672_v45 = vmax.f32 %v2577_v35, %v5656_v34  ;;  %v2578_v49 = vmax.f32 %v2428_v38, 0.0 }
 0x511   : > { %v2576_v50 = vmax.f32 %v2420_v43, 0.0 }
 0x512   : > { %v5661_v51 = vmax.f32 %v2575_v41, %v5672_v45  ;;  %v2624_v52 = vpack.c.bf16 %v2578_v49, %v2577_v35 }
 0x513   : > { %v2623_v56 = vpack.c.bf16 %v2576_v50, %v2575_v41  ;;  %v11670_v57 = vpop.f32.mrb[100].mxu0 }
 0x514   : > { %v5677_v1 = vmax.f32 %v2578_v49, %v5661_v51  ;;  %v2441_v4 = vadd.f32 %v11670_v57, %v14433_v37  ;;  %v2432_v5 = vpop.f32.mrb[101].mxu0 }
 0x515   : > { %v2433_v18 = vadd.f32 %v14433_v37, %v2432_v5  ;;  %v11671_v25 = vpop.f32.mrb[102].mxu0  ;;  %11736 = vmatprep.mubr.msk.bf16.mxu1 %vm1637_vm2, %v2623_v56 }
 0x516   : > { %v5685_v26 = vmax.f32 %v2576_v50, %v5677_v1  ;;  %v2581_v33 = vmax.f32 %v2441_v4, 0.0  ;;  %v2444_v44 = vadd.f32 %v11671_v25, %v14433_v37  ;;  %v2435_v54 = vpop.f32.mrb[103].mxu0  ;;  %11737 = vmatmul.mubr.msk.bf16.gmra.mrb[96].mxu1 %vm1637_vm2, %v2624_v52 }
 0x517   : > { %v2579_v55 = vmax.f32 %v2433_v18, 0.0  ;;  %v2436_v58 = vadd.f32 %v14433_v37, %v2435_v54 }
 0x518   : > { %v5659_v59 = vmax.f32 %v2581_v33, %v5685_v26  ;;  %v2582_v61 = vmax.f32 %v2444_v44, 0.0 }
 0x519   : > { %v2580_v46 = vmax.f32 %v2436_v58, 0.0 }
 0x51a   : > { %v5675_v62 = vmax.f32 %v2579_v55, %v5659_v59  ;;  %v2626_v63 = vpack.c.bf16 %v2582_v61, %v2581_v33 }
 0x51b   : > { %v2625_v0 = vpack.c.bf16 %v2580_v46, %v2579_v55  ;;  %v11674_v2 = vpop.f32.mrb[104].mxu0  ;;  %v15704_v55 = vmov 0  }
 0x51c   : > { %v5683_v3 = vmax.f32 %v2582_v61, %v5675_v62  ;;  %v2457_v6 = vadd.f32 %v11674_v2, %v14433_v37  ;;  %v2448_v53 = vpop.f32.mrb[105].mxu0  ;;  %3617 = vmatprep.mubr.bf16.mxu0 %v15704_v55 }
 0x51d   : > { %v2449_v8 = vadd.f32 %v14433_v37, %v2448_v53  ;;  %v11675_v9 = vpop.f32.mrb[106].mxu0  ;;  %11740 = vmatprep.mubr.msk.bf16.mxu1 %vm1637_vm2, %v2625_v0 }
 0x51e   : > { %v5662_v10 = vmax.f32 %v2580_v46, %v5683_v3  ;;  %v2585_v12 = vmax.f32 %v2457_v6, 0.0  ;;  %v2460_v22 = vadd.f32 %v11675_v9, %v14433_v37  ;;  %v2451_v32 = vpop.f32.mrb[107].mxu0  ;;  %11741 = vmatmul.mubr.msk.bf16.gmra.mrb[100].mxu1 %vm1637_vm2, %v2626_v63 }
 0x51f   : > { %v2583_v36 = vmax.f32 %v2449_v8, 0.0  ;;  %v2452_v42 = vadd.f32 %v14433_v37, %v2451_v32  ;;  %v14522_v32 = vld [vmem:[#allocation20 + $0x30] sm:$0xff] }
 0x520   : > { %v5678_v47 = vmax.f32 %v2585_v12, %v5662_v10  ;;  %v2586_v13 = vmax.f32 %v2460_v22, 0.0  ;;  %v14520_v22 = vld [vmem:[#allocation20 + $0x10] sm:$0xff] }
 0x521   : > { %v2584_v14 = vmax.f32 %v2452_v42, 0.0 }
 0x522   : > { %v5686_v39 = vmax.f32 %v2583_v36, %v5678_v47  ;;  %v2628_v48 = vpack.c.bf16 %v2586_v13, %v2585_v12  ;;  %v10727_v47 = vcombine.low %v14520_v22, %v14522_v32 }
 0x523   : > { %v2627_v60 = vpack.c.bf16 %v2584_v14, %v2583_v36  ;;  %v11678_v15 = vpop.f32.mrb[108].mxu0  ;;  %v14524_v36 = vld [vmem:[#allocation20 + $0x18] sm:$0xff] }
 0x524   : > { %v5660_v16 = vmax.f32 %v2586_v13, %v5686_v39  ;;  %v2473_v17 = vadd.f32 %v11678_v15, %v14433_v37  ;;  %v2464_v19 = vpop.f32.mrb[109].mxu0  ;;  %v10728_v13 = vcombine.high %v14520_v22, %v14522_v32  ;;  %v3185_v32 = vld [vmem:[#allocation20 + $0xd0] sm:$0xff] }
 0x525   : > { %v2465_v21 = vadd.f32 %v14433_v37, %v2464_v19  ;;  %v11679_v11 = vpop.f32.mrb[110].mxu0  ;;  %11744 = vmatprep.mubr.msk.bf16.mxu1 %vm1637_vm2, %v2627_v60 }
 0x526   : > { %v5676_v23 = vmax.f32 %v2584_v14, %v5660_v16  ;;  %v2589_v24 = vmax.f32 %v2473_v17, 0.0  ;;  %v2476_v27 = vadd.f32 %v11679_v11, %v14433_v37  ;;  %v2467_v28 = vpop.f32.mrb[111].mxu0  ;;  %11745 = vmatmul.mubr.msk.bf16.gmra.mrb[104].mxu1 %vm1637_vm2, %v2628_v48  ;;  %v14530_v14 = vld [vmem:[#allocation20 + $0x38] sm:$0xff]  ;;  %4291 = vmatprep.subr.bf16.mxu0 %v10728_v13  ;;  %v3169_v13 = vld [vmem:[#allocation20 + $0x50] sm:$0xff] }
 0x527   : > { %v2587_v29 = vmax.f32 %v2465_v21, 0.0  ;;  %v2468_v30 = vadd.f32 %v14433_v37, %v2467_v28  ;;  %v10729_v60 = vcombine.low %v14524_v36, %v14530_v14  ;;  %v10730_v15 = vcombine.high %v14524_v36, %v14530_v14  ;;  %v3186_v14 = vld [vmem:[#allocation20 + $0xd8] sm:$0xff] }
 0x528   : > { %v5684_v31 = vmax.f32 %v2589_v24, %v5676_v23  ;;  %v2590_v34 = vmax.f32 %v2476_v27, 0.0 }
 0x529   : > { %v2588_v35 = vmax.f32 %v2468_v30, 0.0  ;;  %4644 = vmatprep.subr.bf16.mxu1 %v10730_v15  ;;  %v3173_v15 = vld [vmem:[#allocation20 + $0x70] sm:$0xff] }
 0x52a   : > { %v5665_v38 = vmax.f32 %v2587_v29, %v5684_v31  ;;  %v2630_v40 = vpack.c.bf16 %v2590_v34, %v2589_v24 }
 0x52b   : > { %v2629_v41 = vpack.c.bf16 %v2588_v35, %v2587_v29  ;;  %v11682_v43 = vpop.f32.mrb[112].mxu0 }
 0x52c   : > { %v5681_v45 = vmax.f32 %v2590_v34, %v5665_v38  ;;  %v2489_v49 = vadd.f32 %v11682_v43, %v14433_v37  ;;  %v2480_v50 = vpop.f32.mrb[113].mxu0 }
 0x52d   : > { %v2481_v51 = vadd.f32 %v14433_v37, %v2480_v50  ;;  %v11683_v52 = vpop.f32.mrb[114].mxu0  ;;  %11748 = vmatprep.mubr.msk.bf16.mxu1 %vm1637_vm2, %v2629_v41 }
 0x52e   : > { %v5689_v56 = vmax.f32 %v2588_v35, %v5681_v45  ;;  %v2593_v57 = vmax.f32 %v2489_v49, 0.0  ;;  %v2492_v1 = vadd.f32 %v11683_v52, %v14433_v37  ;;  %v2483_v4 = vpop.f32.mrb[115].mxu0  ;;  %11749 = vmatmul.mubr.msk.bf16.gmra.mrb[108].mxu1 %vm1637_vm2, %v2630_v40 }
 0x52f   : > { %v2591_v5 = vmax.f32 %v2481_v51, 0.0  ;;  %v2484_v18 = vadd.f32 %v14433_v37, %v2483_v4 }
 0x530   : > { %v5693_v25 = vmax.f32 %v2593_v57, %v5689_v56  ;;  %v2594_v26 = vmax.f32 %v2492_v1, 0.0 }
 0x531   : > { %v2592_v33 = vmax.f32 %v2484_v18, 0.0 }
 0x532   : > { %v5663_v44 = vmax.f32 %v2591_v5, %v5693_v25  ;;  %v2632_v54 = vpack.c.bf16 %v2594_v26, %v2593_v57 }
 0x533   : > { %v2631_v58 = vpack.c.bf16 %v2592_v33, %v2591_v5  ;;  %v11686_v59 = vpop.f32.mrb[116].mxu0 }
 0x534   : > { %v5679_v61 = vmax.f32 %v2594_v26, %v5663_v44  ;;  %v2505_v46 = vadd.f32 %v11686_v59, %v14433_v37  ;;  %v2496_v62 = vpop.f32.mrb[117].mxu0 }
 0x535   : > { %v2497_v63 = vadd.f32 %v14433_v37, %v2496_v62  ;;  %v11687_v0 = vpop.f32.mrb[118].mxu0  ;;  %11752 = vmatprep.mubr.msk.bf16.mxu1 %vm1637_vm2, %v2631_v58 }
 0x536   : > { %v5687_v2 = vmax.f32 %v2592_v33, %v5679_v61  ;;  %v2597_v3 = vmax.f32 %v2505_v46, 0.0  ;;  %v2508_v6 = vadd.f32 %v11687_v0, %v14433_v37  ;;  %v2499_v53 = vpop.f32.mrb[119].mxu0  ;;  %11753 = vmatmul.mubr.msk.bf16.gmra.mrb[112].mxu1 %vm1637_vm2, %v2632_v54 }
 0x537   : > { %v2595_v8 = vmax.f32 %v2497_v63, 0.0  ;;  %v2500_v9 = vadd.f32 %v14433_v37, %v2499_v53  ;;  %v14553_v63 = vld [vmem:[#allocation18] ss:$0 sm:$0xff] }
 0x538   : > { %v5691_v10 = vmax.f32 %v2597_v3, %v5687_v2  ;;  %v2598_v12 = vmax.f32 %v2508_v6, 0.0 }
 0x539   : > { %v2596_v42 = vmax.f32 %v2500_v9, 0.0 }
 0x53a   : > { %v5695_v39 = vmax.f32 %v5691_v10, %v2595_v8  ;;  %v2634_v48 = vpack.c.bf16 %v2598_v12, %v2597_v3 }
 0x53b   : > { %v2633_v16 = vpack.c.bf16 %v2596_v42, %v2595_v8  ;;  %v11690_v17 = vpop.f32.mrb[120].mxu0 }
 0x53c   : > { %v5666_v19 = vmax.f32 %v2598_v12, %v5695_v39  ;;  %v2521_v21 = vadd.f32 %v11690_v17, %v14433_v37  ;;  %v2512_v11 = vpop.f32.mrb[121].mxu0  ;;  %v3174_v17 = vld [vmem:[#allocation20 + $0x78] sm:$0xff] }
 0x53d   : > { %v2513_v23 = vadd.f32 %v14433_v37, %v2512_v11  ;;  %v11691_v24 = vpop.f32.mrb[122].mxu0  ;;  %11756 = vmatprep.mubr.msk.bf16.mxu1 %vm1637_vm2, %v2633_v16  ;;  %v3170_v16 = vld [vmem:[#allocation20 + $0x58] sm:$0xff] }
 0x53e   : > { %v5682_v27 = vmax.f32 %v2596_v42, %v5666_v19  ;;  %v2601_v28 = vmax.f32 %v2521_v21, 0.0  ;;  %v2524_v29 = vadd.f32 %v11691_v24, %v14433_v37  ;;  %v2515_v30 = vpop.f32.mrb[123].mxu0  ;;  %11757 = vmatmul.mubr.msk.bf16.gmra.mrb[116].mxu1 %vm1637_vm2, %v2634_v48  ;;  %v14563_v24 = vld [vmem:[#allocation20 + $0x90] sm:$0xff] }
 0x53f   : > { %v2599_v31 = vmax.f32 %v2513_v23, 0.0  ;;  %v2516_v34 = vadd.f32 %v14433_v37, %v2515_v30  ;;  %v10738_v30 = vcombine.high %v3170_v16, %v3174_v17 }
 0x540   : > { %v5690_v35 = vmax.f32 %v2601_v28, %v5682_v27  ;;  %v2602_v38 = vmax.f32 %v2524_v29, 0.0  ;;  %v10736_v29 = vcombine.high %v3169_v13, %v3173_v15 }
 0x541   : > { %v2600_v40 = vmax.f32 %v2516_v34, 0.0  ;;  %v3178_v34 = vld [vmem:[#allocation20 + $0x98] sm:$0xff] }
 0x542   : > { %v5694_v41 = vmax.f32 %v2599_v31, %v5690_v35  ;;  %v2636_v43 = vpack.c.bf16 %v2602_v38, %v2601_v28  ;;  %v3182_v35 = vld [vmem:[#allocation20 + $0xb8] sm:$0xff] }
 0x543   : > { %v2635_v45 = vpack.c.bf16 %v2600_v40, %v2599_v31  ;;  %v11694_v49 = vpop.f32.mrb[124].mxu0  ;;  %v3181_v31 = vld [vmem:[#allocation20 + $0xb0] sm:$0xff] }
 0x544   : > { %v5664_v50 = vmax.f32 %v2602_v38, %v5694_v41  ;;  %v2537_v51 = vadd.f32 %v11694_v49, %v14433_v37  ;;  %v2528_v52 = vpop.f32.mrb[125].mxu0 }
 0x545   : > { %v2529_v56 = vadd.f32 %v14433_v37, %v2528_v52  ;;  %v11695_v57 = vpop.f32.mrb[126].mxu0  ;;  %11760 = vmatprep.mubr.msk.bf16.mxu1 %vm1637_vm2, %v2635_v45 }
 0x546   : > { %v5680_v1 = vmax.f32 %v2600_v40, %v5664_v50  ;;  %v2605_v4 = vmax.f32 %v2537_v51, 0.0  ;;  %v2540_v5 = vadd.f32 %v11695_v57, %v14433_v37  ;;  %v2531_v18 = vpop.f32.mrb[127].mxu0  ;;  %11761 = vmatmul.mubr.msk.bf16.gmra.mrb[120].mxu1 %vm1637_vm2, %v2636_v43  ;;  %v10735_v50 = vcombine.low %v3169_v13, %v3173_v15 }
 0x547   : > { %v2603_v25 = vmax.f32 %v2529_v56, 0.0  ;;  %v2532_v26 = vadd.f32 %v14433_v37, %v2531_v18  ;;  %v10737_v51 = vcombine.low %v3170_v16, %v3174_v17  ;;  %v10744_v57 = vcombine.high %v14563_v24, %v3181_v31 }
 0x548   : > { %v5688_v33 = vmax.f32 %v2605_v4, %v5680_v1  ;;  %v2606_v44 = vmax.f32 %v2540_v5, 0.0  ;;  %v10746_v1 = vcombine.high %v3178_v34, %v3182_v35 }
 0x549   : > { %v2604_v54 = vmax.f32 %v2532_v26, 0.0 }
 0x54a   : > { %v5692_v58 = vmax.f32 %v2603_v25, %v5688_v33  ;;  %v2638_v59 = vpack.c.bf16 %v2606_v44, %v2605_v4  ;;  %v10743_v33 = vcombine.low %v14563_v24, %v3181_v31 }
 0x54b   : > { %v2637_v61 = vpack.c.bf16 %v2604_v54, %v2603_v25 }
 0x54c   : > { %v5696_v46 = vmax.f32 %v5692_v58, %v2606_v44  ;;  %v10745_v44 = vcombine.low %v3178_v34, %v3182_v35 }
 0x54d   : > { %11764 = vmatprep.mubr.msk.bf16.mxu1 %vm1637_vm2, %v2637_v61 }
 0x54e   : > { %v14549_v62 = vmax.f32 %v2604_v54, %v5696_v46  ;;  %11765 = vmatmul.mubr.msk.bf16.gmra.mrb[124].mxu1 %vm1637_vm2, %v2638_v59 }
 0x54f   : > { %3970 = vmatprep.mubr.bf16.mxu1 %v15704_v55 }
 0x550   : > { %15764 = vst [vmem:[#allocation47_spill] sm:$0xff] %v14549_v62  ;;  %v15768_v62 = vmov 0  }
 0x5a9   : > { %v11706_v0 = vpop.f32.mrb[64].mxu1 }
 0x5aa   : > { %v2817_v37 = vadd.f32 %v11706_v0, %v14553_v63  ;;  %v2808_v2 = vpop.f32.mrb[65].mxu1  ;;  %v3193_v0 = vld [vmem:[#allocation20 + $0x110] sm:$0xff] }
 0x5ab   : > { %v2809_v3 = vadd.f32 %v14553_v63, %v2808_v2  ;;  %v11707_v6 = vpop.f32.mrb[66].mxu1 }
 0x5ac   : > { %v3065_v53 = vmax.f32 %v2817_v37, 0.0  ;;  %v2820_v8 = vadd.f32 %v11707_v6, %v14553_v63  ;;  %v2811_v9 = vpop.f32.mrb[67].mxu1  ;;  %v3194_v6 = vld [vmem:[#allocation20 + $0x118] sm:$0xff] }
 0x5ad   : > { %v3063_v10 = vmax.f32 %v2809_v3, 0.0  ;;  %v2812_v12 = vadd.f32 %v14553_v63, %v2811_v9  ;;  %v3197_v3 = vld [vmem:[#allocation20 + $0x130] sm:$0xff] }
 0x5ae   : > { %v3066_v42 = vmax.f32 %v2820_v8, 0.0  ;;  %v10760_v17 = vcombine.high %v3193_v0, %v3197_v3 }
 0x5af   : > { %v5700_v39 = vmax.f32 %v3065_v53, %v3063_v10  ;;  %v3064_v48 = vmax.f32 %v2812_v12, 0.0 }
 0x5b0   : > { %v14559_v19 = vpack.c.bf16 %v3066_v42, %v3065_v53  ;;  %v3198_v53 = vld [vmem:[#allocation20 + $0x138] sm:$0xff] }
 0x5b1   : > { %v5698_v21 = vmax.f32 %v3066_v42, %v5700_v39  ;;  %v14561_v11 = vpack.c.bf16 %v3064_v48, %v3063_v10  ;;  %v11710_v23 = vpop.f32.mrb[68].mxu1  ;;  %v10761_v31 = vcombine.low %v3194_v6, %v3198_v53 }
 0x5b2   : > { %v2833_v27 = vadd.f32 %v11710_v23, %v14553_v63  ;;  %v2824_v28 = vpop.f32.mrb[69].mxu1 }
 0x5b3   : > { %v5701_v38 = vmax.f32 %v3064_v48, %v5698_v21  ;;  %v2825_v40 = vadd.f32 %v14553_v63, %v2824_v28  ;;  %v11711_v41 = vpop.f32.mrb[70].mxu1  ;;  %3618 = vmatmul.mubr.bf16.vlgmr.msra.gmra.mrb[128].mxu0 %v14561_v11  ;;  %3971 = vmatmul.mubr.bf16.vlgmr.msra.gmra.mrb[128].mxu1 %v14561_v11  ;;  %v10762_v21 = vcombine.high %v3194_v6, %v3198_v53  ;;  %v3206_v6 = vld [vmem:[#allocation20 + $0x178] sm:$0xff] }
 0x5b4   : > { %v3069_v43 = vmax.f32 %v2833_v27, 0.0  ;;  %v2836_v45 = vadd.f32 %v11711_v41, %v14553_v63  ;;  %4292 = vmatpush1.bf16.msra.mxu0 %v10727_v47  ;;  %4645 = vmatpush1.bf16.msra.mxu1 %v10729_v60  ;;  %v2827_v49 = vpop.f32.mrb[71].mxu1  ;;  %v3189_v47 = vld [vmem:[#allocation20 + $0xf0] sm:$0xff]  ;;  %v3190_v60 = vld [vmem:[#allocation20 + $0xf8] sm:$0xff] }
 0x5b5   : > { %v3067_v52 = vmax.f32 %v2825_v40, 0.0  ;;  %v2828_v56 = vadd.f32 %v14553_v63, %v2827_v49  ;;  %3627 = vmatprep.mubr.bf16.mxu0 %v15704_v55  ;;  %3980 = vmatprep.mubr.bf16.mxu1 %v15704_v55  ;;  %v10752_v61 = vcombine.high %v3185_v32, %v3189_v47  ;;  %v10754_v46 = vcombine.high %v3186_v14, %v3190_v60 }
 0x5b6   : > { %v5699_v4 = vmax.f32 %v3069_v43, %v5701_v38  ;;  %v3070_v22 = vmax.f32 %v2836_v45, 0.0  ;;  %4293 = vmatprep.subr.bf16.mxu0 %v10736_v29  ;;  %4646 = vmatprep.subr.bf16.mxu1 %v10738_v30  ;;  %v10751_v39 = vcombine.low %v3185_v32, %v3189_v47  ;;  %v10753_v48 = vcombine.low %v3186_v14, %v3190_v60 }
 0x5b7   : > { %v3068_v36 = vmax.f32 %v2828_v56, 0.0  ;;  %v10759_v30 = vcombine.low %v3193_v0, %v3197_v3 }
 0x5b8   : > { %v5704_v5 = vmax.f32 %v3067_v52, %v5699_v4  ;;  %v14580_v18 = vpack.c.bf16 %v3070_v22, %v3069_v43  ;;  %4294 = vmatpush1.bf16.msra.mxu0 %v10735_v50  ;;  %4647 = vmatpush1.bf16.msra.mxu1 %v10737_v51 }
 0x5b9   : > { %v14582_v25 = vpack.c.bf16 %v3068_v36, %v3067_v52  ;;  %v11714_v26 = vpop.f32.mrb[72].mxu1  ;;  %4295 = vmatprep.subr.bf16.mxu0 %v10744_v57  ;;  %4648 = vmatprep.subr.bf16.mxu1 %v10746_v1 }
 0x5ba   : > { %v5702_v54 = vmax.f32 %v3070_v22, %v5704_v5  ;;  %v2849_v58 = vadd.f32 %v11714_v26, %v14553_v63  ;;  %v2840_v59 = vpop.f32.mrb[73].mxu1 }
 0x5bb   : > { %v2841_v37 = vadd.f32 %v14553_v63, %v2840_v59  ;;  %3628 = vmatmul.mubr.bf16.gmra.mrb[132].mxu0 %v14559_v19  ;;  %3981 = vmatmul.mubr.bf16.gmra.mrb[132].mxu1 %v14559_v19  ;;  %v11715_v2 = vpop.f32.mrb[74].mxu1  ;;  %v3201_v59 = vld [vmem:[#allocation20 + $0x150] sm:$0xff] }
 0x5bc   : > { %v5705_v8 = vmax.f32 %v3068_v36, %v5702_v54  ;;  %v3073_v9 = vmax.f32 %v2849_v58, 0.0  ;;  %v2852_v10 = vadd.f32 %v11715_v2, %v14553_v63  ;;  %v2843_v12 = vpop.f32.mrb[75].mxu1  ;;  %3637 = vmatprep.mubr.bf16.mxu0 %v15704_v55  ;;  %3990 = vmatprep.mubr.bf16.mxu1 %v15704_v55 }
 0x5bd   : > { %v3071_v42 = vmax.f32 %v2841_v37, 0.0  ;;  %v2844_v13 = vadd.f32 %v14553_v63, %v2843_v12  ;;  %4296 = vmatpush1.bf16.msra.mxu0 %v10743_v33  ;;  %4649 = vmatpush1.bf16.msra.mxu1 %v10745_v44 }
 0x5be   : > { %v5703_v15 = vmax.f32 %v3073_v9, %v5705_v8  ;;  %v3074_v16 = vmax.f32 %v2852_v10, 0.0  ;;  %4297 = vmatprep.subr.bf16.mxu0 %v10752_v61  ;;  %4650 = vmatprep.subr.bf16.mxu1 %v10754_v46  ;;  %v3205_v61 = vld [vmem:[#allocation20 + $0x170] sm:$0xff]  ;;  %v3202_v46 = vld [vmem:[#allocation20 + $0x158] sm:$0xff] }
 0x5bf   : > { %v3072_v23 = vmax.f32 %v2844_v13, 0.0  ;;  %v10767_v2 = vcombine.low %v3201_v59, %v3205_v61  ;;  %v10768_v3 = vcombine.high %v3201_v59, %v3205_v61  ;;  %v10770_v10 = vcombine.high %v3202_v46, %v3206_v6 }
 0x5c0   : > { %v5708_v24 = vmax.f32 %v3071_v42, %v5703_v15  ;;  %v14593_v27 = vpack.c.bf16 %v3074_v16, %v3073_v9  ;;  %v10769_v9 = vcombine.low %v3202_v46, %v3206_v6 }
 0x5c1   : > { %v14595_v28 = vpack.c.bf16 %v3072_v23, %v3071_v42  ;;  %v11718_v29 = vpop.f32.mrb[76].mxu1  ;;  %4298 = vmatpush1.bf16.msra.mxu0 %v10751_v39  ;;  %4651 = vmatpush1.bf16.msra.mxu1 %v10753_v48 }
 0x5c2   : > { %v5706_v34 = vmax.f32 %v3074_v16, %v5708_v24  ;;  %v2865_v35 = vadd.f32 %v11718_v29, %v14553_v63  ;;  %v2856_v38 = vpop.f32.mrb[77].mxu1  ;;  %4299 = vmatprep.subr.bf16.mxu0 %v10760_v17  ;;  %4652 = vmatprep.subr.bf16.mxu1 %v10762_v21 }
 0x5c3   : > { %3638 = vmatmul.mubr.bf16.gmra.mrb[136].mxu0 %v14582_v25  ;;  %3991 = vmatmul.mubr.bf16.gmra.mrb[136].mxu1 %v14582_v25  ;;  %v2857_v40 = vadd.f32 %v14553_v63, %v2856_v38  ;;  %v11719_v41 = vpop.f32.mrb[78].mxu1 }
 0x5c4   : > { %v5709_v43 = vmax.f32 %v3072_v23, %v5706_v34  ;;  %v3077_v45 = vmax.f32 %v2865_v35, 0.0  ;;  %3647 = vmatprep.mubr.bf16.mxu0 %v15704_v55  ;;  %4000 = vmatprep.mubr.bf16.mxu1 %v15704_v55  ;;  %v2868_v49 = vadd.f32 %v11719_v41, %v14553_v63  ;;  %v2859_v50 = vpop.f32.mrb[79].mxu1 }
 0x5c5   : > { %v3075_v51 = vmax.f32 %v2857_v40, 0.0  ;;  %v2860_v52 = vadd.f32 %v14553_v63, %v2859_v50  ;;  %4300 = vmatpush1.bf16.msra.mxu0 %v10759_v30  ;;  %4653 = vmatpush1.bf16.msra.mxu1 %v10761_v31 }
 0x5c6   : > { %v5707_v56 = vmax.f32 %v3077_v45, %v5709_v43  ;;  %v3078_v57 = vmax.f32 %v2868_v49, 0.0  ;;  %4301 = vmatprep.subr.bf16.mxu0 %v10768_v3  ;;  %4654 = vmatprep.subr.bf16.mxu1 %v10770_v10 }
 0x5c7   : > { %v3076_v1 = vmax.f32 %v2860_v52, 0.0 }
 0x5c8   : > { %v5712_v4 = vmax.f32 %v3075_v51, %v5707_v56  ;;  %v14605_v22 = vpack.c.bf16 %v3078_v57, %v3077_v45 }
 0x5c9   : > { %v14607_v32 = vpack.c.bf16 %v3076_v1, %v3075_v51  ;;  %v11722_v36 = vpop.f32.mrb[80].mxu1  ;;  %4302 = vmatpush1.bf16.msra.mxu0 %v10767_v2  ;;  %4655 = vmatpush1.bf16.msra.mxu1 %v10769_v9 }
 0x5ca   : > { %v5710_v47 = vmax.f32 %v3078_v57, %v5712_v4  ;;  %v2881_v14 = vadd.f32 %v11722_v36, %v14553_v63  ;;  %v2872_v60 = vpop.f32.mrb[81].mxu1 }
 0x5cb   : > { %3648 = vmatmul.mubr.bf16.gmra.mrb[140].mxu0 %v14580_v18  ;;  %4001 = vmatmul.mubr.bf16.gmra.mrb[140].mxu1 %v14580_v18  ;;  %v2873_v5 = vadd.f32 %v14553_v63, %v2872_v60  ;;  %v11723_v26 = vpop.f32.mrb[82].mxu1 }
 0x5cc   : > { %v5713_v33 = vmax.f32 %v3076_v1, %v5710_v47  ;;  %3657 = vmatprep.mubr.bf16.mxu0 %v15704_v55  ;;  %4010 = vmatprep.mubr.bf16.mxu1 %v15704_v55  ;;  %v3081_v44 = vmax.f32 %v2881_v14, 0.0  ;;  %v2884_v54 = vadd.f32 %v11723_v26, %v14553_v63  ;;  %v2875_v58 = vpop.f32.mrb[83].mxu1 }
 0x5cd   : > { %v3079_v0 = vmax.f32 %v2873_v5, 0.0  ;;  %v2876_v37 = vadd.f32 %v14553_v63, %v2875_v58 }
 0x5ce   : > { %v5711_v53 = vmax.f32 %v3081_v44, %v5713_v33  ;;  %v3082_v8 = vmax.f32 %v2884_v54, 0.0 }
 0x5cf   : > { %v3080_v12 = vmax.f32 %v2876_v37, 0.0 }
 0x5d0   : > { %v5716_v42 = vmax.f32 %v3079_v0, %v5711_v53  ;;  %v14617_v13 = vpack.c.bf16 %v3082_v8, %v3081_v44 }
 0x5d1   : > { %v14619_v39 = vpack.c.bf16 %v3080_v12, %v3079_v0  ;;  %v11726_v48 = vpop.f32.mrb[84].mxu1 }
 0x5d2   : > { %v5732_v15 = vmax.f32 %v3082_v8, %v5716_v42  ;;  %v2897_v16 = vadd.f32 %v11726_v48, %v14553_v63  ;;  %v2888_v17 = vpop.f32.mrb[85].mxu1 }
 0x5d3   : > { %3658 = vmatmul.mubr.bf16.gmra.mrb[144].mxu0 %v14595_v28  ;;  %4011 = vmatmul.mubr.bf16.gmra.mrb[144].mxu1 %v14595_v28  ;;  %v2889_v21 = vadd.f32 %v14553_v63, %v2888_v17  ;;  %v11727_v23 = vpop.f32.mrb[86].mxu1 }
 0x5d4   : > { %3667 = vmatprep.mubr.bf16.mxu0 %v15704_v55  ;;  %4020 = vmatprep.mubr.bf16.mxu1 %v15704_v55  ;;  %v5714_v24 = vmax.f32 %v3080_v12, %v5732_v15  ;;  %v3085_v29 = vmax.f32 %v2897_v16, 0.0  ;;  %v2900_v30 = vadd.f32 %v11727_v23, %v14553_v63  ;;  %v2891_v31 = vpop.f32.mrb[87].mxu1 }
 0x5d5   : > { %v3083_v34 = vmax.f32 %v2889_v21, 0.0  ;;  %v2892_v35 = vadd.f32 %v14553_v63, %v2891_v31 }
 0x5d6   : > { %v5730_v38 = vmax.f32 %v3085_v29, %v5714_v24  ;;  %v3086_v40 = vmax.f32 %v2900_v30, 0.0 }
 0x5d7   : > { %v3084_v41 = vmax.f32 %v2892_v35, 0.0 }
 0x5d8   : > { %v5717_v43 = vmax.f32 %v3083_v34, %v5730_v38  ;;  %v14629_v45 = vpack.c.bf16 %v3086_v40, %v3085_v29 }
 0x5d9   : > { %v14631_v49 = vpack.c.bf16 %v3084_v41, %v3083_v34  ;;  %v11730_v50 = vpop.f32.mrb[88].mxu1 }
 0x5da   : > { %v5733_v51 = vmax.f32 %v3086_v40, %v5717_v43  ;;  %v2913_v52 = vadd.f32 %v11730_v50, %v14553_v63  ;;  %v2904_v56 = vpop.f32.mrb[89].mxu1  ;;  %v3209_v43 = vld [vmem:[#allocation20 + $0x190] sm:$0xff] }
 0x5db   : > { %3668 = vmatmul.mubr.bf16.gmra.mrb[148].mxu0 %v14593_v27  ;;  %4021 = vmatmul.mubr.bf16.gmra.mrb[148].mxu1 %v14593_v27  ;;  %v2905_v57 = vadd.f32 %v14553_v63, %v2904_v56  ;;  %v11731_v1 = vpop.f32.mrb[90].mxu1  ;;  %v3213_v50 = vld [vmem:[#allocation20 + $0x1b0] sm:$0xff] }
 0x5dc   : > { %v5715_v4 = vmax.f32 %v3084_v41, %v5733_v51  ;;  %v3089_v36 = vmax.f32 %v2913_v52, 0.0  ;;  %3677 = vmatprep.mubr.bf16.mxu0 %v15704_v55  ;;  %4030 = vmatprep.mubr.bf16.mxu1 %v15704_v55  ;;  %v2916_v47 = vadd.f32 %v11731_v1, %v14553_v63  ;;  %v2907_v14 = vpop.f32.mrb[91].mxu1  ;;  %v3210_v51 = vld [vmem:[#allocation20 + $0x198] sm:$0xff]  ;;  %v10776_v1 = vcombine.high %v3209_v43, %v3213_v50 }
 0x5dd   : > { %v3087_v60 = vmax.f32 %v2905_v57, 0.0  ;;  %v2908_v5 = vadd.f32 %v14553_v63, %v2907_v14  ;;  %v10775_v57 = vcombine.low %v3209_v43, %v3213_v50 }
 0x5de   : > { %v5731_v26 = vmax.f32 %v3089_v36, %v5715_v4  ;;  %v3090_v33 = vmax.f32 %v2916_v47, 0.0  ;;  %v3214_v4 = vld [vmem:[#allocation20 + $0x1b8] sm:$0xff]  ;;  %4303 = vmatprep.subr.bf16.mxu0 %v10776_v1 }
 0x5df   : > { %v3088_v44 = vmax.f32 %v2908_v5, 0.0  ;;  %v10777_v14 = vcombine.low %v3210_v51, %v3214_v4  ;;  %4304 = vmatpush1.bf16.msra.mxu0 %v10775_v57 }
 0x5e0   : > { %v5720_v54 = vmax.f32 %v3087_v60, %v5731_v26  ;;  %v14641_v58 = vpack.c.bf16 %v3090_v33, %v3089_v36 }
 0x5e1   : > { %v14643_v59 = vpack.c.bf16 %v3088_v44, %v3087_v60  ;;  %v11734_v61 = vpop.f32.mrb[92].mxu1  ;;  %v10778_v60 = vcombine.high %v3210_v51, %v3214_v4 }
 0x5e2   : > { %v5736_v46 = vmax.f32 %v3090_v33, %v5720_v54  ;;  %v2929_v0 = vadd.f32 %v11734_v61, %v14553_v63  ;;  %v2920_v37 = vpop.f32.mrb[93].mxu1 }
 0x5e3   : > { %3678 = vmatmul.mubr.bf16.gmra.mrb[152].mxu0 %v14607_v32  ;;  %4031 = vmatmul.mubr.bf16.gmra.mrb[152].mxu1 %v14607_v32  ;;  %v2921_v2 = vadd.f32 %v14553_v63, %v2920_v37  ;;  %v11735_v3 = vpop.f32.mrb[94].mxu1 }
 0x5e4   : > { %v5718_v6 = vmax.f32 %v3088_v44, %v5736_v46  ;;  %v3093_v53 = vmax.f32 %v2929_v0, 0.0  ;;  %v2932_v8 = vadd.f32 %v11735_v3, %v14553_v63  ;;  %v2923_v9 = vpop.f32.mrb[95].mxu1  ;;  %3687 = vmatprep.mubr.bf16.mxu0 %v15704_v55  ;;  %4040 = vmatprep.mubr.bf16.mxu1 %v15704_v55 }
 0x5e5   : > { %v3091_v10 = vmax.f32 %v2921_v2, 0.0  ;;  %v2924_v12 = vadd.f32 %v14553_v63, %v2923_v9  ;;  %4656 = vmatprep.subr.bf16.mxu1 %v10778_v60 }
 0x5e6   : > { %v5734_v42 = vmax.f32 %v3093_v53, %v5718_v6  ;;  %v3094_v48 = vmax.f32 %v2932_v8, 0.0  ;;  %4657 = vmatpush1.bf16.msra.mxu1 %v10777_v14 }
 0x5e7   : > { %v3092_v15 = vmax.f32 %v2924_v12, 0.0 }
 0x5e8   : > { %v5721_v16 = vmax.f32 %v3091_v10, %v5734_v42  ;;  %v14653_v17 = vpack.c.bf16 %v3094_v48, %v3093_v53 }
 0x5e9   : > { %v14655_v21 = vpack.c.bf16 %v3092_v15, %v3091_v10  ;;  %v11738_v23 = vpop.f32.mrb[96].mxu1 }
 0x5ea   : > { %v5737_v24 = vmax.f32 %v3094_v48, %v5721_v16  ;;  %v2945_v29 = vadd.f32 %v11738_v23, %v14553_v63  ;;  %v2936_v30 = vpop.f32.mrb[97].mxu1 }
 0x5eb   : > { %v2937_v31 = vadd.f32 %v14553_v63, %v2936_v30  ;;  %v11739_v34 = vpop.f32.mrb[98].mxu1  ;;  %3688 = vmatmul.mubr.bf16.gmra.mrb[156].mxu0 %v14605_v22  ;;  %4041 = vmatmul.mubr.bf16.gmra.mrb[156].mxu1 %v14605_v22 }
 0x5ec   : > { %v5719_v35 = vmax.f32 %v3092_v15, %v5737_v24  ;;  %v3097_v38 = vmax.f32 %v2945_v29, 0.0  ;;  %v2948_v40 = vadd.f32 %v11739_v34, %v14553_v63  ;;  %v2939_v41 = vpop.f32.mrb[99].mxu1  ;;  %3697 = vmatprep.mubr.bf16.mxu0 %v15704_v55  ;;  %4050 = vmatprep.mubr.bf16.mxu1 %v15704_v55 }
 0x5ed   : > { %v3095_v52 = vmax.f32 %v2937_v31, 0.0  ;;  %v2940_v56 = vadd.f32 %v14553_v63, %v2939_v41 }
 0x5ee   : > { %v5735_v36 = vmax.f32 %v3097_v38, %v5719_v35  ;;  %v3098_v47 = vmax.f32 %v2948_v40, 0.0 }
 0x5ef   : > { %v3096_v5 = vmax.f32 %v2940_v56, 0.0 }
 0x5f0   : > { %v5724_v26 = vmax.f32 %v3095_v52, %v5735_v36  ;;  %v14665_v33 = vpack.c.bf16 %v3098_v47, %v3097_v38 }
 0x5f1   : > { %v14667_v44 = vpack.c.bf16 %v3096_v5, %v3095_v52  ;;  %v11742_v54 = vpop.f32.mrb[100].mxu1 }
 0x5f2   : > { %v5740_v61 = vmax.f32 %v3098_v47, %v5724_v26  ;;  %v2961_v46 = vadd.f32 %v11742_v54, %v14553_v63  ;;  %v2952_v0 = vpop.f32.mrb[101].mxu1 }
 0x5f3   : > { %v2953_v37 = vadd.f32 %v14553_v63, %v2952_v0  ;;  %v11743_v2 = vpop.f32.mrb[102].mxu1  ;;  %3698 = vmatmul.mubr.bf16.gmra.mrb[160].mxu0 %v14619_v39  ;;  %4051 = vmatmul.mubr.bf16.gmra.mrb[160].mxu1 %v14619_v39 }
 0x5f4   : > { %v5748_v3 = vmax.f32 %v3096_v5, %v5740_v61  ;;  %v3101_v6 = vmax.f32 %v2961_v46, 0.0  ;;  %v2964_v53 = vadd.f32 %v11743_v2, %v14553_v63  ;;  %v2955_v8 = vpop.f32.mrb[103].mxu1  ;;  %3707 = vmatprep.mubr.bf16.mxu0 %v15704_v55  ;;  %4060 = vmatprep.mubr.bf16.mxu1 %v15704_v55 }
 0x5f5   : > { %v3099_v9 = vmax.f32 %v2953_v37, 0.0  ;;  %v2956_v10 = vadd.f32 %v14553_v63, %v2955_v8 }
 0x5f6   : > { %v5722_v12 = vmax.f32 %v3101_v6, %v5748_v3  ;;  %v3102_v42 = vmax.f32 %v2964_v53, 0.0 }
 0x5f7   : > { %v3100_v48 = vmax.f32 %v2956_v10, 0.0 }
 0x5f8   : > { %v5738_v15 = vmax.f32 %v3099_v9, %v5722_v12  ;;  %v14677_v16 = vpack.c.bf16 %v3102_v42, %v3101_v6 }
 0x5f9   : > { %v14679_v23 = vpack.c.bf16 %v3100_v48, %v3099_v9  ;;  %v11746_v24 = vpop.f32.mrb[104].mxu1 }
 0x5fa   : > { %v5746_v29 = vmax.f32 %v3102_v42, %v5738_v15  ;;  %v2977_v30 = vadd.f32 %v11746_v24, %v14553_v63  ;;  %v2968_v31 = vpop.f32.mrb[105].mxu1 }
 0x5fb   : > { %v2969_v34 = vadd.f32 %v14553_v63, %v2968_v31  ;;  %v11747_v35 = vpop.f32.mrb[106].mxu1  ;;  %3708 = vmatmul.mubr.bf16.gmra.mrb[164].mxu0 %v14617_v13  ;;  %4061 = vmatmul.mubr.bf16.gmra.mrb[164].mxu1 %v14617_v13 }
 0x5fc   : > { %v5725_v38 = vmax.f32 %v3100_v48, %v5746_v29  ;;  %v3105_v40 = vmax.f32 %v2977_v30, 0.0  ;;  %v2980_v41 = vadd.f32 %v11747_v35, %v14553_v63  ;;  %v2971_v43 = vpop.f32.mrb[107].mxu1  ;;  %3717 = vmatprep.mubr.bf16.mxu0 %v15704_v55  ;;  %4070 = vmatprep.mubr.bf16.mxu1 %v15704_v55 }
 0x5fd   : > { %v3103_v50 = vmax.f32 %v2969_v34, 0.0  ;;  %v2972_v51 = vadd.f32 %v14553_v63, %v2971_v43 }
 0x5fe   : > { %v5741_v52 = vmax.f32 %v3105_v40, %v5725_v38  ;;  %v3106_v56 = vmax.f32 %v2980_v41, 0.0 }
 0x5ff   : > { %v3104_v57 = vmax.f32 %v2972_v51, 0.0 }
 0x600   : > { %v5749_v1 = vmax.f32 %v3103_v50, %v5741_v52  ;;  %v14689_v4 = vpack.c.bf16 %v3106_v56, %v3105_v40 }
 0x601   : > { %v14691_v36 = vpack.c.bf16 %v3104_v57, %v3103_v50  ;;  %v11750_v47 = vpop.f32.mrb[108].mxu1 }
 0x602   : > { %v5723_v14 = vmax.f32 %v3106_v56, %v5749_v1  ;;  %v2993_v60 = vadd.f32 %v11750_v47, %v14553_v63  ;;  %v2984_v5 = vpop.f32.mrb[109].mxu1 }
 0x603   : > { %v2985_v26 = vadd.f32 %v14553_v63, %v2984_v5  ;;  %v11751_v54 = vpop.f32.mrb[110].mxu1  ;;  %3718 = vmatmul.mubr.bf16.gmra.mrb[168].mxu0 %v14631_v49  ;;  %4071 = vmatmul.mubr.bf16.gmra.mrb[168].mxu1 %v14631_v49 }
 0x604   : > { %v5739_v61 = vmax.f32 %v3104_v57, %v5723_v14  ;;  %v3109_v46 = vmax.f32 %v2993_v60, 0.0  ;;  %v2996_v0 = vadd.f32 %v11751_v54, %v14553_v63  ;;  %v2987_v37 = vpop.f32.mrb[111].mxu1  ;;  %3727 = vmatprep.mubr.bf16.mxu0 %v15704_v55  ;;  %4080 = vmatprep.mubr.bf16.mxu1 %v15704_v55 }
 0x605   : > { %v3107_v2 = vmax.f32 %v2985_v26, 0.0  ;;  %v2988_v3 = vadd.f32 %v14553_v63, %v2987_v37 }
 0x606   : > { %v5747_v6 = vmax.f32 %v3109_v46, %v5739_v61  ;;  %v3110_v53 = vmax.f32 %v2996_v0, 0.0 }
 0x607   : > { %v3108_v8 = vmax.f32 %v2988_v3, 0.0 }
 0x608   : > { %v5728_v9 = vmax.f32 %v3107_v2, %v5747_v6  ;;  %v14701_v10 = vpack.c.bf16 %v3110_v53, %v3109_v46 }
 0x609   : > { %v14703_v12 = vpack.c.bf16 %v3108_v8, %v3107_v2  ;;  %v11754_v42 = vpop.f32.mrb[112].mxu1 }
 0x60a   : > { %v5744_v48 = vmax.f32 %v3110_v53, %v5728_v9  ;;  %v3009_v15 = vadd.f32 %v11754_v42, %v14553_v63  ;;  %v3000_v24 = vpop.f32.mrb[113].mxu1  ;;  %v3217_v53 = vld [vmem:[#allocation20 + $0x1d0] sm:$0xff]  ;;  %v3218_v9 = vld [vmem:[#allocation20 + $0x1d8] sm:$0xff] }
 0x60b   : > { %v3001_v29 = vadd.f32 %v14553_v63, %v3000_v24  ;;  %v11755_v30 = vpop.f32.mrb[114].mxu1  ;;  %3728 = vmatmul.mubr.bf16.gmra.mrb[172].mxu0 %v14629_v45  ;;  %4081 = vmatmul.mubr.bf16.gmra.mrb[172].mxu1 %v14629_v45  ;;  %v3222_v24 = vld [vmem:[#allocation20 + $0x1f8] sm:$0xff] }
 0x60c   : > { %v5752_v31 = vmax.f32 %v3108_v8, %v5744_v48  ;;  %v3113_v34 = vmax.f32 %v3009_v15, 0.0  ;;  %v3012_v35 = vadd.f32 %v11755_v30, %v14553_v63  ;;  %v3003_v38 = vpop.f32.mrb[115].mxu1  ;;  %3737 = vmatprep.mubr.bf16.mxu0 %v15704_v55  ;;  %4090 = vmatprep.mubr.bf16.mxu1 %v15704_v55  ;;  %v3221_v8 = vld [vmem:[#allocation20 + $0x1f0] sm:$0xff] }
 0x60d   : > { %v3111_v40 = vmax.f32 %v3001_v29, 0.0  ;;  %v3004_v41 = vadd.f32 %v14553_v63, %v3003_v38  ;;  %v10783_v48 = vcombine.low %v3217_v53, %v3221_v8  ;;  %v10784_v15 = vcombine.high %v3217_v53, %v3221_v8 }
 0x60e   : > { %v5756_v43 = vmax.f32 %v3113_v34, %v5752_v31  ;;  %v3114_v50 = vmax.f32 %v3012_v35, 0.0  ;;  %v10786_v31 = vcombine.high %v3218_v9, %v3222_v24  ;;  %v10785_v38 = vcombine.low %v3218_v9, %v3222_v24 }
 0x60f   : > { %v3112_v51 = vmax.f32 %v3004_v41, 0.0  ;;  %4305 = vmatprep.subr.bf16.mxu0 %v10784_v15 }
 0x610   : > { %v5726_v52 = vmax.f32 %v3111_v40, %v5756_v43  ;;  %v14713_v56 = vpack.c.bf16 %v3114_v50, %v3113_v34  ;;  %4658 = vmatprep.subr.bf16.mxu1 %v10786_v31  ;;  %4306 = vmatpush1.bf16.msra.mxu0 %v10783_v48 }
 0x611   : > { %v14715_v57 = vpack.c.bf16 %v3112_v51, %v3111_v40  ;;  %v11758_v1 = vpop.f32.mrb[116].mxu1  ;;  %4659 = vmatpush1.bf16.msra.mxu1 %v10785_v38 }
 0x612   : > { %v5742_v47 = vmax.f32 %v3114_v50, %v5726_v52  ;;  %v3025_v14 = vadd.f32 %v11758_v1, %v14553_v63  ;;  %v3016_v60 = vpop.f32.mrb[117].mxu1 }
 0x613   : > { %v3017_v5 = vadd.f32 %v14553_v63, %v3016_v60  ;;  %v11759_v26 = vpop.f32.mrb[118].mxu1  ;;  %3738 = vmatmul.mubr.bf16.gmra.mrb[176].mxu0 %v14643_v59  ;;  %4091 = vmatmul.mubr.bf16.gmra.mrb[176].mxu1 %v14643_v59 }
 0x614   : > { %v5750_v54 = vmax.f32 %v3112_v51, %v5742_v47  ;;  %v3117_v61 = vmax.f32 %v3025_v14, 0.0  ;;  %v3028_v46 = vadd.f32 %v11759_v26, %v14553_v63  ;;  %v3019_v0 = vpop.f32.mrb[119].mxu1  ;;  %3747 = vmatprep.mubr.bf16.mxu0 %v15704_v55  ;;  %4100 = vmatprep.mubr.bf16.mxu1 %v15704_v55 }
 0x615   : > { %v3115_v37 = vmax.f32 %v3017_v5, 0.0  ;;  %v3020_v2 = vadd.f32 %v14553_v63, %v3019_v0 }
 0x616   : > { %v5754_v3 = vmax.f32 %v3117_v61, %v5750_v54  ;;  %v3118_v6 = vmax.f32 %v3028_v46, 0.0 }
 0x617   : > { %v3116_v42 = vmax.f32 %v3020_v2, 0.0 }
 0x618   : > { %v5758_v29 = vmax.f32 %v5754_v3, %v3115_v37  ;;  %v14725_v30 = vpack.c.bf16 %v3118_v6, %v3117_v61 }
 0x619   : > { %v14727_v34 = vpack.c.bf16 %v3116_v42, %v3115_v37  ;;  %v11762_v35 = vpop.f32.mrb[120].mxu1 }
 0x61a   : > { %v5729_v40 = vmax.f32 %v3118_v6, %v5758_v29  ;;  %v3041_v41 = vadd.f32 %v11762_v35, %v14553_v63  ;;  %v3032_v43 = vpop.f32.mrb[121].mxu1 }
 0x61b   : > { %v3033_v50 = vadd.f32 %v14553_v63, %v3032_v43  ;;  %v11763_v51 = vpop.f32.mrb[122].mxu1  ;;  %3748 = vmatmul.mubr.bf16.gmra.mrb[180].mxu0 %v14641_v58  ;;  %4101 = vmatmul.mubr.bf16.gmra.mrb[180].mxu1 %v14641_v58 }
 0x61c   : > { %v5745_v52 = vmax.f32 %v3116_v42, %v5729_v40  ;;  %v3121_v1 = vmax.f32 %v3041_v41, 0.0  ;;  %v3044_v47 = vadd.f32 %v11763_v51, %v14553_v63  ;;  %v3035_v14 = vpop.f32.mrb[123].mxu1  ;;  %3757 = vmatprep.mubr.bf16.mxu0 %v15704_v55  ;;  %4110 = vmatprep.mubr.bf16.mxu1 %v15704_v55 }
 0x61d   : > { %v3119_v60 = vmax.f32 %v3033_v50, 0.0  ;;  %v3036_v5 = vadd.f32 %v14553_v63, %v3035_v14 }
 0x61e   : > { %v5753_v26 = vmax.f32 %v3121_v1, %v5745_v52  ;;  %v3122_v54 = vmax.f32 %v3044_v47, 0.0 }
 0x61f   : > { %v3120_v61 = vmax.f32 %v3036_v5, 0.0 }
 0x620   : > { %v5757_v46 = vmax.f32 %v3119_v60, %v5753_v26  ;;  %v14737_v0 = vpack.c.bf16 %v3122_v54, %v3121_v1 }
 0x621   : > { %v14739_v37 = vpack.c.bf16 %v3120_v61, %v3119_v60  ;;  %v11766_v2 = vpop.f32.mrb[124].mxu1  ;;  %v3223_v60 = vld [vmem:[#allocation21] sm:$0xff] }
 0x622   : > { %v5727_v3 = vmax.f32 %v3122_v54, %v5757_v46  ;;  %v3057_v6 = vadd.f32 %v11766_v2, %v14553_v63  ;;  %v3048_v53 = vpop.f32.mrb[125].mxu1 }
 0x623   : > { %v3049_v8 = vadd.f32 %v14553_v63, %v3048_v53  ;;  %v11767_v9 = vpop.f32.mrb[126].mxu1  ;;  %3758 = vmatmul.mubr.bf16.gmra.mrb[184].mxu0 %v14655_v21  ;;  %4111 = vmatmul.mubr.bf16.gmra.mrb[184].mxu1 %v14655_v21 }
 0x624   : > { %v5743_v42 = vmax.f32 %v3120_v61, %v5727_v3  ;;  %v3125_v48 = vmax.f32 %v3057_v6, 0.0  ;;  %v3060_v15 = vadd.f32 %v11767_v9, %v14553_v63  ;;  %v3051_v24 = vpop.f32.mrb[127].mxu1  ;;  %3767 = vmatprep.mubr.bf16.mxu0 %v15704_v55  ;;  %4120 = vmatprep.mubr.bf16.mxu1 %v15704_v55 }
 0x625   : > { %v3123_v29 = vmax.f32 %v3049_v8, 0.0  ;;  %v3052_v31 = vadd.f32 %v14553_v63, %v3051_v24  ;;  %v3225_v63 = vlaneseq }
 0x626   : > { %v5751_v35 = vmax.f32 %v3125_v48, %v5743_v42  ;;  %v3126_v38 = vmax.f32 %v3060_v15, 0.0 }
 0x627   : > { %v3124_v40 = vmax.f32 %v3052_v31, 0.0  ;;  %v14797_v1 = vshrl.u32 %v3225_v63, 7 }
 0x628   : > { %v5755_v41 = vmax.f32 %v3123_v29, %v5751_v35  ;;  %v14749_v43 = vpack.c.bf16 %v3126_v38, %v3125_v48 }
 0x629   : > { %v14751_v50 = vpack.c.bf16 %v3124_v40, %v3123_v29  ;;  %v14802_v47 = vsub.s32 0, %v14797_v1  ;;  %v15699_v14 = vsub.s32 2, %v14797_v1  ;;  %v14806_v5 = vsub.s32 1, %v14797_v1 }
 0x62a   : > { %v5759_v51 = vmax.f32 %v5755_v41, %v3126_v38  ;;  %v15698_v26 = vsub.s32 3, %v14797_v1 }
 0x62b   : > { %3768 = vmatmul.mubr.bf16.gmra.mrb[188].mxu0 %v14653_v17  ;;  %4121 = vmatmul.mubr.bf16.gmra.mrb[188].mxu1 %v14653_v17  ;;  %15766 = vst [vmem:[#allocation49_spill] sm:$0xff] %v14802_v47  ;;  %15767 = vst [vmem:[#allocation50_spill] sm:$0xff] %v14806_v5  ;;  %v14812_v54 = vrot.slane %v3223_v60, %v14802_v47  ;;  %v14816_v61 = vrot.slane %v3223_v60, %v15699_v14 }
 0x62c   : > { %v14755_v52 = vmax.f32 %v3124_v40, %v5759_v51  ;;  %3777 = vmatprep.mubr.bf16.mxu0 %v15704_v55  ;;  %4130 = vmatprep.mubr.bf16.mxu1 %v15704_v55  ;;  %v14819_v46 = vrot.slane %v3223_v60, %v14806_v5  ;;  %v14823_v2 = vrot.slane %v3223_v60, %v15698_v26 }
 0x62e   : > { %15765 = vst [vmem:[#allocation48_spill] sm:$0xff] %v14755_v52 }
 0x633   : > { %3778 = vmatmul.mubr.bf16.gmra.mrb[192].mxu0 %v14667_v44  ;;  %4131 = vmatmul.mubr.bf16.gmra.mrb[192].mxu1 %v14667_v44 }
 0x634   : > { %3787 = vmatprep.mubr.bf16.mxu0 %v15704_v55  ;;  %4140 = vmatprep.mubr.bf16.mxu1 %v15704_v55 }
 0x63b   : > { %3788 = vmatmul.mubr.bf16.gmra.mrb[196].mxu0 %v14665_v33  ;;  %4141 = vmatmul.mubr.bf16.gmra.mrb[196].mxu1 %v14665_v33 }
 0x63c   : > { %3797 = vmatprep.mubr.bf16.mxu0 %v15704_v55  ;;  %4150 = vmatprep.mubr.bf16.mxu1 %v15704_v55 }
 0x643   : > { %3798 = vmatmul.mubr.bf16.gmra.mrb[200].mxu0 %v14679_v23  ;;  %4151 = vmatmul.mubr.bf16.gmra.mrb[200].mxu1 %v14679_v23 }
 0x644   : > { %3807 = vmatprep.mubr.bf16.mxu0 %v15704_v55  ;;  %4160 = vmatprep.mubr.bf16.mxu1 %v15704_v55 }
 0x64b   : > { %3808 = vmatmul.mubr.bf16.gmra.mrb[204].mxu0 %v14677_v16  ;;  %4161 = vmatmul.mubr.bf16.gmra.mrb[204].mxu1 %v14677_v16 }
 0x64c   : > { %3817 = vmatprep.mubr.bf16.mxu0 %v15704_v55  ;;  %4170 = vmatprep.mubr.bf16.mxu1 %v15704_v55 }
 0x653   : > { %3818 = vmatmul.mubr.bf16.gmra.mrb[208].mxu0 %v14691_v36  ;;  %4171 = vmatmul.mubr.bf16.gmra.mrb[208].mxu1 %v14691_v36 }
 0x654   : > { %3827 = vmatprep.mubr.bf16.mxu0 %v15704_v55  ;;  %4180 = vmatprep.mubr.bf16.mxu1 %v15704_v55 }
 0x65b   : > { %3828 = vmatmul.mubr.bf16.gmra.mrb[212].mxu0 %v14689_v4  ;;  %4181 = vmatmul.mubr.bf16.gmra.mrb[212].mxu1 %v14689_v4 }
 0x65c   : > { %3837 = vmatprep.mubr.bf16.mxu0 %v15704_v55  ;;  %4190 = vmatprep.mubr.bf16.mxu1 %v15704_v55 }
 0x663   : > { %3838 = vmatmul.mubr.bf16.gmra.mrb[216].mxu0 %v14703_v12  ;;  %4191 = vmatmul.mubr.bf16.gmra.mrb[216].mxu1 %v14703_v12 }
 0x664   : > { %3847 = vmatprep.mubr.bf16.mxu0 %v15704_v55  ;;  %4200 = vmatprep.mubr.bf16.mxu1 %v15704_v55 }
 0x66b   : > { %3848 = vmatmul.mubr.bf16.gmra.mrb[220].mxu0 %v14701_v10  ;;  %4201 = vmatmul.mubr.bf16.gmra.mrb[220].mxu1 %v14701_v10 }
 0x66c   : > { %3857 = vmatprep.mubr.bf16.mxu0 %v15704_v55  ;;  %4210 = vmatprep.mubr.bf16.mxu1 %v15704_v55 }
 0x673   : > { %3858 = vmatmul.mubr.bf16.gmra.mrb[224].mxu0 %v14715_v57  ;;  %4211 = vmatmul.mubr.bf16.gmra.mrb[224].mxu1 %v14715_v57 }
 0x674   : > { %3867 = vmatprep.mubr.bf16.mxu0 %v15704_v55  ;;  %4220 = vmatprep.mubr.bf16.mxu1 %v15704_v55 }
 0x67b   : > { %3868 = vmatmul.mubr.bf16.gmra.mrb[228].mxu0 %v14713_v56  ;;  %4221 = vmatmul.mubr.bf16.gmra.mrb[228].mxu1 %v14713_v56 }
 0x67c   : > { %3877 = vmatprep.mubr.bf16.mxu0 %v15704_v55  ;;  %4230 = vmatprep.mubr.bf16.mxu1 %v15704_v55 }
 0x683   : > { %3878 = vmatmul.mubr.bf16.gmra.mrb[232].mxu0 %v14727_v34  ;;  %4231 = vmatmul.mubr.bf16.gmra.mrb[232].mxu1 %v14727_v34 }
 0x684   : > { %3887 = vmatprep.mubr.bf16.mxu0 %v15704_v55  ;;  %4240 = vmatprep.mubr.bf16.mxu1 %v15704_v55 }
 0x686   : > { %v3619_v3 = vpop.f32.mrb[128].mxu0  ;;  %v3972_v6 = vpop.f32.mrb[128].mxu1 }
 0x687   : > { %v3620_v53 = vadd.f32 %v3619_v3, %v14812_v54  ;;  %v3973_v8 = vadd.f32 %v3972_v6, %v14816_v61  ;;  %v3621_v9 = vpop.f32.mrb[129].mxu0  ;;  %v3974_v42 = vpop.f32.mrb[129].mxu1 }
 0x688   : > { %v3622_v48 = vadd.f32 %v3621_v9, %v14819_v46  ;;  %v3975_v15 = vadd.f32 %v3974_v42, %v14823_v2  ;;  %v3623_v24 = vpop.f32.mrb[130].mxu0  ;;  %v3976_v29 = vpop.f32.mrb[130].mxu1 }
 0x689   : > { %v3624_v31 = vadd.f32 %v3623_v24, %v14812_v54  ;;  %v3977_v35 = vadd.f32 %v3976_v29, %v14816_v61  ;;  %v3625_v38 = vpop.f32.mrb[131].mxu0  ;;  %v3978_v40 = vpop.f32.mrb[131].mxu1  ;;  %v4997_v63 = vmax.f32 %v3620_v53, 0.0  ;;  %v4999_v60 = vmax.f32 %v3973_v8, 0.0 }
 0x68a   : > { %v3626_v41 = vadd.f32 %v3625_v38, %v14819_v46  ;;  %v3979_v51 = vadd.f32 %v3978_v40, %v14823_v2  ;;  %v4998_v9 = vmax.f32 %v3622_v48, 0.0  ;;  %v5000_v42 = vmax.f32 %v3975_v15, 0.0 }
 0x68b   : > { %v5005_v3 = vmax.f32 %v3624_v31, 0.0  ;;  %v5007_v6 = vmax.f32 %v3977_v35, 0.0  ;;  %3888 = vmatmul.mubr.bf16.gmra.mrb[236].mxu0 %v14725_v30  ;;  %4241 = vmatmul.mubr.bf16.gmra.mrb[236].mxu1 %v14725_v30 }
 0x68c   : > { %v5006_v26 = vmax.f32 %v3626_v41, 0.0  ;;  %v5008_v24 = vmax.f32 %v3979_v51, 0.0  ;;  %3897 = vmatprep.mubr.bf16.mxu0 %v15704_v55  ;;  %4250 = vmatprep.mubr.bf16.mxu1 %v15704_v55 }
 0x68d   : > { %v5761_v29 = vmax.f32 %v4997_v63, %v5005_v3  ;;  %v5763_v38 = vmax.f32 %v4999_v60, %v5007_v6 }
 0x68e   : > { %v5762_v14 = vmax.f32 %v4998_v9, %v5006_v26  ;;  %v5764_v40 = vmax.f32 %v5000_v42, %v5008_v24  ;;  %v3629_v53 = vpop.f32.mrb[132].mxu0  ;;  %v3982_v8 = vpop.f32.mrb[132].mxu1 }
 0x68f   : > { %v3630_v31 = vadd.f32 %v3629_v53, %v14812_v54  ;;  %v3983_v35 = vadd.f32 %v3982_v8, %v14816_v61  ;;  %v3631_v5 = vpop.f32.mrb[133].mxu0  ;;  %v3984_v47 = vpop.f32.mrb[133].mxu1 }
 0x690   : > { %v3632_v48 = vadd.f32 %v3631_v5, %v14819_v46  ;;  %v3985_v15 = vadd.f32 %v3984_v47, %v14823_v2  ;;  %v3633_v41 = vpop.f32.mrb[134].mxu0  ;;  %v3986_v51 = vpop.f32.mrb[134].mxu1 }
 0x691   : > { %v5013_v52 = vmax.f32 %v3630_v31, 0.0  ;;  %v5015_v55 = vmax.f32 %v3983_v35, 0.0  ;;  %v3634_v63 = vadd.f32 %v3633_v41, %v14812_v54  ;;  %v3987_v26 = vadd.f32 %v3986_v51, %v14816_v61  ;;  %v3635_v60 = vpop.f32.mrb[135].mxu0  ;;  %v3988_v3 = vpop.f32.mrb[135].mxu1 }
 0x692   : > { %v5014_v6 = vmax.f32 %v3632_v48, 0.0  ;;  %v5016_v9 = vmax.f32 %v3985_v15, 0.0  ;;  %v3636_v42 = vadd.f32 %v3635_v60, %v14819_v46  ;;  %v3989_v24 = vadd.f32 %v3988_v3, %v14823_v2 }
 0x693   : > { %v5769_v53 = vmax.f32 %v5013_v52, %v5761_v29  ;;  %v5771_v5 = vmax.f32 %v5015_v55, %v5763_v38  ;;  %v5021_v8 = vmax.f32 %v3634_v63, 0.0  ;;  %v5023_v47 = vmax.f32 %v3987_v26, 0.0  ;;  %3898 = vmatmul.mubr.bf16.gmra.mrb[240].mxu0 %v14739_v37  ;;  %4251 = vmatmul.mubr.bf16.gmra.mrb[240].mxu1 %v14739_v37 }
 0x694   : > { %v5770_v31 = vmax.f32 %v5014_v6, %v5762_v14  ;;  %v5772_v35 = vmax.f32 %v5016_v9, %v5764_v40  ;;  %v5022_v41 = vmax.f32 %v3636_v42, 0.0  ;;  %v5024_v51 = vmax.f32 %v3989_v24, 0.0  ;;  %3907 = vmatprep.mubr.bf16.mxu0 %v15768_v62  ;;  %4260 = vmatprep.mubr.bf16.mxu1 %v15768_v62 }
 0x695   : > { %v5777_v48 = vmax.f32 %v5021_v8, %v5769_v53  ;;  %v5779_v15 = vmax.f32 %v5023_v47, %v5771_v5 }
 0x696   : > { %v5778_v60 = vmax.f32 %v5022_v41, %v5770_v31  ;;  %v5780_v3 = vmax.f32 %v5024_v51, %v5772_v35  ;;  %v3639_v52 = vpop.f32.mrb[136].mxu0  ;;  %v3992_v55 = vpop.f32.mrb[136].mxu1 }
 0x697   : > { %v3640_v29 = vadd.f32 %v3639_v52, %v14812_v54  ;;  %v3993_v38 = vadd.f32 %v3992_v55, %v14816_v61  ;;  %v3641_v63 = vpop.f32.mrb[137].mxu0  ;;  %v3994_v26 = vpop.f32.mrb[137].mxu1 }
 0x698   : > { %v3642_v14 = vadd.f32 %v3641_v63, %v14819_v46  ;;  %v3995_v40 = vadd.f32 %v3994_v26, %v14823_v2  ;;  %v3643_v6 = vpop.f32.mrb[138].mxu0  ;;  %v3996_v9 = vpop.f32.mrb[138].mxu1 }
 0x699   : > { %v5029_v42 = vmax.f32 %v3640_v29, 0.0  ;;  %v5031_v24 = vmax.f32 %v3993_v38, 0.0  ;;  %v3644_v53 = vadd.f32 %v3643_v6, %v14812_v54  ;;  %v3997_v5 = vadd.f32 %v3996_v9, %v14816_v61  ;;  %v3645_v8 = vpop.f32.mrb[139].mxu0  ;;  %v3998_v47 = vpop.f32.mrb[139].mxu1 }
 0x69a   : > { %v5030_v31 = vmax.f32 %v3642_v14, 0.0  ;;  %v5032_v35 = vmax.f32 %v3995_v40, 0.0  ;;  %v3646_v41 = vadd.f32 %v3645_v8, %v14819_v46  ;;  %v3999_v51 = vadd.f32 %v3998_v47, %v14823_v2 }
 0x69b   : > { %v5785_v52 = vmax.f32 %v5029_v42, %v5777_v48  ;;  %v5787_v55 = vmax.f32 %v5031_v24, %v5779_v15  ;;  %v5037_v63 = vmax.f32 %v3644_v53, 0.0  ;;  %v5039_v26 = vmax.f32 %v3997_v5, 0.0  ;;  %3908 = vmatmul.mubr.bf16.gmra.mrb[244].mxu0 %v14737_v0  ;;  %4261 = vmatmul.mubr.bf16.gmra.mrb[244].mxu1 %v14737_v0 }
 0x69c   : > { %v5786_v29 = vmax.f32 %v5030_v31, %v5778_v60  ;;  %v5788_v38 = vmax.f32 %v5032_v35, %v5780_v3  ;;  %v5038_v6 = vmax.f32 %v3646_v41, 0.0  ;;  %v5040_v9 = vmax.f32 %v3999_v51, 0.0  ;;  %3917 = vmatprep.mubr.bf16.mxu0 %v15768_v62  ;;  %4270 = vmatprep.mubr.bf16.mxu1 %v15768_v62 }
 0x69d   : > { %v5793_v14 = vmax.f32 %v5037_v63, %v5785_v52  ;;  %v5795_v40 = vmax.f32 %v5039_v26, %v5787_v55 }
 0x69e   : > { %v5794_v8 = vmax.f32 %v5038_v6, %v5786_v29  ;;  %v5796_v47 = vmax.f32 %v5040_v9, %v5788_v38  ;;  %v3649_v48 = vpop.f32.mrb[140].mxu0  ;;  %v4002_v15 = vpop.f32.mrb[140].mxu1 }
 0x69f   : > { %v3650_v42 = vadd.f32 %v3649_v48, %v14812_v54  ;;  %v4003_v24 = vadd.f32 %v4002_v15, %v14816_v61  ;;  %v3651_v53 = vpop.f32.mrb[141].mxu0  ;;  %v4004_v5 = vpop.f32.mrb[141].mxu1 }
 0x6a0   : > { %v3652_v60 = vadd.f32 %v3651_v53, %v14819_v46  ;;  %v4005_v3 = vadd.f32 %v4004_v5, %v14823_v2  ;;  %v3653_v31 = vpop.f32.mrb[142].mxu0  ;;  %v4006_v35 = vpop.f32.mrb[142].mxu1 }
 0x6a1   : > { %v5045_v41 = vmax.f32 %v3650_v42, 0.0  ;;  %v5047_v51 = vmax.f32 %v4003_v24, 0.0  ;;  %v3654_v52 = vadd.f32 %v3653_v31, %v14812_v54  ;;  %v4007_v55 = vadd.f32 %v4006_v35, %v14816_v61  ;;  %v3655_v63 = vpop.f32.mrb[143].mxu0  ;;  %v4008_v26 = vpop.f32.mrb[143].mxu1 }
 0x6a2   : > { %v5046_v29 = vmax.f32 %v3652_v60, 0.0  ;;  %v5048_v38 = vmax.f32 %v4005_v3, 0.0  ;;  %v3656_v6 = vadd.f32 %v3655_v63, %v14819_v46  ;;  %v4009_v9 = vadd.f32 %v4008_v26, %v14823_v2 }
 0x6a3   : > { %v5801_v48 = vmax.f32 %v5045_v41, %v5793_v14  ;;  %v5803_v15 = vmax.f32 %v5047_v51, %v5795_v40  ;;  %v5053_v53 = vmax.f32 %v3654_v52, 0.0  ;;  %v5055_v5 = vmax.f32 %v4007_v55, 0.0  ;;  %3918 = vmatmul.mubr.bf16.gmra.mrb[248].mxu0 %v14751_v50  ;;  %4271 = vmatmul.mubr.bf16.gmra.mrb[248].mxu1 %v14751_v50 }
 0x6a4   : > { %v5802_v42 = vmax.f32 %v5046_v29, %v5794_v8  ;;  %v5804_v24 = vmax.f32 %v5048_v38, %v5796_v47  ;;  %v5054_v31 = vmax.f32 %v3656_v6, 0.0  ;;  %v5056_v35 = vmax.f32 %v4009_v9, 0.0  ;;  %3927 = vmatprep.mubr.bf16.mxu0 %v15768_v62  ;;  %4280 = vmatprep.mubr.bf16.mxu1 %v15768_v62 }
 0x6a5   : > { %v5809_v60 = vmax.f32 %v5053_v53, %v5801_v48  ;;  %v5811_v3 = vmax.f32 %v5055_v5, %v5803_v15 }
 0x6a6   : > { %v5810_v63 = vmax.f32 %v5054_v31, %v5802_v42  ;;  %v5812_v26 = vmax.f32 %v5056_v35, %v5804_v24  ;;  %v3659_v14 = vpop.f32.mrb[144].mxu0  ;;  %v4012_v40 = vpop.f32.mrb[144].mxu1 }
 0x6a7   : > { %v3660_v41 = vadd.f32 %v3659_v14, %v14812_v54  ;;  %v4013_v51 = vadd.f32 %v4012_v40, %v14816_v61  ;;  %v3661_v52 = vpop.f32.mrb[145].mxu0  ;;  %v4014_v55 = vpop.f32.mrb[145].mxu1 }
 0x6a8   : > { %v3662_v8 = vadd.f32 %v3661_v52, %v14819_v46  ;;  %v4015_v47 = vadd.f32 %v4014_v55, %v14823_v2  ;;  %v3663_v29 = vpop.f32.mrb[146].mxu0  ;;  %v4016_v38 = vpop.f32.mrb[146].mxu1 }
 0x6a9   : > { %v5061_v6 = vmax.f32 %v3660_v41, 0.0  ;;  %v5063_v9 = vmax.f32 %v4013_v51, 0.0  ;;  %v3664_v48 = vadd.f32 %v3663_v29, %v14812_v54  ;;  %v4017_v15 = vadd.f32 %v4016_v38, %v14816_v61  ;;  %v3665_v53 = vpop.f32.mrb[147].mxu0  ;;  %v4018_v5 = vpop.f32.mrb[147].mxu1 }
 0x6aa   : > { %v5062_v42 = vmax.f32 %v3662_v8, 0.0  ;;  %v5064_v24 = vmax.f32 %v4015_v47, 0.0  ;;  %v3666_v31 = vadd.f32 %v3665_v53, %v14819_v46  ;;  %v4019_v35 = vadd.f32 %v4018_v5, %v14823_v2 }
 0x6ab   : > { %v5817_v14 = vmax.f32 %v5061_v6, %v5809_v60  ;;  %v5819_v40 = vmax.f32 %v5063_v9, %v5811_v3  ;;  %v5069_v52 = vmax.f32 %v3664_v48, 0.0  ;;  %v5071_v55 = vmax.f32 %v4017_v15, 0.0  ;;  %3928 = vmatmul.mubr.bf16.gmra.mrb[252].mxu0 %v14749_v43  ;;  %4281 = vmatmul.mubr.bf16.gmra.mrb[252].mxu1 %v14749_v43 }
 0x6ac   : > { %v5818_v41 = vmax.f32 %v5062_v42, %v5810_v63  ;;  %v5820_v51 = vmax.f32 %v5064_v24, %v5812_v26  ;;  %v5070_v29 = vmax.f32 %v3666_v31, 0.0  ;;  %v5072_v38 = vmax.f32 %v4019_v35, 0.0  ;;  %4323 = vmatprep.mubr.bf16.mxu0 %v15768_v62  ;;  %4676 = vmatprep.mubr.bf16.mxu1 %v15768_v62 }
 0x6ad   : > { %v5825_v8 = vmax.f32 %v5069_v52, %v5817_v14  ;;  %v5827_v47 = vmax.f32 %v5071_v55, %v5819_v40 }
 0x6ae   : > { %v5826_v53 = vmax.f32 %v5070_v29, %v5818_v41  ;;  %v5828_v5 = vmax.f32 %v5072_v38, %v5820_v51  ;;  %v3669_v60 = vpop.f32.mrb[148].mxu0  ;;  %v4022_v3 = vpop.f32.mrb[148].mxu1 }
 0x6af   : > { %v3670_v6 = vadd.f32 %v3669_v60, %v14812_v54  ;;  %v4023_v9 = vadd.f32 %v4022_v3, %v14816_v61  ;;  %v3671_v48 = vpop.f32.mrb[149].mxu0  ;;  %v4024_v15 = vpop.f32.mrb[149].mxu1 }
 0x6b0   : > { %v3672_v63 = vadd.f32 %v3671_v48, %v14819_v46  ;;  %v4025_v26 = vadd.f32 %v4024_v15, %v14823_v2  ;;  %v3673_v42 = vpop.f32.mrb[150].mxu0  ;;  %v4026_v24 = vpop.f32.mrb[150].mxu1 }
 0x6b1   : > { %v5077_v31 = vmax.f32 %v3670_v6, 0.0  ;;  %v5079_v35 = vmax.f32 %v4023_v9, 0.0  ;;  %v3674_v14 = vadd.f32 %v3673_v42, %v14812_v54  ;;  %v4027_v40 = vadd.f32 %v4026_v24, %v14816_v61  ;;  %v3675_v52 = vpop.f32.mrb[151].mxu0  ;;  %v4028_v55 = vpop.f32.mrb[151].mxu1 }
 0x6b2   : > { %v5078_v41 = vmax.f32 %v3672_v63, 0.0  ;;  %v5080_v51 = vmax.f32 %v4025_v26, 0.0  ;;  %v3676_v29 = vadd.f32 %v3675_v52, %v14819_v46  ;;  %v4029_v38 = vadd.f32 %v4028_v55, %v14823_v2 }
 0x6b3   : > { %v5833_v60 = vmax.f32 %v5077_v31, %v5825_v8  ;;  %v5835_v3 = vmax.f32 %v5079_v35, %v5827_v47  ;;  %v5085_v48 = vmax.f32 %v3674_v14, 0.0  ;;  %v5087_v15 = vmax.f32 %v4027_v40, 0.0  ;;  %4324 = vmatmul.mubr.bf16.vlgmr.msra.gmra.mrb[0].mxu0 %v14561_v11  ;;  %4677 = vmatmul.mubr.bf16.vlgmr.msra.gmra.mrb[0].mxu1 %v14561_v11 }
 0x6b4   : > { %v5834_v6 = vmax.f32 %v5078_v41, %v5826_v53  ;;  %v5836_v9 = vmax.f32 %v5080_v51, %v5828_v5  ;;  %v5086_v42 = vmax.f32 %v3676_v29, 0.0  ;;  %v5088_v24 = vmax.f32 %v4029_v38, 0.0  ;;  %4333 = vmatprep.mubr.bf16.mxu0 %v15768_v62  ;;  %4686 = vmatprep.mubr.bf16.mxu1 %v15768_v62 }
 0x6b5   : > { %v5841_v63 = vmax.f32 %v5085_v48, %v5833_v60  ;;  %v5843_v26 = vmax.f32 %v5087_v15, %v5835_v3 }
 0x6b6   : > { %v5842_v52 = vmax.f32 %v5086_v42, %v5834_v6  ;;  %v5844_v55 = vmax.f32 %v5088_v24, %v5836_v9  ;;  %v3679_v8 = vpop.f32.mrb[152].mxu0  ;;  %v4032_v47 = vpop.f32.mrb[152].mxu1 }
 0x6b7   : > { %v3680_v31 = vadd.f32 %v3679_v8, %v14812_v54  ;;  %v4033_v35 = vadd.f32 %v4032_v47, %v14816_v61  ;;  %v3681_v14 = vpop.f32.mrb[153].mxu0  ;;  %v4034_v11 = vpop.f32.mrb[153].mxu1 }
 0x6b8   : > { %v3682_v53 = vadd.f32 %v3681_v14, %v14819_v46  ;;  %v4035_v5 = vadd.f32 %v4034_v11, %v14823_v2  ;;  %v3683_v40 = vpop.f32.mrb[154].mxu0  ;;  %v4036_v41 = vpop.f32.mrb[154].mxu1 }
 0x6b9   : > { %v5093_v51 = vmax.f32 %v3680_v31, 0.0  ;;  %v5095_v29 = vmax.f32 %v4033_v35, 0.0  ;;  %v3684_v38 = vadd.f32 %v3683_v40, %v14812_v54  ;;  %v4037_v60 = vadd.f32 %v4036_v41, %v14816_v61  ;;  %v3685_v3 = vpop.f32.mrb[155].mxu0  ;;  %v4038_v48 = vpop.f32.mrb[155].mxu1 }
 0x6ba   : > { %v5094_v15 = vmax.f32 %v3682_v53, 0.0  ;;  %v5096_v6 = vmax.f32 %v4035_v5, 0.0  ;;  %v3686_v9 = vadd.f32 %v3685_v3, %v14819_v46  ;;  %v4039_v42 = vadd.f32 %v4038_v48, %v14823_v2 }
 0x6bb   : > { %v5849_v24 = vmax.f32 %v5093_v51, %v5841_v63  ;;  %v5851_v8 = vmax.f32 %v5095_v29, %v5843_v26  ;;  %v5101_v47 = vmax.f32 %v3684_v38, 0.0  ;;  %v5103_v14 = vmax.f32 %v4037_v60, 0.0  ;;  %4334 = vmatmul.mubr.bf16.gmra.mrb[4].mxu0 %v14559_v19  ;;  %4687 = vmatmul.mubr.bf16.gmra.mrb[4].mxu1 %v14559_v19 }
 0x6bc   : > { %v5850_v31 = vmax.f32 %v5094_v15, %v5842_v52  ;;  %v5852_v35 = vmax.f32 %v5096_v6, %v5844_v55  ;;  %v5102_v11 = vmax.f32 %v3686_v9, 0.0  ;;  %v5104_v40 = vmax.f32 %v4039_v42, 0.0  ;;  %4343 = vmatprep.mubr.bf16.mxu0 %v15768_v62  ;;  %4696 = vmatprep.mubr.bf16.mxu1 %v15768_v62 }
 0x6bd   : > { %v5857_v53 = vmax.f32 %v5101_v47, %v5849_v24  ;;  %v5859_v5 = vmax.f32 %v5103_v14, %v5851_v8 }
 0x6be   : > { %v5858_v41 = vmax.f32 %v5102_v11, %v5850_v31  ;;  %v5860_v3 = vmax.f32 %v5104_v40, %v5852_v35  ;;  %v3689_v63 = vpop.f32.mrb[156].mxu0  ;;  %v4042_v26 = vpop.f32.mrb[156].mxu1 }
 0x6bf   : > { %v3690_v51 = vadd.f32 %v3689_v63, %v14812_v54  ;;  %v4043_v29 = vadd.f32 %v4042_v26, %v14816_v61  ;;  %v3691_v38 = vpop.f32.mrb[157].mxu0  ;;  %v4044_v19 = vpop.f32.mrb[157].mxu1 }
 0x6c0   : > { %v3692_v52 = vadd.f32 %v3691_v38, %v14819_v46  ;;  %v4045_v55 = vadd.f32 %v4044_v19, %v14823_v2  ;;  %v3693_v60 = vpop.f32.mrb[158].mxu0  ;;  %v4046_v48 = vpop.f32.mrb[158].mxu1 }
 0x6c1   : > { %v5109_v15 = vmax.f32 %v3690_v51, 0.0  ;;  %v5111_v6 = vmax.f32 %v4043_v29, 0.0  ;;  %v3694_v9 = vadd.f32 %v3693_v60, %v14812_v54  ;;  %v4047_v42 = vadd.f32 %v4046_v48, %v14816_v61  ;;  %v3695_v24 = vpop.f32.mrb[159].mxu0  ;;  %v4048_v8 = vpop.f32.mrb[159].mxu1 }
 0x6c2   : > { %v5110_v47 = vmax.f32 %v3692_v52, 0.0  ;;  %v5112_v14 = vmax.f32 %v4045_v55, 0.0  ;;  %v3696_v31 = vadd.f32 %v3695_v24, %v14819_v46  ;;  %v4049_v35 = vadd.f32 %v4048_v8, %v14823_v2 }
 0x6c3   : > { %v5865_v11 = vmax.f32 %v5109_v15, %v5857_v53  ;;  %v5867_v40 = vmax.f32 %v5111_v6, %v5859_v5  ;;  %v5117_v63 = vmax.f32 %v3694_v9, 0.0  ;;  %v5119_v26 = vmax.f32 %v4047_v42, 0.0  ;;  %4344 = vmatmul.mubr.bf16.gmra.mrb[8].mxu0 %v14582_v25  ;;  %4697 = vmatmul.mubr.bf16.gmra.mrb[8].mxu1 %v14582_v25 }
 0x6c4   : > { %v5866_v51 = vmax.f32 %v5110_v47, %v5858_v41  ;;  %v5868_v29 = vmax.f32 %v5112_v14, %v5860_v3  ;;  %v5118_v38 = vmax.f32 %v3696_v31, 0.0  ;;  %v5120_v19 = vmax.f32 %v4049_v35, 0.0  ;;  %4353 = vmatprep.mubr.bf16.mxu0 %v15768_v62  ;;  %4706 = vmatprep.mubr.bf16.mxu1 %v15768_v62 }
 0x6c5   : > { %v5873_v52 = vmax.f32 %v5117_v63, %v5865_v11  ;;  %v5875_v55 = vmax.f32 %v5119_v26, %v5867_v40 }
 0x6c6   : > { %v5874_v60 = vmax.f32 %v5118_v38, %v5866_v51  ;;  %v5876_v48 = vmax.f32 %v5120_v19, %v5868_v29  ;;  %v3699_v53 = vpop.f32.mrb[160].mxu0  ;;  %v4052_v5 = vpop.f32.mrb[160].mxu1 }
 0x6c7   : > { %v3700_v15 = vadd.f32 %v3699_v53, %v14812_v54  ;;  %v4053_v6 = vadd.f32 %v4052_v5, %v14816_v61  ;;  %v3701_v9 = vpop.f32.mrb[161].mxu0  ;;  %v4054_v25 = vpop.f32.mrb[161].mxu1 }
 0x6c8   : > { %v3702_v41 = vadd.f32 %v3701_v9, %v14819_v46  ;;  %v4055_v3 = vadd.f32 %v4054_v25, %v14823_v2  ;;  %v3703_v42 = vpop.f32.mrb[162].mxu0  ;;  %v4056_v24 = vpop.f32.mrb[162].mxu1 }
 0x6c9   : > { %v5125_v8 = vmax.f32 %v3700_v15, 0.0  ;;  %v5127_v47 = vmax.f32 %v4053_v6, 0.0  ;;  %v3704_v14 = vadd.f32 %v3703_v42, %v14812_v54  ;;  %v4057_v31 = vadd.f32 %v4056_v24, %v14816_v61  ;;  %v3705_v35 = vpop.f32.mrb[163].mxu0  ;;  %v4058_v11 = vpop.f32.mrb[163].mxu1 }
 0x6ca   : > { %v5126_v40 = vmax.f32 %v3702_v41, 0.0  ;;  %v5128_v63 = vmax.f32 %v4055_v3, 0.0  ;;  %v3706_v26 = vadd.f32 %v3705_v35, %v14819_v46  ;;  %v4059_v51 = vadd.f32 %v4058_v11, %v14823_v2 }
 0x6cb   : > { %v5881_v29 = vmax.f32 %v5125_v8, %v5873_v52  ;;  %v5883_v38 = vmax.f32 %v5127_v47, %v5875_v55  ;;  %v5133_v19 = vmax.f32 %v3704_v14, 0.0  ;;  %v5135_v53 = vmax.f32 %v4057_v31, 0.0  ;;  %4354 = vmatmul.mubr.bf16.gmra.mrb[12].mxu0 %v14580_v18  ;;  %4707 = vmatmul.mubr.bf16.gmra.mrb[12].mxu1 %v14580_v18 }
 0x6cc   : > { %v5882_v5 = vmax.f32 %v5126_v40, %v5874_v60  ;;  %v5884_v15 = vmax.f32 %v5128_v63, %v5876_v48  ;;  %v5134_v6 = vmax.f32 %v3706_v26, 0.0  ;;  %v5136_v9 = vmax.f32 %v4059_v51, 0.0  ;;  %4363 = vmatprep.mubr.bf16.mxu0 %v15768_v62  ;;  %4716 = vmatprep.mubr.bf16.mxu1 %v15768_v62 }
 0x6cd   : > { %v5889_v25 = vmax.f32 %v5133_v19, %v5881_v29  ;;  %v5891_v41 = vmax.f32 %v5135_v53, %v5883_v38 }
 0x6ce   : > { %v5890_v3 = vmax.f32 %v5134_v6, %v5882_v5  ;;  %v5892_v42 = vmax.f32 %v5136_v9, %v5884_v15  ;;  %v3709_v52 = vpop.f32.mrb[164].mxu0  ;;  %v4062_v55 = vpop.f32.mrb[164].mxu1 }
 0x6cf   : > { %v3710_v24 = vadd.f32 %v3709_v52, %v14812_v54  ;;  %v4063_v8 = vadd.f32 %v4062_v55, %v14816_v61  ;;  %v3711_v47 = vpop.f32.mrb[165].mxu0  ;;  %v4064_v18 = vpop.f32.mrb[165].mxu1 }
 0x6d0   : > { %v3712_v60 = vadd.f32 %v3711_v47, %v14819_v46  ;;  %v4065_v48 = vadd.f32 %v4064_v18, %v14823_v2  ;;  %v3713_v14 = vpop.f32.mrb[166].mxu0  ;;  %v4066_v31 = vpop.f32.mrb[166].mxu1 }
 0x6d1   : > { %v5141_v35 = vmax.f32 %v3710_v24, 0.0  ;;  %v5143_v11 = vmax.f32 %v4063_v8, 0.0  ;;  %v3714_v40 = vadd.f32 %v3713_v14, %v14812_v54  ;;  %v4067_v63 = vadd.f32 %v4066_v31, %v14816_v61  ;;  %v3715_v26 = vpop.f32.mrb[167].mxu0  ;;  %v4068_v51 = vpop.f32.mrb[167].mxu1 }
 0x6d2   : > { %v5142_v29 = vmax.f32 %v3712_v60, 0.0  ;;  %v5144_v38 = vmax.f32 %v4065_v48, 0.0  ;;  %v3716_v19 = vadd.f32 %v3715_v26, %v14819_v46  ;;  %v4069_v53 = vadd.f32 %v4068_v51, %v14823_v2 }
 0x6d3   : > { %v6017_v5 = vmax.f32 %v5141_v35, %v5889_v25  ;;  %v6019_v15 = vmax.f32 %v5143_v11, %v5891_v41  ;;  %v5149_v6 = vmax.f32 %v3714_v40, 0.0  ;;  %v5151_v9 = vmax.f32 %v4067_v63, 0.0  ;;  %4364 = vmatmul.mubr.bf16.gmra.mrb[16].mxu0 %v14595_v28  ;;  %4717 = vmatmul.mubr.bf16.gmra.mrb[16].mxu1 %v14595_v28 }
 0x6d4   : > { %v6018_v52 = vmax.f32 %v5142_v29, %v5890_v3  ;;  %v6020_v55 = vmax.f32 %v5144_v38, %v5892_v42  ;;  %v5150_v24 = vmax.f32 %v3716_v19, 0.0  ;;  %v5152_v8 = vmax.f32 %v4069_v53, 0.0  ;;  %4373 = vmatprep.mubr.bf16.mxu0 %v15768_v62  ;;  %4726 = vmatprep.mubr.bf16.mxu1 %v15768_v62 }
 0x6d5   : > { %v5897_v47 = vmax.f32 %v5149_v6, %v6017_v5  ;;  %v5899_v18 = vmax.f32 %v5151_v9, %v6019_v15 }
 0x6d6   : > { %v5898_v60 = vmax.f32 %v5150_v24, %v6018_v52  ;;  %v5900_v48 = vmax.f32 %v5152_v8, %v6020_v55  ;;  %v3719_v25 = vpop.f32.mrb[168].mxu0  ;;  %v4072_v41 = vpop.f32.mrb[168].mxu1 }
 0x6d7   : > { %v3720_v14 = vadd.f32 %v3719_v25, %v14812_v54  ;;  %v4073_v31 = vadd.f32 %v4072_v41, %v14816_v61  ;;  %v3721_v35 = vpop.f32.mrb[169].mxu0  ;;  %v4074_v28 = vpop.f32.mrb[169].mxu1 }
 0x6d8   : > { %v3722_v3 = vadd.f32 %v3721_v35, %v14819_v46  ;;  %v4075_v42 = vadd.f32 %v4074_v28, %v14823_v2  ;;  %v3723_v11 = vpop.f32.mrb[170].mxu0  ;;  %v4076_v40 = vpop.f32.mrb[170].mxu1 }
 0x6d9   : > { %v5157_v63 = vmax.f32 %v3720_v14, 0.0  ;;  %v5159_v26 = vmax.f32 %v4073_v31, 0.0  ;;  %v3724_v51 = vadd.f32 %v3723_v11, %v14812_v54  ;;  %v4077_v29 = vadd.f32 %v4076_v40, %v14816_v61  ;;  %v3725_v38 = vpop.f32.mrb[171].mxu0  ;;  %v4078_v19 = vpop.f32.mrb[171].mxu1 }
 0x6da   : > { %v5158_v53 = vmax.f32 %v3722_v3, 0.0  ;;  %v5160_v5 = vmax.f32 %v4075_v42, 0.0  ;;  %v3726_v15 = vadd.f32 %v3725_v38, %v14819_v46  ;;  %v4079_v6 = vadd.f32 %v4078_v19, %v14823_v2 }
 0x6db   : > { %v6025_v9 = vmax.f32 %v5157_v63, %v5897_v47  ;;  %v6027_v52 = vmax.f32 %v5159_v26, %v5899_v18  ;;  %v5165_v55 = vmax.f32 %v3724_v51, 0.0  ;;  %v5167_v24 = vmax.f32 %v4077_v29, 0.0  ;;  %4374 = vmatmul.mubr.bf16.gmra.mrb[20].mxu0 %v14593_v27  ;;  %4727 = vmatmul.mubr.bf16.gmra.mrb[20].mxu1 %v14593_v27 }
 0x6dc   : > { %v6026_v8 = vmax.f32 %v5158_v53, %v5898_v60  ;;  %v6028_v25 = vmax.f32 %v5160_v5, %v5900_v48  ;;  %v5166_v41 = vmax.f32 %v3726_v15, 0.0  ;;  %v5168_v14 = vmax.f32 %v4079_v6, 0.0  ;;  %4383 = vmatprep.mubr.bf16.mxu0 %v15768_v62  ;;  %4736 = vmatprep.mubr.bf16.mxu1 %v15768_v62 }
 0x6dd   : > { %v5905_v31 = vmax.f32 %v5165_v55, %v6025_v9  ;;  %v5907_v35 = vmax.f32 %v5167_v24, %v6027_v52 }
 0x6de   : > { %v5906_v28 = vmax.f32 %v5166_v41, %v6026_v8  ;;  %v5908_v3 = vmax.f32 %v5168_v14, %v6028_v25  ;;  %v3729_v47 = vpop.f32.mrb[172].mxu0  ;;  %v4082_v18 = vpop.f32.mrb[172].mxu1 }
 0x6df   : > { %v3730_v42 = vadd.f32 %v3729_v47, %v14812_v54  ;;  %v4083_v11 = vadd.f32 %v4082_v18, %v14816_v61  ;;  %v3731_v40 = vpop.f32.mrb[173].mxu0  ;;  %v4084_v27 = vpop.f32.mrb[173].mxu1 }
 0x6e0   : > { %v3732_v60 = vadd.f32 %v3731_v40, %v14819_v46  ;;  %v4085_v48 = vadd.f32 %v4084_v27, %v14823_v2  ;;  %v3733_v63 = vpop.f32.mrb[174].mxu0  ;;  %v4086_v26 = vpop.f32.mrb[174].mxu1 }
 0x6e1   : > { %v5173_v51 = vmax.f32 %v3730_v42, 0.0  ;;  %v5175_v29 = vmax.f32 %v4083_v11, 0.0  ;;  %v3734_v38 = vadd.f32 %v3733_v63, %v14812_v54  ;;  %v4087_v19 = vadd.f32 %v4086_v26, %v14816_v61  ;;  %v3735_v53 = vpop.f32.mrb[175].mxu0  ;;  %v4088_v5 = vpop.f32.mrb[175].mxu1 }
 0x6e2   : > { %v5174_v15 = vmax.f32 %v3732_v60, 0.0  ;;  %v5176_v6 = vmax.f32 %v4085_v48, 0.0  ;;  %v3736_v9 = vadd.f32 %v3735_v53, %v14819_v46  ;;  %v4089_v52 = vadd.f32 %v4088_v5, %v14823_v2 }
 0x6e3   : > { %v6033_v55 = vmax.f32 %v5173_v51, %v5905_v31  ;;  %v6035_v24 = vmax.f32 %v5175_v29, %v5907_v35  ;;  %v5181_v8 = vmax.f32 %v3734_v38, 0.0  ;;  %v5183_v25 = vmax.f32 %v4087_v19, 0.0  ;;  %4384 = vmatmul.mubr.bf16.gmra.mrb[24].mxu0 %v14607_v32  ;;  %4737 = vmatmul.mubr.bf16.gmra.mrb[24].mxu1 %v14607_v32 }
 0x6e4   : > { %v6034_v41 = vmax.f32 %v5174_v15, %v5906_v28  ;;  %v6036_v14 = vmax.f32 %v5176_v6, %v5908_v3  ;;  %v5182_v47 = vmax.f32 %v3736_v9, 0.0  ;;  %v5184_v18 = vmax.f32 %v4089_v52, 0.0  ;;  %4393 = vmatprep.mubr.bf16.mxu0 %v15768_v62  ;;  %4746 = vmatprep.mubr.bf16.mxu1 %v15768_v62 }
 0x6e5   : > { %v5913_v42 = vmax.f32 %v5181_v8, %v6033_v55  ;;  %v5915_v11 = vmax.f32 %v5183_v25, %v6035_v24 }
 0x6e6   : > { %v5914_v40 = vmax.f32 %v5182_v47, %v6034_v41  ;;  %v5916_v27 = vmax.f32 %v5184_v18, %v6036_v14  ;;  %v3739_v31 = vpop.f32.mrb[176].mxu0  ;;  %v4092_v35 = vpop.f32.mrb[176].mxu1 }
 0x6e7   : > { %v3740_v60 = vadd.f32 %v3739_v31, %v14812_v54  ;;  %v4093_v48 = vadd.f32 %v4092_v35, %v14816_v61  ;;  %v3741_v63 = vpop.f32.mrb[177].mxu0  ;;  %v4094_v32 = vpop.f32.mrb[177].mxu1 }
 0x6e8   : > { %v3742_v28 = vadd.f32 %v3741_v63, %v14819_v46  ;;  %v4095_v3 = vadd.f32 %v4094_v32, %v14823_v2  ;;  %v3743_v26 = vpop.f32.mrb[178].mxu0  ;;  %v4096_v51 = vpop.f32.mrb[178].mxu1 }
 0x6e9   : > { %v5189_v29 = vmax.f32 %v3740_v60, 0.0  ;;  %v5191_v38 = vmax.f32 %v4093_v48, 0.0  ;;  %v3744_v19 = vadd.f32 %v3743_v26, %v14812_v54  ;;  %v4097_v53 = vadd.f32 %v4096_v51, %v14816_v61  ;;  %v3745_v5 = vpop.f32.mrb[179].mxu0  ;;  %v4098_v15 = vpop.f32.mrb[179].mxu1 }
 0x6ea   : > { %v5190_v6 = vmax.f32 %v3742_v28, 0.0  ;;  %v5192_v9 = vmax.f32 %v4095_v3, 0.0  ;;  %v3746_v52 = vadd.f32 %v3745_v5, %v14819_v46  ;;  %v4099_v55 = vadd.f32 %v4098_v15, %v14823_v2 }
 0x6eb   : > { %v6041_v24 = vmax.f32 %v5189_v29, %v5913_v42  ;;  %v6043_v8 = vmax.f32 %v5191_v38, %v5915_v11  ;;  %v5197_v25 = vmax.f32 %v3744_v19, 0.0  ;;  %v5199_v41 = vmax.f32 %v4097_v53, 0.0  ;;  %4394 = vmatmul.mubr.bf16.gmra.mrb[28].mxu0 %v14605_v22  ;;  %4747 = vmatmul.mubr.bf16.gmra.mrb[28].mxu1 %v14605_v22 }
 0x6ec   : > { %v6042_v14 = vmax.f32 %v5190_v6, %v5914_v40  ;;  %v6044_v47 = vmax.f32 %v5192_v9, %v5916_v27  ;;  %v5198_v18 = vmax.f32 %v3746_v52, 0.0  ;;  %v5200_v31 = vmax.f32 %v4099_v55, 0.0  ;;  %4403 = vmatprep.mubr.bf16.mxu0 %v15768_v62  ;;  %4756 = vmatprep.mubr.bf16.mxu1 %v15768_v62 }
 0x6ed   : > { %v5921_v35 = vmax.f32 %v5197_v25, %v6041_v24  ;;  %v5923_v60 = vmax.f32 %v5199_v41, %v6043_v8 }
 0x6ee   : > { %v5922_v48 = vmax.f32 %v5198_v18, %v6042_v14  ;;  %v5924_v63 = vmax.f32 %v5200_v31, %v6044_v47  ;;  %v3749_v42 = vpop.f32.mrb[180].mxu0  ;;  %v4102_v11 = vpop.f32.mrb[180].mxu1 }
 0x6ef   : > { %v3750_v32 = vadd.f32 %v3749_v42, %v14812_v54  ;;  %v4103_v28 = vadd.f32 %v4102_v11, %v14816_v61  ;;  %v3751_v3 = vpop.f32.mrb[181].mxu0  ;;  %v4104_v22 = vpop.f32.mrb[181].mxu1 }
 0x6f0   : > { %v3752_v40 = vadd.f32 %v3751_v3, %v14819_v46  ;;  %v4105_v27 = vadd.f32 %v4104_v22, %v14823_v2  ;;  %v3753_v26 = vpop.f32.mrb[182].mxu0  ;;  %v4106_v51 = vpop.f32.mrb[182].mxu1 }
 0x6f1   : > { %v5205_v29 = vmax.f32 %v3750_v32, 0.0  ;;  %v5207_v38 = vmax.f32 %v4103_v28, 0.0  ;;  %v3754_v19 = vadd.f32 %v3753_v26, %v14812_v54  ;;  %v4107_v53 = vadd.f32 %v4106_v51, %v14816_v61  ;;  %v3755_v5 = vpop.f32.mrb[183].mxu0  ;;  %v4108_v15 = vpop.f32.mrb[183].mxu1 }
 0x6f2   : > { %v5206_v6 = vmax.f32 %v3752_v40, 0.0  ;;  %v5208_v9 = vmax.f32 %v4105_v27, 0.0  ;;  %v3756_v52 = vadd.f32 %v3755_v5, %v14819_v46  ;;  %v4109_v55 = vadd.f32 %v4108_v15, %v14823_v2 }
 0x6f3   : > { %v6049_v24 = vmax.f32 %v5205_v29, %v5921_v35  ;;  %v6051_v8 = vmax.f32 %v5207_v38, %v5923_v60  ;;  %v5213_v25 = vmax.f32 %v3754_v19, 0.0  ;;  %v5215_v41 = vmax.f32 %v4107_v53, 0.0  ;;  %4404 = vmatmul.mubr.bf16.gmra.mrb[32].mxu0 %v14619_v39  ;;  %4757 = vmatmul.mubr.bf16.gmra.mrb[32].mxu1 %v14619_v39 }
 0x6f4   : > { %v6050_v14 = vmax.f32 %v5206_v6, %v5922_v48  ;;  %v6052_v47 = vmax.f32 %v5208_v9, %v5924_v63  ;;  %v5214_v18 = vmax.f32 %v3756_v52, 0.0  ;;  %v5216_v31 = vmax.f32 %v4109_v55, 0.0  ;;  %4413 = vmatprep.mubr.bf16.mxu0 %v15768_v62  ;;  %4766 = vmatprep.mubr.bf16.mxu1 %v15768_v62 }
 0x6f5   : > { %v5929_v42 = vmax.f32 %v5213_v25, %v6049_v24  ;;  %v5931_v11 = vmax.f32 %v5215_v41, %v6051_v8 }
 0x6f6   : > { %v5930_v32 = vmax.f32 %v5214_v18, %v6050_v14  ;;  %v5932_v28 = vmax.f32 %v5216_v31, %v6052_v47  ;;  %v3759_v35 = vpop.f32.mrb[184].mxu0  ;;  %v4112_v60 = vpop.f32.mrb[184].mxu1 }
 0x6f7   : > { %v3760_v3 = vadd.f32 %v3759_v35, %v14812_v54  ;;  %v4113_v22 = vadd.f32 %v4112_v60, %v14816_v61  ;;  %v3761_v40 = vpop.f32.mrb[185].mxu0  ;;  %v4114_v39 = vpop.f32.mrb[185].mxu1 }
 0x6f8   : > { %v3762_v48 = vadd.f32 %v3761_v40, %v14819_v46  ;;  %v4115_v63 = vadd.f32 %v4114_v39, %v14823_v2  ;;  %v3763_v27 = vpop.f32.mrb[186].mxu0  ;;  %v4116_v26 = vpop.f32.mrb[186].mxu1 }
 0x6f9   : > { %v5221_v51 = vmax.f32 %v3760_v3, 0.0  ;;  %v5223_v29 = vmax.f32 %v4113_v22, 0.0  ;;  %v3764_v38 = vadd.f32 %v3763_v27, %v14812_v54  ;;  %v4117_v19 = vadd.f32 %v4116_v26, %v14816_v61  ;;  %v3765_v53 = vpop.f32.mrb[187].mxu0  ;;  %v4118_v5 = vpop.f32.mrb[187].mxu1 }
 0x6fa   : > { %v5222_v15 = vmax.f32 %v3762_v48, 0.0  ;;  %v5224_v6 = vmax.f32 %v4115_v63, 0.0  ;;  %v3766_v9 = vadd.f32 %v3765_v53, %v14819_v46  ;;  %v4119_v52 = vadd.f32 %v4118_v5, %v14823_v2 }
 0x6fb   : > { %v6057_v55 = vmax.f32 %v5221_v51, %v5929_v42  ;;  %v6059_v24 = vmax.f32 %v5223_v29, %v5931_v11  ;;  %v5229_v8 = vmax.f32 %v3764_v38, 0.0  ;;  %v5231_v25 = vmax.f32 %v4117_v19, 0.0  ;;  %4414 = vmatmul.mubr.bf16.gmra.mrb[36].mxu0 %v14617_v13  ;;  %4767 = vmatmul.mubr.bf16.gmra.mrb[36].mxu1 %v14617_v13 }
 0x6fc   : > { %v6058_v41 = vmax.f32 %v5222_v15, %v5930_v32  ;;  %v6060_v14 = vmax.f32 %v5224_v6, %v5932_v28  ;;  %v5230_v47 = vmax.f32 %v3766_v9, 0.0  ;;  %v5232_v18 = vmax.f32 %v4119_v52, 0.0  ;;  %4423 = vmatprep.mubr.bf16.mxu0 %v15768_v62  ;;  %4776 = vmatprep.mubr.bf16.mxu1 %v15768_v62 }
 0x6fd   : > { %v5937_v31 = vmax.f32 %v5229_v8, %v6057_v55  ;;  %v5939_v35 = vmax.f32 %v5231_v25, %v6059_v24 }
 0x6fe   : > { %v5938_v60 = vmax.f32 %v5230_v47, %v6058_v41  ;;  %v5940_v3 = vmax.f32 %v5232_v18, %v6060_v14  ;;  %v3769_v42 = vpop.f32.mrb[188].mxu0  ;;  %v4122_v11 = vpop.f32.mrb[188].mxu1 }
 0x6ff   : > { %v3770_v22 = vadd.f32 %v3769_v42, %v14812_v54  ;;  %v4123_v40 = vadd.f32 %v4122_v11, %v14816_v61  ;;  %v3771_v39 = vpop.f32.mrb[189].mxu0  ;;  %v4124_v13 = vpop.f32.mrb[189].mxu1 }
 0x700   : > { %v3772_v32 = vadd.f32 %v3771_v39, %v14819_v46  ;;  %v4125_v28 = vadd.f32 %v4124_v13, %v14823_v2  ;;  %v3773_v48 = vpop.f32.mrb[190].mxu0  ;;  %v4126_v63 = vpop.f32.mrb[190].mxu1 }
 0x701   : > { %v5237_v27 = vmax.f32 %v3770_v22, 0.0  ;;  %v5239_v26 = vmax.f32 %v4123_v40, 0.0  ;;  %v3774_v51 = vadd.f32 %v3773_v48, %v14812_v54  ;;  %v4127_v29 = vadd.f32 %v4126_v63, %v14816_v61  ;;  %v3775_v38 = vpop.f32.mrb[191].mxu0  ;;  %v4128_v19 = vpop.f32.mrb[191].mxu1 }
 0x702   : > { %v5238_v53 = vmax.f32 %v3772_v32, 0.0  ;;  %v5240_v5 = vmax.f32 %v4125_v28, 0.0  ;;  %v3776_v15 = vadd.f32 %v3775_v38, %v14819_v46  ;;  %v4129_v6 = vadd.f32 %v4128_v19, %v14823_v2 }
 0x703   : > { %v6065_v9 = vmax.f32 %v5237_v27, %v5937_v31  ;;  %v6067_v52 = vmax.f32 %v5239_v26, %v5939_v35  ;;  %v5245_v55 = vmax.f32 %v3774_v51, 0.0  ;;  %v5247_v24 = vmax.f32 %v4127_v29, 0.0  ;;  %4424 = vmatmul.mubr.bf16.gmra.mrb[40].mxu0 %v14631_v49  ;;  %4777 = vmatmul.mubr.bf16.gmra.mrb[40].mxu1 %v14631_v49 }
 0x704   : > { %v6066_v8 = vmax.f32 %v5238_v53, %v5938_v60  ;;  %v6068_v25 = vmax.f32 %v5240_v5, %v5940_v3  ;;  %v5246_v41 = vmax.f32 %v3776_v15, 0.0  ;;  %v5248_v14 = vmax.f32 %v4129_v6, 0.0  ;;  %4433 = vmatprep.mubr.bf16.mxu0 %v15768_v62  ;;  %4786 = vmatprep.mubr.bf16.mxu1 %v15768_v62 }
 0x705   : > { %v5945_v47 = vmax.f32 %v5245_v55, %v6065_v9  ;;  %v5947_v18 = vmax.f32 %v5247_v24, %v6067_v52 }
 0x706   : > { %v5946_v42 = vmax.f32 %v5246_v41, %v6066_v8  ;;  %v5948_v11 = vmax.f32 %v5248_v14, %v6068_v25  ;;  %v3779_v31 = vpop.f32.mrb[192].mxu0  ;;  %v4132_v35 = vpop.f32.mrb[192].mxu1 }
 0x707   : > { %v3780_v22 = vadd.f32 %v3779_v31, %v14812_v54  ;;  %v4133_v40 = vadd.f32 %v4132_v35, %v14816_v61  ;;  %v3781_v39 = vpop.f32.mrb[193].mxu0  ;;  %v4134_v49 = vpop.f32.mrb[193].mxu1 }
 0x708   : > { %v3782_v60 = vadd.f32 %v3781_v39, %v14819_v46  ;;  %v4135_v3 = vadd.f32 %v4134_v49, %v14823_v2  ;;  %v3783_v13 = vpop.f32.mrb[194].mxu0  ;;  %v4136_v32 = vpop.f32.mrb[194].mxu1 }
 0x709   : > { %v5253_v28 = vmax.f32 %v3780_v22, 0.0  ;;  %v5255_v48 = vmax.f32 %v4133_v40, 0.0  ;;  %v3784_v63 = vadd.f32 %v3783_v13, %v14812_v54  ;;  %v4137_v27 = vadd.f32 %v4136_v32, %v14816_v61  ;;  %v3785_v26 = vpop.f32.mrb[195].mxu0  ;;  %v4138_v51 = vpop.f32.mrb[195].mxu1 }
 0x70a   : > { %v5254_v29 = vmax.f32 %v3782_v60, 0.0  ;;  %v5256_v38 = vmax.f32 %v4135_v3, 0.0  ;;  %v3786_v19 = vadd.f32 %v3785_v26, %v14819_v46  ;;  %v4139_v53 = vadd.f32 %v4138_v51, %v14823_v2 }
 0x70b   : > { %v6073_v5 = vmax.f32 %v5253_v28, %v5945_v47  ;;  %v6075_v15 = vmax.f32 %v5255_v48, %v5947_v18  ;;  %v5261_v6 = vmax.f32 %v3784_v63, 0.0  ;;  %v5263_v9 = vmax.f32 %v4137_v27, 0.0  ;;  %4434 = vmatmul.mubr.bf16.gmra.mrb[44].mxu0 %v14629_v45  ;;  %4787 = vmatmul.mubr.bf16.gmra.mrb[44].mxu1 %v14629_v45 }
 0x70c   : > { %v6074_v52 = vmax.f32 %v5254_v29, %v5946_v42  ;;  %v6076_v55 = vmax.f32 %v5256_v38, %v5948_v11  ;;  %v5262_v24 = vmax.f32 %v3786_v19, 0.0  ;;  %v5264_v8 = vmax.f32 %v4139_v53, 0.0  ;;  %4443 = vmatprep.mubr.bf16.mxu0 %v15768_v62  ;;  %4796 = vmatprep.mubr.bf16.mxu1 %v15768_v62 }
 0x70d   : > { %v5953_v25 = vmax.f32 %v5261_v6, %v6073_v5  ;;  %v5955_v41 = vmax.f32 %v5263_v9, %v6075_v15 }
 0x70e   : > { %v5954_v14 = vmax.f32 %v5262_v24, %v6074_v52  ;;  %v5956_v31 = vmax.f32 %v5264_v8, %v6076_v55  ;;  %v3789_v47 = vpop.f32.mrb[196].mxu0  ;;  %v4142_v18 = vpop.f32.mrb[196].mxu1 }
 0x70f   : > { %v3790_v35 = vadd.f32 %v3789_v47, %v14812_v54  ;;  %v4143_v22 = vadd.f32 %v4142_v18, %v14816_v61  ;;  %v3791_v40 = vpop.f32.mrb[197].mxu0  ;;  %v4144_v45 = vpop.f32.mrb[197].mxu1 }
 0x710   : > { %v3792_v42 = vadd.f32 %v3791_v40, %v14819_v46  ;;  %v4145_v11 = vadd.f32 %v4144_v45, %v14823_v2  ;;  %v3793_v39 = vpop.f32.mrb[198].mxu0  ;;  %v4146_v49 = vpop.f32.mrb[198].mxu1 }
 0x711   : > { %v5269_v60 = vmax.f32 %v3790_v35, 0.0  ;;  %v5271_v3 = vmax.f32 %v4143_v22, 0.0  ;;  %v3794_v13 = vadd.f32 %v3793_v39, %v14812_v54  ;;  %v4147_v32 = vadd.f32 %v4146_v49, %v14816_v61  ;;  %v3795_v28 = vpop.f32.mrb[199].mxu0  ;;  %v4148_v48 = vpop.f32.mrb[199].mxu1 }
 0x712   : > { %v5270_v63 = vmax.f32 %v3792_v42, 0.0  ;;  %v5272_v27 = vmax.f32 %v4145_v11, 0.0  ;;  %v3796_v26 = vadd.f32 %v3795_v28, %v14819_v46  ;;  %v4149_v51 = vadd.f32 %v4148_v48, %v14823_v2 }
 0x713   : > { %v6081_v29 = vmax.f32 %v5269_v60, %v5953_v25  ;;  %v6083_v38 = vmax.f32 %v5271_v3, %v5955_v41  ;;  %v5277_v19 = vmax.f32 %v3794_v13, 0.0  ;;  %v5279_v53 = vmax.f32 %v4147_v32, 0.0  ;;  %4444 = vmatmul.mubr.bf16.gmra.mrb[48].mxu0 %v14643_v59  ;;  %4797 = vmatmul.mubr.bf16.gmra.mrb[48].mxu1 %v14643_v59 }
 0x714   : > { %v6082_v5 = vmax.f32 %v5270_v63, %v5954_v14  ;;  %v6084_v15 = vmax.f32 %v5272_v27, %v5956_v31  ;;  %v5278_v6 = vmax.f32 %v3796_v26, 0.0  ;;  %v5280_v9 = vmax.f32 %v4149_v51, 0.0  ;;  %4453 = vmatprep.mubr.bf16.mxu0 %v15768_v62  ;;  %4806 = vmatprep.mubr.bf16.mxu1 %v15768_v62 }
 0x715   : > { %v6145_v52 = vmax.f32 %v5277_v19, %v6081_v29  ;;  %v6147_v55 = vmax.f32 %v5279_v53, %v6083_v38 }
 0x716   : > { %v6146_v24 = vmax.f32 %v5278_v6, %v6082_v5  ;;  %v6148_v8 = vmax.f32 %v5280_v9, %v6084_v15  ;;  %v3799_v25 = vpop.f32.mrb[200].mxu0  ;;  %v4152_v41 = vpop.f32.mrb[200].mxu1 }
 0x717   : > { %v3800_v47 = vadd.f32 %v3799_v25, %v14812_v54  ;;  %v4153_v18 = vadd.f32 %v4152_v41, %v14816_v61  ;;  %v3801_v35 = vpop.f32.mrb[201].mxu0  ;;  %v4154_v59 = vpop.f32.mrb[201].mxu1 }
 0x718   : > { %v3802_v14 = vadd.f32 %v3801_v35, %v14819_v46  ;;  %v4155_v31 = vadd.f32 %v4154_v59, %v14823_v2  ;;  %v3803_v22 = vpop.f32.mrb[202].mxu0  ;;  %v4156_v40 = vpop.f32.mrb[202].mxu1 }
 0x719   : > { %v5285_v45 = vmax.f32 %v3800_v47, 0.0  ;;  %v5287_v42 = vmax.f32 %v4153_v18, 0.0  ;;  %v3804_v11 = vadd.f32 %v3803_v22, %v14812_v54  ;;  %v4157_v39 = vadd.f32 %v4156_v40, %v14816_v61  ;;  %v3805_v49 = vpop.f32.mrb[203].mxu0  ;;  %v4158_v60 = vpop.f32.mrb[203].mxu1 }
 0x71a   : > { %v5286_v3 = vmax.f32 %v3802_v14, 0.0  ;;  %v5288_v13 = vmax.f32 %v4155_v31, 0.0  ;;  %v3806_v32 = vadd.f32 %v3805_v49, %v14819_v46  ;;  %v4159_v28 = vadd.f32 %v4158_v60, %v14823_v2 }
 0x71b   : > { %v5961_v48 = vmax.f32 %v5285_v45, %v6145_v52  ;;  %v5963_v63 = vmax.f32 %v5287_v42, %v6147_v55  ;;  %v5293_v27 = vmax.f32 %v3804_v11, 0.0  ;;  %v5295_v26 = vmax.f32 %v4157_v39, 0.0  ;;  %4454 = vmatmul.mubr.bf16.gmra.mrb[52].mxu0 %v14641_v58  ;;  %4807 = vmatmul.mubr.bf16.gmra.mrb[52].mxu1 %v14641_v58 }
 0x71c   : > { %v5962_v51 = vmax.f32 %v5286_v3, %v6146_v24  ;;  %v5964_v29 = vmax.f32 %v5288_v13, %v6148_v8  ;;  %v5294_v38 = vmax.f32 %v3806_v32, 0.0  ;;  %v5296_v19 = vmax.f32 %v4159_v28, 0.0  ;;  %4463 = vmatprep.mubr.bf16.mxu0 %v15768_v62  ;;  %4816 = vmatprep.mubr.bf16.mxu1 %v15768_v62 }
 0x71d   : > { %v6089_v53 = vmax.f32 %v5293_v27, %v5961_v48  ;;  %v6091_v5 = vmax.f32 %v5295_v26, %v5963_v63 }
 0x71e   : > { %v6090_v15 = vmax.f32 %v5294_v38, %v5962_v51  ;;  %v6092_v6 = vmax.f32 %v5296_v19, %v5964_v29  ;;  %v3809_v9 = vpop.f32.mrb[204].mxu0  ;;  %v4162_v52 = vpop.f32.mrb[204].mxu1 }
 0x71f   : > { %v3810_v55 = vadd.f32 %v3809_v9, %v14812_v54  ;;  %v4163_v25 = vadd.f32 %v4162_v52, %v14816_v61  ;;  %v3811_v41 = vpop.f32.mrb[205].mxu0  ;;  %v4164_v58 = vpop.f32.mrb[205].mxu1 }
 0x720   : > { %v3812_v24 = vadd.f32 %v3811_v41, %v14819_v46  ;;  %v4165_v8 = vadd.f32 %v4164_v58, %v14823_v2  ;;  %v3813_v47 = vpop.f32.mrb[206].mxu0  ;;  %v4166_v18 = vpop.f32.mrb[206].mxu1 }
 0x721   : > { %v5301_v35 = vmax.f32 %v3810_v55, 0.0  ;;  %v5303_v59 = vmax.f32 %v4163_v25, 0.0  ;;  %v3814_v14 = vadd.f32 %v3813_v47, %v14812_v54  ;;  %v4167_v31 = vadd.f32 %v4166_v18, %v14816_v61  ;;  %v3815_v22 = vpop.f32.mrb[207].mxu0  ;;  %v4168_v40 = vpop.f32.mrb[207].mxu1 }
 0x722   : > { %v5302_v45 = vmax.f32 %v3812_v24, 0.0  ;;  %v5304_v42 = vmax.f32 %v4165_v8, 0.0  ;;  %v3816_v11 = vadd.f32 %v3815_v22, %v14819_v46  ;;  %v4169_v39 = vadd.f32 %v4168_v40, %v14823_v2 }
 0x723   : > { %v6153_v49 = vmax.f32 %v5301_v35, %v6089_v53  ;;  %v6155_v60 = vmax.f32 %v5303_v59, %v6091_v5  ;;  %v5309_v3 = vmax.f32 %v3814_v14, 0.0  ;;  %v5311_v13 = vmax.f32 %v4167_v31, 0.0  ;;  %4464 = vmatmul.mubr.bf16.gmra.mrb[56].mxu0 %v14655_v21  ;;  %4817 = vmatmul.mubr.bf16.gmra.mrb[56].mxu1 %v14655_v21 }
 0x724   : > { %v6154_v32 = vmax.f32 %v5302_v45, %v6090_v15  ;;  %v6156_v28 = vmax.f32 %v5304_v42, %v6092_v6  ;;  %v5310_v48 = vmax.f32 %v3816_v11, 0.0  ;;  %v5312_v63 = vmax.f32 %v4169_v39, 0.0  ;;  %4473 = vmatprep.mubr.bf16.mxu0 %v15768_v62  ;;  %4826 = vmatprep.mubr.bf16.mxu1 %v15768_v62 }
 0x725   : > { %v5969_v27 = vmax.f32 %v5309_v3, %v6153_v49  ;;  %v5971_v26 = vmax.f32 %v5311_v13, %v6155_v60 }
 0x726   : > { %v5970_v51 = vmax.f32 %v5310_v48, %v6154_v32  ;;  %v5972_v29 = vmax.f32 %v5312_v63, %v6156_v28  ;;  %v3819_v38 = vpop.f32.mrb[208].mxu0  ;;  %v4172_v19 = vpop.f32.mrb[208].mxu1 }
 0x727   : > { %v3820_v53 = vadd.f32 %v3819_v38, %v14812_v54  ;;  %v4173_v5 = vadd.f32 %v4172_v19, %v14816_v61  ;;  %v3821_v9 = vpop.f32.mrb[209].mxu0  ;;  %v4174_v21 = vpop.f32.mrb[209].mxu1 }
 0x728   : > { %v3822_v15 = vadd.f32 %v3821_v9, %v14819_v46  ;;  %v4175_v6 = vadd.f32 %v4174_v21, %v14823_v2  ;;  %v3823_v52 = vpop.f32.mrb[210].mxu0  ;;  %v4176_v55 = vpop.f32.mrb[210].mxu1 }
 0x729   : > { %v5317_v25 = vmax.f32 %v3820_v53, 0.0  ;;  %v5319_v41 = vmax.f32 %v4173_v5, 0.0  ;;  %v3824_v58 = vadd.f32 %v3823_v52, %v14812_v54  ;;  %v4177_v24 = vadd.f32 %v4176_v55, %v14816_v61  ;;  %v3825_v8 = vpop.f32.mrb[211].mxu0  ;;  %v4178_v47 = vpop.f32.mrb[211].mxu1 }
 0x72a   : > { %v5318_v18 = vmax.f32 %v3822_v15, 0.0  ;;  %v5320_v35 = vmax.f32 %v4175_v6, 0.0  ;;  %v3826_v59 = vadd.f32 %v3825_v8, %v14819_v46  ;;  %v4179_v14 = vadd.f32 %v4178_v47, %v14823_v2 }
 0x72b   : > { %v6097_v31 = vmax.f32 %v5317_v25, %v5969_v27  ;;  %v6099_v22 = vmax.f32 %v5319_v41, %v5971_v26  ;;  %v5325_v40 = vmax.f32 %v3824_v58, 0.0  ;;  %v5327_v45 = vmax.f32 %v4177_v24, 0.0  ;;  %4474 = vmatmul.mubr.bf16.gmra.mrb[60].mxu0 %v14653_v17  ;;  %4827 = vmatmul.mubr.bf16.gmra.mrb[60].mxu1 %v14653_v17 }
 0x72c   : > { %v6098_v42 = vmax.f32 %v5318_v18, %v5970_v51  ;;  %v6100_v11 = vmax.f32 %v5320_v35, %v5972_v29  ;;  %v5326_v39 = vmax.f32 %v3826_v59, 0.0  ;;  %v5328_v49 = vmax.f32 %v4179_v14, 0.0  ;;  %4483 = vmatprep.mubr.bf16.mxu0 %v15768_v62  ;;  %4836 = vmatprep.mubr.bf16.mxu1 %v15768_v62 }
 0x72d   : > { %v6161_v60 = vmax.f32 %v5325_v40, %v6097_v31  ;;  %v6163_v3 = vmax.f32 %v5327_v45, %v6099_v22 }
 0x72e   : > { %v6162_v13 = vmax.f32 %v5326_v39, %v6098_v42  ;;  %v6164_v32 = vmax.f32 %v5328_v49, %v6100_v11  ;;  %v3829_v28 = vpop.f32.mrb[212].mxu0  ;;  %v4182_v48 = vpop.f32.mrb[212].mxu1 }
 0x72f   : > { %v3830_v63 = vadd.f32 %v3829_v28, %v14812_v54  ;;  %v4183_v27 = vadd.f32 %v4182_v48, %v14816_v61  ;;  %v3831_v26 = vpop.f32.mrb[213].mxu0  ;;  %v4184_v17 = vpop.f32.mrb[213].mxu1 }
 0x730   : > { %v3832_v51 = vadd.f32 %v3831_v26, %v14819_v46  ;;  %v4185_v29 = vadd.f32 %v4184_v17, %v14823_v2  ;;  %v3833_v38 = vpop.f32.mrb[214].mxu0  ;;  %v4186_v19 = vpop.f32.mrb[214].mxu1 }
 0x731   : > { %v5333_v53 = vmax.f32 %v3830_v63, 0.0  ;;  %v5335_v5 = vmax.f32 %v4183_v27, 0.0  ;;  %v3834_v9 = vadd.f32 %v3833_v38, %v14812_v54  ;;  %v4187_v21 = vadd.f32 %v4186_v19, %v14816_v61  ;;  %v3835_v15 = vpop.f32.mrb[215].mxu0  ;;  %v4188_v6 = vpop.f32.mrb[215].mxu1 }
 0x732   : > { %v5334_v52 = vmax.f32 %v3832_v51, 0.0  ;;  %v5336_v55 = vmax.f32 %v4185_v29, 0.0  ;;  %v3836_v25 = vadd.f32 %v3835_v15, %v14819_v46  ;;  %v4189_v41 = vadd.f32 %v4188_v6, %v14823_v2 }
 0x733   : > { %v5977_v58 = vmax.f32 %v5333_v53, %v6161_v60  ;;  %v5979_v24 = vmax.f32 %v5335_v5, %v6163_v3  ;;  %v5341_v8 = vmax.f32 %v3834_v9, 0.0  ;;  %v5343_v47 = vmax.f32 %v4187_v21, 0.0  ;;  %4484 = vmatmul.mubr.bf16.gmra.mrb[64].mxu0 %v14667_v44  ;;  %4837 = vmatmul.mubr.bf16.gmra.mrb[64].mxu1 %v14667_v44 }
 0x734   : > { %v5978_v18 = vmax.f32 %v5334_v52, %v6162_v13  ;;  %v5980_v35 = vmax.f32 %v5336_v55, %v6164_v32  ;;  %v5342_v59 = vmax.f32 %v3836_v25, 0.0  ;;  %v5344_v14 = vmax.f32 %v4189_v41, 0.0  ;;  %4493 = vmatprep.mubr.bf16.mxu0 %v15768_v62  ;;  %4846 = vmatprep.mubr.bf16.mxu1 %v15768_v62 }
 0x735   : > { %v6105_v31 = vmax.f32 %v5341_v8, %v5977_v58  ;;  %v6107_v22 = vmax.f32 %v5343_v47, %v5979_v24 }
 0x736   : > { %v6106_v40 = vmax.f32 %v5342_v59, %v5978_v18  ;;  %v6108_v45 = vmax.f32 %v5344_v14, %v5980_v35  ;;  %v3839_v42 = vpop.f32.mrb[216].mxu0  ;;  %v4192_v11 = vpop.f32.mrb[216].mxu1 }
 0x737   : > { %v3840_v39 = vadd.f32 %v3839_v42, %v14812_v54  ;;  %v4193_v49 = vadd.f32 %v4192_v11, %v14816_v61  ;;  %v3841_v60 = vpop.f32.mrb[217].mxu0  ;;  %v4194_v44 = vpop.f32.mrb[217].mxu1 }
 0x738   : > { %v3842_v3 = vadd.f32 %v3841_v60, %v14819_v46  ;;  %v4195_v13 = vadd.f32 %v4194_v44, %v14823_v2  ;;  %v3843_v32 = vpop.f32.mrb[218].mxu0  ;;  %v4196_v28 = vpop.f32.mrb[218].mxu1 }
 0x739   : > { %v5349_v48 = vmax.f32 %v3840_v39, 0.0  ;;  %v5351_v63 = vmax.f32 %v4193_v49, 0.0  ;;  %v3844_v27 = vadd.f32 %v3843_v32, %v14812_v54  ;;  %v4197_v26 = vadd.f32 %v4196_v28, %v14816_v61  ;;  %v3845_v17 = vpop.f32.mrb[219].mxu0  ;;  %v4198_v51 = vpop.f32.mrb[219].mxu1 }
 0x73a   : > { %v5350_v29 = vmax.f32 %v3842_v3, 0.0  ;;  %v5352_v38 = vmax.f32 %v4195_v13, 0.0  ;;  %v3846_v19 = vadd.f32 %v3845_v17, %v14819_v46  ;;  %v4199_v53 = vadd.f32 %v4198_v51, %v14823_v2 }
 0x73b   : > { %v6169_v5 = vmax.f32 %v5349_v48, %v6105_v31  ;;  %v6171_v9 = vmax.f32 %v5351_v63, %v6107_v22  ;;  %v5357_v21 = vmax.f32 %v3844_v27, 0.0  ;;  %v5359_v15 = vmax.f32 %v4197_v26, 0.0  ;;  %4494 = vmatmul.mubr.bf16.gmra.mrb[68].mxu0 %v14665_v33  ;;  %4847 = vmatmul.mubr.bf16.gmra.mrb[68].mxu1 %v14665_v33 }
 0x73c   : > { %v6170_v6 = vmax.f32 %v5350_v29, %v6106_v40  ;;  %v6172_v52 = vmax.f32 %v5352_v38, %v6108_v45  ;;  %v5358_v55 = vmax.f32 %v3846_v19, 0.0  ;;  %v5360_v25 = vmax.f32 %v4199_v53, 0.0  ;;  %4503 = vmatprep.mubr.bf16.mxu0 %v15768_v62  ;;  %4856 = vmatprep.mubr.bf16.mxu1 %v15768_v62 }
 0x73d   : > { %v5985_v41 = vmax.f32 %v5357_v21, %v6169_v5  ;;  %v5987_v58 = vmax.f32 %v5359_v15, %v6171_v9 }
 0x73e   : > { %v5986_v24 = vmax.f32 %v5358_v55, %v6170_v6  ;;  %v5988_v8 = vmax.f32 %v5360_v25, %v6172_v52  ;;  %v3849_v47 = vpop.f32.mrb[220].mxu0  ;;  %v4202_v18 = vpop.f32.mrb[220].mxu1 }
 0x73f   : > { %v3850_v35 = vadd.f32 %v3849_v47, %v14812_v54  ;;  %v4203_v59 = vadd.f32 %v4202_v18, %v14816_v61  ;;  %v3851_v14 = vpop.f32.mrb[221].mxu0  ;;  %v4204_v33 = vpop.f32.mrb[221].mxu1 }
 0x740   : > { %v3852_v31 = vadd.f32 %v3851_v14, %v14819_v46  ;;  %v4205_v22 = vadd.f32 %v4204_v33, %v14823_v2  ;;  %v3853_v40 = vpop.f32.mrb[222].mxu0  ;;  %v4206_v45 = vpop.f32.mrb[222].mxu1 }
 0x741   : > { %v5365_v42 = vmax.f32 %v3850_v35, 0.0  ;;  %v5367_v11 = vmax.f32 %v4203_v59, 0.0  ;;  %v3854_v39 = vadd.f32 %v3853_v40, %v14812_v54  ;;  %v4207_v49 = vadd.f32 %v4206_v45, %v14816_v61  ;;  %v3855_v60 = vpop.f32.mrb[223].mxu0  ;;  %v4208_v44 = vpop.f32.mrb[223].mxu1 }
 0x742   : > { %v5366_v3 = vmax.f32 %v3852_v31, 0.0  ;;  %v5368_v13 = vmax.f32 %v4205_v22, 0.0  ;;  %v3856_v32 = vadd.f32 %v3855_v60, %v14819_v46  ;;  %v4209_v28 = vadd.f32 %v4208_v44, %v14823_v2 }
 0x743   : > { %v6113_v48 = vmax.f32 %v5365_v42, %v5985_v41  ;;  %v6115_v63 = vmax.f32 %v5367_v11, %v5987_v58  ;;  %v5373_v27 = vmax.f32 %v3854_v39, 0.0  ;;  %v5375_v26 = vmax.f32 %v4207_v49, 0.0  ;;  %4504 = vmatmul.mubr.bf16.gmra.mrb[72].mxu0 %v14679_v23  ;;  %4857 = vmatmul.mubr.bf16.gmra.mrb[72].mxu1 %v14679_v23 }
 0x744   : > { %v6114_v17 = vmax.f32 %v5366_v3, %v5986_v24  ;;  %v6116_v51 = vmax.f32 %v5368_v13, %v5988_v8  ;;  %v5374_v29 = vmax.f32 %v3856_v32, 0.0  ;;  %v5376_v38 = vmax.f32 %v4209_v28, 0.0  ;;  %4513 = vmatprep.mubr.bf16.mxu0 %v15768_v62  ;;  %4866 = vmatprep.mubr.bf16.mxu1 %v15768_v62 }
 0x745   : > { %v6177_v19 = vmax.f32 %v5373_v27, %v6113_v48  ;;  %v6179_v53 = vmax.f32 %v5375_v26, %v6115_v63 }
 0x746   : > { %v6178_v5 = vmax.f32 %v5374_v29, %v6114_v17  ;;  %v6180_v9 = vmax.f32 %v5376_v38, %v6116_v51  ;;  %v3859_v21 = vpop.f32.mrb[224].mxu0  ;;  %v4212_v15 = vpop.f32.mrb[224].mxu1 }
 0x747   : > { %v3860_v6 = vadd.f32 %v3859_v21, %v14812_v54  ;;  %v4213_v52 = vadd.f32 %v4212_v15, %v14816_v61  ;;  %v3861_v55 = vpop.f32.mrb[225].mxu0  ;;  %v4214_v23 = vpop.f32.mrb[225].mxu1 }
 0x748   : > { %v3862_v25 = vadd.f32 %v3861_v55, %v14819_v46  ;;  %v4215_v41 = vadd.f32 %v4214_v23, %v14823_v2  ;;  %v3863_v58 = vpop.f32.mrb[226].mxu0  ;;  %v4216_v24 = vpop.f32.mrb[226].mxu1 }
 0x749   : > { %v5381_v8 = vmax.f32 %v3860_v6, 0.0  ;;  %v5383_v47 = vmax.f32 %v4213_v52, 0.0  ;;  %v3864_v18 = vadd.f32 %v3863_v58, %v14812_v54  ;;  %v4217_v35 = vadd.f32 %v4216_v24, %v14816_v61  ;;  %v3865_v59 = vpop.f32.mrb[227].mxu0  ;;  %v4218_v14 = vpop.f32.mrb[227].mxu1 }
 0x74a   : > { %v5382_v33 = vmax.f32 %v3862_v25, 0.0  ;;  %v5384_v31 = vmax.f32 %v4215_v41, 0.0  ;;  %v3866_v22 = vadd.f32 %v3865_v59, %v14819_v46  ;;  %v4219_v40 = vadd.f32 %v4218_v14, %v14823_v2 }
 0x74b   : > { %v6209_v45 = vmax.f32 %v5381_v8, %v6177_v19  ;;  %v6211_v42 = vmax.f32 %v5383_v47, %v6179_v53  ;;  %v5389_v11 = vmax.f32 %v3864_v18, 0.0  ;;  %v5391_v39 = vmax.f32 %v4217_v35, 0.0  ;;  %4514 = vmatmul.mubr.bf16.gmra.mrb[76].mxu0 %v14677_v16  ;;  %4867 = vmatmul.mubr.bf16.gmra.mrb[76].mxu1 %v14677_v16 }
 0x74c   : > { %v6210_v49 = vmax.f32 %v5382_v33, %v6178_v5  ;;  %v6212_v60 = vmax.f32 %v5384_v31, %v6180_v9  ;;  %v5390_v44 = vmax.f32 %v3866_v22, 0.0  ;;  %v5392_v3 = vmax.f32 %v4219_v40, 0.0  ;;  %4523 = vmatprep.mubr.bf16.mxu0 %v15768_v62  ;;  %4876 = vmatprep.mubr.bf16.mxu1 %v15768_v62 }
 0x74d   : > { %v5993_v13 = vmax.f32 %v5389_v11, %v6209_v45  ;;  %v5995_v32 = vmax.f32 %v5391_v39, %v6211_v42 }
 0x74e   : > { %v5994_v28 = vmax.f32 %v5390_v44, %v6210_v49  ;;  %v5996_v48 = vmax.f32 %v5392_v3, %v6212_v60  ;;  %v3869_v63 = vpop.f32.mrb[228].mxu0  ;;  %v4222_v27 = vpop.f32.mrb[228].mxu1 }
 0x74f   : > { %v3870_v26 = vadd.f32 %v3869_v63, %v14812_v54  ;;  %v4223_v17 = vadd.f32 %v4222_v27, %v14816_v61  ;;  %v3871_v51 = vpop.f32.mrb[229].mxu0  ;;  %v4224_v16 = vpop.f32.mrb[229].mxu1 }
 0x750   : > { %v3872_v29 = vadd.f32 %v3871_v51, %v14819_v46  ;;  %v4225_v38 = vadd.f32 %v4224_v16, %v14823_v2  ;;  %v3873_v19 = vpop.f32.mrb[230].mxu0  ;;  %v4226_v53 = vpop.f32.mrb[230].mxu1 }
 0x751   : > { %v5397_v5 = vmax.f32 %v3870_v26, 0.0  ;;  %v5399_v9 = vmax.f32 %v4223_v17, 0.0  ;;  %v3874_v21 = vadd.f32 %v3873_v19, %v14812_v54  ;;  %v4227_v15 = vadd.f32 %v4226_v53, %v14816_v61  ;;  %v3875_v6 = vpop.f32.mrb[231].mxu0  ;;  %v4228_v52 = vpop.f32.mrb[231].mxu1 }
 0x752   : > { %v5398_v55 = vmax.f32 %v3872_v29, 0.0  ;;  %v5400_v23 = vmax.f32 %v4225_v38, 0.0  ;;  %v3876_v25 = vadd.f32 %v3875_v6, %v14819_v46  ;;  %v4229_v41 = vadd.f32 %v4228_v52, %v14823_v2 }
 0x753   : > { %v6121_v58 = vmax.f32 %v5397_v5, %v5993_v13  ;;  %v6123_v24 = vmax.f32 %v5399_v9, %v5995_v32  ;;  %v5405_v8 = vmax.f32 %v3874_v21, 0.0  ;;  %v5407_v47 = vmax.f32 %v4227_v15, 0.0  ;;  %4524 = vmatmul.mubr.bf16.gmra.mrb[80].mxu0 %v14691_v36  ;;  %4877 = vmatmul.mubr.bf16.gmra.mrb[80].mxu1 %v14691_v36 }
 0x754   : > { %v6122_v18 = vmax.f32 %v5398_v55, %v5994_v28  ;;  %v6124_v35 = vmax.f32 %v5400_v23, %v5996_v48  ;;  %v5406_v59 = vmax.f32 %v3876_v25, 0.0  ;;  %v5408_v14 = vmax.f32 %v4229_v41, 0.0  ;;  %4533 = vmatprep.mubr.bf16.mxu0 %v15768_v62  ;;  %4886 = vmatprep.mubr.bf16.mxu1 %v15768_v62 }
 0x755   : > { %v6185_v33 = vmax.f32 %v5405_v8, %v6121_v58  ;;  %v6187_v31 = vmax.f32 %v5407_v47, %v6123_v24 }
 0x756   : > { %v6186_v22 = vmax.f32 %v5406_v59, %v6122_v18  ;;  %v6188_v40 = vmax.f32 %v5408_v14, %v6124_v35  ;;  %v3879_v45 = vpop.f32.mrb[232].mxu0  ;;  %v4232_v42 = vpop.f32.mrb[232].mxu1 }
 0x757   : > { %v3880_v11 = vadd.f32 %v3879_v45, %v14812_v54  ;;  %v4233_v39 = vadd.f32 %v4232_v42, %v14816_v61  ;;  %v3881_v49 = vpop.f32.mrb[233].mxu0  ;;  %v4234_v36 = vpop.f32.mrb[233].mxu1 }
 0x758   : > { %v3882_v60 = vadd.f32 %v3881_v49, %v14819_v46  ;;  %v4235_v44 = vadd.f32 %v4234_v36, %v14823_v2  ;;  %v3883_v3 = vpop.f32.mrb[234].mxu0  ;;  %v4236_v13 = vpop.f32.mrb[234].mxu1 }
 0x759   : > { %v5413_v32 = vmax.f32 %v3880_v11, 0.0  ;;  %v5415_v28 = vmax.f32 %v4233_v39, 0.0  ;;  %v3884_v48 = vadd.f32 %v3883_v3, %v14812_v54  ;;  %v4237_v63 = vadd.f32 %v4236_v13, %v14816_v61  ;;  %v3885_v27 = vpop.f32.mrb[235].mxu0  ;;  %v4238_v26 = vpop.f32.mrb[235].mxu1 }
 0x75a   : > { %v5414_v17 = vmax.f32 %v3882_v60, 0.0  ;;  %v5416_v51 = vmax.f32 %v4235_v44, 0.0  ;;  %v3886_v16 = vadd.f32 %v3885_v27, %v14819_v46  ;;  %v4239_v29 = vadd.f32 %v4238_v26, %v14823_v2 }
 0x75b   : > { %v6217_v38 = vmax.f32 %v5413_v32, %v6185_v33  ;;  %v6219_v19 = vmax.f32 %v5415_v28, %v6187_v31  ;;  %v5421_v53 = vmax.f32 %v3884_v48, 0.0  ;;  %v5423_v5 = vmax.f32 %v4237_v63, 0.0  ;;  %4534 = vmatmul.mubr.bf16.gmra.mrb[84].mxu0 %v14689_v4  ;;  %4887 = vmatmul.mubr.bf16.gmra.mrb[84].mxu1 %v14689_v4 }
 0x75c   : > { %v6218_v9 = vmax.f32 %v5414_v17, %v6186_v22  ;;  %v6220_v21 = vmax.f32 %v5416_v51, %v6188_v40  ;;  %v5422_v15 = vmax.f32 %v3886_v16, 0.0  ;;  %v5424_v6 = vmax.f32 %v4239_v29, 0.0  ;;  %4543 = vmatprep.mubr.bf16.mxu0 %v15768_v62  ;;  %4896 = vmatprep.mubr.bf16.mxu1 %v15768_v62 }
 0x75d   : > { %v6001_v52 = vmax.f32 %v5421_v53, %v6217_v38  ;;  %v6003_v55 = vmax.f32 %v5423_v5, %v6219_v19 }
 0x75e   : > { %v6002_v23 = vmax.f32 %v5422_v15, %v6218_v9  ;;  %v6004_v25 = vmax.f32 %v5424_v6, %v6220_v21  ;;  %v3889_v41 = vpop.f32.mrb[236].mxu0  ;;  %v4242_v58 = vpop.f32.mrb[236].mxu1 }
 0x75f   : > { %v3890_v24 = vadd.f32 %v3889_v41, %v14812_v54  ;;  %v4243_v8 = vadd.f32 %v4242_v58, %v14816_v61  ;;  %v3891_v47 = vpop.f32.mrb[237].mxu0  ;;  %v4244_v4 = vpop.f32.mrb[237].mxu1 }
 0x760   : > { %v3892_v18 = vadd.f32 %v3891_v47, %v14819_v46  ;;  %v4245_v35 = vadd.f32 %v4244_v4, %v14823_v2  ;;  %v3893_v59 = vpop.f32.mrb[238].mxu0  ;;  %v4246_v14 = vpop.f32.mrb[238].mxu1 }
 0x761   : > { %v5429_v33 = vmax.f32 %v3890_v24, 0.0  ;;  %v5431_v31 = vmax.f32 %v4243_v8, 0.0  ;;  %v3894_v22 = vadd.f32 %v3893_v59, %v14812_v54  ;;  %v4247_v40 = vadd.f32 %v4246_v14, %v14816_v61  ;;  %v3895_v45 = vpop.f32.mrb[239].mxu0  ;;  %v4248_v42 = vpop.f32.mrb[239].mxu1 }
 0x762   : > { %v5430_v11 = vmax.f32 %v3892_v18, 0.0  ;;  %v5432_v39 = vmax.f32 %v4245_v35, 0.0  ;;  %v3896_v49 = vadd.f32 %v3895_v45, %v14819_v46  ;;  %v4249_v36 = vadd.f32 %v4248_v42, %v14823_v2 }
 0x763   : > { %v6129_v60 = vmax.f32 %v5429_v33, %v6001_v52  ;;  %v6131_v44 = vmax.f32 %v5431_v31, %v6003_v55  ;;  %v5437_v3 = vmax.f32 %v3894_v22, 0.0  ;;  %v5439_v13 = vmax.f32 %v4247_v40, 0.0  ;;  %4544 = vmatmul.mubr.bf16.gmra.mrb[88].mxu0 %v14703_v12  ;;  %4897 = vmatmul.mubr.bf16.gmra.mrb[88].mxu1 %v14703_v12 }
 0x764   : > { %v6130_v32 = vmax.f32 %v5430_v11, %v6002_v23  ;;  %v6132_v28 = vmax.f32 %v5432_v39, %v6004_v25  ;;  %v5438_v48 = vmax.f32 %v3896_v49, 0.0  ;;  %v5440_v63 = vmax.f32 %v4249_v36, 0.0  ;;  %4553 = vmatprep.mubr.bf16.mxu0 %v15768_v62  ;;  %4906 = vmatprep.mubr.bf16.mxu1 %v15768_v62 }
 0x765   : > { %v6193_v27 = vmax.f32 %v5437_v3, %v6129_v60  ;;  %v6195_v26 = vmax.f32 %v5439_v13, %v6131_v44 }
 0x766   : > { %v6194_v17 = vmax.f32 %v5438_v48, %v6130_v32  ;;  %v6196_v51 = vmax.f32 %v5440_v63, %v6132_v28  ;;  %v3899_v16 = vpop.f32.mrb[240].mxu0  ;;  %v4252_v29 = vpop.f32.mrb[240].mxu1 }
 0x767   : > { %v3900_v38 = vadd.f32 %v3899_v16, %v14812_v54  ;;  %v4253_v19 = vadd.f32 %v4252_v29, %v14816_v61  ;;  %v3901_v53 = vpop.f32.mrb[241].mxu0  ;;  %v4254_v12 = vpop.f32.mrb[241].mxu1 }
 0x768   : > { %v3902_v5 = vadd.f32 %v3901_v53, %v14819_v46  ;;  %v4255_v9 = vadd.f32 %v4254_v12, %v14823_v2  ;;  %v3903_v21 = vpop.f32.mrb[242].mxu0  ;;  %v4256_v15 = vpop.f32.mrb[242].mxu1 }
 0x769   : > { %v5445_v6 = vmax.f32 %v3900_v38, 0.0  ;;  %v5447_v52 = vmax.f32 %v4253_v19, 0.0  ;;  %v3904_v55 = vadd.f32 %v3903_v21, %v14812_v54  ;;  %v4257_v23 = vadd.f32 %v4256_v15, %v14816_v61  ;;  %v3905_v25 = vpop.f32.mrb[243].mxu0  ;;  %v4258_v41 = vpop.f32.mrb[243].mxu1 }
 0x76a   : > { %v5446_v58 = vmax.f32 %v3902_v5, 0.0  ;;  %v5448_v24 = vmax.f32 %v4255_v9, 0.0  ;;  %v3906_v8 = vadd.f32 %v3905_v25, %v14819_v46  ;;  %v4259_v47 = vadd.f32 %v4258_v41, %v14823_v2 }
 0x76b   : > { %v6225_v4 = vmax.f32 %v5445_v6, %v6193_v27  ;;  %v6227_v18 = vmax.f32 %v5447_v52, %v6195_v26  ;;  %v5453_v35 = vmax.f32 %v3904_v55, 0.0  ;;  %v5455_v59 = vmax.f32 %v4257_v23, 0.0  ;;  %4554 = vmatmul.mubr.bf16.gmra.mrb[92].mxu0 %v14701_v10  ;;  %4907 = vmatmul.mubr.bf16.gmra.mrb[92].mxu1 %v14701_v10 }
 0x76c   : > { %v6226_v14 = vmax.f32 %v5446_v58, %v6194_v17  ;;  %v6228_v33 = vmax.f32 %v5448_v24, %v6196_v51  ;;  %v5454_v31 = vmax.f32 %v3906_v8, 0.0  ;;  %v5456_v22 = vmax.f32 %v4259_v47, 0.0  ;;  %4563 = vmatprep.mubr.bf16.mxu0 %v15768_v62  ;;  %4916 = vmatprep.mubr.bf16.mxu1 %v15768_v62 }
 0x76d   : > { %v6241_v40 = vmax.f32 %v5453_v35, %v6225_v4  ;;  %v6243_v45 = vmax.f32 %v5455_v59, %v6227_v18  ;;  %v3243_v18 = vsub.s32 4, %v14797_v1  ;;  %v3251_v35 = vsub.s32 6, %v14797_v1 }
 0x76e   : > { %v6242_v42 = vmax.f32 %v5454_v31, %v6226_v14  ;;  %v6244_v11 = vmax.f32 %v5456_v22, %v6228_v33  ;;  %v3909_v39 = vpop.f32.mrb[244].mxu0  ;;  %v4262_v49 = vpop.f32.mrb[244].mxu1  ;;  %v3247_v22 = vsub.s32 5, %v14797_v1 }
 0x76f   : > { %v3910_v36 = vadd.f32 %v3909_v39, %v14812_v54  ;;  %v4263_v60 = vadd.f32 %v4262_v49, %v14816_v61  ;;  %v3911_v44 = vpop.f32.mrb[245].mxu0  ;;  %v4264_v10 = vpop.f32.mrb[245].mxu1 }
 0x770   : > { %v3912_v3 = vadd.f32 %v3911_v44, %v14819_v46  ;;  %v4265_v13 = vadd.f32 %v4264_v10, %v14823_v2  ;;  %v3913_v32 = vpop.f32.mrb[246].mxu0  ;;  %v4266_v28 = vpop.f32.mrb[246].mxu1 }
 0x771   : > { %v5461_v48 = vmax.f32 %v3910_v36, 0.0  ;;  %v5463_v63 = vmax.f32 %v4263_v60, 0.0  ;;  %v3914_v27 = vadd.f32 %v3913_v32, %v14812_v54  ;;  %v4267_v26 = vadd.f32 %v4266_v28, %v14816_v61  ;;  %v3915_v17 = vpop.f32.mrb[247].mxu0  ;;  %v4268_v51 = vpop.f32.mrb[247].mxu1 }
 0x772   : > { %v5462_v16 = vmax.f32 %v3912_v3, 0.0  ;;  %v5464_v29 = vmax.f32 %v4265_v13, 0.0  ;;  %v3916_v38 = vadd.f32 %v3915_v17, %v14819_v46  ;;  %v4269_v19 = vadd.f32 %v4268_v51, %v14823_v2 }
 0x773   : > { %v6009_v53 = vmax.f32 %v5461_v48, %v6241_v40  ;;  %v6011_v12 = vmax.f32 %v5463_v63, %v6243_v45  ;;  %v5469_v5 = vmax.f32 %v3914_v27, 0.0  ;;  %v5471_v9 = vmax.f32 %v4267_v26, 0.0  ;;  %4564 = vmatmul.mubr.bf16.gmra.mrb[96].mxu0 %v14715_v57  ;;  %4917 = vmatmul.mubr.bf16.gmra.mrb[96].mxu1 %v14715_v57 }
 0x774   : > { %v6010_v21 = vmax.f32 %v5462_v16, %v6242_v42  ;;  %v6012_v15 = vmax.f32 %v5464_v29, %v6244_v11  ;;  %v5470_v6 = vmax.f32 %v3916_v38, 0.0  ;;  %v5472_v52 = vmax.f32 %v4269_v19, 0.0  ;;  %4573 = vmatprep.mubr.bf16.mxu0 %v15768_v62  ;;  %4926 = vmatprep.mubr.bf16.mxu1 %v15768_v62 }
 0x775   : > { %v6137_v55 = vmax.f32 %v5469_v5, %v6009_v53  ;;  %v6139_v23 = vmax.f32 %v5471_v9, %v6011_v12  ;;  %v3255_v40 = vsub.s32 7, %v14797_v1 }
 0x776   : > { %v6138_v25 = vmax.f32 %v5470_v6, %v6010_v21  ;;  %v6140_v41 = vmax.f32 %v5472_v52, %v6012_v15  ;;  %v3919_v58 = vpop.f32.mrb[248].mxu0  ;;  %v4272_v24 = vpop.f32.mrb[248].mxu1  ;;  %v12080_v21 = vld [vmem:[#allocation21] sm:$0xff] }
 0x777   : > { %v3920_v8 = vadd.f32 %v3919_v58, %v14812_v54  ;;  %v4273_v47 = vadd.f32 %v4272_v24, %v14816_v61  ;;  %v3921_v4 = vpop.f32.mrb[249].mxu0  ;;  %v4274_v57 = vpop.f32.mrb[249].mxu1  ;;  %v15205_v15 = vrot.slane %v12080_v21, %v3243_v18  ;;  %v15207_v6 = vrot.slane %v12080_v21, %v3251_v35 }
 0x778   : > { %v3922_v59 = vadd.f32 %v3921_v4, %v14819_v46  ;;  %v4275_v14 = vadd.f32 %v4274_v57, %v14823_v2  ;;  %v3923_v33 = vpop.f32.mrb[250].mxu0  ;;  %v4276_v31 = vpop.f32.mrb[250].mxu1  ;;  %v15213_v58 = vrot.slane %v12080_v21, %v3255_v40 }
 0x779   : > { %v5477_v45 = vmax.f32 %v3920_v8, 0.0  ;;  %v5479_v42 = vmax.f32 %v4273_v47, 0.0  ;;  %v3924_v11 = vadd.f32 %v3923_v33, %v14812_v54  ;;  %v4277_v39 = vadd.f32 %v4276_v31, %v14816_v61  ;;  %v3925_v49 = vpop.f32.mrb[251].mxu0  ;;  %v4278_v36 = vpop.f32.mrb[251].mxu1 }
 0x77a   : > { %v5478_v60 = vmax.f32 %v3922_v59, 0.0  ;;  %v5480_v44 = vmax.f32 %v4275_v14, 0.0  ;;  %v3926_v10 = vadd.f32 %v3925_v49, %v14819_v46  ;;  %v4279_v3 = vadd.f32 %v4278_v36, %v14823_v2 }
 0x77b   : > { %v6201_v13 = vmax.f32 %v5477_v45, %v6137_v55  ;;  %v6203_v32 = vmax.f32 %v5479_v42, %v6139_v23  ;;  %v5485_v28 = vmax.f32 %v3924_v11, 0.0  ;;  %v5487_v48 = vmax.f32 %v4277_v39, 0.0  ;;  %4574 = vmatmul.mubr.bf16.gmra.mrb[100].mxu0 %v14713_v56  ;;  %4927 = vmatmul.mubr.bf16.gmra.mrb[100].mxu1 %v14713_v56 }
 0x77c   : > { %v6202_v63 = vmax.f32 %v5478_v60, %v6138_v25  ;;  %v6204_v27 = vmax.f32 %v5480_v44, %v6140_v41  ;;  %v5486_v26 = vmax.f32 %v3926_v10, 0.0  ;;  %v5488_v17 = vmax.f32 %v4279_v3, 0.0  ;;  %4583 = vmatprep.mubr.bf16.mxu0 %v15768_v62  ;;  %4936 = vmatprep.mubr.bf16.mxu1 %v15768_v62 }
 0x77d   : > { %v6233_v51 = vmax.f32 %v5485_v28, %v6201_v13  ;;  %v6235_v16 = vmax.f32 %v5487_v48, %v6203_v32  ;;  %v15211_v41 = vrot.slane %v12080_v21, %v3247_v22 }
 0x77e   : > { %v6234_v29 = vmax.f32 %v5486_v26, %v6202_v63  ;;  %v6236_v38 = vmax.f32 %v5488_v17, %v6204_v27  ;;  %v3929_v19 = vpop.f32.mrb[252].mxu0  ;;  %v4282_v53 = vpop.f32.mrb[252].mxu1 }
 0x77f   : > { %v3930_v12 = vadd.f32 %v3929_v19, %v14812_v54  ;;  %v4283_v5 = vadd.f32 %v4282_v53, %v14816_v61  ;;  %v3931_v9 = vpop.f32.mrb[253].mxu0  ;;  %v4284_v56 = vpop.f32.mrb[253].mxu1 }
 0x780   : > { %v3932_v52 = vadd.f32 %v3931_v9, %v14819_v46  ;;  %v4285_v55 = vadd.f32 %v4284_v56, %v14823_v2  ;;  %v3933_v23 = vpop.f32.mrb[254].mxu0  ;;  %v4286_v25 = vpop.f32.mrb[254].mxu1 }
 0x781   : > { %v5493_v24 = vmax.f32 %v3930_v12, 0.0  ;;  %v5495_v8 = vmax.f32 %v4283_v5, 0.0  ;;  %v3934_v47 = vadd.f32 %v3933_v23, %v14812_v54  ;;  %v4287_v4 = vadd.f32 %v4286_v25, %v14816_v61  ;;  %v3935_v57 = vpop.f32.mrb[255].mxu0  ;;  %v4288_v18 = vpop.f32.mrb[255].mxu1 }
 0x782   : > { %v5494_v35 = vmax.f32 %v3932_v52, 0.0  ;;  %v5496_v59 = vmax.f32 %v4285_v55, 0.0  ;;  %v3936_v14 = vadd.f32 %v3935_v57, %v14819_v46  ;;  %v4289_v33 = vadd.f32 %v4288_v18, %v14823_v2 }
 0x783   : > { %v6249_v31 = vmax.f32 %v5493_v24, %v6233_v51  ;;  %v6251_v45 = vmax.f32 %v5495_v8, %v6235_v16  ;;  %v5501_v22 = vmax.f32 %v3934_v47, 0.0  ;;  %v5503_v42 = vmax.f32 %v4287_v4, 0.0  ;;  %4584 = vmatmul.mubr.bf16.gmra.mrb[104].mxu0 %v14727_v34  ;;  %4937 = vmatmul.mubr.bf16.gmra.mrb[104].mxu1 %v14727_v34 }
 0x784   : > { %v6250_v40 = vmax.f32 %v5494_v35, %v6234_v29  ;;  %v6252_v54 = vmax.f32 %v5496_v59, %v6236_v38  ;;  %v5502_v11 = vmax.f32 %v3936_v14, 0.0  ;;  %v5504_v61 = vmax.f32 %v4289_v33, 0.0  ;;  %4593 = vmatprep.mubr.bf16.mxu0 %v15768_v62  ;;  %4946 = vmatprep.mubr.bf16.mxu1 %v15768_v62 }
 0x785   : > { %v15223_v39 = vmax.f32 %v5501_v22, %v6249_v31  ;;  %v15225_v46 = vmax.f32 %v5503_v42, %v6251_v45 }
 0x786   : > { %v15227_v2 = vmax.f32 %v5502_v11, %v6250_v40  ;;  %v15229_v49 = vmax.f32 %v5504_v61, %v6252_v54  ;;  %v4325_v36 = vpop.f32.mrb[0].mxu0  ;;  %v4678_v60 = vpop.f32.mrb[0].mxu1 }
 0x787   : > { %v4326_v34 = vadd.f32 %v4325_v36, %v15205_v15  ;;  %v4679_v44 = vadd.f32 %v4678_v60, %v15207_v6  ;;  %v4327_v10 = vpop.f32.mrb[1].mxu0  ;;  %v4680_v3 = vpop.f32.mrb[1].mxu1  ;;  %6273 = vst [vmem:[#allocation6] sm:$0xff] (!%p10787_p6), %v15223_v39  ;;  %6275 = vst [vmem:[#allocation6 + $0x10] sm:$0xff] (!%p10787_p6), %v15225_v46 }
 0x788   : > { %v4328_v13 = vadd.f32 %v4327_v10, %v15211_v41  ;;  %v4681_v32 = vadd.f32 %v4680_v3, %v15213_v58  ;;  %v4329_v28 = vpop.f32.mrb[2].mxu0  ;;  %v4682_v48 = vpop.f32.mrb[2].mxu1  ;;  %6274 = vst [vmem:[#allocation6 + $0x8] sm:$0xff] (!%p10787_p6), %v15227_v2  ;;  %6276 = vst [vmem:[#allocation6 + $0x18] sm:$0xff] (!%p10787_p6), %v15229_v49 }
 0x789   : > { %v4330_v63 = vadd.f32 %v4329_v28, %v15205_v15  ;;  %v4683_v27 = vadd.f32 %v4682_v48, %v15207_v6  ;;  %v4331_v26 = vpop.f32.mrb[3].mxu0  ;;  %v4684_v17 = vpop.f32.mrb[3].mxu1  ;;  %v5001_v29 = vmax.f32 %v4326_v34, 0.0  ;;  %v5003_v38 = vmax.f32 %v4679_v44, 0.0 }
 0x78a   : > { %v4332_v51 = vadd.f32 %v4331_v26, %v15211_v41  ;;  %v4685_v16 = vadd.f32 %v4684_v17, %v15213_v58  ;;  %v5002_v12 = vmax.f32 %v4328_v13, 0.0  ;;  %v5004_v5 = vmax.f32 %v4681_v32, 0.0 }
 0x78b   : > { %v5009_v19 = vmax.f32 %v4330_v63, 0.0  ;;  %v5011_v53 = vmax.f32 %v4683_v27, 0.0  ;;  %4594 = vmatmul.mubr.bf16.gmra.mrb[108].mxu0 %v14725_v30  ;;  %4947 = vmatmul.mubr.bf16.gmra.mrb[108].mxu1 %v14725_v30 }
 0x78c   : > { %v5010_v9 = vmax.f32 %v4332_v51, 0.0  ;;  %v5012_v56 = vmax.f32 %v4685_v16, 0.0  ;;  %4603 = vmatprep.mubr.bf16.mxu0 %v15768_v62  ;;  %4956 = vmatprep.mubr.bf16.mxu1 %v15768_v62 }
 0x78d   : > { %v5765_v21 = vmax.f32 %v5001_v29, %v5009_v19  ;;  %v5767_v52 = vmax.f32 %v5003_v38, %v5011_v53 }
 0x78e   : > { %v5766_v55 = vmax.f32 %v5002_v12, %v5010_v9  ;;  %v5768_v23 = vmax.f32 %v5004_v5, %v5012_v56  ;;  %v4335_v25 = vpop.f32.mrb[4].mxu0  ;;  %v4688_v24 = vpop.f32.mrb[4].mxu1 }
 0x78f   : > { %v4336_v8 = vadd.f32 %v4335_v25, %v15205_v15  ;;  %v4689_v47 = vadd.f32 %v4688_v24, %v15207_v6  ;;  %v4337_v4 = vpop.f32.mrb[5].mxu0  ;;  %v4690_v30 = vpop.f32.mrb[5].mxu1 }
 0x790   : > { %v4338_v57 = vadd.f32 %v4337_v4, %v15211_v41  ;;  %v4691_v18 = vadd.f32 %v4690_v30, %v15213_v58  ;;  %v4339_v35 = vpop.f32.mrb[6].mxu0  ;;  %v4692_v59 = vpop.f32.mrb[6].mxu1 }
 0x791   : > { %v5017_v14 = vmax.f32 %v4336_v8, 0.0  ;;  %v5019_v33 = vmax.f32 %v4689_v47, 0.0  ;;  %v4340_v31 = vadd.f32 %v4339_v35, %v15205_v15  ;;  %v4693_v45 = vadd.f32 %v4692_v59, %v15207_v6  ;;  %v4341_v22 = vpop.f32.mrb[7].mxu0  ;;  %v4694_v42 = vpop.f32.mrb[7].mxu1 }
 0x792   : > { %v5018_v40 = vmax.f32 %v4338_v57, 0.0  ;;  %v5020_v54 = vmax.f32 %v4691_v18, 0.0  ;;  %v4342_v11 = vadd.f32 %v4341_v22, %v15211_v41  ;;  %v4695_v61 = vadd.f32 %v4694_v42, %v15213_v58 }
 0x793   : > { %v5773_v36 = vmax.f32 %v5017_v14, %v5765_v21  ;;  %v5775_v60 = vmax.f32 %v5019_v33, %v5767_v52  ;;  %v5025_v34 = vmax.f32 %v4340_v31, 0.0  ;;  %v5027_v44 = vmax.f32 %v4693_v45, 0.0  ;;  %4604 = vmatmul.mubr.bf16.gmra.mrb[112].mxu0 %v14739_v37  ;;  %4957 = vmatmul.mubr.bf16.gmra.mrb[112].mxu1 %v14739_v37 }
 0x794   : > { %v5774_v10 = vmax.f32 %v5018_v40, %v5766_v55  ;;  %v5776_v3 = vmax.f32 %v5020_v54, %v5768_v23  ;;  %v5026_v13 = vmax.f32 %v4342_v11, 0.0  ;;  %v5028_v32 = vmax.f32 %v4695_v61, 0.0  ;;  %4613 = vmatprep.mubr.bf16.mxu0 %v15768_v62  ;;  %4966 = vmatprep.mubr.bf16.mxu1 %v15768_v62 }
 0x795   : > { %v5781_v28 = vmax.f32 %v5025_v34, %v5773_v36  ;;  %v5783_v48 = vmax.f32 %v5027_v44, %v5775_v60 }
 0x796   : > { %v5782_v63 = vmax.f32 %v5026_v13, %v5774_v10  ;;  %v5784_v27 = vmax.f32 %v5028_v32, %v5776_v3  ;;  %v4345_v26 = vpop.f32.mrb[8].mxu0  ;;  %v4698_v17 = vpop.f32.mrb[8].mxu1 }
 0x797   : > { %v4346_v51 = vadd.f32 %v4345_v26, %v15205_v15  ;;  %v4699_v16 = vadd.f32 %v4698_v17, %v15207_v6  ;;  %v4347_v29 = vpop.f32.mrb[9].mxu0  ;;  %v4700_v37 = vpop.f32.mrb[9].mxu1 }
 0x798   : > { %v4348_v38 = vadd.f32 %v4347_v29, %v15211_v41  ;;  %v4701_v19 = vadd.f32 %v4700_v37, %v15213_v58  ;;  %v4349_v53 = vpop.f32.mrb[10].mxu0  ;;  %v4702_v12 = vpop.f32.mrb[10].mxu1 }
 0x799   : > { %v5033_v5 = vmax.f32 %v4346_v51, 0.0  ;;  %v5035_v9 = vmax.f32 %v4699_v16, 0.0  ;;  %v4350_v56 = vadd.f32 %v4349_v53, %v15205_v15  ;;  %v4703_v21 = vadd.f32 %v4702_v12, %v15207_v6  ;;  %v4351_v52 = vpop.f32.mrb[11].mxu0  ;;  %v4704_v55 = vpop.f32.mrb[11].mxu1 }
 0x79a   : > { %v5034_v23 = vmax.f32 %v4348_v38, 0.0  ;;  %v5036_v25 = vmax.f32 %v4701_v19, 0.0  ;;  %v4352_v24 = vadd.f32 %v4351_v52, %v15211_v41  ;;  %v4705_v8 = vadd.f32 %v4704_v55, %v15213_v58 }
 0x79b   : > { %v5789_v47 = vmax.f32 %v5033_v5, %v5781_v28  ;;  %v5791_v4 = vmax.f32 %v5035_v9, %v5783_v48  ;;  %v5041_v30 = vmax.f32 %v4350_v56, 0.0  ;;  %v5043_v57 = vmax.f32 %v4703_v21, 0.0  ;;  %4614 = vmatmul.mubr.bf16.gmra.mrb[116].mxu0 %v14737_v0  ;;  %4967 = vmatmul.mubr.bf16.gmra.mrb[116].mxu1 %v14737_v0 }
 0x79c   : > { %v5790_v18 = vmax.f32 %v5034_v23, %v5782_v63  ;;  %v5792_v35 = vmax.f32 %v5036_v25, %v5784_v27  ;;  %v5042_v59 = vmax.f32 %v4352_v24, 0.0  ;;  %v5044_v14 = vmax.f32 %v4705_v8, 0.0  ;;  %4623 = vmatprep.mubr.bf16.mxu0 %v15768_v62  ;;  %4976 = vmatprep.mubr.bf16.mxu1 %v15768_v62 }
 0x79d   : > { %v5797_v33 = vmax.f32 %v5041_v30, %v5789_v47  ;;  %v5799_v31 = vmax.f32 %v5043_v57, %v5791_v4 }
 0x79e   : > { %v5798_v45 = vmax.f32 %v5042_v59, %v5790_v18  ;;  %v5800_v22 = vmax.f32 %v5044_v14, %v5792_v35  ;;  %v4355_v42 = vpop.f32.mrb[12].mxu0  ;;  %v4708_v40 = vpop.f32.mrb[12].mxu1 }
 0x79f   : > { %v4356_v54 = vadd.f32 %v4355_v42, %v15205_v15  ;;  %v4709_v11 = vadd.f32 %v4708_v40, %v15207_v6  ;;  %v4357_v61 = vpop.f32.mrb[13].mxu0  ;;  %v4710_v0 = vpop.f32.mrb[13].mxu1 }
 0x7a0   : > { %v4358_v36 = vadd.f32 %v4357_v61, %v15211_v41  ;;  %v4711_v60 = vadd.f32 %v4710_v0, %v15213_v58  ;;  %v4359_v34 = vpop.f32.mrb[14].mxu0  ;;  %v4712_v44 = vpop.f32.mrb[14].mxu1 }
 0x7a1   : > { %v5049_v10 = vmax.f32 %v4356_v54, 0.0  ;;  %v5051_v3 = vmax.f32 %v4709_v11, 0.0  ;;  %v4360_v13 = vadd.f32 %v4359_v34, %v15205_v15  ;;  %v4713_v32 = vadd.f32 %v4712_v44, %v15207_v6  ;;  %v4361_v28 = vpop.f32.mrb[15].mxu0  ;;  %v4714_v48 = vpop.f32.mrb[15].mxu1 }
 0x7a2   : > { %v5050_v63 = vmax.f32 %v4358_v36, 0.0  ;;  %v5052_v27 = vmax.f32 %v4711_v60, 0.0  ;;  %v4362_v26 = vadd.f32 %v4361_v28, %v15211_v41  ;;  %v4715_v17 = vadd.f32 %v4714_v48, %v15213_v58 }
 0x7a3   : > { %v5805_v51 = vmax.f32 %v5049_v10, %v5797_v33  ;;  %v5807_v16 = vmax.f32 %v5051_v3, %v5799_v31  ;;  %v5057_v29 = vmax.f32 %v4360_v13, 0.0  ;;  %v5059_v37 = vmax.f32 %v4713_v32, 0.0  ;;  %4624 = vmatmul.mubr.bf16.gmra.mrb[120].mxu0 %v14751_v50  ;;  %4977 = vmatmul.mubr.bf16.gmra.mrb[120].mxu1 %v14751_v50 }
 0x7a4   : > { %v5806_v38 = vmax.f32 %v5050_v63, %v5798_v45  ;;  %v5808_v19 = vmax.f32 %v5052_v27, %v5800_v22  ;;  %v5058_v53 = vmax.f32 %v4362_v26, 0.0  ;;  %v5060_v12 = vmax.f32 %v4715_v17, 0.0  ;;  %4633 = vmatprep.mubr.bf16.mxu0 %v15768_v62  ;;  %4986 = vmatprep.mubr.bf16.mxu1 %v15768_v62 }
 0x7a5   : > { %v5813_v5 = vmax.f32 %v5057_v29, %v5805_v51  ;;  %v5815_v9 = vmax.f32 %v5059_v37, %v5807_v16 }
 0x7a6   : > { %v5814_v56 = vmax.f32 %v5058_v53, %v5806_v38  ;;  %v5816_v21 = vmax.f32 %v5060_v12, %v5808_v19  ;;  %v4365_v52 = vpop.f32.mrb[16].mxu0  ;;  %v4718_v55 = vpop.f32.mrb[16].mxu1 }
 0x7a7   : > { %v4366_v23 = vadd.f32 %v4365_v52, %v15205_v15  ;;  %v4719_v25 = vadd.f32 %v4718_v55, %v15207_v6  ;;  %v4367_v24 = vpop.f32.mrb[17].mxu0  ;;  %v4720_v50 = vpop.f32.mrb[17].mxu1 }
 0x7a8   : > { %v4368_v8 = vadd.f32 %v4367_v24, %v15211_v41  ;;  %v4721_v47 = vadd.f32 %v4720_v50, %v15213_v58  ;;  %v4369_v4 = vpop.f32.mrb[18].mxu0  ;;  %v4722_v30 = vpop.f32.mrb[18].mxu1 }
 0x7a9   : > { %v5065_v57 = vmax.f32 %v4366_v23, 0.0  ;;  %v5067_v62 = vmax.f32 %v4719_v25, 0.0  ;;  %v4370_v18 = vadd.f32 %v4369_v4, %v15205_v15  ;;  %v4723_v35 = vadd.f32 %v4722_v30, %v15207_v6  ;;  %v4371_v59 = vpop.f32.mrb[19].mxu0  ;;  %v4724_v14 = vpop.f32.mrb[19].mxu1 }
 0x7aa   : > { %v5066_v33 = vmax.f32 %v4368_v8, 0.0  ;;  %v5068_v31 = vmax.f32 %v4721_v47, 0.0  ;;  %v4372_v45 = vadd.f32 %v4371_v59, %v15211_v41  ;;  %v4725_v22 = vadd.f32 %v4724_v14, %v15213_v58 }
 0x7ab   : > { %v5821_v42 = vmax.f32 %v5065_v57, %v5813_v5  ;;  %v5823_v40 = vmax.f32 %v5067_v62, %v5815_v9  ;;  %v5073_v54 = vmax.f32 %v4370_v18, 0.0  ;;  %v5075_v11 = vmax.f32 %v4723_v35, 0.0  ;;  %4634 = vmatmul.mubr.bf16.gmra.mrb[124].mxu0 %v14749_v43  ;;  %4987 = vmatmul.mubr.bf16.gmra.mrb[124].mxu1 %v14749_v43 }
 0x7ac   : > { %v5822_v61 = vmax.f32 %v5066_v33, %v5814_v56  ;;  %v5824_v0 = vmax.f32 %v5068_v31, %v5816_v21  ;;  %v5074_v36 = vmax.f32 %v4372_v45, 0.0  ;;  %v5076_v60 = vmax.f32 %v4725_v22, 0.0 }
 0x7ad   : > { %v5829_v34 = vmax.f32 %v5073_v54, %v5821_v42  ;;  %v5831_v44 = vmax.f32 %v5075_v11, %v5823_v40 }
 0x7ae   : > { %v5830_v10 = vmax.f32 %v5074_v36, %v5822_v61  ;;  %v5832_v3 = vmax.f32 %v5076_v60, %v5824_v0  ;;  %v4375_v13 = vpop.f32.mrb[20].mxu0  ;;  %v4728_v32 = vpop.f32.mrb[20].mxu1 }
 0x7af   : > { %v4376_v28 = vadd.f32 %v4375_v13, %v15205_v15  ;;  %v4729_v48 = vadd.f32 %v4728_v32, %v15207_v6  ;;  %v4377_v63 = vpop.f32.mrb[21].mxu0  ;;  %v4730_v27 = vpop.f32.mrb[21].mxu1 }
 0x7b0   : > { %v4378_v26 = vadd.f32 %v4377_v63, %v15211_v41  ;;  %v4731_v43 = vadd.f32 %v4730_v27, %v15213_v58  ;;  %v4379_v17 = vpop.f32.mrb[22].mxu0  ;;  %v4732_v51 = vpop.f32.mrb[22].mxu1 }
 0x7b1   : > { %v5081_v16 = vmax.f32 %v4376_v28, 0.0  ;;  %v5083_v29 = vmax.f32 %v4729_v48, 0.0  ;;  %v4380_v37 = vadd.f32 %v4379_v17, %v15205_v15  ;;  %v4733_v38 = vadd.f32 %v4732_v51, %v15207_v6  ;;  %v4381_v19 = vpop.f32.mrb[23].mxu0  ;;  %v4734_v53 = vpop.f32.mrb[23].mxu1 }
 0x7b2   : > { %v5082_v12 = vmax.f32 %v4378_v26, 0.0  ;;  %v5084_v5 = vmax.f32 %v4731_v43, 0.0  ;;  %v4382_v9 = vadd.f32 %v4381_v19, %v15211_v41  ;;  %v4735_v56 = vadd.f32 %v4734_v53, %v15213_v58 }
 0x7b3   : > { %v5837_v21 = vmax.f32 %v5081_v16, %v5829_v34  ;;  %v5839_v52 = vmax.f32 %v5083_v29, %v5831_v44  ;;  %v5089_v55 = vmax.f32 %v4380_v37, 0.0  ;;  %v5091_v23 = vmax.f32 %v4733_v38, 0.0 }
 0x7b4   : > { %v5838_v25 = vmax.f32 %v5082_v12, %v5830_v10  ;;  %v5840_v24 = vmax.f32 %v5084_v5, %v5832_v3  ;;  %v5090_v50 = vmax.f32 %v4382_v9, 0.0  ;;  %v5092_v8 = vmax.f32 %v4735_v56, 0.0 }
 0x7b5   : > { %v5845_v47 = vmax.f32 %v5089_v55, %v5837_v21  ;;  %v5847_v4 = vmax.f32 %v5091_v23, %v5839_v52 }
 0x7b6   : > { %v5846_v30 = vmax.f32 %v5090_v50, %v5838_v25  ;;  %v5848_v57 = vmax.f32 %v5092_v8, %v5840_v24  ;;  %v4385_v62 = vpop.f32.mrb[24].mxu0  ;;  %v4738_v18 = vpop.f32.mrb[24].mxu1 }
 0x7b7   : > { %v4386_v35 = vadd.f32 %v4385_v62, %v15205_v15  ;;  %v4739_v59 = vadd.f32 %v4738_v18, %v15207_v6  ;;  %v4387_v14 = vpop.f32.mrb[25].mxu0  ;;  %v4740_v33 = vpop.f32.mrb[25].mxu1 }
 0x7b8   : > { %v4388_v31 = vadd.f32 %v4387_v14, %v15211_v41  ;;  %v4741_v45 = vadd.f32 %v4740_v33, %v15213_v58  ;;  %v4389_v22 = vpop.f32.mrb[26].mxu0  ;;  %v4742_v42 = vpop.f32.mrb[26].mxu1 }
 0x7b9   : > { %v5097_v40 = vmax.f32 %v4386_v35, 0.0  ;;  %v5099_v54 = vmax.f32 %v4739_v59, 0.0  ;;  %v4390_v11 = vadd.f32 %v4389_v22, %v15205_v15  ;;  %v4743_v61 = vadd.f32 %v4742_v42, %v15207_v6  ;;  %v4391_v0 = vpop.f32.mrb[27].mxu0  ;;  %v4744_v36 = vpop.f32.mrb[27].mxu1 }
 0x7ba   : > { %v5098_v60 = vmax.f32 %v4388_v31, 0.0  ;;  %v5100_v34 = vmax.f32 %v4741_v45, 0.0  ;;  %v4392_v44 = vadd.f32 %v4391_v0, %v15211_v41  ;;  %v4745_v10 = vadd.f32 %v4744_v36, %v15213_v58 }
 0x7bb   : > { %v5853_v3 = vmax.f32 %v5097_v40, %v5845_v47  ;;  %v5855_v13 = vmax.f32 %v5099_v54, %v5847_v4  ;;  %v5105_v32 = vmax.f32 %v4390_v11, 0.0  ;;  %v5107_v28 = vmax.f32 %v4743_v61, 0.0 }
 0x7bc   : > { %v5854_v48 = vmax.f32 %v5098_v60, %v5846_v30  ;;  %v5856_v63 = vmax.f32 %v5100_v34, %v5848_v57  ;;  %v5106_v27 = vmax.f32 %v4392_v44, 0.0  ;;  %v5108_v26 = vmax.f32 %v4745_v10, 0.0 }
 0x7bd   : > { %v5861_v43 = vmax.f32 %v5105_v32, %v5853_v3  ;;  %v5863_v17 = vmax.f32 %v5107_v28, %v5855_v13 }
 0x7be   : > { %v5862_v51 = vmax.f32 %v5106_v27, %v5854_v48  ;;  %v5864_v16 = vmax.f32 %v5108_v26, %v5856_v63  ;;  %v4395_v29 = vpop.f32.mrb[28].mxu0  ;;  %v4748_v37 = vpop.f32.mrb[28].mxu1 }
 0x7bf   : > { %v4396_v38 = vadd.f32 %v4395_v29, %v15205_v15  ;;  %v4749_v19 = vadd.f32 %v4748_v37, %v15207_v6  ;;  %v4397_v53 = vpop.f32.mrb[29].mxu0  ;;  %v4750_v12 = vpop.f32.mrb[29].mxu1 }
 0x7c0   : > { %v4398_v5 = vadd.f32 %v4397_v53, %v15211_v41  ;;  %v4751_v9 = vadd.f32 %v4750_v12, %v15213_v58  ;;  %v4399_v56 = vpop.f32.mrb[30].mxu0  ;;  %v4752_v21 = vpop.f32.mrb[30].mxu1 }
 0x7c1   : > { %v5113_v52 = vmax.f32 %v4396_v38, 0.0  ;;  %v5115_v55 = vmax.f32 %v4749_v19, 0.0  ;;  %v4400_v23 = vadd.f32 %v4399_v56, %v15205_v15  ;;  %v4753_v25 = vadd.f32 %v4752_v21, %v15207_v6  ;;  %v4401_v24 = vpop.f32.mrb[31].mxu0  ;;  %v4754_v50 = vpop.f32.mrb[31].mxu1 }
 0x7c2   : > { %v5114_v8 = vmax.f32 %v4398_v5, 0.0  ;;  %v5116_v47 = vmax.f32 %v4751_v9, 0.0  ;;  %v4402_v4 = vadd.f32 %v4401_v24, %v15211_v41  ;;  %v4755_v30 = vadd.f32 %v4754_v50, %v15213_v58 }
 0x7c3   : > { %v5869_v57 = vmax.f32 %v5113_v52, %v5861_v43  ;;  %v5871_v62 = vmax.f32 %v5115_v55, %v5863_v17  ;;  %v5121_v18 = vmax.f32 %v4400_v23, 0.0  ;;  %v5123_v35 = vmax.f32 %v4753_v25, 0.0 }
 0x7c4   : > { %v5870_v59 = vmax.f32 %v5114_v8, %v5862_v51  ;;  %v5872_v14 = vmax.f32 %v5116_v47, %v5864_v16  ;;  %v5122_v33 = vmax.f32 %v4402_v4, 0.0  ;;  %v5124_v31 = vmax.f32 %v4755_v30, 0.0 }
 0x7c5   : > { %v5877_v45 = vmax.f32 %v5121_v18, %v5869_v57  ;;  %v5879_v22 = vmax.f32 %v5123_v35, %v5871_v62 }
 0x7c6   : > { %v5878_v42 = vmax.f32 %v5122_v33, %v5870_v59  ;;  %v5880_v40 = vmax.f32 %v5124_v31, %v5872_v14  ;;  %v4405_v54 = vpop.f32.mrb[32].mxu0  ;;  %v4758_v11 = vpop.f32.mrb[32].mxu1 }
 0x7c7   : > { %v4406_v61 = vadd.f32 %v4405_v54, %v15205_v15  ;;  %v4759_v0 = vadd.f32 %v4758_v11, %v15207_v6  ;;  %v4407_v36 = vpop.f32.mrb[33].mxu0  ;;  %v4760_v60 = vpop.f32.mrb[33].mxu1 }
 0x7c8   : > { %v4408_v34 = vadd.f32 %v4407_v36, %v15211_v41  ;;  %v4761_v44 = vadd.f32 %v4760_v60, %v15213_v58  ;;  %v4409_v10 = vpop.f32.mrb[34].mxu0  ;;  %v4762_v3 = vpop.f32.mrb[34].mxu1 }
 0x7c9   : > { %v5129_v13 = vmax.f32 %v4406_v61, 0.0  ;;  %v5131_v32 = vmax.f32 %v4759_v0, 0.0  ;;  %v4410_v28 = vadd.f32 %v4409_v10, %v15205_v15  ;;  %v4763_v48 = vadd.f32 %v4762_v3, %v15207_v6  ;;  %v4411_v63 = vpop.f32.mrb[35].mxu0  ;;  %v4764_v27 = vpop.f32.mrb[35].mxu1 }
 0x7ca   : > { %v5130_v26 = vmax.f32 %v4408_v34, 0.0  ;;  %v5132_v43 = vmax.f32 %v4761_v44, 0.0  ;;  %v4412_v17 = vadd.f32 %v4411_v63, %v15211_v41  ;;  %v4765_v51 = vadd.f32 %v4764_v27, %v15213_v58 }
 0x7cb   : > { %v5885_v16 = vmax.f32 %v5129_v13, %v5877_v45  ;;  %v5887_v29 = vmax.f32 %v5131_v32, %v5879_v22  ;;  %v5137_v37 = vmax.f32 %v4410_v28, 0.0  ;;  %v5139_v38 = vmax.f32 %v4763_v48, 0.0 }
 0x7cc   : > { %v5886_v19 = vmax.f32 %v5130_v26, %v5878_v42  ;;  %v5888_v53 = vmax.f32 %v5132_v43, %v5880_v40  ;;  %v5138_v12 = vmax.f32 %v4412_v17, 0.0  ;;  %v5140_v5 = vmax.f32 %v4765_v51, 0.0 }
 0x7cd   : > { %v5893_v9 = vmax.f32 %v5137_v37, %v5885_v16  ;;  %v5895_v56 = vmax.f32 %v5139_v38, %v5887_v29 }
 0x7ce   : > { %v5894_v21 = vmax.f32 %v5138_v12, %v5886_v19  ;;  %v5896_v52 = vmax.f32 %v5140_v5, %v5888_v53  ;;  %v4415_v55 = vpop.f32.mrb[36].mxu0  ;;  %v4768_v23 = vpop.f32.mrb[36].mxu1 }
 0x7cf   : > { %v4416_v25 = vadd.f32 %v4415_v55, %v15205_v15  ;;  %v4769_v24 = vadd.f32 %v4768_v23, %v15207_v6  ;;  %v4417_v50 = vpop.f32.mrb[37].mxu0  ;;  %v4770_v8 = vpop.f32.mrb[37].mxu1 }
 0x7d0   : > { %v4418_v47 = vadd.f32 %v4417_v50, %v15211_v41  ;;  %v4771_v4 = vadd.f32 %v4770_v8, %v15213_v58  ;;  %v4419_v30 = vpop.f32.mrb[38].mxu0  ;;  %v4772_v57 = vpop.f32.mrb[38].mxu1 }
 0x7d1   : > { %v5145_v62 = vmax.f32 %v4416_v25, 0.0  ;;  %v5147_v18 = vmax.f32 %v4769_v24, 0.0  ;;  %v4420_v35 = vadd.f32 %v4419_v30, %v15205_v15  ;;  %v4773_v59 = vadd.f32 %v4772_v57, %v15207_v6  ;;  %v4421_v14 = vpop.f32.mrb[39].mxu0  ;;  %v4774_v33 = vpop.f32.mrb[39].mxu1 }
 0x7d2   : > { %v5146_v31 = vmax.f32 %v4418_v47, 0.0  ;;  %v5148_v45 = vmax.f32 %v4771_v4, 0.0  ;;  %v4422_v22 = vadd.f32 %v4421_v14, %v15211_v41  ;;  %v4775_v42 = vadd.f32 %v4774_v33, %v15213_v58 }
 0x7d3   : > { %v6021_v40 = vmax.f32 %v5145_v62, %v5893_v9  ;;  %v6023_v54 = vmax.f32 %v5147_v18, %v5895_v56  ;;  %v5153_v11 = vmax.f32 %v4420_v35, 0.0  ;;  %v5155_v61 = vmax.f32 %v4773_v59, 0.0 }
 0x7d4   : > { %v6022_v0 = vmax.f32 %v5146_v31, %v5894_v21  ;;  %v6024_v36 = vmax.f32 %v5148_v45, %v5896_v52  ;;  %v5154_v60 = vmax.f32 %v4422_v22, 0.0  ;;  %v5156_v34 = vmax.f32 %v4775_v42, 0.0 }
 0x7d5   : > { %v5901_v44 = vmax.f32 %v5153_v11, %v6021_v40  ;;  %v5903_v10 = vmax.f32 %v5155_v61, %v6023_v54 }
 0x7d6   : > { %v5902_v3 = vmax.f32 %v5154_v60, %v6022_v0  ;;  %v5904_v13 = vmax.f32 %v5156_v34, %v6024_v36  ;;  %v4425_v32 = vpop.f32.mrb[40].mxu0  ;;  %v4778_v28 = vpop.f32.mrb[40].mxu1 }
 0x7d7   : > { %v4426_v48 = vadd.f32 %v4425_v32, %v15205_v15  ;;  %v4779_v63 = vadd.f32 %v4778_v28, %v15207_v6  ;;  %v4427_v27 = vpop.f32.mrb[41].mxu0  ;;  %v4780_v26 = vpop.f32.mrb[41].mxu1 }
 0x7d8   : > { %v4428_v43 = vadd.f32 %v4427_v27, %v15211_v41  ;;  %v4781_v17 = vadd.f32 %v4780_v26, %v15213_v58  ;;  %v4429_v51 = vpop.f32.mrb[42].mxu0  ;;  %v4782_v16 = vpop.f32.mrb[42].mxu1 }
 0x7d9   : > { %v5161_v29 = vmax.f32 %v4426_v48, 0.0  ;;  %v5163_v37 = vmax.f32 %v4779_v63, 0.0  ;;  %v4430_v38 = vadd.f32 %v4429_v51, %v15205_v15  ;;  %v4783_v19 = vadd.f32 %v4782_v16, %v15207_v6  ;;  %v4431_v53 = vpop.f32.mrb[43].mxu0  ;;  %v4784_v12 = vpop.f32.mrb[43].mxu1 }
 0x7da   : > { %v5162_v5 = vmax.f32 %v4428_v43, 0.0  ;;  %v5164_v9 = vmax.f32 %v4781_v17, 0.0  ;;  %v4432_v56 = vadd.f32 %v4431_v53, %v15211_v41  ;;  %v4785_v21 = vadd.f32 %v4784_v12, %v15213_v58 }
 0x7db   : > { %v6029_v52 = vmax.f32 %v5161_v29, %v5901_v44  ;;  %v6031_v55 = vmax.f32 %v5163_v37, %v5903_v10  ;;  %v5169_v23 = vmax.f32 %v4430_v38, 0.0  ;;  %v5171_v25 = vmax.f32 %v4783_v19, 0.0 }
 0x7dc   : > { %v6030_v24 = vmax.f32 %v5162_v5, %v5902_v3  ;;  %v6032_v50 = vmax.f32 %v5164_v9, %v5904_v13  ;;  %v5170_v8 = vmax.f32 %v4432_v56, 0.0  ;;  %v5172_v47 = vmax.f32 %v4785_v21, 0.0 }
 0x7dd   : > { %v5909_v4 = vmax.f32 %v5169_v23, %v6029_v52  ;;  %v5911_v30 = vmax.f32 %v5171_v25, %v6031_v55 }
 0x7de   : > { %v5910_v57 = vmax.f32 %v5170_v8, %v6030_v24  ;;  %v5912_v62 = vmax.f32 %v5172_v47, %v6032_v50  ;;  %v4435_v18 = vpop.f32.mrb[44].mxu0  ;;  %v4788_v35 = vpop.f32.mrb[44].mxu1 }
 0x7df   : > { %v4436_v59 = vadd.f32 %v4435_v18, %v15205_v15  ;;  %v4789_v14 = vadd.f32 %v4788_v35, %v15207_v6  ;;  %v4437_v33 = vpop.f32.mrb[45].mxu0  ;;  %v4790_v31 = vpop.f32.mrb[45].mxu1 }
 0x7e0   : > { %v4438_v45 = vadd.f32 %v4437_v33, %v15211_v41  ;;  %v4791_v22 = vadd.f32 %v4790_v31, %v15213_v58  ;;  %v4439_v42 = vpop.f32.mrb[46].mxu0  ;;  %v4792_v40 = vpop.f32.mrb[46].mxu1 }
 0x7e1   : > { %v5177_v54 = vmax.f32 %v4436_v59, 0.0  ;;  %v5179_v11 = vmax.f32 %v4789_v14, 0.0  ;;  %v4440_v61 = vadd.f32 %v4439_v42, %v15205_v15  ;;  %v4793_v0 = vadd.f32 %v4792_v40, %v15207_v6  ;;  %v4441_v36 = vpop.f32.mrb[47].mxu0  ;;  %v4794_v60 = vpop.f32.mrb[47].mxu1 }
 0x7e2   : > { %v5178_v34 = vmax.f32 %v4438_v45, 0.0  ;;  %v5180_v44 = vmax.f32 %v4791_v22, 0.0  ;;  %v4442_v10 = vadd.f32 %v4441_v36, %v15211_v41  ;;  %v4795_v3 = vadd.f32 %v4794_v60, %v15213_v58 }
 0x7e3   : > { %v6037_v13 = vmax.f32 %v5177_v54, %v5909_v4  ;;  %v6039_v32 = vmax.f32 %v5179_v11, %v5911_v30  ;;  %v5185_v28 = vmax.f32 %v4440_v61, 0.0  ;;  %v5187_v48 = vmax.f32 %v4793_v0, 0.0 }
 0x7e4   : > { %v6038_v63 = vmax.f32 %v5178_v34, %v5910_v57  ;;  %v6040_v27 = vmax.f32 %v5180_v44, %v5912_v62  ;;  %v5186_v26 = vmax.f32 %v4442_v10, 0.0  ;;  %v5188_v43 = vmax.f32 %v4795_v3, 0.0 }
 0x7e5   : > { %v5917_v17 = vmax.f32 %v5185_v28, %v6037_v13  ;;  %v5919_v51 = vmax.f32 %v5187_v48, %v6039_v32 }
 0x7e6   : > { %v5918_v16 = vmax.f32 %v5186_v26, %v6038_v63  ;;  %v5920_v29 = vmax.f32 %v5188_v43, %v6040_v27  ;;  %v4445_v37 = vpop.f32.mrb[48].mxu0  ;;  %v4798_v38 = vpop.f32.mrb[48].mxu1 }
 0x7e7   : > { %v4446_v19 = vadd.f32 %v4445_v37, %v15205_v15  ;;  %v4799_v53 = vadd.f32 %v4798_v38, %v15207_v6  ;;  %v4447_v12 = vpop.f32.mrb[49].mxu0  ;;  %v4800_v5 = vpop.f32.mrb[49].mxu1 }
 0x7e8   : > { %v4448_v9 = vadd.f32 %v4447_v12, %v15211_v41  ;;  %v4801_v56 = vadd.f32 %v4800_v5, %v15213_v58  ;;  %v4449_v21 = vpop.f32.mrb[50].mxu0  ;;  %v4802_v52 = vpop.f32.mrb[50].mxu1 }
 0x7e9   : > { %v5193_v55 = vmax.f32 %v4446_v19, 0.0  ;;  %v5195_v23 = vmax.f32 %v4799_v53, 0.0  ;;  %v4450_v25 = vadd.f32 %v4449_v21, %v15205_v15  ;;  %v4803_v24 = vadd.f32 %v4802_v52, %v15207_v6  ;;  %v4451_v50 = vpop.f32.mrb[51].mxu0  ;;  %v4804_v8 = vpop.f32.mrb[51].mxu1 }
 0x7ea   : > { %v5194_v47 = vmax.f32 %v4448_v9, 0.0  ;;  %v5196_v4 = vmax.f32 %v4801_v56, 0.0  ;;  %v4452_v30 = vadd.f32 %v4451_v50, %v15211_v41  ;;  %v4805_v57 = vadd.f32 %v4804_v8, %v15213_v58 }
 0x7eb   : > { %v6045_v62 = vmax.f32 %v5193_v55, %v5917_v17  ;;  %v6047_v18 = vmax.f32 %v5195_v23, %v5919_v51  ;;  %v5201_v35 = vmax.f32 %v4450_v25, 0.0  ;;  %v5203_v59 = vmax.f32 %v4803_v24, 0.0 }
 0x7ec   : > { %v6046_v14 = vmax.f32 %v5194_v47, %v5918_v16  ;;  %v6048_v33 = vmax.f32 %v5196_v4, %v5920_v29  ;;  %v5202_v31 = vmax.f32 %v4452_v30, 0.0  ;;  %v5204_v45 = vmax.f32 %v4805_v57, 0.0 }
 0x7ed   : > { %v5925_v22 = vmax.f32 %v5201_v35, %v6045_v62  ;;  %v5927_v42 = vmax.f32 %v5203_v59, %v6047_v18 }
 0x7ee   : > { %v5926_v40 = vmax.f32 %v5202_v31, %v6046_v14  ;;  %v5928_v54 = vmax.f32 %v5204_v45, %v6048_v33  ;;  %v4455_v11 = vpop.f32.mrb[52].mxu0  ;;  %v4808_v61 = vpop.f32.mrb[52].mxu1 }
 0x7ef   : > { %v4456_v0 = vadd.f32 %v4455_v11, %v15205_v15  ;;  %v4809_v36 = vadd.f32 %v4808_v61, %v15207_v6  ;;  %v4457_v60 = vpop.f32.mrb[53].mxu0  ;;  %v4810_v34 = vpop.f32.mrb[53].mxu1 }
 0x7f0   : > { %v4458_v44 = vadd.f32 %v4457_v60, %v15211_v41  ;;  %v4811_v10 = vadd.f32 %v4810_v34, %v15213_v58  ;;  %v4459_v3 = vpop.f32.mrb[54].mxu0  ;;  %v4812_v13 = vpop.f32.mrb[54].mxu1 }
 0x7f1   : > { %v5209_v32 = vmax.f32 %v4456_v0, 0.0  ;;  %v5211_v28 = vmax.f32 %v4809_v36, 0.0  ;;  %v4460_v48 = vadd.f32 %v4459_v3, %v15205_v15  ;;  %v4813_v63 = vadd.f32 %v4812_v13, %v15207_v6  ;;  %v4461_v27 = vpop.f32.mrb[55].mxu0  ;;  %v4814_v26 = vpop.f32.mrb[55].mxu1 }
 0x7f2   : > { %v5210_v43 = vmax.f32 %v4458_v44, 0.0  ;;  %v5212_v17 = vmax.f32 %v4811_v10, 0.0  ;;  %v4462_v51 = vadd.f32 %v4461_v27, %v15211_v41  ;;  %v4815_v16 = vadd.f32 %v4814_v26, %v15213_v58 }
 0x7f3   : > { %v6053_v29 = vmax.f32 %v5209_v32, %v5925_v22  ;;  %v6055_v37 = vmax.f32 %v5211_v28, %v5927_v42  ;;  %v5217_v38 = vmax.f32 %v4460_v48, 0.0  ;;  %v5219_v19 = vmax.f32 %v4813_v63, 0.0 }
 0x7f4   : > { %v6054_v53 = vmax.f32 %v5210_v43, %v5926_v40  ;;  %v6056_v12 = vmax.f32 %v5212_v17, %v5928_v54  ;;  %v5218_v5 = vmax.f32 %v4462_v51, 0.0  ;;  %v5220_v9 = vmax.f32 %v4815_v16, 0.0 }
 0x7f5   : > { %v5933_v56 = vmax.f32 %v5217_v38, %v6053_v29  ;;  %v5935_v21 = vmax.f32 %v5219_v19, %v6055_v37 }
 0x7f6   : > { %v5934_v52 = vmax.f32 %v5218_v5, %v6054_v53  ;;  %v5936_v55 = vmax.f32 %v5220_v9, %v6056_v12  ;;  %v4465_v23 = vpop.f32.mrb[56].mxu0  ;;  %v4818_v25 = vpop.f32.mrb[56].mxu1 }
 0x7f7   : > { %v4466_v24 = vadd.f32 %v4465_v23, %v15205_v15  ;;  %v4819_v50 = vadd.f32 %v4818_v25, %v15207_v6  ;;  %v4467_v8 = vpop.f32.mrb[57].mxu0  ;;  %v4820_v47 = vpop.f32.mrb[57].mxu1 }
 0x7f8   : > { %v4468_v4 = vadd.f32 %v4467_v8, %v15211_v41  ;;  %v4821_v30 = vadd.f32 %v4820_v47, %v15213_v58  ;;  %v4469_v57 = vpop.f32.mrb[58].mxu0  ;;  %v4822_v62 = vpop.f32.mrb[58].mxu1 }
 0x7f9   : > { %v5225_v18 = vmax.f32 %v4466_v24, 0.0  ;;  %v5227_v35 = vmax.f32 %v4819_v50, 0.0  ;;  %v4470_v59 = vadd.f32 %v4469_v57, %v15205_v15  ;;  %v4823_v14 = vadd.f32 %v4822_v62, %v15207_v6  ;;  %v4471_v33 = vpop.f32.mrb[59].mxu0  ;;  %v4824_v31 = vpop.f32.mrb[59].mxu1 }
 0x7fa   : > { %v5226_v45 = vmax.f32 %v4468_v4, 0.0  ;;  %v5228_v22 = vmax.f32 %v4821_v30, 0.0  ;;  %v4472_v42 = vadd.f32 %v4471_v33, %v15211_v41  ;;  %v4825_v40 = vadd.f32 %v4824_v31, %v15213_v58 }
 0x7fb   : > { %v6061_v54 = vmax.f32 %v5225_v18, %v5933_v56  ;;  %v6063_v11 = vmax.f32 %v5227_v35, %v5935_v21  ;;  %v5233_v61 = vmax.f32 %v4470_v59, 0.0  ;;  %v5235_v0 = vmax.f32 %v4823_v14, 0.0 }
 0x7fc   : > { %v6062_v36 = vmax.f32 %v5226_v45, %v5934_v52  ;;  %v6064_v60 = vmax.f32 %v5228_v22, %v5936_v55  ;;  %v5234_v34 = vmax.f32 %v4472_v42, 0.0  ;;  %v5236_v44 = vmax.f32 %v4825_v40, 0.0 }
 0x7fd   : > { %v5941_v10 = vmax.f32 %v5233_v61, %v6061_v54  ;;  %v5943_v3 = vmax.f32 %v5235_v0, %v6063_v11 }
 0x7fe   : > { %v5942_v13 = vmax.f32 %v5234_v34, %v6062_v36  ;;  %v5944_v32 = vmax.f32 %v5236_v44, %v6064_v60  ;;  %v4475_v28 = vpop.f32.mrb[60].mxu0  ;;  %v4828_v48 = vpop.f32.mrb[60].mxu1 }
 0x7ff   : > { %v4476_v63 = vadd.f32 %v4475_v28, %v15205_v15  ;;  %v4829_v27 = vadd.f32 %v4828_v48, %v15207_v6  ;;  %v4477_v26 = vpop.f32.mrb[61].mxu0  ;;  %v4830_v43 = vpop.f32.mrb[61].mxu1 }
 0x800   : > { %v4478_v17 = vadd.f32 %v4477_v26, %v15211_v41  ;;  %v4831_v51 = vadd.f32 %v4830_v43, %v15213_v58  ;;  %v4479_v16 = vpop.f32.mrb[62].mxu0  ;;  %v4832_v29 = vpop.f32.mrb[62].mxu1 }
 0x801   : > { %v5241_v37 = vmax.f32 %v4476_v63, 0.0  ;;  %v5243_v38 = vmax.f32 %v4829_v27, 0.0  ;;  %v4480_v19 = vadd.f32 %v4479_v16, %v15205_v15  ;;  %v4833_v53 = vadd.f32 %v4832_v29, %v15207_v6  ;;  %v4481_v12 = vpop.f32.mrb[63].mxu0  ;;  %v4834_v5 = vpop.f32.mrb[63].mxu1 }
 0x802   : > { %v5242_v9 = vmax.f32 %v4478_v17, 0.0  ;;  %v5244_v56 = vmax.f32 %v4831_v51, 0.0  ;;  %v4482_v21 = vadd.f32 %v4481_v12, %v15211_v41  ;;  %v4835_v52 = vadd.f32 %v4834_v5, %v15213_v58 }
 0x803   : > { %v6069_v55 = vmax.f32 %v5241_v37, %v5941_v10  ;;  %v6071_v23 = vmax.f32 %v5243_v38, %v5943_v3  ;;  %v5249_v25 = vmax.f32 %v4480_v19, 0.0  ;;  %v5251_v24 = vmax.f32 %v4833_v53, 0.0 }
 0x804   : > { %v6070_v50 = vmax.f32 %v5242_v9, %v5942_v13  ;;  %v6072_v8 = vmax.f32 %v5244_v56, %v5944_v32  ;;  %v5250_v47 = vmax.f32 %v4482_v21, 0.0  ;;  %v5252_v4 = vmax.f32 %v4835_v52, 0.0 }
 0x805   : > { %v5949_v30 = vmax.f32 %v5249_v25, %v6069_v55  ;;  %v5951_v57 = vmax.f32 %v5251_v24, %v6071_v23 }
 0x806   : > { %v5950_v62 = vmax.f32 %v5250_v47, %v6070_v50  ;;  %v5952_v18 = vmax.f32 %v5252_v4, %v6072_v8  ;;  %v4485_v35 = vpop.f32.mrb[64].mxu0  ;;  %v4838_v59 = vpop.f32.mrb[64].mxu1 }
 0x807   : > { %v4486_v14 = vadd.f32 %v4485_v35, %v15205_v15  ;;  %v4839_v33 = vadd.f32 %v4838_v59, %v15207_v6  ;;  %v4487_v31 = vpop.f32.mrb[65].mxu0  ;;  %v4840_v45 = vpop.f32.mrb[65].mxu1 }
 0x808   : > { %v4488_v22 = vadd.f32 %v4487_v31, %v15211_v41  ;;  %v4841_v42 = vadd.f32 %v4840_v45, %v15213_v58  ;;  %v4489_v40 = vpop.f32.mrb[66].mxu0  ;;  %v4842_v54 = vpop.f32.mrb[66].mxu1 }
 0x809   : > { %v5257_v11 = vmax.f32 %v4486_v14, 0.0  ;;  %v5259_v61 = vmax.f32 %v4839_v33, 0.0  ;;  %v4490_v0 = vadd.f32 %v4489_v40, %v15205_v15  ;;  %v4843_v36 = vadd.f32 %v4842_v54, %v15207_v6  ;;  %v4491_v60 = vpop.f32.mrb[67].mxu0  ;;  %v4844_v34 = vpop.f32.mrb[67].mxu1 }
 0x80a   : > { %v5258_v44 = vmax.f32 %v4488_v22, 0.0  ;;  %v5260_v10 = vmax.f32 %v4841_v42, 0.0  ;;  %v4492_v3 = vadd.f32 %v4491_v60, %v15211_v41  ;;  %v4845_v13 = vadd.f32 %v4844_v34, %v15213_v58 }
 0x80b   : > { %v6077_v32 = vmax.f32 %v5257_v11, %v5949_v30  ;;  %v6079_v28 = vmax.f32 %v5259_v61, %v5951_v57  ;;  %v5265_v48 = vmax.f32 %v4490_v0, 0.0  ;;  %v5267_v63 = vmax.f32 %v4843_v36, 0.0 }
 0x80c   : > { %v6078_v27 = vmax.f32 %v5258_v44, %v5950_v62  ;;  %v6080_v26 = vmax.f32 %v5260_v10, %v5952_v18  ;;  %v5266_v43 = vmax.f32 %v4492_v3, 0.0  ;;  %v5268_v17 = vmax.f32 %v4845_v13, 0.0 }
 0x80d   : > { %v5957_v51 = vmax.f32 %v5265_v48, %v6077_v32  ;;  %v5959_v16 = vmax.f32 %v5267_v63, %v6079_v28 }
 0x80e   : > { %v5958_v29 = vmax.f32 %v5266_v43, %v6078_v27  ;;  %v5960_v37 = vmax.f32 %v5268_v17, %v6080_v26  ;;  %v4495_v38 = vpop.f32.mrb[68].mxu0  ;;  %v4848_v19 = vpop.f32.mrb[68].mxu1 }
 0x80f   : > { %v4496_v53 = vadd.f32 %v4495_v38, %v15205_v15  ;;  %v4849_v12 = vadd.f32 %v4848_v19, %v15207_v6  ;;  %v4497_v5 = vpop.f32.mrb[69].mxu0  ;;  %v4850_v9 = vpop.f32.mrb[69].mxu1 }
 0x810   : > { %v4498_v56 = vadd.f32 %v4497_v5, %v15211_v41  ;;  %v4851_v21 = vadd.f32 %v4850_v9, %v15213_v58  ;;  %v4499_v52 = vpop.f32.mrb[70].mxu0  ;;  %v4852_v55 = vpop.f32.mrb[70].mxu1 }
 0x811   : > { %v5273_v23 = vmax.f32 %v4496_v53, 0.0  ;;  %v5275_v25 = vmax.f32 %v4849_v12, 0.0  ;;  %v4500_v24 = vadd.f32 %v4499_v52, %v15205_v15  ;;  %v4853_v50 = vadd.f32 %v4852_v55, %v15207_v6  ;;  %v4501_v8 = vpop.f32.mrb[71].mxu0  ;;  %v4854_v47 = vpop.f32.mrb[71].mxu1 }
 0x812   : > { %v5274_v4 = vmax.f32 %v4498_v56, 0.0  ;;  %v5276_v30 = vmax.f32 %v4851_v21, 0.0  ;;  %v4502_v57 = vadd.f32 %v4501_v8, %v15211_v41  ;;  %v4855_v62 = vadd.f32 %v4854_v47, %v15213_v58 }
 0x813   : > { %v6085_v18 = vmax.f32 %v5273_v23, %v5957_v51  ;;  %v6087_v35 = vmax.f32 %v5275_v25, %v5959_v16  ;;  %v5281_v59 = vmax.f32 %v4500_v24, 0.0  ;;  %v5283_v14 = vmax.f32 %v4853_v50, 0.0 }
 0x814   : > { %v6086_v33 = vmax.f32 %v5274_v4, %v5958_v29  ;;  %v6088_v31 = vmax.f32 %v5276_v30, %v5960_v37  ;;  %v5282_v45 = vmax.f32 %v4502_v57, 0.0  ;;  %v5284_v22 = vmax.f32 %v4855_v62, 0.0 }
 0x815   : > { %v6149_v42 = vmax.f32 %v5281_v59, %v6085_v18  ;;  %v6151_v40 = vmax.f32 %v5283_v14, %v6087_v35 }
 0x816   : > { %v6150_v54 = vmax.f32 %v5282_v45, %v6086_v33  ;;  %v6152_v11 = vmax.f32 %v5284_v22, %v6088_v31  ;;  %v4505_v61 = vpop.f32.mrb[72].mxu0  ;;  %v4858_v0 = vpop.f32.mrb[72].mxu1 }
 0x817   : > { %v4506_v36 = vadd.f32 %v4505_v61, %v15205_v15  ;;  %v4859_v60 = vadd.f32 %v4858_v0, %v15207_v6  ;;  %v4507_v34 = vpop.f32.mrb[73].mxu0  ;;  %v4860_v44 = vpop.f32.mrb[73].mxu1 }
 0x818   : > { %v4508_v10 = vadd.f32 %v4507_v34, %v15211_v41  ;;  %v4861_v3 = vadd.f32 %v4860_v44, %v15213_v58  ;;  %v4509_v13 = vpop.f32.mrb[74].mxu0  ;;  %v4862_v32 = vpop.f32.mrb[74].mxu1 }
 0x819   : > { %v5289_v28 = vmax.f32 %v4506_v36, 0.0  ;;  %v5291_v48 = vmax.f32 %v4859_v60, 0.0  ;;  %v4510_v63 = vadd.f32 %v4509_v13, %v15205_v15  ;;  %v4863_v27 = vadd.f32 %v4862_v32, %v15207_v6  ;;  %v4511_v26 = vpop.f32.mrb[75].mxu0  ;;  %v4864_v43 = vpop.f32.mrb[75].mxu1 }
 0x81a   : > { %v5290_v17 = vmax.f32 %v4508_v10, 0.0  ;;  %v5292_v51 = vmax.f32 %v4861_v3, 0.0  ;;  %v4512_v16 = vadd.f32 %v4511_v26, %v15211_v41  ;;  %v4865_v29 = vadd.f32 %v4864_v43, %v15213_v58 }
 0x81b   : > { %v5965_v37 = vmax.f32 %v5289_v28, %v6149_v42  ;;  %v5967_v38 = vmax.f32 %v5291_v48, %v6151_v40  ;;  %v5297_v19 = vmax.f32 %v4510_v63, 0.0  ;;  %v5299_v53 = vmax.f32 %v4863_v27, 0.0 }
 0x81c   : > { %v5966_v12 = vmax.f32 %v5290_v17, %v6150_v54  ;;  %v5968_v5 = vmax.f32 %v5292_v51, %v6152_v11  ;;  %v5298_v9 = vmax.f32 %v4512_v16, 0.0  ;;  %v5300_v56 = vmax.f32 %v4865_v29, 0.0 }
 0x81d   : > { %v6093_v21 = vmax.f32 %v5297_v19, %v5965_v37  ;;  %v6095_v52 = vmax.f32 %v5299_v53, %v5967_v38 }
 0x81e   : > { %v6094_v55 = vmax.f32 %v5298_v9, %v5966_v12  ;;  %v6096_v23 = vmax.f32 %v5300_v56, %v5968_v5  ;;  %v4515_v25 = vpop.f32.mrb[76].mxu0  ;;  %v4868_v24 = vpop.f32.mrb[76].mxu1 }
 0x81f   : > { %v4516_v50 = vadd.f32 %v4515_v25, %v15205_v15  ;;  %v4869_v8 = vadd.f32 %v4868_v24, %v15207_v6  ;;  %v4517_v47 = vpop.f32.mrb[77].mxu0  ;;  %v4870_v4 = vpop.f32.mrb[77].mxu1 }
 0x820   : > { %v4518_v30 = vadd.f32 %v4517_v47, %v15211_v41  ;;  %v4871_v57 = vadd.f32 %v4870_v4, %v15213_v58  ;;  %v4519_v62 = vpop.f32.mrb[78].mxu0  ;;  %v4872_v18 = vpop.f32.mrb[78].mxu1 }
 0x821   : > { %v5305_v35 = vmax.f32 %v4516_v50, 0.0  ;;  %v5307_v59 = vmax.f32 %v4869_v8, 0.0  ;;  %v4520_v14 = vadd.f32 %v4519_v62, %v15205_v15  ;;  %v4873_v33 = vadd.f32 %v4872_v18, %v15207_v6  ;;  %v4521_v31 = vpop.f32.mrb[79].mxu0  ;;  %v4874_v45 = vpop.f32.mrb[79].mxu1 }
 0x822   : > { %v5306_v22 = vmax.f32 %v4518_v30, 0.0  ;;  %v5308_v42 = vmax.f32 %v4871_v57, 0.0  ;;  %v4522_v40 = vadd.f32 %v4521_v31, %v15211_v41  ;;  %v4875_v54 = vadd.f32 %v4874_v45, %v15213_v58 }
 0x823   : > { %v6157_v11 = vmax.f32 %v5305_v35, %v6093_v21  ;;  %v6159_v61 = vmax.f32 %v5307_v59, %v6095_v52  ;;  %v5313_v0 = vmax.f32 %v4520_v14, 0.0  ;;  %v5315_v36 = vmax.f32 %v4873_v33, 0.0 }
 0x824   : > { %v6158_v60 = vmax.f32 %v5306_v22, %v6094_v55  ;;  %v6160_v34 = vmax.f32 %v5308_v42, %v6096_v23  ;;  %v5314_v44 = vmax.f32 %v4522_v40, 0.0  ;;  %v5316_v10 = vmax.f32 %v4875_v54, 0.0 }
 0x825   : > { %v5973_v3 = vmax.f32 %v5313_v0, %v6157_v11  ;;  %v5975_v13 = vmax.f32 %v5315_v36, %v6159_v61 }
 0x826   : > { %v5974_v32 = vmax.f32 %v5314_v44, %v6158_v60  ;;  %v5976_v28 = vmax.f32 %v5316_v10, %v6160_v34  ;;  %v4525_v48 = vpop.f32.mrb[80].mxu0  ;;  %v4878_v63 = vpop.f32.mrb[80].mxu1 }
 0x827   : > { %v4526_v27 = vadd.f32 %v4525_v48, %v15205_v15  ;;  %v4879_v26 = vadd.f32 %v4878_v63, %v15207_v6  ;;  %v4527_v43 = vpop.f32.mrb[81].mxu0  ;;  %v4880_v17 = vpop.f32.mrb[81].mxu1 }
 0x828   : > { %v4528_v51 = vadd.f32 %v4527_v43, %v15211_v41  ;;  %v4881_v16 = vadd.f32 %v4880_v17, %v15213_v58  ;;  %v4529_v29 = vpop.f32.mrb[82].mxu0  ;;  %v4882_v37 = vpop.f32.mrb[82].mxu1 }
 0x829   : > { %v5321_v38 = vmax.f32 %v4526_v27, 0.0  ;;  %v5323_v19 = vmax.f32 %v4879_v26, 0.0  ;;  %v4530_v53 = vadd.f32 %v4529_v29, %v15205_v15  ;;  %v4883_v12 = vadd.f32 %v4882_v37, %v15207_v6  ;;  %v4531_v5 = vpop.f32.mrb[83].mxu0  ;;  %v4884_v9 = vpop.f32.mrb[83].mxu1 }
 0x82a   : > { %v5322_v56 = vmax.f32 %v4528_v51, 0.0  ;;  %v5324_v21 = vmax.f32 %v4881_v16, 0.0  ;;  %v4532_v52 = vadd.f32 %v4531_v5, %v15211_v41  ;;  %v4885_v55 = vadd.f32 %v4884_v9, %v15213_v58 }
 0x82b   : > { %v6101_v23 = vmax.f32 %v5321_v38, %v5973_v3  ;;  %v6103_v25 = vmax.f32 %v5323_v19, %v5975_v13  ;;  %v5329_v24 = vmax.f32 %v4530_v53, 0.0  ;;  %v5331_v50 = vmax.f32 %v4883_v12, 0.0 }
 0x82c   : > { %v6102_v8 = vmax.f32 %v5322_v56, %v5974_v32  ;;  %v6104_v47 = vmax.f32 %v5324_v21, %v5976_v28  ;;  %v5330_v4 = vmax.f32 %v4532_v52, 0.0  ;;  %v5332_v30 = vmax.f32 %v4885_v55, 0.0 }
 0x82d   : > { %v6165_v57 = vmax.f32 %v5329_v24, %v6101_v23  ;;  %v6167_v62 = vmax.f32 %v5331_v50, %v6103_v25 }
 0x82e   : > { %v6166_v18 = vmax.f32 %v5330_v4, %v6102_v8  ;;  %v6168_v35 = vmax.f32 %v5332_v30, %v6104_v47  ;;  %v4535_v59 = vpop.f32.mrb[84].mxu0  ;;  %v4888_v14 = vpop.f32.mrb[84].mxu1 }
 0x82f   : > { %v4536_v33 = vadd.f32 %v4535_v59, %v15205_v15  ;;  %v4889_v31 = vadd.f32 %v4888_v14, %v15207_v6  ;;  %v4537_v45 = vpop.f32.mrb[85].mxu0  ;;  %v4890_v22 = vpop.f32.mrb[85].mxu1 }
 0x830   : > { %v4538_v42 = vadd.f32 %v4537_v45, %v15211_v41  ;;  %v4891_v40 = vadd.f32 %v4890_v22, %v15213_v58  ;;  %v4539_v54 = vpop.f32.mrb[86].mxu0  ;;  %v4892_v11 = vpop.f32.mrb[86].mxu1 }
 0x831   : > { %v5337_v61 = vmax.f32 %v4536_v33, 0.0  ;;  %v5339_v0 = vmax.f32 %v4889_v31, 0.0  ;;  %v4540_v36 = vadd.f32 %v4539_v54, %v15205_v15  ;;  %v4893_v60 = vadd.f32 %v4892_v11, %v15207_v6  ;;  %v4541_v34 = vpop.f32.mrb[87].mxu0  ;;  %v4894_v44 = vpop.f32.mrb[87].mxu1 }
 0x832   : > { %v5338_v10 = vmax.f32 %v4538_v42, 0.0  ;;  %v5340_v3 = vmax.f32 %v4891_v40, 0.0  ;;  %v4542_v13 = vadd.f32 %v4541_v34, %v15211_v41  ;;  %v4895_v32 = vadd.f32 %v4894_v44, %v15213_v58 }
 0x833   : > { %v5981_v28 = vmax.f32 %v5337_v61, %v6165_v57  ;;  %v5983_v48 = vmax.f32 %v5339_v0, %v6167_v62  ;;  %v5345_v63 = vmax.f32 %v4540_v36, 0.0  ;;  %v5347_v27 = vmax.f32 %v4893_v60, 0.0 }
 0x834   : > { %v5982_v26 = vmax.f32 %v5338_v10, %v6166_v18  ;;  %v5984_v43 = vmax.f32 %v5340_v3, %v6168_v35  ;;  %v5346_v17 = vmax.f32 %v4542_v13, 0.0  ;;  %v5348_v51 = vmax.f32 %v4895_v32, 0.0 }
 0x835   : > { %v6109_v16 = vmax.f32 %v5345_v63, %v5981_v28  ;;  %v6111_v29 = vmax.f32 %v5347_v27, %v5983_v48 }
 0x836   : > { %v6110_v37 = vmax.f32 %v5346_v17, %v5982_v26  ;;  %v6112_v38 = vmax.f32 %v5348_v51, %v5984_v43  ;;  %v4545_v19 = vpop.f32.mrb[88].mxu0  ;;  %v4898_v53 = vpop.f32.mrb[88].mxu1 }
 0x837   : > { %v4546_v12 = vadd.f32 %v4545_v19, %v15205_v15  ;;  %v4899_v5 = vadd.f32 %v4898_v53, %v15207_v6  ;;  %v4547_v9 = vpop.f32.mrb[89].mxu0  ;;  %v4900_v56 = vpop.f32.mrb[89].mxu1 }
 0x838   : > { %v4548_v21 = vadd.f32 %v4547_v9, %v15211_v41  ;;  %v4901_v52 = vadd.f32 %v4900_v56, %v15213_v58  ;;  %v4549_v55 = vpop.f32.mrb[90].mxu0  ;;  %v4902_v23 = vpop.f32.mrb[90].mxu1 }
 0x839   : > { %v5353_v25 = vmax.f32 %v4546_v12, 0.0  ;;  %v5355_v24 = vmax.f32 %v4899_v5, 0.0  ;;  %v4550_v50 = vadd.f32 %v4549_v55, %v15205_v15  ;;  %v4903_v8 = vadd.f32 %v4902_v23, %v15207_v6  ;;  %v4551_v47 = vpop.f32.mrb[91].mxu0  ;;  %v4904_v4 = vpop.f32.mrb[91].mxu1 }
 0x83a   : > { %v5354_v30 = vmax.f32 %v4548_v21, 0.0  ;;  %v5356_v57 = vmax.f32 %v4901_v52, 0.0  ;;  %v4552_v62 = vadd.f32 %v4551_v47, %v15211_v41  ;;  %v4905_v18 = vadd.f32 %v4904_v4, %v15213_v58 }
 0x83b   : > { %v6173_v35 = vmax.f32 %v5353_v25, %v6109_v16  ;;  %v6175_v59 = vmax.f32 %v5355_v24, %v6111_v29  ;;  %v5361_v14 = vmax.f32 %v4550_v50, 0.0  ;;  %v5363_v33 = vmax.f32 %v4903_v8, 0.0 }
 0x83c   : > { %v6174_v31 = vmax.f32 %v5354_v30, %v6110_v37  ;;  %v6176_v45 = vmax.f32 %v5356_v57, %v6112_v38  ;;  %v5362_v22 = vmax.f32 %v4552_v62, 0.0  ;;  %v5364_v42 = vmax.f32 %v4905_v18, 0.0 }
 0x83d   : > { %v5989_v40 = vmax.f32 %v5361_v14, %v6173_v35  ;;  %v5991_v54 = vmax.f32 %v5363_v33, %v6175_v59 }
 0x83e   : > { %v5990_v11 = vmax.f32 %v5362_v22, %v6174_v31  ;;  %v5992_v61 = vmax.f32 %v5364_v42, %v6176_v45  ;;  %v4555_v0 = vpop.f32.mrb[92].mxu0  ;;  %v4908_v36 = vpop.f32.mrb[92].mxu1 }
 0x83f   : > { %v4556_v60 = vadd.f32 %v4555_v0, %v15205_v15  ;;  %v4909_v34 = vadd.f32 %v4908_v36, %v15207_v6  ;;  %v4557_v44 = vpop.f32.mrb[93].mxu0  ;;  %v4910_v10 = vpop.f32.mrb[93].mxu1 }
 0x840   : > { %v4558_v3 = vadd.f32 %v4557_v44, %v15211_v41  ;;  %v4911_v13 = vadd.f32 %v4910_v10, %v15213_v58  ;;  %v4559_v32 = vpop.f32.mrb[94].mxu0  ;;  %v4912_v28 = vpop.f32.mrb[94].mxu1 }
 0x841   : > { %v5369_v48 = vmax.f32 %v4556_v60, 0.0  ;;  %v5371_v63 = vmax.f32 %v4909_v34, 0.0  ;;  %v4560_v27 = vadd.f32 %v4559_v32, %v15205_v15  ;;  %v4913_v26 = vadd.f32 %v4912_v28, %v15207_v6  ;;  %v4561_v43 = vpop.f32.mrb[95].mxu0  ;;  %v4914_v17 = vpop.f32.mrb[95].mxu1 }
 0x842   : > { %v5370_v51 = vmax.f32 %v4558_v3, 0.0  ;;  %v5372_v16 = vmax.f32 %v4911_v13, 0.0  ;;  %v4562_v29 = vadd.f32 %v4561_v43, %v15211_v41  ;;  %v4915_v37 = vadd.f32 %v4914_v17, %v15213_v58 }
 0x843   : > { %v6117_v38 = vmax.f32 %v5369_v48, %v5989_v40  ;;  %v6119_v19 = vmax.f32 %v5371_v63, %v5991_v54  ;;  %v5377_v53 = vmax.f32 %v4560_v27, 0.0  ;;  %v5379_v12 = vmax.f32 %v4913_v26, 0.0 }
 0x844   : > { %v6118_v5 = vmax.f32 %v5370_v51, %v5990_v11  ;;  %v6120_v9 = vmax.f32 %v5372_v16, %v5992_v61  ;;  %v5378_v56 = vmax.f32 %v4562_v29, 0.0  ;;  %v5380_v21 = vmax.f32 %v4915_v37, 0.0 }
 0x845   : > { %v6181_v52 = vmax.f32 %v5377_v53, %v6117_v38  ;;  %v6183_v55 = vmax.f32 %v5379_v12, %v6119_v19 }
 0x846   : > { %v6182_v23 = vmax.f32 %v5378_v56, %v6118_v5  ;;  %v6184_v25 = vmax.f32 %v5380_v21, %v6120_v9  ;;  %v4565_v24 = vpop.f32.mrb[96].mxu0  ;;  %v4918_v50 = vpop.f32.mrb[96].mxu1 }
 0x847   : > { %v4566_v8 = vadd.f32 %v4565_v24, %v15205_v15  ;;  %v4919_v47 = vadd.f32 %v4918_v50, %v15207_v6  ;;  %v4567_v4 = vpop.f32.mrb[97].mxu0  ;;  %v4920_v30 = vpop.f32.mrb[97].mxu1 }
 0x848   : > { %v4568_v57 = vadd.f32 %v4567_v4, %v15211_v41  ;;  %v4921_v62 = vadd.f32 %v4920_v30, %v15213_v58  ;;  %v4569_v18 = vpop.f32.mrb[98].mxu0  ;;  %v4922_v35 = vpop.f32.mrb[98].mxu1 }
 0x849   : > { %v5385_v59 = vmax.f32 %v4566_v8, 0.0  ;;  %v5387_v14 = vmax.f32 %v4919_v47, 0.0  ;;  %v4570_v33 = vadd.f32 %v4569_v18, %v15205_v15  ;;  %v4923_v31 = vadd.f32 %v4922_v35, %v15207_v6  ;;  %v4571_v45 = vpop.f32.mrb[99].mxu0  ;;  %v4924_v22 = vpop.f32.mrb[99].mxu1 }
 0x84a   : > { %v5386_v42 = vmax.f32 %v4568_v57, 0.0  ;;  %v5388_v40 = vmax.f32 %v4921_v62, 0.0  ;;  %v4572_v54 = vadd.f32 %v4571_v45, %v15211_v41  ;;  %v4925_v11 = vadd.f32 %v4924_v22, %v15213_v58 }
 0x84b   : > { %v6213_v61 = vmax.f32 %v5385_v59, %v6181_v52  ;;  %v6215_v0 = vmax.f32 %v5387_v14, %v6183_v55  ;;  %v5393_v36 = vmax.f32 %v4570_v33, 0.0  ;;  %v5395_v60 = vmax.f32 %v4923_v31, 0.0 }
 0x84c   : > { %v6214_v34 = vmax.f32 %v5386_v42, %v6182_v23  ;;  %v6216_v44 = vmax.f32 %v5388_v40, %v6184_v25  ;;  %v5394_v10 = vmax.f32 %v4572_v54, 0.0  ;;  %v5396_v3 = vmax.f32 %v4925_v11, 0.0 }
 0x84d   : > { %v5997_v13 = vmax.f32 %v5393_v36, %v6213_v61  ;;  %v5999_v32 = vmax.f32 %v5395_v60, %v6215_v0 }
 0x84e   : > { %v5998_v28 = vmax.f32 %v5394_v10, %v6214_v34  ;;  %v6000_v48 = vmax.f32 %v5396_v3, %v6216_v44  ;;  %v4575_v63 = vpop.f32.mrb[100].mxu0  ;;  %v4928_v27 = vpop.f32.mrb[100].mxu1 }
 0x84f   : > { %v4576_v26 = vadd.f32 %v4575_v63, %v15205_v15  ;;  %v4929_v43 = vadd.f32 %v4928_v27, %v15207_v6  ;;  %v4577_v17 = vpop.f32.mrb[101].mxu0  ;;  %v4930_v51 = vpop.f32.mrb[101].mxu1 }
 0x850   : > { %v4578_v16 = vadd.f32 %v4577_v17, %v15211_v41  ;;  %v4931_v29 = vadd.f32 %v4930_v51, %v15213_v58  ;;  %v4579_v37 = vpop.f32.mrb[102].mxu0  ;;  %v4932_v38 = vpop.f32.mrb[102].mxu1 }
 0x851   : > { %v5401_v19 = vmax.f32 %v4576_v26, 0.0  ;;  %v5403_v53 = vmax.f32 %v4929_v43, 0.0  ;;  %v4580_v12 = vadd.f32 %v4579_v37, %v15205_v15  ;;  %v4933_v5 = vadd.f32 %v4932_v38, %v15207_v6  ;;  %v4581_v9 = vpop.f32.mrb[103].mxu0  ;;  %v4934_v56 = vpop.f32.mrb[103].mxu1 }
 0x852   : > { %v5402_v21 = vmax.f32 %v4578_v16, 0.0  ;;  %v5404_v52 = vmax.f32 %v4931_v29, 0.0  ;;  %v4582_v55 = vadd.f32 %v4581_v9, %v15211_v41  ;;  %v4935_v23 = vadd.f32 %v4934_v56, %v15213_v58 }
 0x853   : > { %v6125_v25 = vmax.f32 %v5401_v19, %v5997_v13  ;;  %v6127_v24 = vmax.f32 %v5403_v53, %v5999_v32  ;;  %v5409_v50 = vmax.f32 %v4580_v12, 0.0  ;;  %v5411_v8 = vmax.f32 %v4933_v5, 0.0 }
 0x854   : > { %v6126_v47 = vmax.f32 %v5402_v21, %v5998_v28  ;;  %v6128_v4 = vmax.f32 %v5404_v52, %v6000_v48  ;;  %v5410_v30 = vmax.f32 %v4582_v55, 0.0  ;;  %v5412_v57 = vmax.f32 %v4935_v23, 0.0 }
 0x855   : > { %v6189_v62 = vmax.f32 %v5409_v50, %v6125_v25  ;;  %v6191_v18 = vmax.f32 %v5411_v8, %v6127_v24 }
 0x856   : > { %v6190_v35 = vmax.f32 %v5410_v30, %v6126_v47  ;;  %v6192_v59 = vmax.f32 %v5412_v57, %v6128_v4  ;;  %v4585_v14 = vpop.f32.mrb[104].mxu0  ;;  %v4938_v33 = vpop.f32.mrb[104].mxu1 }
 0x857   : > { %v4586_v31 = vadd.f32 %v4585_v14, %v15205_v15  ;;  %v4939_v45 = vadd.f32 %v4938_v33, %v15207_v6  ;;  %v4587_v22 = vpop.f32.mrb[105].mxu0  ;;  %v4940_v42 = vpop.f32.mrb[105].mxu1 }
 0x858   : > { %v4588_v40 = vadd.f32 %v4587_v22, %v15211_v41  ;;  %v4941_v54 = vadd.f32 %v4940_v42, %v15213_v58  ;;  %v4589_v11 = vpop.f32.mrb[106].mxu0  ;;  %v4942_v61 = vpop.f32.mrb[106].mxu1 }
 0x859   : > { %v5417_v0 = vmax.f32 %v4586_v31, 0.0  ;;  %v5419_v36 = vmax.f32 %v4939_v45, 0.0  ;;  %v4590_v60 = vadd.f32 %v4589_v11, %v15205_v15  ;;  %v4943_v34 = vadd.f32 %v4942_v61, %v15207_v6  ;;  %v4591_v44 = vpop.f32.mrb[107].mxu0  ;;  %v4944_v10 = vpop.f32.mrb[107].mxu1 }
 0x85a   : > { %v5418_v3 = vmax.f32 %v4588_v40, 0.0  ;;  %v5420_v13 = vmax.f32 %v4941_v54, 0.0  ;;  %v4592_v32 = vadd.f32 %v4591_v44, %v15211_v41  ;;  %v4945_v28 = vadd.f32 %v4944_v10, %v15213_v58 }
 0x85b   : > { %v6221_v48 = vmax.f32 %v5417_v0, %v6189_v62  ;;  %v6223_v63 = vmax.f32 %v5419_v36, %v6191_v18  ;;  %v5425_v27 = vmax.f32 %v4590_v60, 0.0  ;;  %v5427_v26 = vmax.f32 %v4943_v34, 0.0 }
 0x85c   : > { %v6222_v43 = vmax.f32 %v5418_v3, %v6190_v35  ;;  %v6224_v17 = vmax.f32 %v5420_v13, %v6192_v59  ;;  %v5426_v51 = vmax.f32 %v4592_v32, 0.0  ;;  %v5428_v16 = vmax.f32 %v4945_v28, 0.0 }
 0x85d   : > { %v6005_v29 = vmax.f32 %v5425_v27, %v6221_v48  ;;  %v6007_v37 = vmax.f32 %v5427_v26, %v6223_v63 }
 0x85e   : > { %v6006_v38 = vmax.f32 %v5426_v51, %v6222_v43  ;;  %v6008_v19 = vmax.f32 %v5428_v16, %v6224_v17  ;;  %v4595_v53 = vpop.f32.mrb[108].mxu0  ;;  %v4948_v12 = vpop.f32.mrb[108].mxu1 }
 0x85f   : > { %v4596_v5 = vadd.f32 %v4595_v53, %v15205_v15  ;;  %v4949_v9 = vadd.f32 %v4948_v12, %v15207_v6  ;;  %v4597_v56 = vpop.f32.mrb[109].mxu0  ;;  %v4950_v21 = vpop.f32.mrb[109].mxu1 }
 0x860   : > { %v4598_v52 = vadd.f32 %v4597_v56, %v15211_v41  ;;  %v4951_v55 = vadd.f32 %v4950_v21, %v15213_v58  ;;  %v4599_v23 = vpop.f32.mrb[110].mxu0  ;;  %v4952_v25 = vpop.f32.mrb[110].mxu1 }
 0x861   : > { %v5433_v24 = vmax.f32 %v4596_v5, 0.0  ;;  %v5435_v50 = vmax.f32 %v4949_v9, 0.0  ;;  %v4600_v8 = vadd.f32 %v4599_v23, %v15205_v15  ;;  %v4953_v47 = vadd.f32 %v4952_v25, %v15207_v6  ;;  %v4601_v4 = vpop.f32.mrb[111].mxu0  ;;  %v4954_v30 = vpop.f32.mrb[111].mxu1 }
 0x862   : > { %v5434_v57 = vmax.f32 %v4598_v52, 0.0  ;;  %v5436_v62 = vmax.f32 %v4951_v55, 0.0  ;;  %v4602_v18 = vadd.f32 %v4601_v4, %v15211_v41  ;;  %v4955_v35 = vadd.f32 %v4954_v30, %v15213_v58 }
 0x863   : > { %v6133_v59 = vmax.f32 %v5433_v24, %v6005_v29  ;;  %v6135_v14 = vmax.f32 %v5435_v50, %v6007_v37  ;;  %v5441_v33 = vmax.f32 %v4600_v8, 0.0  ;;  %v5443_v31 = vmax.f32 %v4953_v47, 0.0 }
 0x864   : > { %v6134_v45 = vmax.f32 %v5434_v57, %v6006_v38  ;;  %v6136_v22 = vmax.f32 %v5436_v62, %v6008_v19  ;;  %v5442_v42 = vmax.f32 %v4602_v18, 0.0  ;;  %v5444_v40 = vmax.f32 %v4955_v35, 0.0 }
 0x865   : > { %v6197_v54 = vmax.f32 %v5441_v33, %v6133_v59  ;;  %v6199_v11 = vmax.f32 %v5443_v31, %v6135_v14 }
 0x866   : > { %v6198_v61 = vmax.f32 %v5442_v42, %v6134_v45  ;;  %v6200_v0 = vmax.f32 %v5444_v40, %v6136_v22  ;;  %v4605_v36 = vpop.f32.mrb[112].mxu0  ;;  %v4958_v60 = vpop.f32.mrb[112].mxu1 }
 0x867   : > { %v4606_v34 = vadd.f32 %v4605_v36, %v15205_v15  ;;  %v4959_v44 = vadd.f32 %v4958_v60, %v15207_v6  ;;  %v4607_v10 = vpop.f32.mrb[113].mxu0  ;;  %v4960_v3 = vpop.f32.mrb[113].mxu1 }
 0x868   : > { %v4608_v13 = vadd.f32 %v4607_v10, %v15211_v41  ;;  %v4961_v32 = vadd.f32 %v4960_v3, %v15213_v58  ;;  %v4609_v28 = vpop.f32.mrb[114].mxu0  ;;  %v4962_v48 = vpop.f32.mrb[114].mxu1 }
 0x869   : > { %v5449_v63 = vmax.f32 %v4606_v34, 0.0  ;;  %v5451_v27 = vmax.f32 %v4959_v44, 0.0  ;;  %v4610_v26 = vadd.f32 %v4609_v28, %v15205_v15  ;;  %v4963_v43 = vadd.f32 %v4962_v48, %v15207_v6  ;;  %v4611_v17 = vpop.f32.mrb[115].mxu0  ;;  %v4964_v51 = vpop.f32.mrb[115].mxu1 }
 0x86a   : > { %v5450_v16 = vmax.f32 %v4608_v13, 0.0  ;;  %v5452_v29 = vmax.f32 %v4961_v32, 0.0  ;;  %v4612_v37 = vadd.f32 %v4611_v17, %v15211_v41  ;;  %v4965_v38 = vadd.f32 %v4964_v51, %v15213_v58 }
 0x86b   : > { %v6229_v19 = vmax.f32 %v5449_v63, %v6197_v54  ;;  %v6231_v53 = vmax.f32 %v5451_v27, %v6199_v11  ;;  %v5457_v12 = vmax.f32 %v4610_v26, 0.0  ;;  %v5459_v5 = vmax.f32 %v4963_v43, 0.0 }
 0x86c   : > { %v6230_v9 = vmax.f32 %v5450_v16, %v6198_v61  ;;  %v6232_v56 = vmax.f32 %v5452_v29, %v6200_v0  ;;  %v5458_v21 = vmax.f32 %v4612_v37, 0.0  ;;  %v5460_v52 = vmax.f32 %v4965_v38, 0.0 }
 0x86d   : > { %v6245_v55 = vmax.f32 %v5457_v12, %v6229_v19  ;;  %v6247_v23 = vmax.f32 %v5459_v5, %v6231_v53 }
 0x86e   : > { %v6246_v25 = vmax.f32 %v5458_v21, %v6230_v9  ;;  %v6248_v24 = vmax.f32 %v5460_v52, %v6232_v56  ;;  %v4615_v50 = vpop.f32.mrb[116].mxu0  ;;  %v4968_v8 = vpop.f32.mrb[116].mxu1 }
 0x86f   : > { %v4616_v47 = vadd.f32 %v4615_v50, %v15205_v15  ;;  %v4969_v4 = vadd.f32 %v4968_v8, %v15207_v6  ;;  %v4617_v30 = vpop.f32.mrb[117].mxu0  ;;  %v4970_v57 = vpop.f32.mrb[117].mxu1 }
 0x870   : > { %v4618_v62 = vadd.f32 %v4617_v30, %v15211_v41  ;;  %v4971_v18 = vadd.f32 %v4970_v57, %v15213_v58  ;;  %v4619_v35 = vpop.f32.mrb[118].mxu0  ;;  %v4972_v59 = vpop.f32.mrb[118].mxu1 }
 0x871   : > { %v5465_v14 = vmax.f32 %v4616_v47, 0.0  ;;  %v5467_v33 = vmax.f32 %v4969_v4, 0.0  ;;  %v4620_v31 = vadd.f32 %v4619_v35, %v15205_v15  ;;  %v4973_v45 = vadd.f32 %v4972_v59, %v15207_v6  ;;  %v4621_v22 = vpop.f32.mrb[119].mxu0  ;;  %v4974_v42 = vpop.f32.mrb[119].mxu1 }
 0x872   : > { %v5466_v40 = vmax.f32 %v4618_v62, 0.0  ;;  %v5468_v54 = vmax.f32 %v4971_v18, 0.0  ;;  %v4622_v11 = vadd.f32 %v4621_v22, %v15211_v41  ;;  %v4975_v61 = vadd.f32 %v4974_v42, %v15213_v58 }
 0x873   : > { %v6013_v0 = vmax.f32 %v5465_v14, %v6245_v55  ;;  %v6015_v36 = vmax.f32 %v5467_v33, %v6247_v23  ;;  %v5473_v60 = vmax.f32 %v4620_v31, 0.0  ;;  %v5475_v34 = vmax.f32 %v4973_v45, 0.0 }
 0x874   : > { %v6014_v44 = vmax.f32 %v5466_v40, %v6246_v25  ;;  %v6016_v10 = vmax.f32 %v5468_v54, %v6248_v24  ;;  %v5474_v3 = vmax.f32 %v4622_v11, 0.0  ;;  %v5476_v13 = vmax.f32 %v4975_v61, 0.0 }
 0x875   : > { %v6141_v32 = vmax.f32 %v5473_v60, %v6013_v0  ;;  %v6143_v28 = vmax.f32 %v5475_v34, %v6015_v36 }
 0x876   : > { %v6142_v48 = vmax.f32 %v5474_v3, %v6014_v44  ;;  %v6144_v63 = vmax.f32 %v5476_v13, %v6016_v10  ;;  %v4625_v27 = vpop.f32.mrb[120].mxu0  ;;  %v4978_v26 = vpop.f32.mrb[120].mxu1 }
 0x877   : > { %v4626_v43 = vadd.f32 %v4625_v27, %v15205_v15  ;;  %v4979_v17 = vadd.f32 %v4978_v26, %v15207_v6  ;;  %v4627_v51 = vpop.f32.mrb[121].mxu0  ;;  %v4980_v16 = vpop.f32.mrb[121].mxu1 }
 0x878   : > { %v4628_v29 = vadd.f32 %v4627_v51, %v15211_v41  ;;  %v4981_v37 = vadd.f32 %v4980_v16, %v15213_v58  ;;  %v4629_v38 = vpop.f32.mrb[122].mxu0  ;;  %v4982_v19 = vpop.f32.mrb[122].mxu1 }
 0x879   : > { %v5481_v53 = vmax.f32 %v4626_v43, 0.0  ;;  %v5483_v12 = vmax.f32 %v4979_v17, 0.0  ;;  %v4630_v5 = vadd.f32 %v4629_v38, %v15205_v15  ;;  %v4983_v9 = vadd.f32 %v4982_v19, %v15207_v6  ;;  %v4631_v56 = vpop.f32.mrb[123].mxu0  ;;  %v4984_v21 = vpop.f32.mrb[123].mxu1 }
 0x87a   : > { %v5482_v52 = vmax.f32 %v4628_v29, 0.0  ;;  %v5484_v55 = vmax.f32 %v4981_v37, 0.0  ;;  %v4632_v23 = vadd.f32 %v4631_v56, %v15211_v41  ;;  %v4985_v25 = vadd.f32 %v4984_v21, %v15213_v58 }
 0x87b   : > { %v6205_v24 = vmax.f32 %v5481_v53, %v6141_v32  ;;  %v6207_v50 = vmax.f32 %v5483_v12, %v6143_v28  ;;  %v5489_v8 = vmax.f32 %v4630_v5, 0.0  ;;  %v5491_v47 = vmax.f32 %v4983_v9, 0.0 }
 0x87c   : > { %v6206_v4 = vmax.f32 %v5482_v52, %v6142_v48  ;;  %v6208_v30 = vmax.f32 %v5484_v55, %v6144_v63  ;;  %v5490_v57 = vmax.f32 %v4632_v23, 0.0  ;;  %v5492_v62 = vmax.f32 %v4985_v25, 0.0 }
 0x87d   : > { %v6237_v18 = vmax.f32 %v5489_v8, %v6205_v24  ;;  %v6239_v35 = vmax.f32 %v5491_v47, %v6207_v50 }
 0x87e   : > { %v6238_v59 = vmax.f32 %v5490_v57, %v6206_v4  ;;  %v6240_v14 = vmax.f32 %v5492_v62, %v6208_v30  ;;  %v4635_v33 = vpop.f32.mrb[124].mxu0  ;;  %v4988_v31 = vpop.f32.mrb[124].mxu1 }
 0x87f   : > { %v4636_v45 = vadd.f32 %v4635_v33, %v15205_v15  ;;  %v4989_v22 = vadd.f32 %v4988_v31, %v15207_v6  ;;  %v4637_v42 = vpop.f32.mrb[125].mxu0  ;;  %v4990_v40 = vpop.f32.mrb[125].mxu1 }
 0x880   : > { %v4638_v54 = vadd.f32 %v4637_v42, %v15211_v41  ;;  %v4991_v11 = vadd.f32 %v4990_v40, %v15213_v58  ;;  %v4639_v61 = vpop.f32.mrb[126].mxu0  ;;  %v4992_v0 = vpop.f32.mrb[126].mxu1  ;;  %6268 = sbr.rel (%p10787_p6) target bundleno = 2185 (0x889), region = 176 }
 0x881   : > { %v5497_v36 = vmax.f32 %v4636_v45, 0.0  ;;  %v5499_v60 = vmax.f32 %v4989_v22, 0.0  ;;  %v4640_v34 = vadd.f32 %v4639_v61, %v15205_v15  ;;  %v4993_v44 = vadd.f32 %v4992_v0, %v15207_v6  ;;  %v4641_v10 = vpop.f32.mrb[127].mxu0  ;;  %v4994_v3 = vpop.f32.mrb[127].mxu1 }
 0x882   : > { %v5498_v13 = vmax.f32 %v4638_v54, 0.0  ;;  %v5500_v32 = vmax.f32 %v4991_v11, 0.0  ;;  %v4642_v28 = vadd.f32 %v4641_v10, %v15211_v41  ;;  %v4995_v48 = vadd.f32 %v4994_v3, %v15213_v58  ;;  %v15769_v41 = vld [vmem:[#allocation47_spill] sm:$0xff] (!%p10787_p6)  ;;  %v15770_v58 = vld [vmem:[#allocation48_spill] sm:$0xff] (!%p10787_p6) }
 0x883   : > { %v6253_v63 = vmax.f32 %v5497_v36, %v6237_v18  ;;  %v6255_v27 = vmax.f32 %v5499_v60, %v6239_v35  ;;  %v5505_v26 = vmax.f32 %v4640_v34, 0.0  ;;  %v5507_v43 = vmax.f32 %v4993_v44, 0.0  ;;  %6271 = vst.msk [vmem:[#allocation4] sm:$0xff] (!%p10787_p6), %vm1637_vm2, %v15769_v41  ;;  %6272 = vst [vmem:[#allocation5] sm:$0xff] (!%p10787_p6), %v15770_v58 }
 0x884   : > { %v6254_v17 = vmax.f32 %v5498_v13, %v6238_v59  ;;  %v6256_v51 = vmax.f32 %v5500_v32, %v6240_v14  ;;  %v5506_v16 = vmax.f32 %v4642_v28, 0.0  ;;  %v5508_v29 = vmax.f32 %v4995_v48, 0.0 }
 0x885   : > { %v6261_v37 = vmax.f32 %v5505_v26, %v6253_v63  ;;  %v6263_v15 = vmax.f32 %v5507_v43, %v6255_v27 }
 0x886   : > { %v6262_v38 = vmax.f32 %v5506_v16, %v6254_v17  ;;  %v6264_v6 = vmax.f32 %v5508_v29, %v6256_v51 }
 0x887   : > { %6277 = vst [vmem:[#allocation6 + $0x20] sm:$0xff] %v6261_v37  ;;  %6279 = vst [vmem:[#allocation6 + $0x30] sm:$0xff] %v6263_v15 }
 0x888   : > { %6278 = vst [vmem:[#allocation6 + $0x28] sm:$0xff] %v6262_v38  ;;  %6280 = vst [vmem:[#allocation6 + $0x38] sm:$0xff] %v6264_v6 }
 0x889 PF: > { %s15771_s9 = sld [smem:[#allocation42_spill]] }
 0x88f   : > { %p10788_p8 = scmp.le.s32.totalorder %s15771_s9, 0 }
 0x890   : > { %v6285_v19 = vld [vmem:[#allocation2] sm:$0xff] (!%p10788_p8)  ;;  %v6288_v53 = vld [vmem:[#allocation3] sm:$0xff] (!%p10788_p8)  ;;  %v6291_v12 = vld [vmem:[#allocation4] sm:$0xff] (!%p10788_p8) }
 0x891   : > { %6284 = sbr.rel (%p10788_p8) target bundleno = 2202 (0x89a), region = 180  ;;  %v6286_v5 = vmax.f32 (!%p10788_p8), %v6285_v19, %v14325_v20  ;;  %v6289_v9 = vmax.f32 (!%p10788_p8), %v6288_v53, %v14424_v7  ;;  %v15772_v56 = vld [vmem:[#allocation47_spill] sm:$0xff] (!%p10788_p8)  ;;  %v6298_v23 = vld [vmem:[#allocation6 + $0x8] sm:$0xff] (!%p10788_p8)  ;;  %v6299_v47 = vld [vmem:[#allocation6 + $0x10] sm:$0xff] (!%p10788_p8) }
 0x892   : > { %v6292_v21 = vmax.f32 (!%p10788_p8), %v6291_v12, %v15772_v56  ;;  %v6294_v52 = vld [vmem:[#allocation5] sm:$0xff] (!%p10788_p8)  ;;  %v6297_v55 = vld [vmem:[#allocation6] sm:$0xff] (!%p10788_p8)  ;;  %v6306_v8 = vmax.f32 (!%p10788_p8), %v6298_v23, %v15227_v2  ;;  %v6307_v20 = vmax.f32 (!%p10788_p8), %v6299_v47, %v15225_v46  ;;  %v6302_v62 = vld [vmem:[#allocation6 + $0x28] sm:$0xff] (!%p10788_p8) }
 0x893   : > { %v15773_v25 = vld [vmem:[#allocation48_spill] sm:$0xff] (!%p10788_p8)  ;;  %v6305_v50 = vmax.f32 (!%p10788_p8), %v6297_v55, %v15223_v39  ;;  %v6300_v4 = vld [vmem:[#allocation6 + $0x18] sm:$0xff] (!%p10788_p8)  ;;  %6287 = vst.msk [vmem:[#allocation2] sm:$0xff] (!%p10788_p8), %vm1637_vm2, %v6286_v5  ;;  %6290 = vst.msk [vmem:[#allocation3] sm:$0xff] (!%p10788_p8), %vm1637_vm2, %v6289_v9  ;;  %v6310_v39 = vmax.f32 (!%p10788_p8), %v6302_v62, %v6262_v38 }
 0x894   : > { %v6295_v24 = vmax.f32 (!%p10788_p8), %v6294_v52, %v15773_v25  ;;  %v6301_v30 = vld [vmem:[#allocation6 + $0x20] sm:$0xff] (!%p10788_p8)  ;;  %6293 = vst.msk [vmem:[#allocation4] sm:$0xff] (!%p10788_p8), %vm1637_vm2, %v6292_v21  ;;  %v6308_v7 = vmax.f32 (!%p10788_p8), %v6300_v4, %v15229_v49  ;;  %v6303_v18 = vld [vmem:[#allocation6 + $0x30] sm:$0xff] (!%p10788_p8)  ;;  %v6304_v35 = vld [vmem:[#allocation6 + $0x38] sm:$0xff] (!%p10788_p8) }
 0x895   : > { %v6309_v57 = vmax.f32 (!%p10788_p8), %v6301_v30, %v6261_v37  ;;  %6313 = vst [vmem:[#allocation6] sm:$0xff] (!%p10788_p8), %v6305_v50  ;;  %6314 = vst [vmem:[#allocation6 + $0x8] sm:$0xff] (!%p10788_p8), %v6306_v8  ;;  %v6311_v2 = vmax.f32 (!%p10788_p8), %v6303_v18, %v6263_v15  ;;  %v6312_v59 = vmax.f32 (!%p10788_p8), %v6304_v35, %v6264_v6 }
 0x896   : > { %6296 = vst [vmem:[#allocation5] sm:$0xff] (!%p10788_p8), %v6295_v24  ;;  %6315 = vst [vmem:[#allocation6 + $0x10] sm:$0xff] (!%p10788_p8), %v6307_v20 }
 0x897   : > { %6316 = vst [vmem:[#allocation6 + $0x18] sm:$0xff] (!%p10788_p8), %v6308_v7  ;;  %6317 = vst [vmem:[#allocation6 + $0x20] sm:$0xff] (!%p10788_p8), %v6309_v57 }
 0x898   : > { %6318 = vst [vmem:[#allocation6 + $0x28] sm:$0xff] %v6310_v39  ;;  %6319 = vst [vmem:[#allocation6 + $0x30] sm:$0xff] %v6311_v2 }
 0x899   : > { %6320 = vst [vmem:[#allocation6 + $0x38] sm:$0xff] %v6312_v59 }
 0x89a PF: > { %s15774_s11 = sld [smem:[#allocation42_spill]] }
 0x8a0   : > { %p10789_p9 = scmp.ne.s32.totalorder %s15774_s11, 1 }
 0x8a1   : > { %v12081_v46 = vld [vmem:[#allocation23 + $0x4] ss:$16 sps:$4 sm:$0xff] (!%p10789_p9)   ;;  %v13403_v14 = vmov (!%p10789_p9), 0   ;;  %v12085_v33 = vld [vmem:[#allocation23] ss:$16 sps:$4 sm:$0xff] (!%p10789_p9)   ;;  %vm15537_vm3 = vmpackc.low (!%p10789_p9), %vm1637_vm2, %vm1637_vm2  ;;  %s15782_s1 = sld [smem:[#allocation69_spill]] (!%p10789_p9) }
 0x8a2   : > { %6324 = sbr.rel (%p10789_p9) target bundleno = 3536 (0xdd0), region = 184  ;;  %v12083_v49 = vld [vmem:[#allocation23 + $0xc04] ss:$16 sps:$4 sm:$0xff] (!%p10789_p9)   ;;  %9225 = vmatprep.mubr.bf16.mxu1 (!%p10789_p9), %v13403_v14  ;;  %8947 = vmatprep.subr.bf16.mxu0 (!%p10789_p9), %v12081_v46  ;;  %v12086_v31 = vld [vmem:[#allocation23 + $0xc00] ss:$16 sps:$4 sm:$0xff] (!%p10789_p9)   ;;  %vm13405_vm4 = vmmov (!%p10789_p9), 0  }
 0x8a3   : > { %9193 = vmatprep.subr.bf16.mxu1 (!%p10789_p9), %v12083_v49  ;;  %v12087_v45 = vld [vmem:[#allocation23 + $0x24] ss:$16 sps:$4 sm:$0xff] (!%p10789_p9)   ;;  %8948 = vmatpush1.bf16.msra.mxu0 (!%p10789_p9), %v12085_v33  ;;  %v12091_v42 = vld [vmem:[#allocation23 + $0x20] ss:$16 sps:$4 sm:$0xff] (!%p10789_p9)   ;;  %v12133_v12 = vld [vmem:[#allocation23 + $0xc] ss:$16 sps:$4 sm:$0xff] (!%p10789_p9)  }
 0x8a4   : > { %9194 = vmatpush1.bf16.msra.mxu1 (!%p10789_p9), %v12086_v31  ;;  %v12089_v22 = vld [vmem:[#allocation23 + $0xc24] ss:$16 sps:$4 sm:$0xff] (!%p10789_p9)   ;;  %8949 = vmatprep.subr.bf16.mxu0 (!%p10789_p9), %v12087_v45  ;;  %v12092_v40 = vld [vmem:[#allocation23 + $0xc20] ss:$16 sps:$4 sm:$0xff] (!%p10789_p9)   ;;  %v12131_v52 = vld [vmem:[#allocation23 + $0x8] ss:$16 sps:$4 sm:$0xff] (!%p10789_p9)  }
 0x8a5   : > { %9195 = vmatprep.subr.bf16.mxu1 (!%p10789_p9), %v12089_v22  ;;  %v12093_v54 = vld [vmem:[#allocation23 + $0x44] ss:$16 sps:$4 sm:$0xff] (!%p10789_p9)   ;;  %v12097_v61 = vld [vmem:[#allocation23 + $0x40] ss:$16 sps:$4 sm:$0xff] (!%p10789_p9)   ;;  %v12139_v23 = vld [vmem:[#allocation23 + $0x2c] ss:$16 sps:$4 sm:$0xff] (!%p10789_p9)  }
 0x8a6   : > { %v12095_v11 = vld [vmem:[#allocation23 + $0xc44] ss:$16 sps:$4 sm:$0xff] (!%p10789_p9)   ;;  %v12098_v0 = vld [vmem:[#allocation23 + $0xc40] ss:$16 sps:$4 sm:$0xff] (!%p10789_p9)   ;;  %v12137_v50 = vld [vmem:[#allocation23 + $0x28] ss:$16 sps:$4 sm:$0xff] (!%p10789_p9)  }
 0x8a7   : > { %8950 = vmatpush1.bf16.msra.mxu0 (!%p10789_p9), %v12091_v42  ;;  %v12099_v36 = vld [vmem:[#allocation23 + $0x64] ss:$16 sps:$4 sm:$0xff] (!%p10789_p9)   ;;  %v12103_v34 = vld [vmem:[#allocation23 + $0x60] ss:$16 sps:$4 sm:$0xff] (!%p10789_p9)   ;;  %v12145_v8 = vld [vmem:[#allocation23 + $0x4c] ss:$16 sps:$4 sm:$0xff] (!%p10789_p9)  }
 0x8a8   : > { %9196 = vmatpush1.bf16.msra.mxu1 (!%p10789_p9), %v12092_v40  ;;  %8951 = vmatprep.subr.bf16.mxu0 (!%p10789_p9), %v12093_v54  ;;  %v12101_v60 = vld [vmem:[#allocation23 + $0xc64] ss:$16 sps:$4 sm:$0xff] (!%p10789_p9)   ;;  %v12104_v44 = vld [vmem:[#allocation23 + $0xc60] ss:$16 sps:$4 sm:$0xff] (!%p10789_p9)   ;;  %v12143_v30 = vld [vmem:[#allocation23 + $0x48] ss:$16 sps:$4 sm:$0xff] (!%p10789_p9)  }
 0x8a9   : > { %9197 = vmatprep.subr.bf16.mxu1 %v12095_v11  ;;  %v12105_v10 = vld [vmem:[#allocation23 + $0x84] ss:$16 sps:$4 sm:$0xff]   ;;  %v12109_v13 = vld [vmem:[#allocation23 + $0x80] ss:$16 sps:$4 sm:$0xff]   ;;  %v12151_v20 = vld [vmem:[#allocation23 + $0x6c] ss:$16 sps:$4 sm:$0xff]  }
 0x8aa   : > { %v12107_v3 = vld [vmem:[#allocation23 + $0xc84] ss:$16 sps:$4 sm:$0xff]   ;;  %v12110_v32 = vld [vmem:[#allocation23 + $0xc80] ss:$16 sps:$4 sm:$0xff]   ;;  %v12149_v39 = vld [vmem:[#allocation23 + $0x68] ss:$16 sps:$4 sm:$0xff]  }
 0x8ab   : > { %8952 = vmatpush1.bf16.msra.mxu0 %v12097_v61  ;;  %v12111_v28 = vld [vmem:[#allocation23 + $0xa4] ss:$16 sps:$4 sm:$0xff]   ;;  %v12115_v63 = vld [vmem:[#allocation23 + $0xa0] ss:$16 sps:$4 sm:$0xff]   ;;  %v12157_v2 = vld [vmem:[#allocation23 + $0x8c] ss:$16 sps:$4 sm:$0xff]  }
 0x8ac   : > { %9198 = vmatpush1.bf16.msra.mxu1 %v12098_v0  ;;  %8953 = vmatprep.subr.bf16.mxu0 %v12099_v36  ;;  %v12113_v48 = vld [vmem:[#allocation23 + $0xca4] ss:$16 sps:$4 sm:$0xff]   ;;  %v12116_v27 = vld [vmem:[#allocation23 + $0xca0] ss:$16 sps:$4 sm:$0xff]   ;;  %v12155_v31 = vld [vmem:[#allocation23 + $0x88] ss:$16 sps:$4 sm:$0xff]  }
 0x8ad   : > { %9199 = vmatprep.subr.bf16.mxu1 %v12101_v60  ;;  %v12117_v26 = vld [vmem:[#allocation23 + $0xc4] ss:$16 sps:$4 sm:$0xff]   ;;  %v12121_v51 = vld [vmem:[#allocation23 + $0xc0] ss:$16 sps:$4 sm:$0xff]   ;;  %v12163_v45 = vld [vmem:[#allocation23 + $0xac] ss:$16 sps:$4 sm:$0xff]  }
 0x8ae   : > { %v12119_v43 = vld [vmem:[#allocation23 + $0xcc4] ss:$16 sps:$4 sm:$0xff]   ;;  %v12122_v16 = vld [vmem:[#allocation23 + $0xcc0] ss:$16 sps:$4 sm:$0xff]   ;;  %v12161_v11 = vld [vmem:[#allocation23 + $0xa8] ss:$16 sps:$4 sm:$0xff]  }
 0x8af   : > { %8954 = vmatpush1.bf16.msra.mxu0 %v12103_v34  ;;  %v6363_v17 = vld [vmem:[#allocation6 + $0x38] sm:$0xff]  ;;  %v12127_v6 = vld [vmem:[#allocation23 + $0xe0] ss:$16 sps:$4 sm:$0xff]   ;;  %v12169_v61 = vld [vmem:[#allocation23 + $0xcc] ss:$16 sps:$4 sm:$0xff]   ;;  %vm10287_vm5 = vcmask 122880  }
 0x8b0   : > { %9200 = vmatpush1.bf16.msra.mxu1 %v12104_v44  ;;  %8955 = vmatprep.subr.bf16.mxu0 %v12105_v10  ;;  %v6406_v29 = vrot.slane %v6363_v17, 4  ;;  %v12123_v37 = vld [vmem:[#allocation23 + $0xe4] ss:$16 sps:$4 sm:$0xff]   ;;  %v12128_v58 = vld [vmem:[#allocation23 + $0xce0] ss:$16 sps:$4 sm:$0xff]  }
 0x8b1   : > { %9201 = vmatprep.subr.bf16.mxu1 %v12107_v3  ;;  %v12125_v15 = vld [vmem:[#allocation23 + $0xce4] ss:$16 sps:$4 sm:$0xff]   ;;  %v12134_v9 = vld [vmem:[#allocation23 + $0x100] ss:$16 sps:$4 sm:$0xff]   ;;  %v12167_v10 = vld [vmem:[#allocation23 + $0xc8] ss:$16 sps:$4 sm:$0xff]  }
 0x8b2   : > { %v6407_v38 = vmax.f32 %v6363_v17, %v6406_v29  ;;  %v12129_v19 = vld [vmem:[#allocation23 + $0x104] ss:$16 sps:$4 sm:$0xff]   ;;  %v12140_v25 = vld [vmem:[#allocation23 + $0x120] ss:$16 sps:$4 sm:$0xff]   ;;  %v12175_v3 = vld [vmem:[#allocation23 + $0xec] ss:$16 sps:$4 sm:$0xff]  }
 0x8b3   : > { %8956 = vmatpush1.bf16.msra.mxu0 %v12109_v13  ;;  %v12135_v21 = vld [vmem:[#allocation23 + $0x124] ss:$16 sps:$4 sm:$0xff]   ;;  %v12146_v47 = vld [vmem:[#allocation23 + $0x140] ss:$16 sps:$4 sm:$0xff]   ;;  %v12180_v17 = vld [vmem:[#allocation23 + $0x108] ss:$16 sps:$4 sm:$0xff]  }
 0x8b4   : > { %9202 = vmatpush1.bf16.msra.mxu1 %v12110_v32  ;;  %8957 = vmatprep.subr.bf16.mxu0 %v12111_v28  ;;  %v6408_v41 = vrot.slane %v6407_v38, 2  ;;  %v12141_v24 = vld [vmem:[#allocation23 + $0x144] ss:$16 sps:$4 sm:$0xff]   ;;  %v6325_v7 = vld [vmem:[#allocation2] sm:$0xff] }
 0x8b5   : > { %9203 = vmatprep.subr.bf16.mxu1 %v12113_v48  ;;  %v12147_v4 = vld [vmem:[#allocation23 + $0x164] ss:$16 sps:$4 sm:$0xff]   ;;  %v12152_v57 = vld [vmem:[#allocation23 + $0x160] ss:$16 sps:$4 sm:$0xff]   ;;  %v6326_v62 = vsel %vm1637_vm2, %v6325_v7, -inf }
 0x8b6   : > { %v6409_v53 = vmax.f32 %v6407_v38, %v6408_v41  ;;  %v12153_v18 = vld [vmem:[#allocation23 + $0x184] ss:$16 sps:$4 sm:$0xff]   ;;  %v6327_v35 = vrot.slane %v6326_v62, 4  ;;  %v12158_v46 = vld [vmem:[#allocation23 + $0x180] ss:$16 sps:$4 sm:$0xff]  }
 0x8b7   : > { %8958 = vmatpush1.bf16.msra.mxu0 %v12115_v63  ;;  %v12159_v49 = vld [vmem:[#allocation23 + $0x1a4] ss:$16 sps:$4 sm:$0xff]   ;;  %v12164_v42 = vld [vmem:[#allocation23 + $0x1a0] ss:$16 sps:$4 sm:$0xff]   ;;  %v6412_v32 = vld [vmem:[%s932_s29] sm:$0x1] }
 0x8b8   : > { %9204 = vmatpush1.bf16.msra.mxu1 %v12116_v27  ;;  %8959 = vmatprep.subr.bf16.mxu0 %v12117_v26  ;;  %v6410_v5 = vrot.slane %v6409_v53, 1  ;;  %v6328_v59 = vmax.f32 %v6326_v62, %v6327_v35  ;;  %v12165_v40 = vld [vmem:[#allocation23 + $0x1c4] ss:$16 sps:$4 sm:$0xff]   ;;  %v12170_v0 = vld [vmem:[#allocation23 + $0x1c0] ss:$16 sps:$4 sm:$0xff]   ;;  %v15550_v27 = vpack.c.bf16 %v6412_v32, %v6412_v32 }
 0x8b9   : > { %9205 = vmatprep.subr.bf16.mxu1 %v12119_v43  ;;  %v12171_v34 = vld [vmem:[#allocation23 + $0x1e4] ss:$16 sps:$4 sm:$0xff]   ;;  %v12176_v13 = vld [vmem:[#allocation23 + $0x1e0] ss:$16 sps:$4 sm:$0xff]   ;;  %v12173_v48 = vld [vmem:[#allocation23 + $0xe8] ss:$16 sps:$4 sm:$0xff]  }
 0x8ba   : > { %v6411_v56 = vmax.f32 %v6409_v53, %v6410_v5  ;;  %v6329_v33 = vrot.slane %v6328_v59, 2  ;;  %v12179_v28 = vld [vmem:[#allocation23 + $0x204] ss:$16 sps:$4 sm:$0xff]   ;;  %v12182_v63 = vld [vmem:[#allocation23 + $0x10c] ss:$16 sps:$4 sm:$0xff]  }
 0x8bb   : > { %8960 = vmatpush1.bf16.msra.mxu0 %v12121_v51  ;;  %v12177_v26 = vld [vmem:[#allocation23 + $0x200] ss:$16 sps:$4 sm:$0xff]   ;;  %v12185_v43 = vld [vmem:[#allocation23 + $0x224] ss:$16 sps:$4 sm:$0xff]   ;;  %v12188_v51 = vld [vmem:[#allocation23 + $0x12c] ss:$16 sps:$4 sm:$0xff]  }
 0x8bc   : > { %9206 = vmatpush1.bf16.msra.mxu1 %v12122_v16  ;;  %8961 = vmatprep.subr.bf16.mxu0 %v12123_v37  ;;  %v15531_v55 = vpack.c.bf16 %v6411_v56, %v6411_v56  ;;  %v6330_v22 = vmax.f32 %v6328_v59, %v6329_v33  ;;  %v12183_v16 = vld [vmem:[#allocation23 + $0x220] ss:$16 sps:$4 sm:$0xff]   ;;  %v12191_v29 = vld [vmem:[#allocation23 + $0x244] ss:$16 sps:$4 sm:$0xff]   ;;  %v12186_v37 = vld [vmem:[#allocation23 + $0x128] ss:$16 sps:$4 sm:$0xff]  }
 0x8bd   : > { %9207 = vmatprep.subr.bf16.mxu1 %v12125_v15  ;;  %v12194_v15 = vld [vmem:[#allocation23 + $0x14c] ss:$16 sps:$4 sm:$0xff]   ;;  %v12189_v38 = vld [vmem:[#allocation23 + $0x240] ss:$16 sps:$4 sm:$0xff]   ;;  %v12192_v41 = vld [vmem:[#allocation23 + $0x148] ss:$16 sps:$4 sm:$0xff]  }
 0x8be   : > { %v6331_v54 = vrot.slane %v6330_v22, 1  ;;  %v12203_v53 = vld [vmem:[#allocation23 + $0x284] ss:$16 sps:$4 sm:$0xff]   ;;  %v12206_v5 = vld [vmem:[#allocation23 + $0x18c] ss:$16 sps:$4 sm:$0xff]  }
 0x8bf   : > { %8962 = vmatpush1.bf16.msra.mxu0 %v12127_v6  ;;  %v12197_v6 = vld [vmem:[#allocation23 + $0x264] ss:$16 sps:$4 sm:$0xff]   ;;  %v12216_v7 = vld [vmem:[#allocation23 + $0x1c8] ss:$16 sps:$4 sm:$0xff]   ;;  %v12224_v62 = vld [vmem:[#allocation23 + $0x1ec] ss:$16 sps:$4 sm:$0xff]  }
 0x8c0   : > { %9208 = vmatpush1.bf16.msra.mxu1 %v12128_v58  ;;  %8963 = vmatprep.subr.bf16.mxu0 %v12129_v19  ;;  %v6332_v36 = vmax.f32 %v6330_v22, %v6331_v54  ;;  %v12200_v58 = vld [vmem:[#allocation23 + $0x16c] ss:$16 sps:$4 sm:$0xff]   ;;  %v12195_v19 = vld [vmem:[#allocation23 + $0x260] ss:$16 sps:$4 sm:$0xff]   ;;  %v12209_v56 = vld [vmem:[#allocation23 + $0x2a4] ss:$16 sps:$4 sm:$0xff]  }
 0x8c1   : > { %9234 = vmatprep.subr.bf16.mxu1 %v12133_v12  ;;  %v12198_v12 = vld [vmem:[#allocation23 + $0x168] ss:$16 sps:$4 sm:$0xff]   ;;  %v12231_v54 = vld [vmem:[#allocation23 + $0x320] ss:$16 sps:$4 sm:$0xff]   ;;  %v12248_v32 = vld [vmem:[#allocation23 + $0x26c] ss:$16 sps:$4 sm:$0xff]  }
 0x8c2   : > { %v11207_v44 = vpack.c.bf16 %v6332_v36, %v6332_v36  ;;  %v12228_v22 = vld [vmem:[#allocation23 + $0x208] ss:$16 sps:$4 sm:$0xff]   ;;  %v12339_v60 = vld [vmem:[#allocation23 + $0x560] ss:$16 sps:$4 sm:$0xff]  }
 0x8c3   : > { %8964 = vmatpush1.bf16.msra.mxu0 %v12134_v9  ;;  %9226 = vmatmul.mubr.bf16.vlgmr.msra.gmra.mrb[0].mxu1 %v15531_v55  ;;  %v12201_v9 = vld [vmem:[#allocation23 + $0x280] ss:$16 sps:$4 sm:$0xff]   ;;  %v12234_v36 = vld [vmem:[#allocation23 + $0x228] ss:$16 sps:$4 sm:$0xff]  }
 0x8c4   : > { %8965 = vmatprep.subr.bf16.mxu0 %v12135_v21  ;;  %9235 = vmatpush1.bf16.msra.mxu1 %v12131_v52  ;;  %v12204_v21 = vld [vmem:[#allocation23 + $0x188] ss:$16 sps:$4 sm:$0xff]   ;;  %v12212_v52 = vld [vmem:[#allocation23 + $0x1ac] ss:$16 sps:$4 sm:$0xff]  }
 0x8c5   : > { %9236 = vmatprep.subr.bf16.mxu1 %v12139_v23  ;;  %11208 = vmatprep.mubr.msk.bf16.mxu0 %vm15537_vm3, %v11207_v44  ;;  %v12207_v23 = vld [vmem:[#allocation23 + $0x2a0] ss:$16 sps:$4 sm:$0xff]  }
 0x8c6   : > { %11217 = vmatprep.mubr.msk.bf16.mxu1 %vm15537_vm3, %v11207_v44 }
 0x8c7   : > { %8966 = vmatpush1.bf16.msra.mxu0 %v12140_v25  ;;  %v12215_v25 = vld [vmem:[#allocation23 + $0x2c4] ss:$16 sps:$4 sm:$0xff]  }
 0x8c8   : > { %8967 = vmatprep.subr.bf16.mxu0 %v12141_v24  ;;  %9237 = vmatpush1.bf16.msra.mxu1 %v12137_v50  ;;  %v12210_v24 = vld [vmem:[#allocation23 + $0x1a8] ss:$16 sps:$4 sm:$0xff]   ;;  %v6341_v50 = vld [vmem:[#allocation4] sm:$0xff] }
 0x8c9   : > { %9238 = vmatprep.subr.bf16.mxu1 %v12145_v8  ;;  %v12218_v8 = vld [vmem:[#allocation23 + $0x1cc] ss:$16 sps:$4 sm:$0xff]  }
 0x8cb   : > { %8968 = vmatpush1.bf16.msra.mxu0 %v12146_v47  ;;  %v6342_v47 = vsel %vm1637_vm2, %v6341_v50, -inf  ;;  %v12276_v50 = vld [vmem:[#allocation23 + $0x308] ss:$16 sps:$4 sm:$0xff]  }
 0x8cc   : > { %8969 = vmatprep.subr.bf16.mxu0 %v12147_v4  ;;  %9239 = vmatpush1.bf16.msra.mxu1 %v12143_v30  ;;  %v12213_v4 = vld [vmem:[#allocation23 + $0x2c0] ss:$16 sps:$4 sm:$0xff]   ;;  %v6343_v30 = vrot.slane %v6342_v47, 4 }
 0x8cd   : > { %9240 = vmatprep.subr.bf16.mxu1 %v12151_v20  ;;  %v12221_v20 = vld [vmem:[#allocation23 + $0x2e4] ss:$16 sps:$4 sm:$0xff]  }
 0x8cf   : > { %8970 = vmatpush1.bf16.msra.mxu0 %v12152_v57  ;;  %v6344_v57 = vmax.f32 %v6342_v47, %v6343_v30  ;;  %v6356_v47 = vld [vmem:[#allocation6] sm:$0xff] }
 0x8d0   : > { %8971 = vmatprep.subr.bf16.mxu0 %v12153_v18  ;;  %9241 = vmatpush1.bf16.msra.mxu1 %v12149_v39  ;;  %v12219_v18 = vld [vmem:[#allocation23 + $0x2e0] ss:$16 sps:$4 sm:$0xff]   ;;  %v12227_v39 = vld [vmem:[#allocation23 + $0x304] ss:$16 sps:$4 sm:$0xff]   ;;  %v6364_v30 = vrot.slane %v6356_v47, 4 }
 0x8d1   : > { %9242 = vmatprep.subr.bf16.mxu1 %v12157_v2  ;;  %v6345_v35 = vrot.slane %v6344_v57, 2  ;;  %v12222_v2 = vld [vmem:[#allocation23 + $0x1e8] ss:$16 sps:$4 sm:$0xff]  }
 0x8d3   : > { %8972 = vmatpush1.bf16.msra.mxu0 %v12158_v46  ;;  %v6346_v59 = vmax.f32 %v6344_v57, %v6345_v35  ;;  %v12230_v46 = vld [vmem:[#allocation23 + $0x20c] ss:$16 sps:$4 sm:$0xff]   ;;  %v6365_v57 = vmax.f32 %v6356_v47, %v6364_v30  ;;  %v12353_v47 = vld [vmem:[#allocation23 + $0x5a4] ss:$16 sps:$4 sm:$0xff]  }
 0x8d4   : > { %8973 = vmatprep.subr.bf16.mxu0 %v12159_v49  ;;  %9243 = vmatpush1.bf16.msra.mxu1 %v12155_v31  ;;  %v12225_v49 = vld [vmem:[#allocation23 + $0x300] ss:$16 sps:$4 sm:$0xff]   ;;  %v12233_v31 = vld [vmem:[#allocation23 + $0x324] ss:$16 sps:$4 sm:$0xff]  }
 0x8d5   : > { %9244 = vmatprep.subr.bf16.mxu1 %v12163_v45  ;;  %v6347_v33 = vrot.slane %v6346_v59, 1  ;;  %v6333_v45 = vld [vmem:[#allocation3] sm:$0xff]  ;;  %v6366_v35 = vrot.slane %v6365_v57, 2 }
 0x8d7   : > { %8974 = vmatpush1.bf16.msra.mxu0 %v12164_v42  ;;  %v6348_v42 = vmax.f32 %v6346_v59, %v6347_v33  ;;  %v6367_v59 = vmax.f32 %v6365_v57, %v6366_v35  ;;  %v12351_v57 = vld [vmem:[#allocation23 + $0x5a0] ss:$16 sps:$4 sm:$0xff]   ;;  %v12354_v35 = vld [vmem:[#allocation23 + $0x4a8] ss:$16 sps:$4 sm:$0xff]  }
 0x8d8   : > { %8975 = vmatprep.subr.bf16.mxu0 %v12165_v40  ;;  %9245 = vmatpush1.bf16.msra.mxu1 %v12161_v11  ;;  %v12236_v40 = vld [vmem:[#allocation23 + $0x22c] ss:$16 sps:$4 sm:$0xff]  }
 0x8d9   : > { %9246 = vmatprep.subr.bf16.mxu1 %v12169_v61  ;;  %v11210_v11 = vpack.c.bf16 %v6348_v42, %v6348_v42  ;;  %v6334_v61 = vsel %vm1637_vm2, %v6333_v45, -inf  ;;  %v6368_v33 = vrot.slane %v6367_v59, 1  ;;  %v12299_v45 = vld [vmem:[#allocation23 + $0x484] ss:$16 sps:$4 sm:$0xff]   ;;  %v12294_v42 = vld [vmem:[#allocation23 + $0x368] ss:$16 sps:$4 sm:$0xff]  }
 0x8da   : > { %v6335_v44 = vrot.slane %v6334_v61, 4 }
 0x8db   : > { %8976 = vmatpush1.bf16.msra.mxu0 %v12170_v0  ;;  %v12239_v0 = vld [vmem:[#allocation23 + $0x344] ss:$16 sps:$4 sm:$0xff]  }
 0x8dc   : > { %8977 = vmatprep.subr.bf16.mxu0 %v12171_v34  ;;  %9247 = vmatpush1.bf16.msra.mxu1 %v12167_v10  ;;  %v12242_v34 = vld [vmem:[#allocation23 + $0x24c] ss:$16 sps:$4 sm:$0xff]   ;;  %v12237_v10 = vld [vmem:[#allocation23 + $0x340] ss:$16 sps:$4 sm:$0xff]  }
 0x8dd   : > { %9248 = vmatprep.subr.bf16.mxu1 %v12175_v3  ;;  %v12245_v3 = vld [vmem:[#allocation23 + $0x364] ss:$16 sps:$4 sm:$0xff]  }
 0x8df   : > { %8978 = vmatpush1.bf16.msra.mxu0 %v12176_v13  ;;  %v12240_v13 = vld [vmem:[#allocation23 + $0x248] ss:$16 sps:$4 sm:$0xff]  }
 0x8e0   : > { %8988 = vmatprep.subr.bf16.mxu0 %v12179_v28  ;;  %9249 = vmatpush1.bf16.msra.mxu1 %v12173_v48  ;;  %v6336_v28 = vmax.f32 %v6334_v61, %v6335_v44  ;;  %v12243_v48 = vld [vmem:[#allocation23 + $0x360] ss:$16 sps:$4 sm:$0xff]   ;;  %v12305_v61 = vld [vmem:[#allocation23 + $0x4a4] ss:$16 sps:$4 sm:$0xff]  }
 0x8e1   : > { %9250 = vmatprep.subr.bf16.mxu1 %v12182_v63  ;;  %v12251_v63 = vld [vmem:[#allocation23 + $0x384] ss:$16 sps:$4 sm:$0xff]  }
 0x8e2   : > { %8980 = vmatmul.mubr.bf16.vlgmr.msra.gmra.mrb[0].mxu0 %v15550_v27  ;;  %v12311_v44 = vld [vmem:[#allocation23 + $0x4c4] ss:$16 sps:$4 sm:$0xff]  }
 0x8e3   : > { %8989 = vmatpush1.bf16.msra.mxu0 %v12177_v26  ;;  %11211 = vmatprep.mubr.msk.bf16.mxu0 %vm15537_vm3, %v11210_v11  ;;  %v12254_v26 = vld [vmem:[#allocation23 + $0x28c] ss:$16 sps:$4 sm:$0xff]  }
 0x8e4   : > { %8990 = vmatprep.subr.bf16.mxu0 %v12185_v43  ;;  %9251 = vmatpush1.bf16.msra.mxu1 %v12180_v17  ;;  %v6337_v43 = vrot.slane %v6336_v28, 2  ;;  %v12249_v17 = vld [vmem:[#allocation23 + $0x380] ss:$16 sps:$4 sm:$0xff]  }
 0x8e5   : > { %9252 = vmatprep.subr.bf16.mxu1 %v12188_v51  ;;  %v12257_v51 = vld [vmem:[#allocation23 + $0x3a4] ss:$16 sps:$4 sm:$0xff]  }
 0x8e7   : > { %8991 = vmatpush1.bf16.msra.mxu0 %v12183_v16  ;;  %v12252_v16 = vld [vmem:[#allocation23 + $0x288] ss:$16 sps:$4 sm:$0xff]  }
 0x8e8   : > { %8992 = vmatprep.subr.bf16.mxu0 %v12191_v29  ;;  %9253 = vmatpush1.bf16.msra.mxu1 %v12186_v37  ;;  %v12260_v29 = vld [vmem:[#allocation23 + $0x2ac] ss:$16 sps:$4 sm:$0xff]   ;;  %v6338_v37 = vmax.f32 %v6336_v28, %v6337_v43  ;;  %v12312_v28 = vld [vmem:[#allocation23 + $0x3c8] ss:$16 sps:$4 sm:$0xff]  }
 0x8e9   : > { %9254 = vmatprep.subr.bf16.mxu1 %v12194_v15  ;;  %v12255_v15 = vld [vmem:[#allocation23 + $0x3a0] ss:$16 sps:$4 sm:$0xff]   ;;  %v12326_v43 = vld [vmem:[#allocation23 + $0x40c] ss:$16 sps:$4 sm:$0xff]  }
 0x8eb   : > { %8993 = vmatpush1.bf16.msra.mxu0 %v12189_v38  ;;  %v12263_v38 = vld [vmem:[#allocation23 + $0x3c4] ss:$16 sps:$4 sm:$0xff]  }
 0x8ec   : > { %8994 = vmatprep.subr.bf16.mxu0 %v12197_v6  ;;  %9255 = vmatpush1.bf16.msra.mxu1 %v12192_v41  ;;  %v12258_v6 = vld [vmem:[#allocation23 + $0x2a8] ss:$16 sps:$4 sm:$0xff]   ;;  %v12266_v41 = vld [vmem:[#allocation23 + $0x2cc] ss:$16 sps:$4 sm:$0xff]  }
 0x8ed   : > { %9256 = vmatprep.subr.bf16.mxu1 %v12200_v58  ;;  %v6339_v58 = vrot.slane %v6338_v37, 1 }
 0x8ef   : > { %8995 = vmatpush1.bf16.msra.mxu0 %v12195_v19  ;;  %v12261_v19 = vld [vmem:[#allocation23 + $0x3c0] ss:$16 sps:$4 sm:$0xff]  }
 0x8f0   : > { %8996 = vmatprep.subr.bf16.mxu0 %v12203_v53  ;;  %9257 = vmatpush1.bf16.msra.mxu1 %v12198_v12  ;;  %v12269_v53 = vld [vmem:[#allocation23 + $0x3e4] ss:$16 sps:$4 sm:$0xff]   ;;  %v12264_v12 = vld [vmem:[#allocation23 + $0x2c8] ss:$16 sps:$4 sm:$0xff]  }
 0x8f1   : > { %9258 = vmatprep.subr.bf16.mxu1 %v12206_v5  ;;  %v12272_v5 = vld [vmem:[#allocation23 + $0x2ec] ss:$16 sps:$4 sm:$0xff]  }
 0x8f3   : > { %8997 = vmatpush1.bf16.msra.mxu0 %v12201_v9  ;;  %v6340_v9 = vmax.f32 %v6338_v37, %v6339_v58  ;;  %v12332_v37 = vld [vmem:[#allocation23 + $0x42c] ss:$16 sps:$4 sm:$0xff]  }
 0x8f4   : > { %8998 = vmatprep.subr.bf16.mxu0 %v12209_v56  ;;  %9259 = vmatpush1.bf16.msra.mxu1 %v12204_v21  ;;  %v12267_v56 = vld [vmem:[#allocation23 + $0x3e0] ss:$16 sps:$4 sm:$0xff]   ;;  %v12275_v21 = vld [vmem:[#allocation23 + $0x404] ss:$16 sps:$4 sm:$0xff]  }
 0x8f5   : > { %9260 = vmatprep.subr.bf16.mxu1 %v12212_v52  ;;  %v12270_v52 = vld [vmem:[#allocation23 + $0x2e8] ss:$16 sps:$4 sm:$0xff]  }
 0x8f7   : > { %8999 = vmatpush1.bf16.msra.mxu0 %v12207_v23  ;;  %v12278_v23 = vld [vmem:[#allocation23 + $0x30c] ss:$16 sps:$4 sm:$0xff]  }
 0x8f8   : > { %9000 = vmatprep.subr.bf16.mxu0 %v12215_v25  ;;  %9261 = vmatpush1.bf16.msra.mxu1 %v12210_v24  ;;  %v15560_v25 = vpack.c.bf16 %v6340_v9, %v6340_v9  ;;  %v12273_v24 = vld [vmem:[#allocation23 + $0x400] ss:$16 sps:$4 sm:$0xff]  }
 0x8f9   : > { %9262 = vmatprep.subr.bf16.mxu1 %v12218_v8  ;;  %v12281_v8 = vld [vmem:[#allocation23 + $0x424] ss:$16 sps:$4 sm:$0xff]  }
 0x8fb   : > { %9001 = vmatpush1.bf16.msra.mxu0 %v12213_v4  ;;  %v12284_v4 = vld [vmem:[#allocation23 + $0x32c] ss:$16 sps:$4 sm:$0xff]  }
 0x8fc   : > { %9002 = vmatprep.subr.bf16.mxu0 %v12221_v20  ;;  %9263 = vmatpush1.bf16.msra.mxu1 %v12216_v7  ;;  %v12279_v20 = vld [vmem:[#allocation23 + $0x420] ss:$16 sps:$4 sm:$0xff]   ;;  %v12287_v7 = vld [vmem:[#allocation23 + $0x444] ss:$16 sps:$4 sm:$0xff]  }
 0x8fd   : > { %9264 = vmatprep.subr.bf16.mxu1 %v12224_v62  ;;  %v12282_v62 = vld [vmem:[#allocation23 + $0x328] ss:$16 sps:$4 sm:$0xff]  }
 0x8ff   : > { %9003 = vmatpush1.bf16.msra.mxu0 %v12219_v18  ;;  %v12290_v18 = vld [vmem:[#allocation23 + $0x34c] ss:$16 sps:$4 sm:$0xff]  }
 0x900   : > { %9004 = vmatprep.subr.bf16.mxu0 %v12227_v39  ;;  %9265 = vmatpush1.bf16.msra.mxu1 %v12222_v2  ;;  %v12285_v39 = vld [vmem:[#allocation23 + $0x440] ss:$16 sps:$4 sm:$0xff]   ;;  %v12293_v2 = vld [vmem:[#allocation23 + $0x464] ss:$16 sps:$4 sm:$0xff]  }
 0x901   : > { %9275 = vmatprep.subr.bf16.mxu1 %v12230_v46  ;;  %v12288_v46 = vld [vmem:[#allocation23 + $0x348] ss:$16 sps:$4 sm:$0xff]  }
 0x903   : > { %9005 = vmatpush1.bf16.msra.mxu0 %v12225_v49  ;;  %9267 = vmatmul.mubr.bf16.vlgmr.msra.gmra.mrb[4].mxu1 %v15550_v27  ;;  %v12246_v27 = vld [vmem:[#allocation23 + $0x268] ss:$16 sps:$4 sm:$0xff]   ;;  %v12296_v49 = vld [vmem:[#allocation23 + $0x36c] ss:$16 sps:$4 sm:$0xff]  }
 0x904   : > { %9006 = vmatprep.subr.bf16.mxu0 %v12233_v31  ;;  %9276 = vmatpush1.bf16.msra.mxu1 %v12228_v22  ;;  %v12291_v31 = vld [vmem:[#allocation23 + $0x460] ss:$16 sps:$4 sm:$0xff]   ;;  %v6369_v22 = vmax.f32 %v6367_v59, %v6368_v33  ;;  %v12360_v33 = vld [vmem:[#allocation23 + $0x4c8] ss:$16 sps:$4 sm:$0xff]  }
 0x905   : > { %9277 = vmatprep.subr.bf16.mxu1 %v12236_v40  ;;  %11220 = vmatprep.mubr.msk.bf16.mxu1 %vm15537_vm3, %v11210_v11  ;;  %v12302_v40 = vld [vmem:[#allocation23 + $0x38c] ss:$16 sps:$4 sm:$0xff]   ;;  %v12297_v11 = vld [vmem:[#allocation23 + $0x480] ss:$16 sps:$4 sm:$0xff]  }
 0x906   : > { %v12357_v59 = vld [vmem:[#allocation23 + $0x5c0] ss:$16 sps:$4 sm:$0xff]  }
 0x907   : > { %9007 = vmatpush1.bf16.msra.mxu0 %v12231_v54  ;;  %v6421_v54 = vpack.c.bf16 %v6369_v22, %v6369_v22  ;;  %v12363_v22 = vld [vmem:[#allocation23 + $0x5e0] ss:$16 sps:$4 sm:$0xff]  }
 0x908   : > { %9008 = vmatprep.subr.bf16.mxu0 %v12239_v0  ;;  %9278 = vmatpush1.bf16.msra.mxu1 %v12234_v36  ;;  %v12300_v0 = vld [vmem:[#allocation23 + $0x388] ss:$16 sps:$4 sm:$0xff]   ;;  %v12308_v36 = vld [vmem:[#allocation23 + $0x3ac] ss:$16 sps:$4 sm:$0xff]  }
 0x909   : > { %9279 = vmatprep.subr.bf16.mxu1 %v12242_v34  ;;  %v12303_v34 = vld [vmem:[#allocation23 + $0x4a0] ss:$16 sps:$4 sm:$0xff]  }
 0x90b   : > { %9009 = vmatpush1.bf16.msra.mxu0 %v12237_v10  ;;  %v12306_v10 = vld [vmem:[#allocation23 + $0x3a8] ss:$16 sps:$4 sm:$0xff]  }
 0x90c   : > { %9010 = vmatprep.subr.bf16.mxu0 %v12245_v3  ;;  %9280 = vmatpush1.bf16.msra.mxu1 %v12240_v13  ;;  %v12314_v3 = vld [vmem:[#allocation23 + $0x3cc] ss:$16 sps:$4 sm:$0xff]   ;;  %v12309_v13 = vld [vmem:[#allocation23 + $0x4c0] ss:$16 sps:$4 sm:$0xff]  }
 0x90d   : > { %9281 = vmatprep.subr.bf16.mxu1 %v12248_v32  ;;  %v12317_v32 = vld [vmem:[#allocation23 + $0x4e4] ss:$16 sps:$4 sm:$0xff]  }
 0x90f   : > { %9011 = vmatpush1.bf16.msra.mxu0 %v12243_v48  ;;  %v12320_v48 = vld [vmem:[#allocation23 + $0x3ec] ss:$16 sps:$4 sm:$0xff]  }
 0x910   : > { %9012 = vmatprep.subr.bf16.mxu0 %v12251_v63  ;;  %9282 = vmatpush1.bf16.msra.mxu1 %v12246_v27  ;;  %v12315_v63 = vld [vmem:[#allocation23 + $0x4e0] ss:$16 sps:$4 sm:$0xff]   ;;  %v12323_v27 = vld [vmem:[#allocation23 + $0x504] ss:$16 sps:$4 sm:$0xff]  }
 0x911   : > { %9283 = vmatprep.subr.bf16.mxu1 %v12254_v26  ;;  %v12318_v26 = vld [vmem:[#allocation23 + $0x3e8] ss:$16 sps:$4 sm:$0xff]  }
 0x913   : > { %9013 = vmatpush1.bf16.msra.mxu0 %v12249_v17  ;;  %v12321_v17 = vld [vmem:[#allocation23 + $0x500] ss:$16 sps:$4 sm:$0xff]  }
 0x914   : > { %9014 = vmatprep.subr.bf16.mxu0 %v12257_v51  ;;  %9284 = vmatpush1.bf16.msra.mxu1 %v12252_v16  ;;  %v12329_v51 = vld [vmem:[#allocation23 + $0x524] ss:$16 sps:$4 sm:$0xff]   ;;  %v12324_v16 = vld [vmem:[#allocation23 + $0x408] ss:$16 sps:$4 sm:$0xff]  }
 0x915   : > { %9285 = vmatprep.subr.bf16.mxu1 %v12260_v29  ;;  %v12327_v29 = vld [vmem:[#allocation23 + $0x520] ss:$16 sps:$4 sm:$0xff]  }
 0x917   : > { %9015 = vmatpush1.bf16.msra.mxu0 %v12255_v15  ;;  %v6349_v15 = vld [vmem:[#allocation5] sm:$0xff] }
 0x918   : > { %9016 = vmatprep.subr.bf16.mxu0 %v12263_v38  ;;  %9286 = vmatpush1.bf16.msra.mxu1 %v12258_v6  ;;  %v12335_v38 = vld [vmem:[#allocation23 + $0x544] ss:$16 sps:$4 sm:$0xff]   ;;  %v12330_v6 = vld [vmem:[#allocation23 + $0x428] ss:$16 sps:$4 sm:$0xff]   ;;  %v6350_v58 = vrot.slane %v6349_v15, 4 }
 0x919   : > { %9287 = vmatprep.subr.bf16.mxu1 %v12266_v41  ;;  %v12338_v41 = vld [vmem:[#allocation23 + $0x44c] ss:$16 sps:$4 sm:$0xff]  }
 0x91a   : > { %v6351_v9 = vmax.f32 %v6349_v15, %v6350_v58  ;;  %v12396_v15 = vld [vmem:[#allocation23 + $0x588] ss:$16 sps:$4 sm:$0xff]  }
 0x91b   : > { %9017 = vmatpush1.bf16.msra.mxu0 %v12261_v19  ;;  %v12333_v19 = vld [vmem:[#allocation23 + $0x540] ss:$16 sps:$4 sm:$0xff]   ;;  %v12402_v58 = vld [vmem:[#allocation23 + $0x5a8] ss:$16 sps:$4 sm:$0xff]  }
 0x91c   : > { %9018 = vmatprep.subr.bf16.mxu0 %v12269_v53  ;;  %9288 = vmatpush1.bf16.msra.mxu1 %v12264_v12  ;;  %v12341_v53 = vld [vmem:[#allocation23 + $0x564] ss:$16 sps:$4 sm:$0xff]   ;;  %v12336_v12 = vld [vmem:[#allocation23 + $0x448] ss:$16 sps:$4 sm:$0xff]  }
 0x91d   : > { %9289 = vmatprep.subr.bf16.mxu1 %v12272_v5  ;;  %v12344_v5 = vld [vmem:[#allocation23 + $0x46c] ss:$16 sps:$4 sm:$0xff]  }
 0x91f   : > { %9019 = vmatpush1.bf16.msra.mxu0 %v12267_v56  ;;  %v12347_v56 = vld [vmem:[#allocation23 + $0x584] ss:$16 sps:$4 sm:$0xff]  }
 0x920   : > { %9029 = vmatprep.subr.bf16.mxu0 %v12275_v21  ;;  %9290 = vmatpush1.bf16.msra.mxu1 %v12270_v52  ;;  %v6358_v21 = vld [vmem:[#allocation6 + $0x10] sm:$0xff]  ;;  %v12342_v52 = vld [vmem:[#allocation23 + $0x468] ss:$16 sps:$4 sm:$0xff]  }
 0x921   : > { %9291 = vmatprep.subr.bf16.mxu1 %v12278_v23  ;;  %v6376_v23 = vrot.slane %v6358_v21, 4 }
 0x922   : > { %11214 = vmatmul.mubr.msk.bf16.vlgmr.msra.gmra.mrb[0].mxu0 %vm15537_vm3, %v15560_v25 }
 0x923   : > { %9030 = vmatpush1.bf16.msra.mxu0 %v12273_v24  ;;  %9061 = vmatprep.mubr.bf16.mxu0 %v6421_v54  ;;  %v6352_v24 = vrot.slane %v6351_v9, 2 }
 0x924   : > { %9031 = vmatprep.subr.bf16.mxu0 %v12281_v8  ;;  %9292 = vmatpush1.bf16.msra.mxu1 %v12276_v50  ;;  %v12345_v50 = vld [vmem:[#allocation23 + $0x580] ss:$16 sps:$4 sm:$0xff]   ;;  %v6377_v8 = vmax.f32 %v6358_v21, %v6376_v23  ;;  %v12414_v21 = vld [vmem:[#allocation23 + $0x5e8] ss:$16 sps:$4 sm:$0xff]  }
 0x925   : > { %9293 = vmatprep.subr.bf16.mxu1 %v12284_v4  ;;  %v12348_v4 = vld [vmem:[#allocation23 + $0x488] ss:$16 sps:$4 sm:$0xff]   ;;  %v12417_v23 = vld [vmem:[#allocation23 + $0x700] ss:$16 sps:$4 sm:$0xff]  }
 0x926   : > { %v6378_v30 = vrot.slane %v6377_v8, 2 }
 0x927   : > { %9032 = vmatpush1.bf16.msra.mxu0 %v12279_v20  ;;  %v12356_v20 = vld [vmem:[#allocation23 + $0x4ac] ss:$16 sps:$4 sm:$0xff]  }
 0x928   : > { %9033 = vmatprep.subr.bf16.mxu0 %v12287_v7  ;;  %9294 = vmatpush1.bf16.msra.mxu1 %v12282_v62  ;;  %v6353_v7 = vmax.f32 %v6351_v9, %v6352_v24  ;;  %v6379_v62 = vmax.f32 %v6377_v8, %v6378_v30  ;;  %v12416_v9 = vld [vmem:[#allocation23 + $0x5ec] ss:$16 sps:$4 sm:$0xff]   ;;  %v12420_v24 = vld [vmem:[#allocation23 + $0x608] ss:$16 sps:$4 sm:$0xff]  }
 0x929   : > { %9295 = vmatprep.subr.bf16.mxu1 %v12290_v18  ;;  %v12359_v18 = vld [vmem:[#allocation23 + $0x5c4] ss:$16 sps:$4 sm:$0xff]   ;;  %v12428_v8 = vld [vmem:[#allocation23 + $0x62c] ss:$16 sps:$4 sm:$0xff]  }
 0x92a   : > { %v6360_v30 = vld [vmem:[#allocation6 + $0x20] sm:$0xff] }
 0x92b   : > { %9034 = vmatpush1.bf16.msra.mxu0 %v12285_v39  ;;  %v12362_v39 = vld [vmem:[#allocation23 + $0x4cc] ss:$16 sps:$4 sm:$0xff]  }
 0x92c   : > { %9035 = vmatprep.subr.bf16.mxu0 %v12293_v2  ;;  %9296 = vmatpush1.bf16.msra.mxu1 %v12288_v46  ;;  %v6354_v2 = vrot.slane %v6353_v7, 1  ;;  %v6380_v46 = vrot.slane %v6379_v62, 1 }
 0x92d   : > { %9297 = vmatprep.subr.bf16.mxu1 %v12296_v49  ;;  %v12365_v49 = vld [vmem:[#allocation23 + $0x5e4] ss:$16 sps:$4 sm:$0xff]  }
 0x92f   : > { %9036 = vmatpush1.bf16.msra.mxu0 %v12291_v31  ;;  %v12368_v31 = vld [vmem:[#allocation23 + $0x4ec] ss:$16 sps:$4 sm:$0xff]  }
 0x930   : > { %9037 = vmatprep.subr.bf16.mxu0 %v12299_v45  ;;  %9298 = vmatpush1.bf16.msra.mxu1 %v12294_v42  ;;  %v6355_v45 = vmax.f32 %v6353_v7, %v6354_v2  ;;  %v6381_v42 = vmax.f32 %v6379_v62, %v6380_v46  ;;  %v12434_v7 = vld [vmem:[#allocation23 + $0x64c] ss:$16 sps:$4 sm:$0xff]   ;;  %v12429_v62 = vld [vmem:[#allocation23 + $0x740] ss:$16 sps:$4 sm:$0xff]  }
 0x931   : > { %9299 = vmatprep.subr.bf16.mxu1 %v12302_v40  ;;  %v12371_v40 = vld [vmem:[#allocation23 + $0x604] ss:$16 sps:$4 sm:$0xff]   ;;  %v12440_v2 = vld [vmem:[#allocation23 + $0x66c] ss:$16 sps:$4 sm:$0xff]   ;;  %v12435_v46 = vld [vmem:[#allocation23 + $0x760] ss:$16 sps:$4 sm:$0xff]  }
 0x933   : > { %9038 = vmatpush1.bf16.msra.mxu0 %v12297_v11  ;;  %v12374_v11 = vld [vmem:[#allocation23 + $0x50c] ss:$16 sps:$4 sm:$0xff]  }
 0x934   : > { %9039 = vmatprep.subr.bf16.mxu0 %v12305_v61  ;;  %9300 = vmatpush1.bf16.msra.mxu1 %v12300_v0  ;;  %v15568_v61 = vpack.c.bf16 %v6355_v45, %v6355_v45  ;;  %v12369_v0 = vld [vmem:[#allocation23 + $0x600] ss:$16 sps:$4 sm:$0xff]   ;;  %v12446_v45 = vld [vmem:[#allocation23 + $0x68c] ss:$16 sps:$4 sm:$0xff]  }
 0x935   : > { %9301 = vmatprep.subr.bf16.mxu1 %v12308_v36  ;;  %v15570_v36 = vpack.c.bf16 %v6381_v42, %v6381_v42  ;;  %v12441_v42 = vld [vmem:[#allocation23 + $0x780] ss:$16 sps:$4 sm:$0xff]  }
 0x937   : > { %9040 = vmatpush1.bf16.msra.mxu0 %v12303_v34  ;;  %v12377_v34 = vld [vmem:[#allocation23 + $0x624] ss:$16 sps:$4 sm:$0xff]  }
 0x938   : > { %9041 = vmatprep.subr.bf16.mxu0 %v12311_v44  ;;  %9302 = vmatpush1.bf16.msra.mxu1 %v12306_v10  ;;  %v12372_v44 = vld [vmem:[#allocation23 + $0x508] ss:$16 sps:$4 sm:$0xff]   ;;  %v12380_v10 = vld [vmem:[#allocation23 + $0x52c] ss:$16 sps:$4 sm:$0xff]  }
 0x939   : > { %9303 = vmatprep.subr.bf16.mxu1 %v12314_v3  ;;  %v12375_v3 = vld [vmem:[#allocation23 + $0x620] ss:$16 sps:$4 sm:$0xff]  }
 0x93b   : > { %9042 = vmatpush1.bf16.msra.mxu0 %v12309_v13  ;;  %v12383_v13 = vld [vmem:[#allocation23 + $0x644] ss:$16 sps:$4 sm:$0xff]  }
 0x93c   : > { %9043 = vmatprep.subr.bf16.mxu0 %v12317_v32  ;;  %9304 = vmatpush1.bf16.msra.mxu1 %v12312_v28  ;;  %v12378_v32 = vld [vmem:[#allocation23 + $0x528] ss:$16 sps:$4 sm:$0xff]   ;;  %v12386_v28 = vld [vmem:[#allocation23 + $0x54c] ss:$16 sps:$4 sm:$0xff]  }
 0x93d   : > { %9305 = vmatprep.subr.bf16.mxu1 %v12320_v48  ;;  %v12381_v48 = vld [vmem:[#allocation23 + $0x640] ss:$16 sps:$4 sm:$0xff]  }
 0x93f   : > { %9044 = vmatpush1.bf16.msra.mxu0 %v12315_v63  ;;  %v12389_v63 = vld [vmem:[#allocation23 + $0x664] ss:$16 sps:$4 sm:$0xff]  }
 0x940   : > { %9045 = vmatprep.subr.bf16.mxu0 %v12323_v27  ;;  %9306 = vmatpush1.bf16.msra.mxu1 %v12318_v26  ;;  %v12384_v27 = vld [vmem:[#allocation23 + $0x548] ss:$16 sps:$4 sm:$0xff]   ;;  %v12392_v26 = vld [vmem:[#allocation23 + $0x56c] ss:$16 sps:$4 sm:$0xff]  }
 0x941   : > { %9316 = vmatprep.subr.bf16.mxu1 %v12326_v43  ;;  %v12387_v43 = vld [vmem:[#allocation23 + $0x660] ss:$16 sps:$4 sm:$0xff]  }
 0x943   : > { %9046 = vmatpush1.bf16.msra.mxu0 %v12321_v17  ;;  %11223 = vmatmul.mubr.msk.bf16.vlgmr.msra.gmra.mrb[4].mxu1 %vm15537_vm3, %v15560_v25  ;;  %v12350_v25 = vld [vmem:[#allocation23 + $0x48c] ss:$16 sps:$4 sm:$0xff]   ;;  %v12395_v17 = vld [vmem:[#allocation23 + $0x684] ss:$16 sps:$4 sm:$0xff]  }
 0x944   : > { %9047 = vmatprep.subr.bf16.mxu0 %v12329_v51  ;;  %9317 = vmatpush1.bf16.msra.mxu1 %v12324_v16  ;;  %v12390_v51 = vld [vmem:[#allocation23 + $0x568] ss:$16 sps:$4 sm:$0xff]   ;;  %v12398_v16 = vld [vmem:[#allocation23 + $0x58c] ss:$16 sps:$4 sm:$0xff]  }
 0x945   : > { %9348 = vmatprep.mubr.bf16.mxu1 %v6421_v54  ;;  %9318 = vmatprep.subr.bf16.mxu1 %v12332_v37  ;;  %v12366_v54 = vld [vmem:[#allocation23 + $0x4e8] ss:$16 sps:$4 sm:$0xff]   ;;  %v12401_v37 = vld [vmem:[#allocation23 + $0x6a4] ss:$16 sps:$4 sm:$0xff]  }
 0x947   : > { %9048 = vmatpush1.bf16.msra.mxu0 %v12327_v29  ;;  %v12393_v29 = vld [vmem:[#allocation23 + $0x680] ss:$16 sps:$4 sm:$0xff]  }
 0x948   : > { %9049 = vmatprep.subr.bf16.mxu0 %v12335_v38  ;;  %9319 = vmatpush1.bf16.msra.mxu1 %v12330_v6  ;;  %v12404_v38 = vld [vmem:[#allocation23 + $0x5ac] ss:$16 sps:$4 sm:$0xff]   ;;  %v12399_v6 = vld [vmem:[#allocation23 + $0x6a0] ss:$16 sps:$4 sm:$0xff]  }
 0x949   : > { %9320 = vmatprep.subr.bf16.mxu1 %v12338_v41  ;;  %v12407_v41 = vld [vmem:[#allocation23 + $0x6c4] ss:$16 sps:$4 sm:$0xff]  }
 0x94b   : > { %9050 = vmatpush1.bf16.msra.mxu0 %v12333_v19  ;;  %v12410_v19 = vld [vmem:[#allocation23 + $0x5cc] ss:$16 sps:$4 sm:$0xff]  }
 0x94c   : > { %9051 = vmatprep.subr.bf16.mxu0 %v12341_v53  ;;  %9321 = vmatpush1.bf16.msra.mxu1 %v12336_v12  ;;  %v12405_v53 = vld [vmem:[#allocation23 + $0x6c0] ss:$16 sps:$4 sm:$0xff]   ;;  %v12413_v12 = vld [vmem:[#allocation23 + $0x6e4] ss:$16 sps:$4 sm:$0xff]  }
 0x94d   : > { %9322 = vmatprep.subr.bf16.mxu1 %v12344_v5  ;;  %v12408_v5 = vld [vmem:[#allocation23 + $0x5c8] ss:$16 sps:$4 sm:$0xff]  }
 0x94f   : > { %9052 = vmatpush1.bf16.msra.mxu0 %v12339_v60  ;;  %v12411_v60 = vld [vmem:[#allocation23 + $0x6e0] ss:$16 sps:$4 sm:$0xff]  }
 0x950   : > { %9053 = vmatprep.subr.bf16.mxu0 %v12347_v56  ;;  %9323 = vmatpush1.bf16.msra.mxu1 %v12342_v52  ;;  %v12419_v56 = vld [vmem:[#allocation23 + $0x704] ss:$16 sps:$4 sm:$0xff]   ;;  %v12422_v52 = vld [vmem:[#allocation23 + $0x60c] ss:$16 sps:$4 sm:$0xff]  }
 0x951   : > { %9324 = vmatprep.subr.bf16.mxu1 %v12350_v25  ;;  %v12425_v25 = vld [vmem:[#allocation23 + $0x724] ss:$16 sps:$4 sm:$0xff]  }
 0x953   : > { %9054 = vmatpush1.bf16.msra.mxu0 %v12345_v50  ;;  %v12423_v50 = vld [vmem:[#allocation23 + $0x720] ss:$16 sps:$4 sm:$0xff]  }
 0x954   : > { %9055 = vmatprep.subr.bf16.mxu0 %v12353_v47  ;;  %9325 = vmatpush1.bf16.msra.mxu1 %v12348_v4  ;;  %v12431_v47 = vld [vmem:[#allocation23 + $0x744] ss:$16 sps:$4 sm:$0xff]  }
 0x955   : > { %9326 = vmatprep.subr.bf16.mxu1 %v12356_v20  ;;  %v6357_v4 = vld [vmem:[#allocation6 + $0x8] sm:$0xff] }
 0x956   : > { %v12426_v20 = vld [vmem:[#allocation23 + $0x628] ss:$16 sps:$4 sm:$0xff]  }
 0x957   : > { %9056 = vmatpush1.bf16.msra.mxu0 %v12351_v57  ;;  %v6370_v57 = vrot.slane %v6357_v4, 4 }
 0x958   : > { %9057 = vmatprep.subr.bf16.mxu0 %v12359_v18  ;;  %9327 = vmatpush1.bf16.msra.mxu1 %v12354_v35  ;;  %v6388_v18 = vrot.slane %v6360_v30, 4  ;;  %v12437_v35 = vld [vmem:[#allocation23 + $0x764] ss:$16 sps:$4 sm:$0xff]  }
 0x959   : > { %9328 = vmatprep.subr.bf16.mxu1 %v12362_v39  ;;  %v12432_v39 = vld [vmem:[#allocation23 + $0x648] ss:$16 sps:$4 sm:$0xff]  }
 0x95b   : > { %9058 = vmatpush1.bf16.msra.mxu0 %v12357_v59  ;;  %v6371_v59 = vmax.f32 %v6357_v4, %v6370_v57  ;;  %v12489_v4 = vld [vmem:[#allocation23 + $0x880] ss:$16 sps:$4 sm:$0xff]  }
 0x95c   : > { %9059 = vmatprep.subr.bf16.mxu0 %v12365_v49  ;;  %9329 = vmatpush1.bf16.msra.mxu1 %v12360_v33  ;;  %v6389_v49 = vmax.f32 %v6360_v30, %v6388_v18  ;;  %v12443_v33 = vld [vmem:[#allocation23 + $0x784] ss:$16 sps:$4 sm:$0xff]   ;;  %v12494_v30 = vld [vmem:[#allocation23 + $0x78c] ss:$16 sps:$4 sm:$0xff]   ;;  %v12495_v57 = vld [vmem:[#allocation23 + $0x8a0] ss:$16 sps:$4 sm:$0xff]  }
 0x95d   : > { %9330 = vmatprep.subr.bf16.mxu1 %v12368_v31  ;;  %v12438_v31 = vld [vmem:[#allocation23 + $0x668] ss:$16 sps:$4 sm:$0xff]   ;;  %v12503_v18 = vld [vmem:[#allocation23 + $0x8c4] ss:$16 sps:$4 sm:$0xff]  }
 0x95f   : > { %9060 = vmatpush1.bf16.msra.mxu0 %v12363_v22  ;;  %v6372_v22 = vrot.slane %v6371_v59, 2 }
 0x960   : > { %9070 = vmatprep.subr.bf16.mxu0 %v12371_v40  ;;  %9331 = vmatpush1.bf16.msra.mxu1 %v12366_v54  ;;  %v6390_v40 = vrot.slane %v6389_v49, 2  ;;  %v12449_v54 = vld [vmem:[#allocation23 + $0x7a4] ss:$16 sps:$4 sm:$0xff]  }
 0x961   : > { %9332 = vmatprep.subr.bf16.mxu1 %v12374_v11  ;;  %v12444_v11 = vld [vmem:[#allocation23 + $0x688] ss:$16 sps:$4 sm:$0xff]  }
 0x962   : > { %9062 = vmatmul.mubr.bf16.vlgmr.msra.gmra.mrb[0].mxu0 %v15568_v61 }
 0x963   : > { %9071 = vmatpush1.bf16.msra.mxu0 %v12369_v0  ;;  %9102 = vmatprep.mubr.bf16.mxu0 %v15570_v36  ;;  %v6373_v0 = vmax.f32 %v6371_v59, %v6372_v22  ;;  %v12509_v59 = vld [vmem:[#allocation23 + $0x8e4] ss:$16 sps:$4 sm:$0xff]   ;;  %v12513_v22 = vld [vmem:[#allocation23 + $0x900] ss:$16 sps:$4 sm:$0xff]  }
 0x964   : > { %9072 = vmatprep.subr.bf16.mxu0 %v12377_v34  ;;  %9333 = vmatpush1.bf16.msra.mxu1 %v12372_v44  ;;  %v6391_v34 = vmax.f32 %v6389_v49, %v6390_v40  ;;  %v12455_v44 = vld [vmem:[#allocation23 + $0x7c4] ss:$16 sps:$4 sm:$0xff]   ;;  %v12507_v49 = vld [vmem:[#allocation23 + $0x8e0] ss:$16 sps:$4 sm:$0xff]  }
 0x965   : > { %9334 = vmatprep.subr.bf16.mxu1 %v12380_v10  ;;  %v12450_v10 = vld [vmem:[#allocation23 + $0x6a8] ss:$16 sps:$4 sm:$0xff]   ;;  %v12521_v40 = vld [vmem:[#allocation23 + $0x924] ss:$16 sps:$4 sm:$0xff]  }
 0x967   : > { %9073 = vmatpush1.bf16.msra.mxu0 %v12375_v3  ;;  %v12458_v3 = vld [vmem:[#allocation23 + $0x6cc] ss:$16 sps:$4 sm:$0xff]  }
 0x968   : > { %9074 = vmatprep.subr.bf16.mxu0 %v12383_v13  ;;  %9335 = vmatpush1.bf16.msra.mxu1 %v12378_v32  ;;  %v6374_v13 = vrot.slane %v6373_v0, 1 }
 0x969   : > { %9336 = vmatprep.subr.bf16.mxu1 %v12386_v28  ;;  %v12453_v28 = vld [vmem:[#allocation23 + $0x7c0] ss:$16 sps:$4 sm:$0xff]  }
 0x96b   : > { %9075 = vmatpush1.bf16.msra.mxu0 %v12381_v48  ;;  %v6392_v48 = vrot.slane %v6391_v34, 1 }
 0x96c   : > { %9076 = vmatprep.subr.bf16.mxu0 %v12389_v63  ;;  %9337 = vmatpush1.bf16.msra.mxu1 %v12384_v27  ;;  %v12461_v27 = vld [vmem:[#allocation23 + $0x7e4] ss:$16 sps:$4 sm:$0xff]  }
 0x96d   : > { %9338 = vmatprep.subr.bf16.mxu1 %v12392_v26 }
 0x96f   : > { %9077 = vmatpush1.bf16.msra.mxu0 %v12387_v43  ;;  %v12456_v43 = vld [vmem:[#allocation23 + $0x6c8] ss:$16 sps:$4 sm:$0xff]  }
 0x970   : > { %9078 = vmatprep.subr.bf16.mxu0 %v12395_v17  ;;  %9339 = vmatpush1.bf16.msra.mxu1 %v12390_v51  ;;  %v12464_v51 = vld [vmem:[#allocation23 + $0x6ec] ss:$16 sps:$4 sm:$0xff]  }
 0x971   : > { %9340 = vmatprep.subr.bf16.mxu1 %v12398_v16  ;;  %v6375_v16 = vmax.f32 %v6373_v0, %v6374_v13  ;;  %v6359_v0 = vld [vmem:[#allocation6 + $0x18] sm:$0xff] }
 0x972   : > { %v6382_v13 = vrot.slane %v6359_v0, 4 }
 0x973   : > { %9079 = vmatpush1.bf16.msra.mxu0 %v12393_v29  ;;  %v12459_v29 = vld [vmem:[#allocation23 + $0x7e0] ss:$16 sps:$4 sm:$0xff]  }
 0x974   : > { %9080 = vmatprep.subr.bf16.mxu0 %v12401_v37  ;;  %9341 = vmatpush1.bf16.msra.mxu1 %v12396_v15  ;;  %v6393_v37 = vmax.f32 %v6391_v34, %v6392_v48  ;;  %v12467_v15 = vld [vmem:[#allocation23 + $0x804] ss:$16 sps:$4 sm:$0xff]  }
 0x975   : > { %9342 = vmatprep.subr.bf16.mxu1 %v12404_v38  ;;  %v12462_v38 = vld [vmem:[#allocation23 + $0x6e8] ss:$16 sps:$4 sm:$0xff]   ;;  %v12527_v34 = vld [vmem:[#allocation23 + $0x944] ss:$16 sps:$4 sm:$0xff]  }
 0x976   : > { %v12533_v48 = vld [vmem:[#allocation23 + $0x964] ss:$16 sps:$4 sm:$0xff]  }
 0x977   : > { %9081 = vmatpush1.bf16.msra.mxu0 %v12399_v6  ;;  %v12470_v6 = vld [vmem:[#allocation23 + $0x70c] ss:$16 sps:$4 sm:$0xff]  }
 0x978   : > { %9082 = vmatprep.subr.bf16.mxu0 %v12407_v41  ;;  %9343 = vmatpush1.bf16.msra.mxu1 %v12402_v58  ;;  %v15580_v41 = vpack.c.bf16 %v6375_v16, %v6375_v16  ;;  %v12465_v58 = vld [vmem:[#allocation23 + $0x800] ss:$16 sps:$4 sm:$0xff]   ;;  %v12539_v16 = vld [vmem:[#allocation23 + $0x984] ss:$16 sps:$4 sm:$0xff]  }
 0x979   : > { %9344 = vmatprep.subr.bf16.mxu1 %v12410_v19  ;;  %v15582_v19 = vpack.c.bf16 %v6393_v37, %v6393_v37  ;;  %v12537_v37 = vld [vmem:[#allocation23 + $0x980] ss:$16 sps:$4 sm:$0xff]  }
 0x97b   : > { %9083 = vmatpush1.bf16.msra.mxu0 %v12405_v53  ;;  %v12473_v53 = vld [vmem:[#allocation23 + $0x824] ss:$16 sps:$4 sm:$0xff]  }
 0x97c   : > { %9084 = vmatprep.subr.bf16.mxu0 %v12413_v12  ;;  %9345 = vmatpush1.bf16.msra.mxu1 %v12408_v5  ;;  %v12468_v12 = vld [vmem:[#allocation23 + $0x708] ss:$16 sps:$4 sm:$0xff]   ;;  %v12476_v5 = vld [vmem:[#allocation23 + $0x72c] ss:$16 sps:$4 sm:$0xff]  }
 0x97d   : > { %9346 = vmatprep.subr.bf16.mxu1 %v12416_v9  ;;  %v12471_v9 = vld [vmem:[#allocation23 + $0x820] ss:$16 sps:$4 sm:$0xff]  }
 0x97f   : > { %9085 = vmatpush1.bf16.msra.mxu0 %v12411_v60  ;;  %v12474_v60 = vld [vmem:[#allocation23 + $0x728] ss:$16 sps:$4 sm:$0xff]  }
 0x980   : > { %9086 = vmatprep.subr.bf16.mxu0 %v12419_v56  ;;  %9347 = vmatpush1.bf16.msra.mxu1 %v12414_v21  ;;  %v12479_v56 = vld [vmem:[#allocation23 + $0x844] ss:$16 sps:$4 sm:$0xff]   ;;  %v12477_v21 = vld [vmem:[#allocation23 + $0x840] ss:$16 sps:$4 sm:$0xff]  }
 0x981   : > { %9357 = vmatprep.subr.bf16.mxu1 %v12422_v52  ;;  %v12482_v52 = vld [vmem:[#allocation23 + $0x74c] ss:$16 sps:$4 sm:$0xff]  }
 0x983   : > { %9087 = vmatpush1.bf16.msra.mxu0 %v12417_v23  ;;  %9349 = vmatmul.mubr.bf16.vlgmr.msra.gmra.mrb[4].mxu1 %v15568_v61  ;;  %v12452_v61 = vld [vmem:[#allocation23 + $0x6ac] ss:$16 sps:$4 sm:$0xff]   ;;  %v12485_v23 = vld [vmem:[#allocation23 + $0x864] ss:$16 sps:$4 sm:$0xff]  }
 0x984   : > { %9088 = vmatprep.subr.bf16.mxu0 %v12425_v25  ;;  %9358 = vmatpush1.bf16.msra.mxu1 %v12420_v24  ;;  %v12480_v25 = vld [vmem:[#allocation23 + $0x748] ss:$16 sps:$4 sm:$0xff]   ;;  %v12483_v24 = vld [vmem:[#allocation23 + $0x860] ss:$16 sps:$4 sm:$0xff]  }
 0x985   : > { %9389 = vmatprep.mubr.bf16.mxu1 %v15570_v36  ;;  %9359 = vmatprep.subr.bf16.mxu1 %v12428_v8  ;;  %v12447_v36 = vld [vmem:[#allocation23 + $0x7a0] ss:$16 sps:$4 sm:$0xff]   ;;  %v12491_v8 = vld [vmem:[#allocation23 + $0x884] ss:$16 sps:$4 sm:$0xff]  }
 0x987   : > { %9089 = vmatpush1.bf16.msra.mxu0 %v12423_v50  ;;  %v12488_v50 = vld [vmem:[#allocation23 + $0x76c] ss:$16 sps:$4 sm:$0xff]  }
 0x988   : > { %9090 = vmatprep.subr.bf16.mxu0 %v12431_v47  ;;  %9360 = vmatpush1.bf16.msra.mxu1 %v12426_v20  ;;  %v12486_v47 = vld [vmem:[#allocation23 + $0x768] ss:$16 sps:$4 sm:$0xff]   ;;  %v12497_v20 = vld [vmem:[#allocation23 + $0x8a4] ss:$16 sps:$4 sm:$0xff]  }
 0x989   : > { %9361 = vmatprep.subr.bf16.mxu1 %v12434_v7  ;;  %v12492_v7 = vld [vmem:[#allocation23 + $0x788] ss:$16 sps:$4 sm:$0xff]  }
 0x98b   : > { %9091 = vmatpush1.bf16.msra.mxu0 %v12429_v62  ;;  %v12500_v62 = vld [vmem:[#allocation23 + $0x7ac] ss:$16 sps:$4 sm:$0xff]  }
 0x98c   : > { %9092 = vmatprep.subr.bf16.mxu0 %v12437_v35  ;;  %9362 = vmatpush1.bf16.msra.mxu1 %v12432_v39  ;;  %v12498_v35 = vld [vmem:[#allocation23 + $0x7a8] ss:$16 sps:$4 sm:$0xff]   ;;  %v12501_v39 = vld [vmem:[#allocation23 + $0x8c0] ss:$16 sps:$4 sm:$0xff]  }
 0x98d   : > { %9363 = vmatprep.subr.bf16.mxu1 %v12440_v2  ;;  %v12506_v2 = vld [vmem:[#allocation23 + $0x7cc] ss:$16 sps:$4 sm:$0xff]  }
 0x98f   : > { %9093 = vmatpush1.bf16.msra.mxu0 %v12435_v46  ;;  %v12504_v46 = vld [vmem:[#allocation23 + $0x7c8] ss:$16 sps:$4 sm:$0xff]  }
 0x990   : > { %9094 = vmatprep.subr.bf16.mxu0 %v12443_v33  ;;  %9364 = vmatpush1.bf16.msra.mxu1 %v12438_v31  ;;  %v12512_v33 = vld [vmem:[#allocation23 + $0x7ec] ss:$16 sps:$4 sm:$0xff]   ;;  %v12515_v31 = vld [vmem:[#allocation23 + $0x904] ss:$16 sps:$4 sm:$0xff]  }
 0x991   : > { %9365 = vmatprep.subr.bf16.mxu1 %v12446_v45  ;;  %v12510_v45 = vld [vmem:[#allocation23 + $0x7e8] ss:$16 sps:$4 sm:$0xff]  }
 0x993   : > { %9095 = vmatpush1.bf16.msra.mxu0 %v12441_v42  ;;  %v12518_v42 = vld [vmem:[#allocation23 + $0x80c] ss:$16 sps:$4 sm:$0xff]  }
 0x994   : > { %9096 = vmatprep.subr.bf16.mxu0 %v12449_v54  ;;  %9366 = vmatpush1.bf16.msra.mxu1 %v12444_v11  ;;  %v12516_v54 = vld [vmem:[#allocation23 + $0x808] ss:$16 sps:$4 sm:$0xff]   ;;  %v12524_v11 = vld [vmem:[#allocation23 + $0x82c] ss:$16 sps:$4 sm:$0xff]  }
 0x995   : > { %9367 = vmatprep.subr.bf16.mxu1 %v12452_v61  ;;  %v12519_v61 = vld [vmem:[#allocation23 + $0x920] ss:$16 sps:$4 sm:$0xff]  }
 0x996   : > { %v15576_v32 = vpop.f32.mrb[0].mxu1 }
 0x997   : > { %9097 = vmatpush1.bf16.msra.mxu0 %v12447_v36  ;;  %v15578_v63 = vpop.f32.mrb[1].mxu1  ;;  %v6362_v36 = vld [vmem:[#allocation6 + $0x30] sm:$0xff] }
 0x998   : > { %9098 = vmatprep.subr.bf16.mxu0 %v12455_v44  ;;  %v9231_v26 = vpop.f32.mrb[2].mxu1  ;;  %9368 = vmatpush1.bf16.msra.mxu1 %v12450_v10  ;;  %v12522_v44 = vld [vmem:[#allocation23 + $0x828] ss:$16 sps:$4 sm:$0xff]   ;;  %v12525_v10 = vld [vmem:[#allocation23 + $0x940] ss:$16 sps:$4 sm:$0xff]  }
 0x999   : > { %v9232_v17 = vpop.f32.mrb[3].mxu1  ;;  %9369 = vmatprep.subr.bf16.mxu1 %v12458_v3  ;;  %v12530_v3 = vld [vmem:[#allocation23 + $0x84c] ss:$16 sps:$4 sm:$0xff]   ;;  %v12531_v26 = vld [vmem:[#allocation23 + $0x960] ss:$16 sps:$4 sm:$0xff]  }
 0x99a   : > { %v6383_v17 = vmax.f32 %v6359_v0, %v6382_v13  ;;  %v12585_v0 = vld [vmem:[#allocation23 + $0xa80] ss:$16 sps:$4 sm:$0xff]   ;;  %v12594_v13 = vld [vmem:[#allocation23 + $0x9a8] ss:$16 sps:$4 sm:$0xff]  }
 0x99b   : > { %9099 = vmatpush1.bf16.msra.mxu0 %v12453_v28  ;;  %v6400_v28 = vrot.slane %v6362_v36, 4 }
 0x99c   : > { %9100 = vmatprep.subr.bf16.mxu0 %v12461_v27  ;;  %9370 = vmatpush1.bf16.msra.mxu1 %v12456_v43  ;;  %v12528_v27 = vld [vmem:[#allocation23 + $0x848] ss:$16 sps:$4 sm:$0xff]   ;;  %v12536_v43 = vld [vmem:[#allocation23 + $0x86c] ss:$16 sps:$4 sm:$0xff]  }
 0x99d   : > { %9371 = vmatprep.subr.bf16.mxu1 %v12464_v51  ;;  %v6401_v51 = vmax.f32 %v6362_v36, %v6400_v28  ;;  %v12593_v36 = vld [vmem:[#allocation23 + $0xaa4] ss:$16 sps:$4 sm:$0xff]   ;;  %v12602_v28 = vld [vmem:[#allocation23 + $0x9cc] ss:$16 sps:$4 sm:$0xff]  }
 0x99f   : > { %9101 = vmatpush1.bf16.msra.mxu0 %v12459_v29  ;;  %v12534_v29 = vld [vmem:[#allocation23 + $0x868] ss:$16 sps:$4 sm:$0xff]  }
 0x9a0   : > { %9111 = vmatprep.subr.bf16.mxu0 %v12467_v15  ;;  %9372 = vmatpush1.bf16.msra.mxu1 %v12462_v38  ;;  %v12542_v15 = vld [vmem:[#allocation23 + $0x88c] ss:$16 sps:$4 sm:$0xff]   ;;  %v6384_v38 = vrot.slane %v6383_v17, 2 }
 0x9a1   : > { %9373 = vmatprep.subr.bf16.mxu1 %v12470_v6  ;;  %v6402_v6 = vrot.slane %v6401_v51, 2 }
 0x9a2   : > { %9103 = vmatmul.mubr.bf16.vlgmr.msra.gmra.mrb[0].mxu0 %v15580_v41 }
 0x9a3   : > { %9112 = vmatpush1.bf16.msra.mxu0 %v12465_v58  ;;  %9143 = vmatprep.mubr.bf16.mxu0 %v15582_v19  ;;  %v12540_v58 = vld [vmem:[#allocation23 + $0x888] ss:$16 sps:$4 sm:$0xff]  }
 0x9a4   : > { %9113 = vmatprep.subr.bf16.mxu0 %v12473_v53  ;;  %9374 = vmatpush1.bf16.msra.mxu1 %v12468_v12  ;;  %v12548_v53 = vld [vmem:[#allocation23 + $0x8ac] ss:$16 sps:$4 sm:$0xff]   ;;  %v6385_v12 = vmax.f32 %v6383_v17, %v6384_v38  ;;  %v12603_v17 = vld [vmem:[#allocation23 + $0xae0] ss:$16 sps:$4 sm:$0xff]   ;;  %v12612_v38 = vld [vmem:[#allocation23 + $0xa08] ss:$16 sps:$4 sm:$0xff]  }
 0x9a5   : > { %9375 = vmatprep.subr.bf16.mxu1 %v12476_v5  ;;  %v6403_v5 = vmax.f32 %v6401_v51, %v6402_v6  ;;  %v12611_v51 = vld [vmem:[#allocation23 + $0xb04] ss:$16 sps:$4 sm:$0xff]   ;;  %v12620_v6 = vld [vmem:[#allocation23 + $0xa2c] ss:$16 sps:$4 sm:$0xff]  }
 0x9a7   : > { %9114 = vmatpush1.bf16.msra.mxu0 %v12471_v9  ;;  %v12551_v9 = vld [vmem:[#allocation23 + $0x9c4] ss:$16 sps:$4 sm:$0xff]  }
 0x9a8   : > { %9115 = vmatprep.subr.bf16.mxu0 %v12479_v56  ;;  %9376 = vmatpush1.bf16.msra.mxu1 %v12474_v60  ;;  %v12546_v60 = vld [vmem:[#allocation23 + $0x8a8] ss:$16 sps:$4 sm:$0xff]   ;;  %v12549_v56 = vld [vmem:[#allocation23 + $0x9c0] ss:$16 sps:$4 sm:$0xff]  }
 0x9a9   : > { %9377 = vmatprep.subr.bf16.mxu1 %v12482_v52  ;;  %v6386_v52 = vrot.slane %v6385_v12, 1 }
 0x9ab   : > { %9116 = vmatpush1.bf16.msra.mxu0 %v12477_v21  ;;  %v12554_v21 = vld [vmem:[#allocation23 + $0x8cc] ss:$16 sps:$4 sm:$0xff]  }
 0x9ac   : > { %9117 = vmatprep.subr.bf16.mxu0 %v12485_v23  ;;  %9378 = vmatpush1.bf16.msra.mxu1 %v12480_v25  ;;  %v6404_v23 = vrot.slane %v6403_v5, 1  ;;  %v12557_v25 = vld [vmem:[#allocation23 + $0x9e4] ss:$16 sps:$4 sm:$0xff]  }
 0x9ad   : > { %9379 = vmatprep.subr.bf16.mxu1 %v12488_v50  ;;  %v12555_v50 = vld [vmem:[#allocation23 + $0x9e0] ss:$16 sps:$4 sm:$0xff]  }
 0x9af   : > { %9118 = vmatpush1.bf16.msra.mxu0 %v12483_v24  ;;  %v12552_v24 = vld [vmem:[#allocation23 + $0x8c8] ss:$16 sps:$4 sm:$0xff]  }
 0x9b0   : > { %9119 = vmatprep.subr.bf16.mxu0 %v12491_v8  ;;  %9380 = vmatpush1.bf16.msra.mxu1 %v12486_v47  ;;  %v12560_v8 = vld [vmem:[#allocation23 + $0x8ec] ss:$16 sps:$4 sm:$0xff]   ;;  %v12563_v47 = vld [vmem:[#allocation23 + $0xa04] ss:$16 sps:$4 sm:$0xff]  }
 0x9b1   : > { %9381 = vmatprep.subr.bf16.mxu1 %v12494_v30  ;;  %v6405_v30 = vmax.f32 %v6403_v5, %v6404_v23  ;;  %v12627_v23 = vld [vmem:[#allocation23 + $0xb60] ss:$16 sps:$4 sm:$0xff]  }
 0x9b3   : > { %9120 = vmatpush1.bf16.msra.mxu0 %v12489_v4  ;;  %v6387_v4 = vmax.f32 %v6385_v12, %v6386_v52  ;;  %v12626_v12 = vld [vmem:[#allocation23 + $0xa4c] ss:$16 sps:$4 sm:$0xff]  }
 0x9b4   : > { %9121 = vmatprep.subr.bf16.mxu0 %v12497_v20  ;;  %9382 = vmatpush1.bf16.msra.mxu1 %v12492_v7  ;;  %v12558_v20 = vld [vmem:[#allocation23 + $0x8e8] ss:$16 sps:$4 sm:$0xff]   ;;  %v12566_v7 = vld [vmem:[#allocation23 + $0x90c] ss:$16 sps:$4 sm:$0xff]  }
 0x9b5   : > { %9383 = vmatprep.subr.bf16.mxu1 %v12500_v62  ;;  %v12561_v62 = vld [vmem:[#allocation23 + $0xa00] ss:$16 sps:$4 sm:$0xff]  }
 0x9b7   : > { %9122 = vmatpush1.bf16.msra.mxu0 %v12495_v57  ;;  %v15588_v57 = vpack.c.bf16 %v6387_v4, %v6387_v4  ;;  %v12641_v4 = vld [vmem:[#allocation23 + $0xba4] ss:$16 sps:$4 sm:$0xff]  }
 0x9b8   : > { %9123 = vmatprep.subr.bf16.mxu0 %v12503_v18  ;;  %9384 = vmatpush1.bf16.msra.mxu1 %v12498_v35  ;;  %v15590_v18 = vpack.c.bf16 %v6405_v30, %v6405_v30  ;;  %v12569_v35 = vld [vmem:[#allocation23 + $0xa24] ss:$16 sps:$4 sm:$0xff]   ;;  %v12636_v30 = vld [vmem:[#allocation23 + $0xa88] ss:$16 sps:$4 sm:$0xff]  }
 0x9b9   : > { %9385 = vmatprep.subr.bf16.mxu1 %v12506_v2  ;;  %v12572_v2 = vld [vmem:[#allocation23 + $0x92c] ss:$16 sps:$4 sm:$0xff]  }
 0x9bb   : > { %9124 = vmatpush1.bf16.msra.mxu0 %v12501_v39  ;;  %v12564_v39 = vld [vmem:[#allocation23 + $0x908] ss:$16 sps:$4 sm:$0xff]  }
 0x9bc   : > { %9125 = vmatprep.subr.bf16.mxu0 %v12509_v59  ;;  %9386 = vmatpush1.bf16.msra.mxu1 %v12504_v46  ;;  %v12567_v59 = vld [vmem:[#allocation23 + $0xa20] ss:$16 sps:$4 sm:$0xff]   ;;  %v12575_v46 = vld [vmem:[#allocation23 + $0xa44] ss:$16 sps:$4 sm:$0xff]  }
 0x9bd   : > { %9387 = vmatprep.subr.bf16.mxu1 %v12512_v33  ;;  %v12578_v33 = vld [vmem:[#allocation23 + $0x94c] ss:$16 sps:$4 sm:$0xff]  }
 0x9bf   : > { %9126 = vmatpush1.bf16.msra.mxu0 %v12507_v49  ;;  %v12570_v49 = vld [vmem:[#allocation23 + $0x928] ss:$16 sps:$4 sm:$0xff]  }
 0x9c0   : > { %9127 = vmatprep.subr.bf16.mxu0 %v12515_v31  ;;  %9388 = vmatpush1.bf16.msra.mxu1 %v12510_v45  ;;  %v12573_v31 = vld [vmem:[#allocation23 + $0xa40] ss:$16 sps:$4 sm:$0xff]   ;;  %v12581_v45 = vld [vmem:[#allocation23 + $0xa64] ss:$16 sps:$4 sm:$0xff]  }
 0x9c1   : > { %9398 = vmatprep.subr.bf16.mxu1 %v12518_v42  ;;  %v12584_v42 = vld [vmem:[#allocation23 + $0x96c] ss:$16 sps:$4 sm:$0xff]  }
 0x9c3   : > { %9128 = vmatpush1.bf16.msra.mxu0 %v12513_v22  ;;  %9390 = vmatmul.mubr.bf16.vlgmr.msra.gmra.mrb[4].mxu1 %v15580_v41  ;;  %v12545_v41 = vld [vmem:[#allocation23 + $0x9a4] ss:$16 sps:$4 sm:$0xff]   ;;  %v12576_v22 = vld [vmem:[#allocation23 + $0x948] ss:$16 sps:$4 sm:$0xff]  }
 0x9c4   : > { %9129 = vmatprep.subr.bf16.mxu0 %v12521_v40  ;;  %9399 = vmatpush1.bf16.msra.mxu1 %v12516_v54  ;;  %v12579_v40 = vld [vmem:[#allocation23 + $0xa60] ss:$16 sps:$4 sm:$0xff]   ;;  %v12587_v54 = vld [vmem:[#allocation23 + $0xa84] ss:$16 sps:$4 sm:$0xff]  }
 0x9c5   : > { %9430 = vmatprep.mubr.bf16.mxu1 %v15582_v19  ;;  %9400 = vmatprep.subr.bf16.mxu1 %v12524_v11  ;;  %v12543_v19 = vld [vmem:[#allocation23 + $0x9a0] ss:$16 sps:$4 sm:$0xff]   ;;  %v12582_v11 = vld [vmem:[#allocation23 + $0x968] ss:$16 sps:$4 sm:$0xff]  }
 0x9c7   : > { %9130 = vmatpush1.bf16.msra.mxu0 %v12519_v61  ;;  %v12590_v61 = vld [vmem:[#allocation23 + $0x98c] ss:$16 sps:$4 sm:$0xff]  }
 0x9c8   : > { %9131 = vmatprep.subr.bf16.mxu0 %v12527_v34  ;;  %9401 = vmatpush1.bf16.msra.mxu1 %v12522_v44  ;;  %v12588_v34 = vld [vmem:[#allocation23 + $0x988] ss:$16 sps:$4 sm:$0xff]   ;;  %v12596_v44 = vld [vmem:[#allocation23 + $0x9ac] ss:$16 sps:$4 sm:$0xff]  }
 0x9c9   : > { %9402 = vmatprep.subr.bf16.mxu1 %v12530_v3  ;;  %v12599_v3 = vld [vmem:[#allocation23 + $0xac4] ss:$16 sps:$4 sm:$0xff]  }
 0x9cb   : > { %9132 = vmatpush1.bf16.msra.mxu0 %v12525_v10  ;;  %v12591_v10 = vld [vmem:[#allocation23 + $0xaa0] ss:$16 sps:$4 sm:$0xff]  }
 0x9cc   : > { %9133 = vmatprep.subr.bf16.mxu0 %v12533_v48  ;;  %9403 = vmatpush1.bf16.msra.mxu1 %v12528_v27  ;;  %v12597_v48 = vld [vmem:[#allocation23 + $0xac0] ss:$16 sps:$4 sm:$0xff]   ;;  %v12605_v27 = vld [vmem:[#allocation23 + $0xae4] ss:$16 sps:$4 sm:$0xff]  }
 0x9cd   : > { %9404 = vmatprep.subr.bf16.mxu1 %v12536_v43  ;;  %v12608_v43 = vld [vmem:[#allocation23 + $0x9ec] ss:$16 sps:$4 sm:$0xff]  }
 0x9cf   : > { %9134 = vmatpush1.bf16.msra.mxu0 %v12531_v26  ;;  %v12600_v26 = vld [vmem:[#allocation23 + $0x9c8] ss:$16 sps:$4 sm:$0xff]  }
 0x9d0   : > { %9135 = vmatprep.subr.bf16.mxu0 %v12539_v16  ;;  %9405 = vmatpush1.bf16.msra.mxu1 %v12534_v29  ;;  %v12606_v16 = vld [vmem:[#allocation23 + $0x9e8] ss:$16 sps:$4 sm:$0xff]   ;;  %v12614_v29 = vld [vmem:[#allocation23 + $0xa0c] ss:$16 sps:$4 sm:$0xff]  }
 0x9d1   : > { %9406 = vmatprep.subr.bf16.mxu1 %v12542_v15  ;;  %v12617_v15 = vld [vmem:[#allocation23 + $0xb24] ss:$16 sps:$4 sm:$0xff]  }
 0x9d3   : > { %9136 = vmatpush1.bf16.msra.mxu0 %v12537_v37  ;;  %v12609_v37 = vld [vmem:[#allocation23 + $0xb00] ss:$16 sps:$4 sm:$0xff]  }
 0x9d4   : > { %9137 = vmatprep.subr.bf16.mxu0 %v12545_v41  ;;  %9407 = vmatpush1.bf16.msra.mxu1 %v12540_v58  ;;  %v12615_v41 = vld [vmem:[#allocation23 + $0xb20] ss:$16 sps:$4 sm:$0xff]   ;;  %v6361_v58 = vld [vmem:[#allocation6 + $0x28] sm:$0xff] }
 0x9d5   : > { %9408 = vmatprep.subr.bf16.mxu1 %v12548_v53  ;;  %v12618_v53 = vld [vmem:[#allocation23 + $0xa28] ss:$16 sps:$4 sm:$0xff]   ;;  %v6394_v5 = vrot.slane %v6361_v58, 4 }
 0x9d7   : > { %9138 = vmatpush1.bf16.msra.mxu0 %v12543_v19  ;;  %v12623_v19 = vld [vmem:[#allocation23 + $0xb44] ss:$16 sps:$4 sm:$0xff]   ;;  %v6395_v52 = vmax.f32 %v6361_v58, %v6394_v5 }
 0x9d8   : > { %9139 = vmatprep.subr.bf16.mxu0 %v12551_v9  ;;  %9409 = vmatpush1.bf16.msra.mxu1 %v12546_v60  ;;  %v12621_v9 = vld [vmem:[#allocation23 + $0xb40] ss:$16 sps:$4 sm:$0xff]   ;;  %v12629_v60 = vld [vmem:[#allocation23 + $0xb64] ss:$16 sps:$4 sm:$0xff]  }
 0x9d9   : > { %9410 = vmatprep.subr.bf16.mxu1 %v12554_v21  ;;  %v12632_v21 = vld [vmem:[#allocation23 + $0xa6c] ss:$16 sps:$4 sm:$0xff]  }
 0x9da   : > { %v12723_v58 = vld [vmem:[#allocation26 + $0x60] ss:$8 sps:$4 sm:$0xff]   ;;  %v12726_v5 = vld [vmem:[#allocation26 + $0x70] ss:$8 sps:$4 sm:$0xff]  }
 0x9db   : > { %9140 = vmatpush1.bf16.msra.mxu0 %v12549_v56  ;;  %v12624_v56 = vld [vmem:[#allocation23 + $0xa48] ss:$16 sps:$4 sm:$0xff]  }
 0x9dc   : > { %9141 = vmatprep.subr.bf16.mxu0 %v12557_v25  ;;  %9411 = vmatpush1.bf16.msra.mxu1 %v12552_v24  ;;  %v12635_v25 = vld [vmem:[#allocation23 + $0xb84] ss:$16 sps:$4 sm:$0xff]   ;;  %v12630_v24 = vld [vmem:[#allocation23 + $0xa68] ss:$16 sps:$4 sm:$0xff]  }
 0x9dd   : > { %9412 = vmatprep.subr.bf16.mxu1 %v12560_v8  ;;  %v6396_v8 = vrot.slane %v6395_v52, 2 }
 0x9df   : > { %9142 = vmatpush1.bf16.msra.mxu0 %v12555_v50  ;;  %v12638_v50 = vld [vmem:[#allocation23 + $0xa8c] ss:$16 sps:$4 sm:$0xff]  }
 0x9e0   : > { %9152 = vmatprep.subr.bf16.mxu0 %v12563_v47  ;;  %9413 = vmatpush1.bf16.msra.mxu1 %v12558_v20  ;;  %v12633_v47 = vld [vmem:[#allocation23 + $0xb80] ss:$16 sps:$4 sm:$0xff]   ;;  %v12644_v20 = vld [vmem:[#allocation23 + $0xaac] ss:$16 sps:$4 sm:$0xff]  }
 0x9e1   : > { %9414 = vmatprep.subr.bf16.mxu1 %v12566_v7  ;;  %v6397_v7 = vmax.f32 %v6395_v52, %v6396_v8  ;;  %v12734_v52 = vld [vmem:[#allocation26 + $0x94] ss:$8 sps:$4 sm:$0xff]  }
 0x9e2   : > { %9144 = vmatmul.mubr.bf16.vlgmr.msra.gmra.mrb[0].mxu0 %v15588_v57  ;;  %v12684_v8 = vld [vmem:[#allocation23 + $0xc28] ss:$16 sps:$4 sm:$0xff]  }
 0x9e3   : > { %9153 = vmatpush1.bf16.msra.mxu0 %v12561_v62  ;;  %9184 = vmatprep.mubr.bf16.mxu0 %v15590_v18  ;;  %v12647_v62 = vld [vmem:[#allocation23 + $0xbc4] ss:$16 sps:$4 sm:$0xff]  }
 0x9e4   : > { %9154 = vmatprep.subr.bf16.mxu0 %v12569_v35  ;;  %9415 = vmatpush1.bf16.msra.mxu1 %v12564_v39  ;;  %v12650_v35 = vld [vmem:[#allocation23 + $0xacc] ss:$16 sps:$4 sm:$0xff]   ;;  %v6398_v39 = vrot.slane %v6397_v7, 1 }
 0x9e5   : > { %9416 = vmatprep.subr.bf16.mxu1 %v12572_v2  ;;  %v12645_v2 = vld [vmem:[#allocation23 + $0xbc0] ss:$16 sps:$4 sm:$0xff]  }
 0x9e7   : > { %9155 = vmatpush1.bf16.msra.mxu0 %v12567_v59  ;;  %v12653_v59 = vld [vmem:[#allocation23 + $0xbe4] ss:$16 sps:$4 sm:$0xff]  }
 0x9e8   : > { %9156 = vmatprep.subr.bf16.mxu0 %v12575_v46  ;;  %9417 = vmatpush1.bf16.msra.mxu1 %v12570_v49  ;;  %v12648_v46 = vld [vmem:[#allocation23 + $0xac8] ss:$16 sps:$4 sm:$0xff]   ;;  %v12656_v49 = vld [vmem:[#allocation23 + $0xaec] ss:$16 sps:$4 sm:$0xff]  }
 0x9e9   : > { %9418 = vmatprep.subr.bf16.mxu1 %v12578_v33  ;;  %v6399_v33 = vmax.f32 %v6397_v7, %v6398_v39  ;;  %v12692_v7 = vld [vmem:[#allocation23 + $0xc6c] ss:$16 sps:$4 sm:$0xff]   ;;  %v12746_v39 = vld [vmem:[#allocation26 + $0xd4] ss:$8 sps:$4 sm:$0xff]  }
 0x9eb   : > { %9157 = vmatpush1.bf16.msra.mxu0 %v12573_v31  ;;  %v12651_v31 = vld [vmem:[#allocation23 + $0xbe0] ss:$16 sps:$4 sm:$0xff]  }
 0x9ec   : > { %9158 = vmatprep.subr.bf16.mxu0 %v12581_v45  ;;  %9419 = vmatpush1.bf16.msra.mxu1 %v12576_v22  ;;  %v12707_v45 = vld [vmem:[#allocation26 + $0x4] ss:$8 sps:$4 sm:$0xff]  }
 0x9ed   : > { %9420 = vmatprep.subr.bf16.mxu1 %v12584_v42  ;;  %v12654_v22 = vld [vmem:[#allocation23 + $0xae8] ss:$16 sps:$4 sm:$0xff]   ;;  %v15596_v42 = vpack.c.bf16 %v6399_v33, %v6399_v33  ;;  %v12701_v33 = vld [vmem:[#allocation23 + $0xccc] ss:$16 sps:$4 sm:$0xff]  }
 0x9ef   : > { %9159 = vmatpush1.bf16.msra.mxu0 %v12579_v40  ;;  %v12659_v40 = vld [vmem:[#allocation23 + $0xb0c] ss:$16 sps:$4 sm:$0xff]  }
 0x9f0   : > { %9160 = vmatprep.subr.bf16.mxu0 %v12587_v54  ;;  %9421 = vmatpush1.bf16.msra.mxu1 %v12582_v11  ;;  %v12705_v54 = vld [vmem:[#allocation26] ss:$8 sps:$4 sm:$0xff]   ;;  %v12710_v11 = vld [vmem:[#allocation26 + $0x14] ss:$8 sps:$4 sm:$0xff]  }
 0x9f1   : > { %9422 = vmatprep.subr.bf16.mxu1 %v12590_v61  ;;  %v12657_v61 = vld [vmem:[#allocation23 + $0xb08] ss:$16 sps:$4 sm:$0xff]  }
 0x9f3   : > { %9161 = vmatpush1.bf16.msra.mxu0 %v12585_v0  ;;  %v12662_v0 = vld [vmem:[#allocation23 + $0xb2c] ss:$16 sps:$4 sm:$0xff]  }
 0x9f4   : > { %9162 = vmatprep.subr.bf16.mxu0 %v12593_v36  ;;  %9423 = vmatpush1.bf16.msra.mxu1 %v12588_v34  ;;  %v12708_v36 = vld [vmem:[#allocation26 + $0x10] ss:$8 sps:$4 sm:$0xff]   ;;  %v12713_v34 = vld [vmem:[#allocation26 + $0x24] ss:$8 sps:$4 sm:$0xff]  }
 0x9f5   : > { %9424 = vmatprep.subr.bf16.mxu1 %v12596_v44  ;;  %v12660_v44 = vld [vmem:[#allocation23 + $0xb28] ss:$16 sps:$4 sm:$0xff]  }
 0x9f7   : > { %9163 = vmatpush1.bf16.msra.mxu0 %v12591_v10  ;;  %v12665_v10 = vld [vmem:[#allocation23 + $0xb4c] ss:$16 sps:$4 sm:$0xff]  }
 0x9f8   : > { %9164 = vmatprep.subr.bf16.mxu0 %v12599_v3  ;;  %9425 = vmatpush1.bf16.msra.mxu1 %v12594_v13  ;;  %v12711_v3 = vld [vmem:[#allocation26 + $0x20] ss:$8 sps:$4 sm:$0xff]   ;;  %v12716_v13 = vld [vmem:[#allocation26 + $0x34] ss:$8 sps:$4 sm:$0xff]  }
 0x9f9   : > { %9426 = vmatprep.subr.bf16.mxu1 %v12602_v28  ;;  %v12663_v28 = vld [vmem:[#allocation23 + $0xb48] ss:$16 sps:$4 sm:$0xff]  }
 0x9fb   : > { %9165 = vmatpush1.bf16.msra.mxu0 %v12597_v48  ;;  %v12668_v48 = vld [vmem:[#allocation23 + $0xb6c] ss:$16 sps:$4 sm:$0xff]  }
 0x9fc   : > { %9166 = vmatprep.subr.bf16.mxu0 %v12605_v27  ;;  %9427 = vmatpush1.bf16.msra.mxu1 %v12600_v26  ;;  %v12714_v27 = vld [vmem:[#allocation26 + $0x30] ss:$8 sps:$4 sm:$0xff]   ;;  %v12719_v26 = vld [vmem:[#allocation26 + $0x44] ss:$8 sps:$4 sm:$0xff]  }
 0x9fd   : > { %9428 = vmatprep.subr.bf16.mxu1 %v12608_v43  ;;  %v12666_v43 = vld [vmem:[#allocation23 + $0xb68] ss:$16 sps:$4 sm:$0xff]  }
 0x9ff   : > { %9167 = vmatpush1.bf16.msra.mxu0 %v12603_v17  ;;  %v12671_v17 = vld [vmem:[#allocation23 + $0xb8c] ss:$16 sps:$4 sm:$0xff]  }
 0xa00   : > { %9168 = vmatprep.subr.bf16.mxu0 %v12611_v51  ;;  %9429 = vmatpush1.bf16.msra.mxu1 %v12606_v16  ;;  %v12717_v51 = vld [vmem:[#allocation26 + $0x40] ss:$8 sps:$4 sm:$0xff]   ;;  %v12722_v16 = vld [vmem:[#allocation26 + $0x54] ss:$8 sps:$4 sm:$0xff]  }
 0xa01   : > { %9439 = vmatprep.subr.bf16.mxu1 %v12614_v29  ;;  %v12669_v29 = vld [vmem:[#allocation23 + $0xb88] ss:$16 sps:$4 sm:$0xff]  }
 0xa03   : > { %9169 = vmatpush1.bf16.msra.mxu0 %v12609_v37  ;;  %9431 = vmatmul.mubr.bf16.vlgmr.msra.gmra.mrb[4].mxu1 %v15588_v57  ;;  %v12639_v57 = vld [vmem:[#allocation23 + $0xba0] ss:$16 sps:$4 sm:$0xff]   ;;  %v12674_v37 = vld [vmem:[#allocation23 + $0xbac] ss:$16 sps:$4 sm:$0xff]  }
 0xa04   : > { %9170 = vmatprep.subr.bf16.mxu0 %v12617_v15  ;;  %9440 = vmatpush1.bf16.msra.mxu1 %v12612_v38  ;;  %v12720_v15 = vld [vmem:[#allocation26 + $0x50] ss:$8 sps:$4 sm:$0xff]   ;;  %v12725_v38 = vld [vmem:[#allocation26 + $0x64] ss:$8 sps:$4 sm:$0xff]  }
 0xa05   : > { %9471 = vmatprep.mubr.bf16.mxu1 %v15590_v18  ;;  %9441 = vmatprep.subr.bf16.mxu1 %v12620_v6  ;;  %v12642_v18 = vld [vmem:[#allocation23 + $0xaa8] ss:$16 sps:$4 sm:$0xff]  }
 0xa06   : > { %v12672_v6 = vld [vmem:[#allocation23 + $0xba8] ss:$16 sps:$4 sm:$0xff]  }
 0xa07   : > { %9171 = vmatpush1.bf16.msra.mxu0 %v12615_v41  ;;  %v12677_v41 = vld [vmem:[#allocation23 + $0xbcc] ss:$16 sps:$4 sm:$0xff]  }
 0xa08   : > { %9172 = vmatprep.subr.bf16.mxu0 %v12623_v19  ;;  %9442 = vmatpush1.bf16.msra.mxu1 %v12618_v53  ;;  %v12728_v19 = vld [vmem:[#allocation26 + $0x74] ss:$8 sps:$4 sm:$0xff]  }
 0xa09   : > { %9443 = vmatprep.subr.bf16.mxu1 %v12626_v12  ;;  %v12675_v53 = vld [vmem:[#allocation23 + $0xbc8] ss:$16 sps:$4 sm:$0xff]   ;;  %v12680_v12 = vld [vmem:[#allocation23 + $0xbec] ss:$16 sps:$4 sm:$0xff]  }
 0xa0b   : > { %9173 = vmatpush1.bf16.msra.mxu0 %v12621_v9  ;;  %v12731_v9 = vld [vmem:[#allocation26 + $0x84] ss:$8 sps:$4 sm:$0xff]  }
 0xa0c   : > { %9174 = vmatprep.subr.bf16.mxu0 %v12629_v60  ;;  %9444 = vmatpush1.bf16.msra.mxu1 %v12624_v56  ;;  %v12678_v60 = vld [vmem:[#allocation23 + $0xbe8] ss:$16 sps:$4 sm:$0xff]   ;;  %v12683_v56 = vld [vmem:[#allocation23 + $0xc0c] ss:$16 sps:$4 sm:$0xff]  }
 0xa0d   : > { %9445 = vmatprep.subr.bf16.mxu1 %v12632_v21  ;;  %v12729_v21 = vld [vmem:[#allocation26 + $0x80] ss:$8 sps:$4 sm:$0xff]  }
 0xa0f   : > { %9175 = vmatpush1.bf16.msra.mxu0 %v12627_v23  ;;  %v12681_v23 = vld [vmem:[#allocation23 + $0xc08] ss:$16 sps:$4 sm:$0xff]  }
 0xa10   : > { %9176 = vmatprep.subr.bf16.mxu0 %v12635_v25  ;;  %9446 = vmatpush1.bf16.msra.mxu1 %v12630_v24  ;;  %v12686_v25 = vld [vmem:[#allocation23 + $0xc2c] ss:$16 sps:$4 sm:$0xff]  }
 0xa11   : > { %9447 = vmatprep.subr.bf16.mxu1 %v12638_v50  ;;  %v12732_v24 = vld [vmem:[#allocation26 + $0x90] ss:$8 sps:$4 sm:$0xff]   ;;  %v12737_v50 = vld [vmem:[#allocation26 + $0xa4] ss:$8 sps:$4 sm:$0xff]  }
 0xa13   : > { %9177 = vmatpush1.bf16.msra.mxu0 %v12633_v47  ;;  %v12689_v47 = vld [vmem:[#allocation23 + $0xc4c] ss:$16 sps:$4 sm:$0xff]  }
 0xa14   : > { %9178 = vmatprep.subr.bf16.mxu0 %v12641_v4  ;;  %9448 = vmatpush1.bf16.msra.mxu1 %v12636_v30  ;;  %v12735_v4 = vld [vmem:[#allocation26 + $0xa0] ss:$8 sps:$4 sm:$0xff]   ;;  %v12740_v30 = vld [vmem:[#allocation26 + $0xb4] ss:$8 sps:$4 sm:$0xff]  }
 0xa15   : > { %9449 = vmatprep.subr.bf16.mxu1 %v12644_v20  ;;  %v12687_v20 = vld [vmem:[#allocation23 + $0xc48] ss:$16 sps:$4 sm:$0xff]  }
 0xa17   : > { %9179 = vmatpush1.bf16.msra.mxu0 %v12639_v57  ;;  %v12738_v57 = vld [vmem:[#allocation26 + $0xb0] ss:$8 sps:$4 sm:$0xff]  }
 0xa18   : > { %9180 = vmatprep.subr.bf16.mxu0 %v12647_v62  ;;  %9450 = vmatpush1.bf16.msra.mxu1 %v12642_v18  ;;  %v12743_v62 = vld [vmem:[#allocation26 + $0xc4] ss:$8 sps:$4 sm:$0xff]  }
 0xa19   : > { %9451 = vmatprep.subr.bf16.mxu1 %v12650_v35  ;;  %v12690_v18 = vld [vmem:[#allocation23 + $0xc68] ss:$16 sps:$4 sm:$0xff]   ;;  %v12695_v35 = vld [vmem:[#allocation23 + $0xc8c] ss:$16 sps:$4 sm:$0xff]  }
 0xa1b   : > { %9181 = vmatpush1.bf16.msra.mxu0 %v12645_v2  ;;  %v12693_v2 = vld [vmem:[#allocation23 + $0xc88] ss:$16 sps:$4 sm:$0xff]  }
 0xa1c   : > { %9182 = vmatprep.subr.bf16.mxu0 %v12653_v59  ;;  %9452 = vmatpush1.bf16.msra.mxu1 %v12648_v46  ;;  %v12698_v59 = vld [vmem:[#allocation23 + $0xcac] ss:$16 sps:$4 sm:$0xff]  }
 0xa1d   : > { %9453 = vmatprep.subr.bf16.mxu1 %v12656_v49  ;;  %v12744_v46 = vld [vmem:[#allocation26 + $0xd0] ss:$8 sps:$4 sm:$0xff]   ;;  %v12696_v49 = vld [vmem:[#allocation23 + $0xca8] ss:$16 sps:$4 sm:$0xff]  }
 0xa1f   : > { %9183 = vmatpush1.bf16.msra.mxu0 %v12651_v31  ;;  %v12699_v31 = vld [vmem:[#allocation23 + $0xcc8] ss:$16 sps:$4 sm:$0xff]  }
 0xa20   : > { %9925 = vmatprep.subr.bf16.mxu0 %v12707_v45  ;;  %9454 = vmatpush1.bf16.msra.mxu1 %v12654_v22  ;;  %v12704_v45 = vld [vmem:[#allocation23 + $0xcec] ss:$16 sps:$4 sm:$0xff]   ;;  %v12702_v22 = vld [vmem:[#allocation23 + $0xce8] ss:$16 sps:$4 sm:$0xff]  }
 0xa21   : > { %9455 = vmatprep.subr.bf16.mxu1 %v12659_v40  ;;  %v12747_v40 = vld [vmem:[#allocation26 + $0xe0] ss:$8 sps:$4 sm:$0xff]  }
 0xa22   : > { %9185 = vmatmul.mubr.bf16.vlgmr.msra.gmra.mrb[0].mxu0 %v15596_v42 }
 0xa23   : > { %9926 = vmatpush1.bf16.msra.mxu0 %v12705_v54  ;;  %v12752_v54 = vld [vmem:[#allocation26 + $0xf4] ss:$8 sps:$4 sm:$0xff]  }
 0xa24   : > { %9927 = vmatprep.subr.bf16.mxu0 %v12710_v11  ;;  %9456 = vmatpush1.bf16.msra.mxu1 %v12657_v61  ;;  %v12750_v11 = vld [vmem:[#allocation26 + $0xf0] ss:$8 sps:$4 sm:$0xff]   ;;  %v12755_v61 = vld [vmem:[#allocation26 + $0x104] ss:$8 sps:$4 sm:$0xff]  }
 0xa25   : > { %9457 = vmatprep.subr.bf16.mxu1 %v12662_v0  ;;  %v12801_v0 = vld [vmem:[#allocation29 + $0x40] sm:$0xff]  }
 0xa27   : > { %9928 = vmatpush1.bf16.msra.mxu0 %v12708_v36  ;;  %v12802_v36 = vld [vmem:[#allocation29] sm:$0xff]  }
 0xa28   : > { %9929 = vmatprep.subr.bf16.mxu0 %v12713_v34  ;;  %9458 = vmatpush1.bf16.msra.mxu1 %v12660_v44  ;;  %v12803_v34 = vld [vmem:[#allocation29 + $0x48] sm:$0xff]  }
 0xa29   : > { %9459 = vmatprep.subr.bf16.mxu1 %v12665_v10  ;;  %v12804_v44 = vld [vmem:[#allocation29 + $0x8] sm:$0xff]   ;;  %v12805_v10 = vld [vmem:[#allocation29 + $0x50] sm:$0xff]  }
 0xa2b   : > { %9930 = vmatpush1.bf16.msra.mxu0 %v12711_v3  ;;  %v12807_v3 = vld [vmem:[#allocation29 + $0x58] sm:$0xff]  }
 0xa2c   : > { %9931 = vmatprep.subr.bf16.mxu0 %v12716_v13  ;;  %9460 = vmatpush1.bf16.msra.mxu1 %v12663_v28  ;;  %v12808_v13 = vld [vmem:[#allocation29 + $0x18] sm:$0xff]   ;;  %v12809_v28 = vld [vmem:[#allocation29 + $0x60] sm:$0xff]  }
 0xa2d   : > { %9461 = vmatprep.subr.bf16.mxu1 %v12668_v48  ;;  %v12810_v48 = vld [vmem:[#allocation29 + $0x20] sm:$0xff]  }
 0xa2f   : > { %9932 = vmatpush1.bf16.msra.mxu0 %v12714_v27  ;;  %v12811_v27 = vld [vmem:[#allocation29 + $0x68] sm:$0xff]  }
 0xa30   : > { %9933 = vmatprep.subr.bf16.mxu0 %v12719_v26  ;;  %9462 = vmatpush1.bf16.msra.mxu1 %v12666_v43  ;;  %v12812_v26 = vld [vmem:[#allocation29 + $0x28] sm:$0xff]   ;;  %v15602_v43 = vld [vmem:[#allocation24] sm:$0xf] }
 0xa31   : > { %9463 = vmatprep.subr.bf16.mxu1 %v12671_v17  ;;  %v15778_v17 = vld [vmem:[#allocation49_spill] sm:$0xff] }
 0xa33   : > { %9934 = vmatpush1.bf16.msra.mxu0 %v12717_v51  ;;  %v8930_v51 = vrot.slane %v15602_v43, %v15778_v17 }
 0xa34   : > { %9935 = vmatprep.subr.bf16.mxu0 %v12722_v16  ;;  %9464 = vmatpush1.bf16.msra.mxu1 %v12669_v29  ;;  %v15779_v16 = vld [vmem:[#allocation50_spill] sm:$0xff] }
 0xa35   : > { %9465 = vmatprep.subr.bf16.mxu1 %v12674_v37  ;;  %v8934_v29 = vrot.slane %v15602_v43, %v15779_v16 }
 0xa37   : > { %9936 = vmatpush1.bf16.msra.mxu0 %v12720_v15 }
 0xa38   : > { %9937 = vmatprep.subr.bf16.mxu0 %v12725_v38  ;;  %9466 = vmatpush1.bf16.msra.mxu1 %v12672_v6 }
 0xa39   : > { %9467 = vmatprep.subr.bf16.mxu1 %v12677_v41 }
 0xa3b   : > { %9938 = vmatpush1.bf16.msra.mxu0 %v12723_v58 }
 0xa3c   : > { %9939 = vmatprep.subr.bf16.mxu0 %v12728_v19  ;;  %9468 = vmatpush1.bf16.msra.mxu1 %v12675_v53 }
 0xa3d   : > { %9469 = vmatprep.subr.bf16.mxu1 %v12680_v12 }
 0xa3f   : > { %9940 = vmatpush1.bf16.msra.mxu0 %v12726_v5 }
 0xa40   : > { %9941 = vmatprep.subr.bf16.mxu0 %v12731_v9  ;;  %9470 = vmatpush1.bf16.msra.mxu1 %v12678_v60  ;;  %v12753_v60 = vld [vmem:[#allocation26 + $0x100] ss:$8 sps:$4 sm:$0xff]  }
 0xa41   : > { %9480 = vmatprep.subr.bf16.mxu1 %v12683_v56 }
 0xa43   : > { %9942 = vmatpush1.bf16.msra.mxu0 %v12729_v21  ;;  %9472 = vmatmul.mubr.bf16.vlgmr.msra.gmra.mrb[4].mxu1 %v15596_v42  ;;  %v12749_v42 = vld [vmem:[#allocation26 + $0xe4] ss:$8 sps:$4 sm:$0xff]   ;;  %v12758_v21 = vld [vmem:[#allocation26 + $0x114] ss:$8 sps:$4 sm:$0xff]  }
 0xa44   : > { %9943 = vmatprep.subr.bf16.mxu0 %v12734_v52  ;;  %9481 = vmatpush1.bf16.msra.mxu1 %v12681_v23  ;;  %v12756_v52 = vld [vmem:[#allocation26 + $0x110] ss:$8 sps:$4 sm:$0xff]   ;;  %v12761_v23 = vld [vmem:[#allocation26 + $0x124] ss:$8 sps:$4 sm:$0xff]  }
 0xa45   : > { %9512 = vmatprep.mubr.bf16.mxu1 %v13403_v14  ;;  %9482 = vmatprep.subr.bf16.mxu1 %v12686_v25  ;;  %v12741_v14 = vld [vmem:[#allocation26 + $0xc0] ss:$8 sps:$4 sm:$0xff]  }
 0xa46   : > { %v12759_v25 = vld [vmem:[#allocation26 + $0x120] ss:$8 sps:$4 sm:$0xff]  }
 0xa47   : > { %9944 = vmatpush1.bf16.msra.mxu0 %v12732_v24  ;;  %v12764_v24 = vld [vmem:[#allocation26 + $0x134] ss:$8 sps:$4 sm:$0xff]  }
 0xa48   : > { %9945 = vmatprep.subr.bf16.mxu0 %v12737_v50  ;;  %9483 = vmatpush1.bf16.msra.mxu1 %v12684_v8  ;;  %v12765_v50 = vld [vmem:[#allocation26 + $0x140] ss:$8 sps:$4 sm:$0xff]   ;;  %v12770_v8 = vld [vmem:[#allocation26 + $0x154] ss:$8 sps:$4 sm:$0xff]  }
 0xa49   : > { %9484 = vmatprep.subr.bf16.mxu1 %v12689_v47  ;;  %v12768_v47 = vld [vmem:[#allocation26 + $0x150] ss:$8 sps:$4 sm:$0xff]  }
 0xa4b   : > { %9946 = vmatpush1.bf16.msra.mxu0 %v12735_v4  ;;  %v12773_v4 = vld [vmem:[#allocation26 + $0x164] ss:$8 sps:$4 sm:$0xff]  }
 0xa4c   : > { %9947 = vmatprep.subr.bf16.mxu0 %v12740_v30  ;;  %9485 = vmatpush1.bf16.msra.mxu1 %v12687_v20  ;;  %v12771_v30 = vld [vmem:[#allocation26 + $0x160] ss:$8 sps:$4 sm:$0xff]   ;;  %v12776_v20 = vld [vmem:[#allocation26 + $0x174] ss:$8 sps:$4 sm:$0xff]  }
 0xa4d   : > { %9486 = vmatprep.subr.bf16.mxu1 %v12692_v7  ;;  %v12774_v7 = vld [vmem:[#allocation26 + $0x170] ss:$8 sps:$4 sm:$0xff]  }
 0xa4f   : > { %9948 = vmatpush1.bf16.msra.mxu0 %v12738_v57  ;;  %v12779_v57 = vld [vmem:[#allocation26 + $0x184] ss:$8 sps:$4 sm:$0xff]  }
 0xa50   : > { %9949 = vmatprep.subr.bf16.mxu0 %v12743_v62  ;;  %9487 = vmatpush1.bf16.msra.mxu1 %v12690_v18  ;;  %v12777_v62 = vld [vmem:[#allocation26 + $0x180] ss:$8 sps:$4 sm:$0xff]   ;;  %v12782_v18 = vld [vmem:[#allocation26 + $0x194] ss:$8 sps:$4 sm:$0xff]  }
 0xa51   : > { %9488 = vmatprep.subr.bf16.mxu1 %v12695_v35  ;;  %v12780_v35 = vld [vmem:[#allocation26 + $0x190] ss:$8 sps:$4 sm:$0xff]  }
 0xa53   : > { %9950 = vmatpush1.bf16.msra.mxu0 %v12741_v14  ;;  %v12785_v14 = vld [vmem:[#allocation26 + $0x1a4] ss:$8 sps:$4 sm:$0xff]  }
 0xa54   : > { %9951 = vmatprep.subr.bf16.mxu0 %v12746_v39  ;;  %9489 = vmatpush1.bf16.msra.mxu1 %v12693_v2  ;;  %v12783_v39 = vld [vmem:[#allocation26 + $0x1a0] ss:$8 sps:$4 sm:$0xff]   ;;  %v12788_v2 = vld [vmem:[#allocation26 + $0x1b4] ss:$8 sps:$4 sm:$0xff]  }
 0xa55   : > { %9490 = vmatprep.subr.bf16.mxu1 %v12698_v59  ;;  %v12786_v59 = vld [vmem:[#allocation26 + $0x1b0] ss:$8 sps:$4 sm:$0xff]  }
 0xa57   : > { %9952 = vmatpush1.bf16.msra.mxu0 %v12744_v46  ;;  %v12791_v46 = vld [vmem:[#allocation26 + $0x1c4] ss:$8 sps:$4 sm:$0xff]  }
 0xa58   : > { %9491 = vmatpush1.bf16.msra.mxu1 %v12696_v49  ;;  %9953 = vmatprep.subr.bf16.mxu0 %v12749_v42  ;;  %v12789_v49 = vld [vmem:[#allocation26 + $0x1c0] ss:$8 sps:$4 sm:$0xff]  }
 0xa59   : > { %9492 = vmatprep.subr.bf16.mxu1 %v12701_v33  ;;  %v12794_v33 = vld [vmem:[#allocation26 + $0x1d4] ss:$8 sps:$4 sm:$0xff]  }
 0xa5b   : > { %9954 = vmatpush1.bf16.msra.mxu0 %v12747_v40  ;;  %v15781_v40 = vsub.s32 3, %v14797_v1 }
 0xa5c   : > { %9493 = vmatpush1.bf16.msra.mxu1 %v12699_v31  ;;  %9955 = vmatprep.subr.bf16.mxu0 %v12752_v54  ;;  %v12792_v31 = vld [vmem:[#allocation26 + $0x1d0] ss:$8 sps:$4 sm:$0xff]  }
 0xa5d   : > { %9494 = vmatprep.subr.bf16.mxu1 %v12704_v45  ;;  %v12797_v45 = vld [vmem:[#allocation26 + $0x1e4] ss:$8 sps:$4 sm:$0xff]   ;;  %v8942_v54 = vrot.slane %v15602_v43, %v15781_v40 }
 0xa5f   : > { %9956 = vmatpush1.bf16.msra.mxu0 %v12750_v11  ;;  %v12795_v11 = vld [vmem:[#allocation26 + $0x1e0] ss:$8 sps:$4 sm:$0xff]  }
 0xa60   : > { %9495 = vmatpush1.bf16.msra.mxu1 %v12702_v22  ;;  %9966 = vmatprep.subr.bf16.mxu0 %v12755_v61  ;;  %v15780_v22 = vsub.s32 2, %v14797_v1  ;;  %v12800_v61 = vld [vmem:[#allocation26 + $0x1f4] ss:$8 sps:$4 sm:$0xff]  }
 0xa61   : > { %11455 = vmatprep.subr.bf16.mxu1 %v12801_v0  ;;  %v12813_v1 = vld [vmem:[#allocation29 + $0x70] sm:$0xff]  }
 0xa62   : > { %v8938_v42 = vrot.slane %v15602_v43, %v15780_v22  ;;  %v12815_v43 = vld [vmem:[#allocation29 + $0x78] sm:$0xff]  }
 0xa63   : > { %9513 = vmatmul.mubr.bf16.vlgmr.msra.gmra.mrb[4].mxu1 %v15531_v55  ;;  %v12806_v55 = vld [vmem:[#allocation29 + $0x10] sm:$0xff]  }
 0xa64   : > { %11456 = vmatpush3.bf16.msra.mxu1 %v12802_v36 }
 0xa65   : > { %11457 = vmatprep.subr.bf16.mxu1 %v12803_v34 }
 0xa68   : > { %11458 = vmatpush3.bf16.msra.mxu1 %v12804_v44 }
 0xa69   : > { %11459 = vmatprep.subr.bf16.mxu1 %v12805_v10 }
 0xa6c   : > { %11460 = vmatpush3.bf16.msra.mxu1 %v12806_v55  ;;  %v12798_v55 = vld [vmem:[#allocation26 + $0x1f0] ss:$8 sps:$4 sm:$0xff]  }
 0xa6d   : > { %11461 = vmatprep.subr.bf16.mxu1 %v12807_v3 }
 0xa70   : > { %11462 = vmatpush3.bf16.msra.mxu1 %v12808_v13 }
 0xa71   : > { %11463 = vmatprep.subr.bf16.mxu1 %v12809_v28 }
 0xa74   : > { %11464 = vmatpush3.bf16.msra.mxu1 %v12810_v48 }
 0xa75   : > { %11465 = vmatprep.subr.bf16.mxu1 %v12811_v27 }
 0xa78   : > { %11466 = vmatpush3.bf16.msra.mxu1 %v12812_v26  ;;  %v12814_v26 = vld [vmem:[#allocation29 + $0x30] sm:$0xff]  }
 0xa79   : > { %11467 = vmatprep.subr.bf16.mxu1 %v12813_v1 }
 0xa7c   : > { %11468 = vmatpush3.bf16.msra.mxu1 %v12814_v26 }
 0xa7d   : > { %11469 = vmatprep.subr.bf16.mxu1 %v12815_v43 }
 0xaf5   : > { %v9186_v37 = vpop.f32.mrb[0].mxu0 }
 0xaf6   : > { %v11788_v15 = vadd.f32 %v9186_v37, %v8930_v51  ;;  %v9188_v38 = vpop.f32.mrb[1].mxu0  ;;  %v12816_v51 = vld [vmem:[#allocation29 + $0x38] sm:$0xff]  }
 0xaf7   : > { %v11790_v6 = vadd.f32 %v9188_v38, %v8934_v29  ;;  %v9190_v41 = vpop.f32.mrb[2].mxu0  ;;  %11470 = vmatpush3.bf16.msra.mxu1 %v12816_v51  ;;  %v13404_v29 = vmov 0.0   ;;  %v9593_v37 = vld [vmem:[#allocation27] sm:$0x3] }
 0xaf8   : > { %v11789_v58 = vadd.f32 %v11788_v15, %v15576_v32  ;;  %v9191_v19 = vpop.f32.mrb[3].mxu0  ;;  %v12762_v32 = vld [vmem:[#allocation26 + $0x130] ss:$8 sps:$4 sm:$0xff]   ;;  %11768 = vmatprep.subr.bf16.mxu1 %v13404_v29  ;;  %v9918_v15 = vrot.slane %v9593_v37, %v15778_v17  ;;  %v9922_v38 = vrot.slane %v9593_v37, %v15779_v16 }
 0xaf9   : > { %v11791_v53 = vadd.f32 %v11790_v6, %v15578_v63  ;;  %v12767_v63 = vld [vmem:[#allocation26 + $0x144] ss:$8 sps:$4 sm:$0xff]   ;;  %v12818_v17 = vld [vmem:[%s15782_s1 + $0x8] sm:$0xff]   ;;  %v12819_v16 = vld [vmem:[%s15782_s1 + $0x10] sm:$0xff]  }
 0xafa   : > { %v9521_v12 = vmax.f32 %v11789_v58, 0.0 }
 0xafb   : > { %v9522_v5 = vmax.f32 %v11791_v53, 0.0 }
 0xafc   : > { %v9525_v56 = vpack.c.bf16 %v9521_v12, %v9521_v12 }
 0xafd   : > { %v9526_v9 = vpack.c.bf16 %v9522_v5, %v9522_v5 }
 0xaff   : > { %9957 = vmatprep.mubr.bf16.mxu0 %v9526_v9 }
 0xb00   : > { %9958 = vmatmul.mubr.bf16.vlgmr.msra.gmra.mrb[4].mxu0 %v9525_v56  ;;  %v12817_v56 = vld [vmem:[%s15782_s1] sm:$0xff]  }
 0xb01   : > { %9967 = vmatpush1.bf16.msra.mxu0 %v12753_v60 }
 0xb02   : > { %9968 = vmatprep.subr.bf16.mxu0 %v12758_v21 }
 0xb05   : > { %9969 = vmatpush1.bf16.msra.mxu0 %v12756_v52  ;;  %v12820_v52 = vld [vmem:[%s15782_s1 + $0x18] sm:$0xff]  }
 0xb06   : > { %9970 = vmatprep.subr.bf16.mxu0 %v12761_v23  ;;  %v12821_v23 = vld [vmem:[%s15782_s1 + $0x20] sm:$0xff]  }
 0xb09   : > { %9971 = vmatpush1.bf16.msra.mxu0 %v12759_v25  ;;  %v12822_v25 = vld [vmem:[%s15782_s1 + $0x28] sm:$0xff]  }
 0xb0a   : > { %9972 = vmatprep.subr.bf16.mxu0 %v12764_v24  ;;  %v12823_v24 = vld [vmem:[%s15782_s1 + $0x30] sm:$0xff]  }
 0xb0d   : > { %9973 = vmatpush1.bf16.msra.mxu0 %v12762_v32  ;;  %v12824_v32 = vld [vmem:[%s15782_s1 + $0x38] sm:$0xff]  }
 0xb0e   : > { %9974 = vmatprep.subr.bf16.mxu0 %v12767_v63 }
 0xb11   : > { %9975 = vmatpush1.bf16.msra.mxu0 %v12765_v50  ;;  %v10043_v50 = vld [vmem:[#allocation30] sm:$0x1] }
 0xb12   : > { %9976 = vmatprep.subr.bf16.mxu0 %v12770_v8 }
 0xb15   : > { %9977 = vmatpush1.bf16.msra.mxu0 %v12768_v47 }
 0xb16   : > { %9978 = vmatprep.subr.bf16.mxu0 %v12773_v4 }
 0xb19   : > { %9979 = vmatpush1.bf16.msra.mxu0 %v12771_v30 }
 0xb1a   : > { %9980 = vmatprep.subr.bf16.mxu0 %v12776_v20 }
 0xb1d   : > { %9981 = vmatpush1.bf16.msra.mxu0 %v12774_v7 }
 0xb1e   : > { %9982 = vmatprep.subr.bf16.mxu0 %v12779_v57 }
 0xb21   : > { %9983 = vmatpush1.bf16.msra.mxu0 %v12777_v62  ;;  %v10198_v62 = vld [vmem:[#allocation32] sm:$0x1] }
 0xb22   : > { %9984 = vmatprep.subr.bf16.mxu0 %v12782_v18 }
 0xb25   : > { %9985 = vmatpush1.bf16.msra.mxu0 %v12780_v35 }
 0xb26   : > { %9986 = vmatprep.subr.bf16.mxu0 %v12785_v14 }
 0xb29   : > { %9987 = vmatpush1.bf16.msra.mxu0 %v12783_v39 }
 0xb2a   : > { %9988 = vmatprep.subr.bf16.mxu0 %v12788_v2 }
 0xb2d   : > { %9989 = vmatpush1.bf16.msra.mxu0 %v12786_v59 }
 0xb2e   : > { %9990 = vmatprep.subr.bf16.mxu0 %v12791_v46 }
 0xb31   : > { %9991 = vmatpush1.bf16.msra.mxu0 %v12789_v49 }
 0xb32   : > { %9992 = vmatprep.subr.bf16.mxu0 %v12794_v33 }
 0xb35   : > { %9993 = vmatpush1.bf16.msra.mxu0 %v12792_v31 }
 0xb36   : > { %9994 = vmatprep.subr.bf16.mxu0 %v12797_v45  ;;  %v9514_v0 = vpop.f32.mrb[4].mxu1 }
 0xb37   : > { %v11792_v36 = vadd.f32 %v9514_v0, %v8938_v42  ;;  %v9516_v34 = vpop.f32.mrb[5].mxu1 }
 0xb38   : > { %v11793_v44 = vadd.f32 %v9516_v34, %v8942_v54  ;;  %v9518_v10 = vpop.f32.mrb[6].mxu1 }
 0xb39   : > { %9995 = vmatpush1.bf16.msra.mxu0 %v12795_v11  ;;  %v9523_v3 = vmax.f32 %v11792_v36, 0.0  ;;  %v9519_v13 = vpop.f32.mrb[7].mxu1 }
 0xb3a   : > { %9996 = vmatprep.subr.bf16.mxu0 %v12800_v61  ;;  %v9524_v28 = vmax.f32 %v11793_v44, 0.0 }
 0xb3b   : > { %v9527_v27 = vpack.c.bf16 %v9523_v3, %v9523_v3 }
 0xb3c   : > { %v9528_v48 = vpack.c.bf16 %v9524_v28, %v9524_v28 }
 0xb3d   : > { %9997 = vmatpush1.bf16.msra.mxu0 %v12798_v55 }
 0xb3e   : > { %9998 = vmatprep.mubr.bf16.mxu0 %v9528_v48 }
 0xb40   : > { %9999 = vmatmul.mubr.bf16.vlgmr.msra.gmra.mrb[4].mxu0 %v9527_v27 }
 0xc13   : > { %v10000_v6 = vpop.f32.mrb[4].mxu0 }
 0xc14   : > { %v11794_v41 = vadd.f32 %v10000_v6, %v9918_v15  ;;  %v10002_v58 = vpop.f32.mrb[5].mxu0 }
 0xc15   : > { %v11795_v19 = vadd.f32 %v10002_v58, %v9922_v38  ;;  %v10004_v53 = vpop.f32.mrb[6].mxu0 }
 0xc16   : > { %v10007_v12 = vmax.f32 %v11794_v41, 0.0  ;;  %v10005_v5 = vpop.f32.mrb[7].mxu0 }
 0xc17   : > { %v10008_v9 = vmax.f32 %v11795_v19, 0.0 }
 0xc18   : > { %v10009_v21 = vpack.c.bf16 %v10007_v12, %v10007_v12 }
 0xc19   : > { %v10010_v60 = vpack.c.bf16 %v10008_v9, %v10008_v9 }
 0xc1b   : > { %10172 = vmatprep.mubr.bf16.mxu1 %v10010_v60 }
 0xc1c   : > { %10173 = vmatmul.mubr.bf16.vlgmr.msra.gmra.mrb[8].mxu1 %v10009_v21 }
 0xc1d   : > { %11769 = vmatpush3.bf16.msra.mxu1 %v12817_v56  ;;  %11784 = vmatprep.mubr.msk.bf16.mxu1 %vm13405_vm4, %v13404_v29 }
 0xc1e   : > { %11770 = vmatprep.subr.bf16.mxu1 %v13404_v29 }
 0xc21   : > { %11771 = vmatpush3.bf16.msra.mxu1 %v12818_v17 }
 0xc22   : > { %11772 = vmatprep.subr.bf16.mxu1 %v13404_v29 }
 0xc25   : > { %11773 = vmatpush3.bf16.msra.mxu1 %v12819_v16 }
 0xc26   : > { %11774 = vmatprep.subr.bf16.mxu1 %v13404_v29 }
 0xc29   : > { %11775 = vmatpush3.bf16.msra.mxu1 %v12820_v52 }
 0xc2a   : > { %11776 = vmatprep.subr.bf16.mxu1 %v13404_v29 }
 0xc2d   : > { %11777 = vmatpush3.bf16.msra.mxu1 %v12821_v23 }
 0xc2e   : > { %11778 = vmatprep.subr.bf16.mxu1 %v13404_v29 }
 0xc31   : > { %11779 = vmatpush3.bf16.msra.mxu1 %v12822_v25 }
 0xc32   : > { %11780 = vmatprep.subr.bf16.mxu1 %v13404_v29 }
 0xc35   : > { %11781 = vmatpush3.bf16.msra.mxu1 %v12823_v24 }
 0xc36   : > { %11782 = vmatprep.subr.bf16.mxu1 %v13404_v29 }
 0xc39   : > { %11783 = vmatpush3.bf16.msra.mxu1 %v12824_v32 }
 0xcef   : > { %v11471_v63 = vpop.f32.mrb[8].mxu1 }
 0xcf0   : > { %v11472_v8 = vpop.f32.mrb[9].mxu1 }
 0xcf1   : > { %v11473_v47 = vadd.f32 %v11472_v8, %v11471_v63  ;;  %v11474_v4 = vpop.f32.mrb[10].mxu1 }
 0xcf2   : > { %v11475_v30 = vpop.f32.mrb[11].mxu1 }
 0xcf3   : > { %v10175_v20 = vadd.f32 %v11473_v47, %v10043_v50 }
 0xcf5   : > { %v10180_v7 = vmax.f32 %v10175_v20, 0.0 }
 0xcf7   : > { %v10181_v57 = vpack.c.bf16 %v10180_v7, %v10180_v7 }
 0xcf9   : > { %11785 = vmatmul.mubr.bf16.vlgmr.msra.gmra.mrb[12].mxu1 %v10181_v57 }
 0xdcc   : > { %v10281_v18 = vpop.f32.mrb[12].mxu1 }
 0xdcd   : > { %v10282_v35 = vadd.f32 %v10281_v18, %v10198_v62  ;;  %v11786_v14 = vpop.f32.mrb[13].mxu1 }
 0xdce   : > { %v10284_v39 = vpop.f32.mrb[14].mxu1 }
 0xdcf   : > { %10288 = vst.msk [vmem:[%s935_s7] sm:$0x1] %vm10287_vm5, %v10282_v35  ;;  %v11787_v2 = vpop.f32.mrb[15].mxu1 }
 0xdd0 PF: > { %s15784_s2 = sld [smem:[#allocation44_spill]]  ;;  %s15786_s25 = smov %s13371_s27 }
 0xdd1   : > { %s15788_s27 = smov %s15794_s4 }
 0xdd6   : > { %s40_s3 = sadd.s32 1, %s15784_s2   ;;  %s15785_s2 = smov %s13367_s26 }
 0xdd7   : > { %p37_p10 = scmp.ge.s32.totalorder %s40_s3, 6   ;;  %s15787_s26 = smov %s15790_s30 }
 0xdd9   :  { %39 = sbr.rel (!%p37_p10) target bundleno = 33 (0x21), region = 221 }
 0xde0   :  { %10306 = vsyncpa [#allocation8], 1 }
 0xde1   :  { %10308 = vsyncpa [#allocation8 + $0x1], 1 }
 0xde2   :  { %10309 = vsyncpa [#allocation10], 1 }
 0xde3   :  { %10310 = vsyncpa [#allocation13], 1 }
 0xde4   :  { %10311 = vsyncpa [#allocation16], 1 }
 0xde5   :  { %10312 = vsyncpa [#allocation19], 1 }
 0xde6   :  { %10313 = vsyncpa [#allocation22], 1 }
 0xde7   :  { %10314 = vsyncpa [#allocation25], 1 }
 0xde8   :  { %10315 = vsyncpa [#allocation28], 1 }
 0xde9   :  { %10316 = vsyncpa [#allocation31], 1 }

</bundles_post_ra>
